<compile_context>
chip_gen: v5e
topology: v5e:2x2
jax: 0.10.0
libtpu: 0.0.40
codegen_flags: <defaults>
</compile_context>

<pallas_src>
import jax
import jax.numpy as jnp
from jax.experimental import pallas as pl
from jax.experimental.pallas import tpu as pltpu


def _round_up(x, m):
    return ((x + m - 1) // m) * m


# ---------------------------------------------------------------------------
# Fused kernel: one grid step == one decode step.
# ---------------------------------------------------------------------------
def decoder_kernel(
    # per-step input
    x_emb_ref,      # (Bp, E)      embedded token for this step
    # resident inputs
    hinit_ref,      # (Bp, H)      initial hidden state
    enc_ref,        # (Bp, Lp, He) encoder outputs (zero padded)
    attb_ref,       # (1, Lp)      additive mask: 0 for valid L, -1e30 for padding
    w1_ref, b1_ref,          # (He, H), (1, H)
    w2_ref, b2_ref,          # (H, H),  (1, H)
    vw_ref,                  # (1, H)
    wih_c_ref, wih_e_ref,    # (3, He, H), (3, E, H)   gate-stacked GRU input weights
    bih_ref,                 # (3, 1, H)
    whh_ref, bhh_ref,        # (3, H, H), (3, 1, H)
    fc1_w_ref, fc1_b_ref,    # (H, E), (1, E)
    fc2_w_ref, fc2_b_ref,    # (E, Vp), (1, Vp)        (zero padded to 128 lanes)
    # outputs
    logits_ref,     # (Bp, Vp)     per-step logits (lane-dense)
    aw_ref,         # (Bp, Lp)     per-step attention weights (lane-dense)
    hout_ref,       # (Bp, H)      resident; final value written back once
    # scratch
    h_scr,          # (Bp, H)      carried hidden state
    s1_scr,         # (Bp, Lp, H)  cached W1(enc_output) + b1
):
    t = pl.program_id(0)
    Bp = hinit_ref.shape[0]

    @pl.when(t == 0)
    def _init():
        h_scr[...] = hinit_ref[...]
        w1 = w1_ref[...]
        b1 = b1_ref[...]
        # loop-invariant attention term, cached once (per-batch 2-D dots, no in-kernel reshape)
        for b in range(Bp):
            s1_scr[b] = jnp.dot(enc_ref[b], w1, preferred_element_type=jnp.float32) + b1

    x_emb = x_emb_ref[...]
    hprev = h_scr[...]
    enc = enc_ref[...]

    # ---------------- attention (layers == 1 -> sum over layers == hprev) ----------------
    s2 = jnp.dot(hprev, w2_ref[...], preferred_element_type=jnp.float32) + b2_ref[...]   # (Bp, H)
    score = jnp.tanh(s1_scr[...] + s2[:, None, :])                                       # (Bp, Lp, H)
    att = jnp.sum(score * vw_ref[...], axis=-1) + attb_ref[...]                          # (Bp, Lp)

    m = jnp.max(att, axis=-1, keepdims=True)
    e = jnp.exp(att - m)
    aw = e * pl.reciprocal(jnp.sum(e, axis=-1, keepdims=True), approx=True)              # (Bp, Lp)
    aw_ref[...] = aw

    ctx = jnp.sum(aw[:, :, None] * enc, axis=1)                                          # (Bp, He)

    # ---------------- GRU step (PyTorch equations, gate order r|z|n) ----------------
    def gi(g):
        return (jnp.dot(ctx, wih_c_ref[g], preferred_element_type=jnp.float32)
                + jnp.dot(x_emb, wih_e_ref[g], preferred_element_type=jnp.float32)
                + bih_ref[g])

    def gh(g):
        return jnp.dot(hprev, whh_ref[g], preferred_element_type=jnp.float32) + bhh_ref[g]

    r = jax.nn.sigmoid(gi(0) + gh(0))
    z = jax.nn.sigmoid(gi(1) + gh(1))
    n = jnp.tanh(gi(2) + r * gh(2))
    h_new = (1.0 - z) * n + z * hprev                                                    # (Bp, H)
    h_scr[...] = h_new
    hout_ref[...] = h_new

    # ---------------- FC head: Linear -> LeakyReLU(0.01) -> Linear ----------------
    y1 = jnp.dot(h_new, fc1_w_ref[...], preferred_element_type=jnp.float32) + fc1_b_ref[...]
    y1 = jnp.where(y1 > 0, y1, 0.01 * y1)
    logits_ref[...] = (jnp.dot(y1, fc2_w_ref[...], preferred_element_type=jnp.float32)
                       + fc2_b_ref[...])


# ---------------------------------------------------------------------------
# Parameters (deterministic, synthetic). GRU weights are gate-stacked: axis 0 = (r, z, n).
# ---------------------------------------------------------------------------
def make_params(output_dim, embed_dim, hidden_dim, enc_outstate_dim, key):
    ks = jax.random.split(key, 16)
    w = lambda k, shape: jax.random.normal(k, shape, jnp.float32) * 0.1
    H, E, He, V = hidden_dim, embed_dim, enc_outstate_dim, output_dim
    return dict(
        embedding=w(ks[0], (V, E)),
        # attention
        w1=w(ks[1], (He, H)), b1=w(ks[2], (1, H)),
        w2=w(ks[3], (H, H)), b2=w(ks[4], (1, H)),
        v_w=w(ks[5], (1, H)), v_b=w(ks[6], (1, 1)),
        # GRU, input = [context(He) | embed(E)], gate-stacked r|z|n
        wih_c=w(ks[7], (3, He, H)), wih_e=w(ks[8], (3, E, H)), bih=w(ks[9], (3, 1, H)),
        whh=w(ks[10], (3, H, H)), bhh=w(ks[11], (3, 1, H)),
        # FC head
        fc1_w=w(ks[12], (H, E)), fc1_b=w(ks[13], (1, E)),
        fc2_w=w(ks[14], (E, V)), fc2_b=w(ks[15], (1, V)),
    )


def _resident_spec(shape):
    n = len(shape)
    return pl.BlockSpec(shape, lambda t, _n=n: (0,) * _n)


# ---------------------------------------------------------------------------
# Fused T-step decode (teacher-forced tokens). One pallas_call for all steps.
# ---------------------------------------------------------------------------
def decoder_forward_fused(params, x_tok_seq, hidden, enc_output, hidden_dim):
    """
    x_tok_seq: (B, T) int32   hidden: (1, B, H) or None   enc_output: (B, L, He)
    Returns: logits_seq (T, B, V), hidden_out (1, B, H), aw_seq (T, B, L)
    """
    B, T = x_tok_seq.shape
    L, He = enc_output.shape[1], enc_output.shape[2]
    H = hidden_dim
    E = params["embedding"].shape[1]
    V = params["fc2_w"].shape[1]

    Bp = _round_up(B, 8)        # sublane-aligned batch
    Lp = _round_up(L, 128)      # lane-dense attention axis
    Vp = _round_up(V, 128)      # lane-dense vocab axis

    if hidden is None:
        hidden = jnp.zeros((1, B, H), jnp.float32)
    hinit = hidden[0]           # layers == 1: sum over layers == hidden[0]

    # glue: embedding gather + padding done in the wrapper
    x_emb_seq = params["embedding"][x_tok_seq]                  # (B, T, E)
    x_emb_seq = jnp.transpose(x_emb_seq, (1, 0, 2))             # (T, B, E)
    x_emb_seq = jnp.pad(x_emb_seq, ((0, 0), (0, Bp - B), (0, 0)))

    enc_pad = jnp.pad(enc_output, ((0, Bp - B), (0, Lp - L), (0, 0)))
    hinit_pad = jnp.pad(hinit, ((0, Bp - B), (0, 0)))
    att_bias = jnp.where(jnp.arange(Lp) < L, 0.0, -1e30).astype(jnp.float32)[None, :]

    fc2_w_pad = jnp.pad(params["fc2_w"], ((0, 0), (0, Vp - V)))
    fc2_b_pad = jnp.pad(params["fc2_b"], ((0, 0), (0, Vp - V)))

    in_specs = [
        pl.BlockSpec((None, Bp, E), lambda t: (t, 0, 0)),       # x_emb per step
        _resident_spec((Bp, H)),                                # hinit
        _resident_spec((Bp, Lp, He)),                           # encoder outputs
        _resident_spec((1, Lp)),                                # attention mask bias
        _resident_spec((He, H)), _resident_spec((1, H)),        # W1, b1
        _resident_spec((H, H)), _resident_spec((1, H)),         # W2, b2
        _resident_spec((1, H)),                                 # V weight (v_b dropped: softmax-invariant)
        _resident_spec((3, He, H)), _resident_spec((3, E, H)), _resident_spec((3, 1, H)),
        _resident_spec((3, H, H)), _resident_spec((3, 1, H)),
        _resident_spec((H, E)), _resident_spec((1, E)),
        _resident_spec((E, Vp)), _resident_spec((1, Vp)),
    ]
    out_specs = (
        pl.BlockSpec((None, Bp, Vp), lambda t: (t, 0, 0)),
        pl.BlockSpec((None, Bp, Lp), lambda t: (t, 0, 0)),
        pl.BlockSpec((Bp, H), lambda t: (0, 0)),
    )
    out_shape = (
        jax.ShapeDtypeStruct((T, Bp, Vp), jnp.float32),
        jax.ShapeDtypeStruct((T, Bp, Lp), jnp.float32),
        jax.ShapeDtypeStruct((Bp, H), jnp.float32),
    )
    scratch_shapes = [
        pltpu.VMEM((Bp, H), jnp.float32),        # carried hidden state
        pltpu.VMEM((Bp, Lp, H), jnp.float32),    # cached W1(enc)+b1
    ]

    # advisory cost hint for the XLA scheduler
    flops = 2 * Bp * Lp * He * H + T * (
        2 * Bp * H * H + 4 * Bp * Lp * H + 2 * Bp * Lp * He
        + 6 * Bp * (He + E + H) * H + 2 * Bp * H * E + 2 * Bp * E * Vp)
    transcendentals = T * Bp * (Lp * H + Lp + 3 * H)
    bytes_accessed = 4 * (
        x_emb_seq.size + hinit_pad.size + enc_pad.size + att_bias.size
        + sum(int(params[k].size) for k in ("w1", "b1", "w2", "b2", "v_w",
                                            "wih_c", "wih_e", "bih", "whh", "bhh",
                                            "fc1_w", "fc1_b"))
        + fc2_w_pad.size + fc2_b_pad.size
        + T * Bp * (Vp + Lp) + Bp * H)

    logits_pad, aw_pad, hout_pad = pl.pallas_call(
        decoder_kernel,
        out_shape=out_shape,
        grid_spec=pltpu.PrefetchScalarGridSpec(
            num_scalar_prefetch=0,
            grid=(T,),
            in_specs=in_specs,
            out_specs=out_specs,
            scratch_shapes=scratch_shapes,
        ),
        compiler_params=pltpu.CompilerParams(dimension_semantics=("arbitrary",)),
        cost_estimate=pl.CostEstimate(flops=int(flops),
                                      transcendentals=int(transcendentals),
                                      bytes_accessed=int(bytes_accessed)),
    )(x_emb_seq, hinit_pad, enc_pad, att_bias,
      params["w1"], params["b1"], params["w2"], params["b2"], params["v_w"],
      params["wih_c"], params["wih_e"], params["bih"], params["whh"], params["bhh"],
      params["fc1_w"], params["fc1_b"], fc2_w_pad, fc2_b_pad)

    logits_seq = logits_pad[:, :B, :V]
    aw_seq = aw_pad[:, :B, :L]
    h_out = hout_pad[:B][None]
    return logits_seq, h_out, aw_seq


def decoder_forward(params, x_tok, hidden, enc_output, hidden_dim):
    """Single decode step, matching the torch forward conventions:
    x_tok (B,1) -> (logits (B,V), hidden (1,B,H), attention_weights (B,L,1))."""
    logits_seq, h_out, aw_seq = decoder_forward_fused(params, x_tok, hidden, enc_output, hidden_dim)
    return logits_seq[0], h_out, aw_seq[0][:, :, None]


# ---------------------------------------------------------------------------
# Pure-JAX reference (same math, includes v_b) for correctness checking.
# ---------------------------------------------------------------------------
def _decoder_ref_step(params, x_emb, hprev, enc_output, H):
    hsum = hprev  # layers == 1
    s1 = enc_output @ params["w1"] + params["b1"]
    s2 = hsum @ params["w2"] + params["b2"]
    score = jnp.tanh(s1 + s2[:, None, :])
    att = jnp.sum(score * params["v_w"][None], axis=-1) + params["v_b"][0, 0]
    aw = jax.nn.softmax(att, axis=1)
    ctx = jnp.sum(aw[:, :, None] * enc_output, axis=1)

    def gi(g): return ctx @ params["wih_c"][g] + x_emb @ params["wih_e"][g] + params["bih"][g]
    def gh(g): return hprev @ params["whh"][g] + params["bhh"][g]

    r = jax.nn.sigmoid(gi(0) + gh(0))
    z = jax.nn.sigmoid(gi(1) + gh(1))
    n = jnp.tanh(gi(2) + r * gh(2))
    h_new = (1.0 - z) * n + z * hprev
    y1 = h_new @ params["fc1_w"] + params["fc1_b"]
    y1 = jnp.where(y1 > 0, y1, 0.01 * y1)
    logits = y1 @ params["fc2_w"] + params["fc2_b"]
    return logits, h_new, aw


def decoder_ref_fused(params, x_tok_seq, hidden, enc_output, hidden_dim):
    B, T = x_tok_seq.shape
    if hidden is None:
        hidden = jnp.zeros((1, B, hidden_dim), jnp.float32)
    h = hidden[0]
    logits_all, aw_all = [], []
    for t in range(T):
        x_emb = params["embedding"][x_tok_seq[:, t]]
        logits, h, aw = _decoder_ref_step(params, x_emb, h, enc_output, hidden_dim)
        logits_all.append(logits)
        aw_all.append(aw)
    return jnp.stack(logits_all, 0), h[None], jnp.stack(aw_all, 0)


if __name__ == "__main__":
    # Small, module-consistent shapes
    B, L, T = 2, 8, 4                 # batch, encoder max_length, fused decode steps
    output_dim, embed_dim, hidden_dim = 12, 16, 32
    enc_outstate_dim = hidden_dim     # default when use_attention and enc_outstate_dim=None
    layers = 1

    key = jax.random.PRNGKey(0)
    kp, kx, kh, ke = jax.random.split(key, 4)
    params = make_params(output_dim, embed_dim, hidden_dim, enc_outstate_dim, kp)

    x_tok_seq = jax.random.randint(kx, (B, T), 0, output_dim, dtype=jnp.int32)       # (B, T)
    hidden = jax.random.normal(kh, (layers, B, hidden_dim), jnp.float32)              # (layers, B, H)
    enc_output = jax.random.normal(ke, (B, L, enc_outstate_dim), jnp.float32)         # (B, L, He)

    # fused multi-step decode (one pallas_call for all T steps)
    logits_seq, h_out, aw_seq = decoder_forward_fused(params, x_tok_seq, hidden, enc_output, hidden_dim)
    jax.block_until_ready((logits_seq, h_out, aw_seq))

    logits_r, h_r, aw_r = decoder_ref_fused(params, x_tok_seq, hidden, enc_output, hidden_dim)

    assert logits_seq.shape == (T, B, output_dim)
    assert h_out.shape == (layers, B, hidden_dim)
    assert aw_seq.shape == (T, B, L)
    # tolerance accounts for pl.reciprocal(approx=True) in the softmax normalization
    assert jnp.allclose(logits_seq, logits_r, rtol=1e-2, atol=1e-2)
    assert jnp.allclose(h_out, h_r, rtol=1e-2, atol=1e-2)
    assert jnp.allclose(aw_seq, aw_r, rtol=1e-2, atol=1e-2)

    # single-step wrapper matching the torch module's forward signature
    lg1, h1, aw1 = decoder_forward(params, x_tok_seq[:, :1], hidden, enc_output, hidden_dim)
    jax.block_until_ready((lg1, h1, aw1))
    assert lg1.shape == (B, output_dim)
    assert h1.shape == (layers, B, hidden_dim)
    assert aw1.shape == (B, L, 1)
    assert jnp.allclose(lg1, logits_r[0], rtol=1e-2, atol=1e-2)

    print("KERNEL_OK")
</pallas_src>

<mosaic_0001>
module attributes {stable_mosaic.version = 11 : i64} {
  func.func @decoder_kernel(%arg0: i32, %arg1: memref<1x8x16xf32, #tpu.memory_space<vmem>>, %arg2: memref<8x32xf32, #tpu.memory_space<vmem>>, %arg3: memref<8x128x32xf32, #tpu.memory_space<vmem>>, %arg4: memref<1x128xf32, #tpu.memory_space<vmem>>, %arg5: memref<32x32xf32, #tpu.memory_space<vmem>>, %arg6: memref<1x32xf32, #tpu.memory_space<vmem>>, %arg7: memref<32x32xf32, #tpu.memory_space<vmem>>, %arg8: memref<1x32xf32, #tpu.memory_space<vmem>>, %arg9: memref<1x32xf32, #tpu.memory_space<vmem>>, %arg10: memref<3x32x32xf32, #tpu.memory_space<vmem>>, %arg11: memref<3x16x32xf32, #tpu.memory_space<vmem>>, %arg12: memref<3x1x32xf32, #tpu.memory_space<vmem>>, %arg13: memref<3x32x32xf32, #tpu.memory_space<vmem>>, %arg14: memref<3x1x32xf32, #tpu.memory_space<vmem>>, %arg15: memref<32x16xf32, #tpu.memory_space<vmem>>, %arg16: memref<1x16xf32, #tpu.memory_space<vmem>>, %arg17: memref<16x128xf32, #tpu.memory_space<vmem>>, %arg18: memref<1x128xf32, #tpu.memory_space<vmem>>, %arg19: memref<1x8x128xf32, #tpu.memory_space<vmem>>, %arg20: memref<1x8x128xf32, #tpu.memory_space<vmem>>, %arg21: memref<8x32xf32, #tpu.memory_space<vmem>>, %arg22: memref<8x32xf32, #tpu.memory_space<vmem>>, %arg23: memref<8x128x32xf32, #tpu.memory_space<vmem>>) attributes {dimension_semantics = [#tpu.dimension_semantics<arbitrary>], iteration_bounds = array<i64: 4>, scalar_prefetch = 0 : i64, scratch_operands = 2 : i64, tpu.core_type = #tpu.core_type<tc>, window_params = [{transform_indices = @transform_0, window_bounds = array<i64: 1, 8, 16>}, {pipeline_mode = #tpu.pipeline_mode<synchronous>, transform_indices = @transform_1, window_bounds = array<i64: 8, 32>}, {pipeline_mode = #tpu.pipeline_mode<synchronous>, transform_indices = @transform_2, window_bounds = array<i64: 8, 128, 32>}, {pipeline_mode = #tpu.pipeline_mode<synchronous>, transform_indices = @transform_3, window_bounds = array<i64: 1, 128>}, {pipeline_mode = #tpu.pipeline_mode<synchronous>, transform_indices = @transform_4, window_bounds = array<i64: 32, 32>}, {pipeline_mode = #tpu.pipeline_mode<synchronous>, transform_indices = @transform_5, window_bounds = array<i64: 1, 32>}, {pipeline_mode = #tpu.pipeline_mode<synchronous>, transform_indices = @transform_6, window_bounds = array<i64: 32, 32>}, {pipeline_mode = #tpu.pipeline_mode<synchronous>, transform_indices = @transform_7, window_bounds = array<i64: 1, 32>}, {pipeline_mode = #tpu.pipeline_mode<synchronous>, transform_indices = @transform_8, window_bounds = array<i64: 1, 32>}, {pipeline_mode = #tpu.pipeline_mode<synchronous>, transform_indices = @transform_9, window_bounds = array<i64: 3, 32, 32>}, {pipeline_mode = #tpu.pipeline_mode<synchronous>, transform_indices = @transform_10, window_bounds = array<i64: 3, 16, 32>}, {pipeline_mode = #tpu.pipeline_mode<synchronous>, transform_indices = @transform_11, window_bounds = array<i64: 3, 1, 32>}, {pipeline_mode = #tpu.pipeline_mode<synchronous>, transform_indices = @transform_12, window_bounds = array<i64: 3, 32, 32>}, {pipeline_mode = #tpu.pipeline_mode<synchronous>, transform_indices = @transform_13, window_bounds = array<i64: 3, 1, 32>}, {pipeline_mode = #tpu.pipeline_mode<synchronous>, transform_indices = @transform_14, window_bounds = array<i64: 32, 16>}, {pipeline_mode = #tpu.pipeline_mode<synchronous>, transform_indices = @transform_15, window_bounds = array<i64: 1, 16>}, {pipeline_mode = #tpu.pipeline_mode<synchronous>, transform_indices = @transform_16, window_bounds = array<i64: 16, 128>}, {pipeline_mode = #tpu.pipeline_mode<synchronous>, transform_indices = @transform_17, window_bounds = array<i64: 1, 128>}, {transform_indices = @transform_18, window_bounds = array<i64: 1, 8, 128>}, {transform_indices = @transform_19, window_bounds = array<i64: 1, 8, 128>}, {pipeline_mode = #tpu.pipeline_mode<synchronous>, transform_indices = @transform_20, window_bounds = array<i64: 8, 32>}]} {
    %c0_i32 = arith.constant 0 : i32
    %0 = arith.cmpi eq, %arg0, %c0_i32 : i32
    %1 = arith.extui %0 : i1 to i32
    %c0_i32_0 = arith.constant 0 : i32
    %2 = arith.cmpi ne, %1, %c0_i32_0 : i32
    scf.if %2 {
      %c0_100 = arith.constant 0 : index
      %c0_101 = arith.constant 0 : index
      %136 = vector.load %arg2[%c0_100, %c0_101] : memref<8x32xf32, #tpu.memory_space<vmem>>, vector<8x32xf32>
      %c0_102 = arith.constant 0 : index
      %c0_103 = arith.constant 0 : index
      %137 = vector.load %arg22[%c0_102, %c0_103] : memref<8x32xf32, #tpu.memory_space<vmem>>, vector<8x32xf32>
      tpu.vector_store %arg22[%c0_102, %c0_103], %136 {strides = array<i32>} : memref<8x32xf32, #tpu.memory_space<vmem>>, vector<8x32xf32>,
      %c0_104 = arith.constant 0 : index
      %c0_105 = arith.constant 0 : index
      %138 = vector.load %arg5[%c0_104, %c0_105] : memref<32x32xf32, #tpu.memory_space<vmem>>, vector<32x32xf32>
      %c0_106 = arith.constant 0 : index
      %c0_107 = arith.constant 0 : index
      %139 = vector.load %arg6[%c0_106, %c0_107] : memref<1x32xf32, #tpu.memory_space<vmem>>, vector<1x32xf32>
      %c0_108 = arith.constant 0 : index
      %c0_109 = arith.constant 0 : index
      %c0_110 = arith.constant 0 : index
      %140 = vector.load %arg3[%c0_108, %c0_109, %c0_110] : memref<8x128x32xf32, #tpu.memory_space<vmem>>, vector<1x128x32xf32>
      %141 = vector.shape_cast %140 : vector<1x128x32xf32> to vector<128x32xf32>
      %cst_111 = arith.constant dense<0.000000e+00> : vector<128x32xf32>
      %142 = tpu.matmul %141, %138, %cst_111 {dimension_numbers = #tpu.dot_dimension_numbers<[1], [0], [0], [1], [0, 0, 1, 1], [], []>} : vector<128x32xf32>, vector<32x32xf32>, vector<128x32xf32> -> vector<128x32xf32>
      %143 = vector.broadcast %139 : vector<1x32xf32> to vector<128x32xf32>
      %144 = arith.addf %142, %143 : vector<128x32xf32>
      %c0_112 = arith.constant 0 : index
      %c0_113 = arith.constant 0 : index
      %c0_114 = arith.constant 0 : index
      %145 = vector.load %arg23[%c0_112, %c0_113, %c0_114] : memref<8x128x32xf32, #tpu.memory_space<vmem>>, vector<1x128x32xf32>
      %146 = vector.shape_cast %145 : vector<1x128x32xf32> to vector<128x32xf32>
      %147 = vector.shape_cast %144 : vector<128x32xf32> to vector<1x128x32xf32>
      tpu.vector_store %arg23[%c0_112, %c0_113, %c0_114], %147 {strides = array<i32>} : memref<8x128x32xf32, #tpu.memory_space<vmem>>, vector<1x128x32xf32>,
      %c1_115 = arith.constant 1 : index
      %c0_116 = arith.constant 0 : index
      %c0_117 = arith.constant 0 : index
      %148 = vector.load %arg3[%c1_115, %c0_116, %c0_117] : memref<8x128x32xf32, #tpu.memory_space<vmem>>, vector<1x128x32xf32>
      %149 = vector.shape_cast %148 : vector<1x128x32xf32> to vector<128x32xf32>
      %cst_118 = arith.constant dense<0.000000e+00> : vector<128x32xf32>
      %150 = tpu.matmul %149, %138, %cst_118 {dimension_numbers = #tpu.dot_dimension_numbers<[1], [0], [0], [1], [0, 0, 1, 1], [], []>} : vector<128x32xf32>, vector<32x32xf32>, vector<128x32xf32> -> vector<128x32xf32>
      %151 = vector.broadcast %139 : vector<1x32xf32> to vector<128x32xf32>
      %152 = arith.addf %150, %151 : vector<128x32xf32>
      %c1_119 = arith.constant 1 : index
      %c0_120 = arith.constant 0 : index
      %c0_121 = arith.constant 0 : index
      %153 = vector.load %arg23[%c1_119, %c0_120, %c0_121] : memref<8x128x32xf32, #tpu.memory_space<vmem>>, vector<1x128x32xf32>
      %154 = vector.shape_cast %153 : vector<1x128x32xf32> to vector<128x32xf32>
      %155 = vector.shape_cast %152 : vector<128x32xf32> to vector<1x128x32xf32>
      tpu.vector_store %arg23[%c1_119, %c0_120, %c0_121], %155 {strides = array<i32>} : memref<8x128x32xf32, #tpu.memory_space<vmem>>, vector<1x128x32xf32>,
      %c2_122 = arith.constant 2 : index
      %c0_123 = arith.constant 0 : index
      %c0_124 = arith.constant 0 : index
      %156 = vector.load %arg3[%c2_122, %c0_123, %c0_124] : memref<8x128x32xf32, #tpu.memory_space<vmem>>, vector<1x128x32xf32>
      %157 = vector.shape_cast %156 : vector<1x128x32xf32> to vector<128x32xf32>
      %cst_125 = arith.constant dense<0.000000e+00> : vector<128x32xf32>
      %158 = tpu.matmul %157, %138, %cst_125 {dimension_numbers = #tpu.dot_dimension_numbers<[1], [0], [0], [1], [0, 0, 1, 1], [], []>} : vector<128x32xf32>, vector<32x32xf32>, vector<128x32xf32> -> vector<128x32xf32>
      %159 = vector.broadcast %139 : vector<1x32xf32> to vector<128x32xf32>
      %160 = arith.addf %158, %159 : vector<128x32xf32>
      %c2_126 = arith.constant 2 : index
      %c0_127 = arith.constant 0 : index
      %c0_128 = arith.constant 0 : index
      %161 = vector.load %arg23[%c2_126, %c0_127, %c0_128] : memref<8x128x32xf32, #tpu.memory_space<vmem>>, vector<1x128x32xf32>
      %162 = vector.shape_cast %161 : vector<1x128x32xf32> to vector<128x32xf32>
      %163 = vector.shape_cast %160 : vector<128x32xf32> to vector<1x128x32xf32>
      tpu.vector_store %arg23[%c2_126, %c0_127, %c0_128], %163 {strides = array<i32>} : memref<8x128x32xf32, #tpu.memory_space<vmem>>, vector<1x128x32xf32>,
      %c3 = arith.constant 3 : index
      %c0_129 = arith.constant 0 : index
      %c0_130 = arith.constant 0 : index
      %164 = vector.load %arg3[%c3, %c0_129, %c0_130] : memref<8x128x32xf32, #tpu.memory_space<vmem>>, vector<1x128x32xf32>
      %165 = vector.shape_cast %164 : vector<1x128x32xf32> to vector<128x32xf32>
      %cst_131 = arith.constant dense<0.000000e+00> : vector<128x32xf32>
      %166 = tpu.matmul %165, %138, %cst_131 {dimension_numbers = #tpu.dot_dimension_numbers<[1], [0], [0], [1], [0, 0, 1, 1], [], []>} : vector<128x32xf32>, vector<32x32xf32>, vector<128x32xf32> -> vector<128x32xf32>
      %167 = vector.broadcast %139 : vector<1x32xf32> to vector<128x32xf32>
      %168 = arith.addf %166, %167 : vector<128x32xf32>
      %c3_132 = arith.constant 3 : index
      %c0_133 = arith.constant 0 : index
      %c0_134 = arith.constant 0 : index
      %169 = vector.load %arg23[%c3_132, %c0_133, %c0_134] : memref<8x128x32xf32, #tpu.memory_space<vmem>>, vector<1x128x32xf32>
      %170 = vector.shape_cast %169 : vector<1x128x32xf32> to vector<128x32xf32>
      %171 = vector.shape_cast %168 : vector<128x32xf32> to vector<1x128x32xf32>
      tpu.vector_store %arg23[%c3_132, %c0_133, %c0_134], %171 {strides = array<i32>} : memref<8x128x32xf32, #tpu.memory_space<vmem>>, vector<1x128x32xf32>,
      %c4 = arith.constant 4 : index
      %c0_135 = arith.constant 0 : index
      %c0_136 = arith.constant 0 : index
      %172 = vector.load %arg3[%c4, %c0_135, %c0_136] : memref<8x128x32xf32, #tpu.memory_space<vmem>>, vector<1x128x32xf32>
      %173 = vector.shape_cast %172 : vector<1x128x32xf32> to vector<128x32xf32>
      %cst_137 = arith.constant dense<0.000000e+00> : vector<128x32xf32>
      %174 = tpu.matmul %173, %138, %cst_137 {dimension_numbers = #tpu.dot_dimension_numbers<[1], [0], [0], [1], [0, 0, 1, 1], [], []>} : vector<128x32xf32>, vector<32x32xf32>, vector<128x32xf32> -> vector<128x32xf32>
      %175 = vector.broadcast %139 : vector<1x32xf32> to vector<128x32xf32>
      %176 = arith.addf %174, %175 : vector<128x32xf32>
      %c4_138 = arith.constant 4 : index
      %c0_139 = arith.constant 0 : index
      %c0_140 = arith.constant 0 : index
      %177 = vector.load %arg23[%c4_138, %c0_139, %c0_140] : memref<8x128x32xf32, #tpu.memory_space<vmem>>, vector<1x128x32xf32>
      %178 = vector.shape_cast %177 : vector<1x128x32xf32> to vector<128x32xf32>
      %179 = vector.shape_cast %176 : vector<128x32xf32> to vector<1x128x32xf32>
      tpu.vector_store %arg23[%c4_138, %c0_139, %c0_140], %179 {strides = array<i32>} : memref<8x128x32xf32, #tpu.memory_space<vmem>>, vector<1x128x32xf32>,
      %c5 = arith.constant 5 : index
      %c0_141 = arith.constant 0 : index
      %c0_142 = arith.constant 0 : index
      %180 = vector.load %arg3[%c5, %c0_141, %c0_142] : memref<8x128x32xf32, #tpu.memory_space<vmem>>, vector<1x128x32xf32>
      %181 = vector.shape_cast %180 : vector<1x128x32xf32> to vector<128x32xf32>
      %cst_143 = arith.constant dense<0.000000e+00> : vector<128x32xf32>
      %182 = tpu.matmul %181, %138, %cst_143 {dimension_numbers = #tpu.dot_dimension_numbers<[1], [0], [0], [1], [0, 0, 1, 1], [], []>} : vector<128x32xf32>, vector<32x32xf32>, vector<128x32xf32> -> vector<128x32xf32>
      %183 = vector.broadcast %139 : vector<1x32xf32> to vector<128x32xf32>
      %184 = arith.addf %182, %183 : vector<128x32xf32>
      %c5_144 = arith.constant 5 : index
      %c0_145 = arith.constant 0 : index
      %c0_146 = arith.constant 0 : index
      %185 = vector.load %arg23[%c5_144, %c0_145, %c0_146] : memref<8x128x32xf32, #tpu.memory_space<vmem>>, vector<1x128x32xf32>
      %186 = vector.shape_cast %185 : vector<1x128x32xf32> to vector<128x32xf32>
      %187 = vector.shape_cast %184 : vector<128x32xf32> to vector<1x128x32xf32>
      tpu.vector_store %arg23[%c5_144, %c0_145, %c0_146], %187 {strides = array<i32>} : memref<8x128x32xf32, #tpu.memory_space<vmem>>, vector<1x128x32xf32>,
      %c6 = arith.constant 6 : index
      %c0_147 = arith.constant 0 : index
      %c0_148 = arith.constant 0 : index
      %188 = vector.load %arg3[%c6, %c0_147, %c0_148] : memref<8x128x32xf32, #tpu.memory_space<vmem>>, vector<1x128x32xf32>
      %189 = vector.shape_cast %188 : vector<1x128x32xf32> to vector<128x32xf32>
      %cst_149 = arith.constant dense<0.000000e+00> : vector<128x32xf32>
      %190 = tpu.matmul %189, %138, %cst_149 {dimension_numbers = #tpu.dot_dimension_numbers<[1], [0], [0], [1], [0, 0, 1, 1], [], []>} : vector<128x32xf32>, vector<32x32xf32>, vector<128x32xf32> -> vector<128x32xf32>
      %191 = vector.broadcast %139 : vector<1x32xf32> to vector<128x32xf32>
      %192 = arith.addf %190, %191 : vector<128x32xf32>
      %c6_150 = arith.constant 6 : index
      %c0_151 = arith.constant 0 : index
      %c0_152 = arith.constant 0 : index
      %193 = vector.load %arg23[%c6_150, %c0_151, %c0_152] : memref<8x128x32xf32, #tpu.memory_space<vmem>>, vector<1x128x32xf32>
      %194 = vector.shape_cast %193 : vector<1x128x32xf32> to vector<128x32xf32>
      %195 = vector.shape_cast %192 : vector<128x32xf32> to vector<1x128x32xf32>
      tpu.vector_store %arg23[%c6_150, %c0_151, %c0_152], %195 {strides = array<i32>} : memref<8x128x32xf32, #tpu.memory_space<vmem>>, vector<1x128x32xf32>,
      %c7 = arith.constant 7 : index
      %c0_153 = arith.constant 0 : index
      %c0_154 = arith.constant 0 : index
      %196 = vector.load %arg3[%c7, %c0_153, %c0_154] : memref<8x128x32xf32, #tpu.memory_space<vmem>>, vector<1x128x32xf32>
      %197 = vector.shape_cast %196 : vector<1x128x32xf32> to vector<128x32xf32>
      %cst_155 = arith.constant dense<0.000000e+00> : vector<128x32xf32>
      %198 = tpu.matmul %197, %138, %cst_155 {dimension_numbers = #tpu.dot_dimension_numbers<[1], [0], [0], [1], [0, 0, 1, 1], [], []>} : vector<128x32xf32>, vector<32x32xf32>, vector<128x32xf32> -> vector<128x32xf32>
      %199 = vector.broadcast %139 : vector<1x32xf32> to vector<128x32xf32>
      %200 = arith.addf %198, %199 : vector<128x32xf32>
      %c7_156 = arith.constant 7 : index
      %c0_157 = arith.constant 0 : index
      %c0_158 = arith.constant 0 : index
      %201 = vector.load %arg23[%c7_156, %c0_157, %c0_158] : memref<8x128x32xf32, #tpu.memory_space<vmem>>, vector<1x128x32xf32>
      %202 = vector.shape_cast %201 : vector<1x128x32xf32> to vector<128x32xf32>
      %203 = vector.shape_cast %200 : vector<128x32xf32> to vector<1x128x32xf32>
      tpu.vector_store %arg23[%c7_156, %c0_157, %c0_158], %203 {strides = array<i32>} : memref<8x128x32xf32, #tpu.memory_space<vmem>>, vector<1x128x32xf32>,
    } else {
    }
    %c0 = arith.constant 0 : index
    %c0_1 = arith.constant 0 : index
    %c0_2 = arith.constant 0 : index
    %3 = vector.load %arg1[%c0, %c0_1, %c0_2] : memref<1x8x16xf32, #tpu.memory_space<vmem>>, vector<1x8x16xf32>
    %4 = vector.shape_cast %3 : vector<1x8x16xf32> to vector<8x16xf32>
    %c0_3 = arith.constant 0 : index
    %c0_4 = arith.constant 0 : index
    %5 = vector.load %arg22[%c0_3, %c0_4] : memref<8x32xf32, #tpu.memory_space<vmem>>, vector<8x32xf32>
    %c0_5 = arith.constant 0 : index
    %c0_6 = arith.constant 0 : index
    %c0_7 = arith.constant 0 : index
    %6 = vector.load %arg3[%c0_5, %c0_6, %c0_7] : memref<8x128x32xf32, #tpu.memory_space<vmem>>, vector<8x128x32xf32>
    %c0_8 = arith.constant 0 : index
    %c0_9 = arith.constant 0 : index
    %7 = vector.load %arg7[%c0_8, %c0_9] : memref<32x32xf32, #tpu.memory_space<vmem>>, vector<32x32xf32>
    %cst = arith.constant dense<0.000000e+00> : vector<8x32xf32>
    %8 = tpu.matmul %5, %7, %cst {dimension_numbers = #tpu.dot_dimension_numbers<[1], [0], [0], [1], [0, 0, 1, 1], [], []>} : vector<8x32xf32>, vector<32x32xf32>, vector<8x32xf32> -> vector<8x32xf32>
    %c0_10 = arith.constant 0 : index
    %c0_11 = arith.constant 0 : index
    %9 = vector.load %arg8[%c0_10, %c0_11] : memref<1x32xf32, #tpu.memory_space<vmem>>, vector<1x32xf32>
    %10 = vector.broadcast %9 : vector<1x32xf32> to vector<8x32xf32>
    %11 = arith.addf %8, %10 : vector<8x32xf32>
    %c0_12 = arith.constant 0 : index
    %c0_13 = arith.constant 0 : index
    %c0_14 = arith.constant 0 : index
    %12 = vector.load %arg23[%c0_12, %c0_13, %c0_14] : memref<8x128x32xf32, #tpu.memory_space<vmem>>, vector<8x128x32xf32>
    %13 = vector.shape_cast %11 : vector<8x32xf32> to vector<8x1x32xf32>
    %14 = vector.broadcast %13 : vector<8x1x32xf32> to vector<8x128x32xf32>
    %15 = arith.addf %12, %14 : vector<8x128x32xf32>
    %16 = math.tanh %15 : vector<8x128x32xf32>
    %c0_15 = arith.constant 0 : index
    %c0_16 = arith.constant 0 : index
    %17 = vector.load %arg9[%c0_15, %c0_16] : memref<1x32xf32, #tpu.memory_space<vmem>>, vector<1x32xf32>
    %18 = vector.shape_cast %17 : vector<1x32xf32> to vector<1x1x32xf32>
    %19 = vector.broadcast %18 : vector<1x1x32xf32> to vector<8x128x32xf32>
    %20 = arith.mulf %16, %19 : vector<8x128x32xf32>
    %cst_17 = arith.constant dense<0.000000e+00> : vector<8x128xf32>
    %21 = vector.multi_reduction <add>, %20, %cst_17 [2] : vector<8x128x32xf32> to vector<8x128xf32>
    %c0_18 = arith.constant 0 : index
    %c0_19 = arith.constant 0 : index
    %22 = vector.load %arg4[%c0_18, %c0_19] : memref<1x128xf32, #tpu.memory_space<vmem>>, vector<1x128xf32>
    %23 = vector.broadcast %22 : vector<1x128xf32> to vector<8x128xf32>
    %24 = arith.addf %21, %23 : vector<8x128xf32>
    %cst_20 = arith.constant dense<0xFF800000> : vector<8xf32>
    %25 = vector.multi_reduction <maximumf>, %24, %cst_20 [1] : vector<8x128xf32> to vector<8xf32>
    %26 = vector.shape_cast %25 : vector<8xf32> to vector<8x1xf32>
    %27 = vector.broadcast %26 : vector<8x1xf32> to vector<8x128xf32>
    %28 = arith.subf %24, %27 : vector<8x128xf32>
    %29 = math.exp %28 : vector<8x128xf32>
    %cst_21 = arith.constant dense<0.000000e+00> : vector<8xf32>
    %30 = vector.multi_reduction <add>, %29, %cst_21 [1] : vector<8x128xf32> to vector<8xf32>
    %31 = vector.shape_cast %30 : vector<8xf32> to vector<8x1xf32>
    %32 = tpu.reciprocal %31 {approx = true} : vector<8x1xf32> -> vector<8x1xf32>
    %33 = vector.broadcast %32 : vector<8x1xf32> to vector<8x128xf32>
    %34 = arith.mulf %29, %33 : vector<8x128xf32>
    %c0_22 = arith.constant 0 : index
    %c0_23 = arith.constant 0 : index
    %c0_24 = arith.constant 0 : index
    %35 = vector.load %arg20[%c0_22, %c0_23, %c0_24] : memref<1x8x128xf32, #tpu.memory_space<vmem>>, vector<1x8x128xf32>
    %36 = vector.shape_cast %35 : vector<1x8x128xf32> to vector<8x128xf32>
    %37 = vector.shape_cast %34 : vector<8x128xf32> to vector<1x8x128xf32>
    tpu.vector_store %arg20[%c0_22, %c0_23, %c0_24], %37 {strides = array<i32>} : memref<1x8x128xf32, #tpu.memory_space<vmem>>, vector<1x8x128xf32>,
    %38 = vector.shape_cast %34 : vector<8x128xf32> to vector<8x128x1xf32>
    %39 = vector.broadcast %38 : vector<8x128x1xf32> to vector<8x128x32xf32>
    %40 = arith.mulf %39, %6 : vector<8x128x32xf32>
    %cst_25 = arith.constant dense<0.000000e+00> : vector<8x32xf32>
    %41 = vector.multi_reduction <add>, %40, %cst_25 [1] : vector<8x128x32xf32> to vector<8x32xf32>
    %c0_26 = arith.constant 0 : index
    %c0_27 = arith.constant 0 : index
    %c0_28 = arith.constant 0 : index
    %42 = vector.load %arg10[%c0_26, %c0_27, %c0_28] : memref<3x32x32xf32, #tpu.memory_space<vmem>>, vector<1x32x32xf32>
    %43 = vector.shape_cast %42 : vector<1x32x32xf32> to vector<32x32xf32>
    %cst_29 = arith.constant dense<0.000000e+00> : vector<8x32xf32>
    %44 = tpu.matmul %41, %43, %cst_29 {dimension_numbers = #tpu.dot_dimension_numbers<[1], [0], [0], [1], [0, 0, 1, 1], [], []>} : vector<8x32xf32>, vector<32x32xf32>, vector<8x32xf32> -> vector<8x32xf32>
    %c0_30 = arith.constant 0 : index
    %c0_31 = arith.constant 0 : index
    %c0_32 = arith.constant 0 : index
    %45 = vector.load %arg11[%c0_30, %c0_31, %c0_32] : memref<3x16x32xf32, #tpu.memory_space<vmem>>, vector<1x16x32xf32>
    %46 = vector.shape_cast %45 : vector<1x16x32xf32> to vector<16x32xf32>
    %cst_33 = arith.constant dense<0.000000e+00> : vector<8x32xf32>
    %47 = tpu.matmul %4, %46, %cst_33 {dimension_numbers = #tpu.dot_dimension_numbers<[1], [0], [0], [1], [0, 0, 1, 1], [], []>} : vector<8x16xf32>, vector<16x32xf32>, vector<8x32xf32> -> vector<8x32xf32>
    %48 = arith.addf %44, %47 : vector<8x32xf32>
    %c0_34 = arith.constant 0 : index
    %c0_35 = arith.constant 0 : index
    %c0_36 = arith.constant 0 : index
    %49 = vector.load %arg12[%c0_34, %c0_35, %c0_36] : memref<3x1x32xf32, #tpu.memory_space<vmem>>, vector<1x1x32xf32>
    %50 = vector.shape_cast %49 : vector<1x1x32xf32> to vector<1x32xf32>
    %51 = vector.broadcast %50 : vector<1x32xf32> to vector<8x32xf32>
    %52 = arith.addf %48, %51 : vector<8x32xf32>
    %c0_37 = arith.constant 0 : index
    %c0_38 = arith.constant 0 : index
    %c0_39 = arith.constant 0 : index
    %53 = vector.load %arg13[%c0_37, %c0_38, %c0_39] : memref<3x32x32xf32, #tpu.memory_space<vmem>>, vector<1x32x32xf32>
    %54 = vector.shape_cast %53 : vector<1x32x32xf32> to vector<32x32xf32>
    %cst_40 = arith.constant dense<0.000000e+00> : vector<8x32xf32>
    %55 = tpu.matmul %5, %54, %cst_40 {dimension_numbers = #tpu.dot_dimension_numbers<[1], [0], [0], [1], [0, 0, 1, 1], [], []>} : vector<8x32xf32>, vector<32x32xf32>, vector<8x32xf32> -> vector<8x32xf32>
    %c0_41 = arith.constant 0 : index
    %c0_42 = arith.constant 0 : index
    %c0_43 = arith.constant 0 : index
    %56 = vector.load %arg14[%c0_41, %c0_42, %c0_43] : memref<3x1x32xf32, #tpu.memory_space<vmem>>, vector<1x1x32xf32>
    %57 = vector.shape_cast %56 : vector<1x1x32xf32> to vector<1x32xf32>
    %58 = vector.broadcast %57 : vector<1x32xf32> to vector<8x32xf32>
    %59 = arith.addf %55, %58 : vector<8x32xf32>
    %60 = arith.addf %52, %59 : vector<8x32xf32>
    %61 = arith.negf %60 : vector<8x32xf32>
    %62 = math.exp %61 : vector<8x32xf32>
    %cst_44 = arith.constant 1.000000e+00 : f32
    %63 = vector.broadcast %cst_44 : f32 to vector<8x32xf32>
    %64 = arith.addf %63, %62 : vector<8x32xf32>
    %65 = arith.divf %63, %64 : vector<8x32xf32>
    %c1 = arith.constant 1 : index
    %c0_45 = arith.constant 0 : index
    %c0_46 = arith.constant 0 : index
    %66 = vector.load %arg10[%c1, %c0_45, %c0_46] : memref<3x32x32xf32, #tpu.memory_space<vmem>>, vector<1x32x32xf32>
    %67 = vector.shape_cast %66 : vector<1x32x32xf32> to vector<32x32xf32>
    %cst_47 = arith.constant dense<0.000000e+00> : vector<8x32xf32>
    %68 = tpu.matmul %41, %67, %cst_47 {dimension_numbers = #tpu.dot_dimension_numbers<[1], [0], [0], [1], [0, 0, 1, 1], [], []>} : vector<8x32xf32>, vector<32x32xf32>, vector<8x32xf32> -> vector<8x32xf32>
    %c1_48 = arith.constant 1 : index
    %c0_49 = arith.constant 0 : index
    %c0_50 = arith.constant 0 : index
    %69 = vector.load %arg11[%c1_48, %c0_49, %c0_50] : memref<3x16x32xf32, #tpu.memory_space<vmem>>, vector<1x16x32xf32>
    %70 = vector.shape_cast %69 : vector<1x16x32xf32> to vector<16x32xf32>
    %cst_51 = arith.constant dense<0.000000e+00> : vector<8x32xf32>
    %71 = tpu.matmul %4, %70, %cst_51 {dimension_numbers = #tpu.dot_dimension_numbers<[1], [0], [0], [1], [0, 0, 1, 1], [], []>} : vector<8x16xf32>, vector<16x32xf32>, vector<8x32xf32> -> vector<8x32xf32>
    %72 = arith.addf %68, %71 : vector<8x32xf32>
    %c1_52 = arith.constant 1 : index
    %c0_53 = arith.constant 0 : index
    %c0_54 = arith.constant 0 : index
    %73 = vector.load %arg12[%c1_52, %c0_53, %c0_54] : memref<3x1x32xf32, #tpu.memory_space<vmem>>, vector<1x1x32xf32>
    %74 = vector.shape_cast %73 : vector<1x1x32xf32> to vector<1x32xf32>
    %75 = vector.broadcast %74 : vector<1x32xf32> to vector<8x32xf32>
    %76 = arith.addf %72, %75 : vector<8x32xf32>
    %c1_55 = arith.constant 1 : index
    %c0_56 = arith.constant 0 : index
    %c0_57 = arith.constant 0 : index
    %77 = vector.load %arg13[%c1_55, %c0_56, %c0_57] : memref<3x32x32xf32, #tpu.memory_space<vmem>>, vector<1x32x32xf32>
    %78 = vector.shape_cast %77 : vector<1x32x32xf32> to vector<32x32xf32>
    %cst_58 = arith.constant dense<0.000000e+00> : vector<8x32xf32>
    %79 = tpu.matmul %5, %78, %cst_58 {dimension_numbers = #tpu.dot_dimension_numbers<[1], [0], [0], [1], [0, 0, 1, 1], [], []>} : vector<8x32xf32>, vector<32x32xf32>, vector<8x32xf32> -> vector<8x32xf32>
    %c1_59 = arith.constant 1 : index
    %c0_60 = arith.constant 0 : index
    %c0_61 = arith.constant 0 : index
    %80 = vector.load %arg14[%c1_59, %c0_60, %c0_61] : memref<3x1x32xf32, #tpu.memory_space<vmem>>, vector<1x1x32xf32>
    %81 = vector.shape_cast %80 : vector<1x1x32xf32> to vector<1x32xf32>
    %82 = vector.broadcast %81 : vector<1x32xf32> to vector<8x32xf32>
    %83 = arith.addf %79, %82 : vector<8x32xf32>
    %84 = arith.addf %76, %83 : vector<8x32xf32>
    %85 = arith.negf %84 : vector<8x32xf32>
    %86 = math.exp %85 : vector<8x32xf32>
    %cst_62 = arith.constant 1.000000e+00 : f32
    %87 = vector.broadcast %cst_62 : f32 to vector<8x32xf32>
    %88 = arith.addf %87, %86 : vector<8x32xf32>
    %89 = arith.divf %87, %88 : vector<8x32xf32>
    %c2 = arith.constant 2 : index
    %c0_63 = arith.constant 0 : index
    %c0_64 = arith.constant 0 : index
    %90 = vector.load %arg10[%c2, %c0_63, %c0_64] : memref<3x32x32xf32, #tpu.memory_space<vmem>>, vector<1x32x32xf32>
    %91 = vector.shape_cast %90 : vector<1x32x32xf32> to vector<32x32xf32>
    %cst_65 = arith.constant dense<0.000000e+00> : vector<8x32xf32>
    %92 = tpu.matmul %41, %91, %cst_65 {dimension_numbers = #tpu.dot_dimension_numbers<[1], [0], [0], [1], [0, 0, 1, 1], [], []>} : vector<8x32xf32>, vector<32x32xf32>, vector<8x32xf32> -> vector<8x32xf32>
    %c2_66 = arith.constant 2 : index
    %c0_67 = arith.constant 0 : index
    %c0_68 = arith.constant 0 : index
    %93 = vector.load %arg11[%c2_66, %c0_67, %c0_68] : memref<3x16x32xf32, #tpu.memory_space<vmem>>, vector<1x16x32xf32>
    %94 = vector.shape_cast %93 : vector<1x16x32xf32> to vector<16x32xf32>
    %cst_69 = arith.constant dense<0.000000e+00> : vector<8x32xf32>
    %95 = tpu.matmul %4, %94, %cst_69 {dimension_numbers = #tpu.dot_dimension_numbers<[1], [0], [0], [1], [0, 0, 1, 1], [], []>} : vector<8x16xf32>, vector<16x32xf32>, vector<8x32xf32> -> vector<8x32xf32>
    %96 = arith.addf %92, %95 : vector<8x32xf32>
    %c2_70 = arith.constant 2 : index
    %c0_71 = arith.constant 0 : index
    %c0_72 = arith.constant 0 : index
    %97 = vector.load %arg12[%c2_70, %c0_71, %c0_72] : memref<3x1x32xf32, #tpu.memory_space<vmem>>, vector<1x1x32xf32>
    %98 = vector.shape_cast %97 : vector<1x1x32xf32> to vector<1x32xf32>
    %99 = vector.broadcast %98 : vector<1x32xf32> to vector<8x32xf32>
    %100 = arith.addf %96, %99 : vector<8x32xf32>
    %c2_73 = arith.constant 2 : index
    %c0_74 = arith.constant 0 : index
    %c0_75 = arith.constant 0 : index
    %101 = vector.load %arg13[%c2_73, %c0_74, %c0_75] : memref<3x32x32xf32, #tpu.memory_space<vmem>>, vector<1x32x32xf32>
    %102 = vector.shape_cast %101 : vector<1x32x32xf32> to vector<32x32xf32>
    %cst_76 = arith.constant dense<0.000000e+00> : vector<8x32xf32>
    %103 = tpu.matmul %5, %102, %cst_76 {dimension_numbers = #tpu.dot_dimension_numbers<[1], [0], [0], [1], [0, 0, 1, 1], [], []>} : vector<8x32xf32>, vector<32x32xf32>, vector<8x32xf32> -> vector<8x32xf32>
    %c2_77 = arith.constant 2 : index
    %c0_78 = arith.constant 0 : index
    %c0_79 = arith.constant 0 : index
    %104 = vector.load %arg14[%c2_77, %c0_78, %c0_79] : memref<3x1x32xf32, #tpu.memory_space<vmem>>, vector<1x1x32xf32>
    %105 = vector.shape_cast %104 : vector<1x1x32xf32> to vector<1x32xf32>
    %106 = vector.broadcast %105 : vector<1x32xf32> to vector<8x32xf32>
    %107 = arith.addf %103, %106 : vector<8x32xf32>
    %108 = arith.mulf %65, %107 : vector<8x32xf32>
    %109 = arith.addf %100, %108 : vector<8x32xf32>
    %110 = math.tanh %109 : vector<8x32xf32>
    %cst_80 = arith.constant 1.000000e+00 : f32
    %111 = vector.broadcast %cst_80 : f32 to vector<8x32xf32>
    %112 = arith.subf %111, %89 : vector<8x32xf32>
    %113 = arith.mulf %112, %110 : vector<8x32xf32>
    %114 = arith.mulf %89, %5 : vector<8x32xf32>
    %115 = arith.addf %113, %114 : vector<8x32xf32>
    %c0_81 = arith.constant 0 : index
    %c0_82 = arith.constant 0 : index
    %116 = vector.load %arg22[%c0_81, %c0_82] : memref<8x32xf32, #tpu.memory_space<vmem>>, vector<8x32xf32>
    tpu.vector_store %arg22[%c0_81, %c0_82], %115 {strides = array<i32>} : memref<8x32xf32, #tpu.memory_space<vmem>>, vector<8x32xf32>,
    %c0_83 = arith.constant 0 : index
    %c0_84 = arith.constant 0 : index
    %117 = vector.load %arg21[%c0_83, %c0_84] : memref<8x32xf32, #tpu.memory_space<vmem>>, vector<8x32xf32>
    tpu.vector_store %arg21[%c0_83, %c0_84], %115 {strides = array<i32>} : memref<8x32xf32, #tpu.memory_space<vmem>>, vector<8x32xf32>,
    %c0_85 = arith.constant 0 : index
    %c0_86 = arith.constant 0 : index
    %118 = vector.load %arg15[%c0_85, %c0_86] : memref<32x16xf32, #tpu.memory_space<vmem>>, vector<32x16xf32>
    %cst_87 = arith.constant dense<0.000000e+00> : vector<8x16xf32>
    %119 = tpu.matmul %115, %118, %cst_87 {dimension_numbers = #tpu.dot_dimension_numbers<[1], [0], [0], [1], [0, 0, 1, 1], [], []>} : vector<8x32xf32>, vector<32x16xf32>, vector<8x16xf32> -> vector<8x16xf32>
    %c0_88 = arith.constant 0 : index
    %c0_89 = arith.constant 0 : index
    %120 = vector.load %arg16[%c0_88, %c0_89] : memref<1x16xf32, #tpu.memory_space<vmem>>, vector<1x16xf32>
    %121 = vector.broadcast %120 : vector<1x16xf32> to vector<8x16xf32>
    %122 = arith.addf %119, %121 : vector<8x16xf32>
    %cst_90 = arith.constant 0.000000e+00 : f32
    %123 = vector.broadcast %cst_90 : f32 to vector<8x16xf32>
    %124 = arith.cmpf ogt, %122, %123 : vector<8x16xf32>
    %cst_91 = arith.constant 0.00999999977 : f32
    %125 = vector.broadcast %cst_91 : f32 to vector<8x16xf32>
    %126 = arith.mulf %125, %122 : vector<8x16xf32>
    %127 = arith.select %124, %122, %126 : vector<8x16xi1>, vector<8x16xf32>
    %c0_92 = arith.constant 0 : index
    %c0_93 = arith.constant 0 : index
    %128 = vector.load %arg17[%c0_92, %c0_93] : memref<16x128xf32, #tpu.memory_space<vmem>>, vector<16x128xf32>
    %cst_94 = arith.constant dense<0.000000e+00> : vector<8x128xf32>
    %129 = tpu.matmul %127, %128, %cst_94 {dimension_numbers = #tpu.dot_dimension_numbers<[1], [0], [0], [1], [0, 0, 1, 1], [], []>} : vector<8x16xf32>, vector<16x128xf32>, vector<8x128xf32> -> vector<8x128xf32>
    %c0_95 = arith.constant 0 : index
    %c0_96 = arith.constant 0 : index
    %130 = vector.load %arg18[%c0_95, %c0_96] : memref<1x128xf32, #tpu.memory_space<vmem>>, vector<1x128xf32>
    %131 = vector.broadcast %130 : vector<1x128xf32> to vector<8x128xf32>
    %132 = arith.addf %129, %131 : vector<8x128xf32>
    %c0_97 = arith.constant 0 : index
    %c0_98 = arith.constant 0 : index
    %c0_99 = arith.constant 0 : index
    %133 = vector.load %arg19[%c0_97, %c0_98, %c0_99] : memref<1x8x128xf32, #tpu.memory_space<vmem>>, vector<1x8x128xf32>
    %134 = vector.shape_cast %133 : vector<1x8x128xf32> to vector<8x128xf32>
    %135 = vector.shape_cast %132 : vector<8x128xf32> to vector<1x8x128xf32>
    tpu.vector_store %arg19[%c0_97, %c0_98, %c0_99], %135 {strides = array<i32>} : memref<1x8x128xf32, #tpu.memory_space<vmem>>, vector<1x8x128xf32>,
    return
  }
  func.func @transform_0(%arg0: i32) -> (i32, i32, i32) {
    %c0_i32 = arith.constant 0 : i32
    %c0_i32_0 = arith.constant 0 : i32
    %c0_i32_1 = arith.constant 0 : i32
    return %arg0, %c0_i32, %c0_i32_0 : i32, i32, i32
  }
  func.func @transform_1(%arg0: i32) -> (i32, i32) {
    %c0_i32 = arith.constant 0 : i32
    %c0_i32_0 = arith.constant 0 : i32
    %c0_i32_1 = arith.constant 0 : i32
    return %c0_i32, %c0_i32_0 : i32, i32
  }
  func.func @transform_2(%arg0: i32) -> (i32, i32, i32) {
    %c0_i32 = arith.constant 0 : i32
    %c0_i32_0 = arith.constant 0 : i32
    %c0_i32_1 = arith.constant 0 : i32
    %c0_i32_2 = arith.constant 0 : i32
    return %c0_i32, %c0_i32_0, %c0_i32_1 : i32, i32, i32
  }
  func.func @transform_3(%arg0: i32) -> (i32, i32) {
    %c0_i32 = arith.constant 0 : i32
    %c0_i32_0 = arith.constant 0 : i32
    %c0_i32_1 = arith.constant 0 : i32
    return %c0_i32, %c0_i32_0 : i32, i32
  }
  func.func @transform_4(%arg0: i32) -> (i32, i32) {
    %c0_i32 = arith.constant 0 : i32
    %c0_i32_0 = arith.constant 0 : i32
    %c0_i32_1 = arith.constant 0 : i32
    return %c0_i32, %c0_i32_0 : i32, i32
  }
  func.func @transform_5(%arg0: i32) -> (i32, i32) {
    %c0_i32 = arith.constant 0 : i32
    %c0_i32_0 = arith.constant 0 : i32
    %c0_i32_1 = arith.constant 0 : i32
    return %c0_i32, %c0_i32_0 : i32, i32
  }
  func.func @transform_6(%arg0: i32) -> (i32, i32) {
    %c0_i32 = arith.constant 0 : i32
    %c0_i32_0 = arith.constant 0 : i32
    %c0_i32_1 = arith.constant 0 : i32
    return %c0_i32, %c0_i32_0 : i32, i32
  }
  func.func @transform_7(%arg0: i32) -> (i32, i32) {
    %c0_i32 = arith.constant 0 : i32
    %c0_i32_0 = arith.constant 0 : i32
    %c0_i32_1 = arith.constant 0 : i32
    return %c0_i32, %c0_i32_0 : i32, i32
  }
  func.func @transform_8(%arg0: i32) -> (i32, i32) {
    %c0_i32 = arith.constant 0 : i32
    %c0_i32_0 = arith.constant 0 : i32
    %c0_i32_1 = arith.constant 0 : i32
    return %c0_i32, %c0_i32_0 : i32, i32
  }
  func.func @transform_9(%arg0: i32) -> (i32, i32, i32) {
    %c0_i32 = arith.constant 0 : i32
    %c0_i32_0 = arith.constant 0 : i32
    %c0_i32_1 = arith.constant 0 : i32
    %c0_i32_2 = arith.constant 0 : i32
    return %c0_i32, %c0_i32_0, %c0_i32_1 : i32, i32, i32
  }
  func.func @transform_10(%arg0: i32) -> (i32, i32, i32) {
    %c0_i32 = arith.constant 0 : i32
    %c0_i32_0 = arith.constant 0 : i32
    %c0_i32_1 = arith.constant 0 : i32
    %c0_i32_2 = arith.constant 0 : i32
    return %c0_i32, %c0_i32_0, %c0_i32_1 : i32, i32, i32
  }
  func.func @transform_11(%arg0: i32) -> (i32, i32, i32) {
    %c0_i32 = arith.constant 0 : i32
    %c0_i32_0 = arith.constant 0 : i32
    %c0_i32_1 = arith.constant 0 : i32
    %c0_i32_2 = arith.constant 0 : i32
    return %c0_i32, %c0_i32_0, %c0_i32_1 : i32, i32, i32
  }
  func.func @transform_12(%arg0: i32) -> (i32, i32, i32) {
    %c0_i32 = arith.constant 0 : i32
    %c0_i32_0 = arith.constant 0 : i32
    %c0_i32_1 = arith.constant 0 : i32
    %c0_i32_2 = arith.constant 0 : i32
    return %c0_i32, %c0_i32_0, %c0_i32_1 : i32, i32, i32
  }
  func.func @transform_13(%arg0: i32) -> (i32, i32, i32) {
    %c0_i32 = arith.constant 0 : i32
    %c0_i32_0 = arith.constant 0 : i32
    %c0_i32_1 = arith.constant 0 : i32
    %c0_i32_2 = arith.constant 0 : i32
    return %c0_i32, %c0_i32_0, %c0_i32_1 : i32, i32, i32
  }
  func.func @transform_14(%arg0: i32) -> (i32, i32) {
    %c0_i32 = arith.constant 0 : i32
    %c0_i32_0 = arith.constant 0 : i32
    %c0_i32_1 = arith.constant 0 : i32
    return %c0_i32, %c0_i32_0 : i32, i32
  }
  func.func @transform_15(%arg0: i32) -> (i32, i32) {
    %c0_i32 = arith.constant 0 : i32
    %c0_i32_0 = arith.constant 0 : i32
    %c0_i32_1 = arith.constant 0 : i32
    return %c0_i32, %c0_i32_0 : i32, i32
  }
  func.func @transform_16(%arg0: i32) -> (i32, i32) {
    %c0_i32 = arith.constant 0 : i32
    %c0_i32_0 = arith.constant 0 : i32
    %c0_i32_1 = arith.constant 0 : i32
    return %c0_i32, %c0_i32_0 : i32, i32
  }
  func.func @transform_17(%arg0: i32) -> (i32, i32) {
    %c0_i32 = arith.constant 0 : i32
    %c0_i32_0 = arith.constant 0 : i32
    %c0_i32_1 = arith.constant 0 : i32
    return %c0_i32, %c0_i32_0 : i32, i32
  }
  func.func @transform_18(%arg0: i32) -> (i32, i32, i32) {
    %c0_i32 = arith.constant 0 : i32
    %c0_i32_0 = arith.constant 0 : i32
    %c0_i32_1 = arith.constant 0 : i32
    return %arg0, %c0_i32, %c0_i32_0 : i32, i32, i32
  }
  func.func @transform_19(%arg0: i32) -> (i32, i32, i32) {
    %c0_i32 = arith.constant 0 : i32
    %c0_i32_0 = arith.constant 0 : i32
    %c0_i32_1 = arith.constant 0 : i32
    return %arg0, %c0_i32, %c0_i32_0 : i32, i32, i32
  }
  func.func @transform_20(%arg0: i32) -> (i32, i32) {
    %c0_i32 = arith.constant 0 : i32
    %c0_i32_0 = arith.constant 0 : i32
    %c0_i32_1 = arith.constant 0 : i32
    return %c0_i32, %c0_i32_0 : i32, i32
  }
}

</mosaic_0001>

<bundles_post_ra>
// kernel: tpu_custom_call.1
= control target key start
LH: loop header
LB: loop body
LE: loop exit
PB: predicated region body
PF: predicated region fallthrough
CT: control target
= control target key end

     0   :  { %s14009_s0 = inlined_call_operand.vmem [shape: f32[4,8,16], index: 0, kind: input, shape index: {}]   ;;  %s14010_s1 = inlined_call_operand.vmem [shape: f32[8,32], index: 1, kind: input, shape index: {}]   ;;  %s14011_s2 = inlined_call_operand.vmem [shape: f32[8,128,32], index: 2, kind: input, shape index: {}]   ;;  %s14012_s3 = inlined_call_operand.vmem [shape: f32[1,128], index: 3, kind: input, shape index: {}]   ;;  %s14013_s4 = inlined_call_operand.vmem [shape: f32[32,32], index: 4, kind: input, shape index: {}]   ;;  %s14014_s5 = inlined_call_operand.vmem [shape: f32[1,32], index: 5, kind: input, shape index: {}]   ;;  %s14015_s6 = inlined_call_operand.vmem [shape: f32[32,32], index: 6, kind: input, shape index: {}]   ;;  %s14016_s7 = inlined_call_operand.vmem [shape: f32[1,32], index: 7, kind: input, shape index: {}]   ;;  %s14017_s8 = inlined_call_operand.vmem [shape: f32[1,32], index: 8, kind: input, shape index: {}]   ;;  %s14018_s9 = inlined_call_operand.vmem [shape: f32[3,32,32], index: 9, kind: input, shape index: {}]   ;;  %s14019_s10 = inlined_call_operand.vmem [shape: f32[3,16,32], index: 10, kind: input, shape index: {}]   ;;  %s14020_s11 = inlined_call_operand.vmem [shape: f32[3,1,32], index: 11, kind: input, shape index: {}]   ;;  %s14021_s12 = inlined_call_operand.vmem [shape: f32[3,32,32], index: 12, kind: input, shape index: {}]   ;;  %s14022_s13 = inlined_call_operand.vmem [shape: f32[3,1,32], index: 13, kind: input, shape index: {}]   ;;  %s14023_s14 = inlined_call_operand.vmem [shape: f32[32,16], index: 14, kind: input, shape index: {}]   ;;  %s14024_s15 = inlined_call_operand.vmem [shape: f32[1,16], index: 15, kind: input, shape index: {}]   ;;  %s14025_s16 = inlined_call_operand.vmem [shape: f32[16,128], index: 16, kind: input, shape index: {}]   ;;  %s14026_s17 = inlined_call_operand.vmem [shape: f32[1,128], index: 17, kind: input, shape index: {}]   ;;  %s14027_s18 = inlined_call_operand.hbm [shape: f32[4,8,128], index: 18, kind: output, shape index: {0}]   ;;  %s14028_s19 = inlined_call_operand.hbm [shape: f32[4,8,128], index: 19, kind: output, shape index: {1}]   ;;  %s14029_s20 = inlined_call_operand.hbm [shape: f32[8,32], index: 20, kind: output, shape index: {2}]  }
   0x1   :  { %14327 = sst [smem:[#allocation211_spill]] %s14009_s0 }
   0x2   :  { %14328 = sst [smem:[#allocation212_spill]] %s14010_s1 }
   0x3   :  { %14329 = sst [smem:[#allocation213_spill]] %s14011_s2 }
   0x4   :  { %14330 = sst [smem:[#allocation214_spill]] %s14012_s3 }
   0x5   :  { %14331 = sst [smem:[#allocation215_spill]] %s14013_s4 }
   0x6   :  { %14332 = sst [smem:[#allocation216_spill]] %s14014_s5 }
   0x7   :  { %14333 = sst [smem:[#allocation217_spill]] %s14015_s6 }
   0x8   :  { %14334 = sst [smem:[#allocation218_spill]] %s14016_s7 }
   0x9   :  { %14335 = sst [smem:[#allocation219_spill]] %s14017_s8 }
   0xa   :  { %14336 = sst [smem:[#allocation220_spill]] %s14026_s17 }
   0xb   :  { %14337 = sst [smem:[#allocation221_spill]] %s14027_s18 }
   0xc   :  { %26 = vsyncpa [#allocation5], 0 }
   0xd   :  { %28 = vsyncpa [#allocation5 + $0x1], 0 }
   0xe   :  { %29 = vsyncpa [#allocation7], 0 }
   0xf   :  { %31 = vsyncpa [#allocation7 + $0x1], 0  ;;  %s8267_s1 = smov 0   ;;  %s8269_s22 = smov 0  }
  0x10   :  { %s8271_s23 = smov 0   ;;  %s8273_s24 = smov 0  }
  0x11 LB: > { %14338 = sst [smem:[#allocation12_spill]] %s8146_s1  ;;  %s8288_s2 = sadd.s32 4294967295, %s8158_s24   ;;  %s8158_s24 = sphi %s8273_s24, %s15476_s24   ;;  %s8154_s23 = sphi %s8271_s23, %s15479_s23   ;;  %s8150_s22 = sphi %s8269_s22, %s15478_s22   ;;  %s8146_s1 = sphi %s8267_s1, %s15477_s1  }
  0x12   : > { %14339 = sst [smem:[#allocation13_spill]] %s8150_s22  ;;  %s14033_s25 = sadd.s32 4294967294, %s8158_s24  }
  0x13   : > { %14340 = sst [smem:[#allocation14_spill]] %s8154_s23  ;;  %s8292_s3 = sadd.s32 1, %s8158_s24  }
  0x14   : > { %14341 = sst [smem:[#allocation15_spill]] %s8158_s24  ;;  %s427_s26 = sadd.s32 1, %s8154_s23 }
  0x15   : > { %14342 = sst [smem:[#allocation16_spill]] %s8292_s3  ;;  %s424_s27 = ssub.s32 %s8158_s24, %s8292_s3 }
  0x16   : > { %p437_p0 = scmp.ne.s32.totalorder %s8154_s23, %s8150_s22  ;;  %p425_p1 = scmp.eq.s32.totalorder %s424_s27, 0 }
  0x17   : > { %p438_p2 = scmp.eq.s32.totalorder %s8288_s2, 3  ;;  %p443_p3 = scmp.ne.s32.totalorder %s8150_s22, %s8146_s1 }
  0x18   : > { %p444_p4 = scmp.eq.s32.totalorder %s14033_s25, 3  ;;  %p7132_p7 = scmp.ge.s32.totalorder %s8158_s24, 1 }
  0x19   : > { %s8305_s28 = scalar_select %p425_p1, %s8154_s23, %s427_s26  }
  0x1a   : > { %p8309_p5 = por %p438_p2, %p437_p0  ;;  %p8313_p6 = por %p444_p4, %p443_p3 }
  0x1b   : > { %14343 = sst [smem:[#allocation17_spill]] %s8305_s28  ;;  %p567_p8 = scmp.lt.s32.totalorder %s8158_s24, 5 }
  0x1c   : > { %s14345_s29 = scalar_select %p8313_p6, 1, 0 }
  0x1d   : > { %p568_p9 = pnand %p7132_p7, %p567_p8 }
  0x1e   : > { %14346 = sst [smem:[#allocation18_spill]] %s14345_s29 }
  0x1f   : > { %571 = sbr.rel (%p568_p9) target bundleno = 3242 (0xcaa), region = 92 }
  0x24   : > { %s14041_s30 = sand.u32 1, %s8150_s22   ;;  %p629_p10 = scmp.lt.s32.totalorder %s8288_s2, 3 }
  0x25   : > { %s8323_s0 = sshll.u32 %s14041_s30, 3  ;;  %s14347_s28 = sld [smem:[#allocation211_spill]] }
  0x26   : > { %s630_s21 = scalar_select %p629_p10, %s8288_s2, 3 }
  0x27   : > { %s626_s29 = scalar_lea.vmem [#allocation6], %s8323_s0  ;;  %p7136_p11 = scmp.ne.s32.totalorder %s8288_s2, 0 }
  0x28   : > { %s7135_s26 = sshll.u32 %s630_s21, 3  ;;  %s14348_s17 = sld [smem:[#allocation215_spill]] (!%p7136_p11) }
  0x29   : > { %636 = sbr.rel (%p7136_p11) target bundleno = 438 (0x1b6), region = 96  ;;  %s14349_s25 = sld [smem:[#allocation212_spill]] (!%p7136_p11) }
  0x2a   : > { %s14350_s30 = sld [smem:[#allocation213_spill]] (!%p7136_p11) }
  0x2b   : > { %s8329_s23 = scalar_lea.vmem %s14347_s28, %s7135_s26  ;;  %s14351_s5 = sld [smem:[#allocation216_spill]] (!%p7136_p11) }
  0x2e   : > { %v643_v0 = vld [vmem:[%s14348_s17 + $0x18] sm:$0xff]  ;;  %v642_v1 = vld [vmem:[%s14348_s17 + $0x10] sm:$0xff]  ;;  %vm638_vm0 = vcmask 261120   ;;  %v641_v3 = vld [vmem:[%s14348_s17 + $0x8] sm:$0xff] }
  0x2f   : > { %1017 = vmatpush.msra.mxu2 %v643_v0  ;;  %1164 = vmatpush.msra.mxu3 %v643_v0  ;;  %v637_v2 = vld [vmem:[%s14349_s25] sm:$0xff] }
  0x30   : > { %724 = vmatpush.msra.mxu0 %v643_v0  ;;  %870 = vmatpush.msra.mxu1 %v643_v0  ;;  %639 = vst.msk [vmem:[#allocation2] sm:$0xff] %vm638_vm0, %v637_v2  ;;  %v640_v4 = vld [vmem:[%s14348_s17] sm:$0xff]  ;;  %v7186_v9 = vld [vmem:[%s14350_s30 + $0x108] sm:$0xff]  ;;  %v7187_v13 = vld [vmem:[%s14350_s30 + $0x110] sm:$0xff] }
  0x31   : > { %1018 = vmatpush.msra.mxu2 %v642_v1  ;;  %1165 = vmatpush.msra.mxu3 %v642_v1  ;;  %v7185_v5 = vld [vmem:[%s14350_s30 + $0x100] sm:$0xff]  ;;  %v7218_v10 = vld [vmem:[%s14350_s30 + $0x188] sm:$0xff]  ;;  %v7219_v14 = vld [vmem:[%s14350_s30 + $0x190] sm:$0xff] }
  0x32   : > { %725 = vmatpush.msra.mxu0 %v642_v1  ;;  %871 = vmatpush.msra.mxu1 %v642_v1  ;;  %v7217_v6 = vld [vmem:[%s14350_s30 + $0x180] sm:$0xff]  ;;  %v646_v11 = vld [vmem:[%s14350_s30 + $0x8] sm:$0xff]  ;;  %v647_v15 = vld [vmem:[%s14350_s30 + $0x10] sm:$0xff] }
  0x33   : > { %1019 = vmatpush.msra.mxu2 %v641_v3  ;;  %1166 = vmatpush.msra.mxu3 %v641_v3  ;;  %v645_v7 = vld [vmem:[%s14350_s30] sm:$0xff]  ;;  %v7154_v12 = vld [vmem:[%s14350_s30 + $0x88] sm:$0xff]  ;;  %v7155_v16 = vld [vmem:[%s14350_s30 + $0x90] sm:$0xff] }
  0x34   : > { %726 = vmatpush.msra.mxu0 %v641_v3  ;;  %872 = vmatpush.msra.mxu1 %v641_v3  ;;  %v7153_v8 = vld [vmem:[%s14350_s30 + $0x80] sm:$0xff]  ;;  %v7188_v17 = vld [vmem:[%s14350_s30 + $0x118] sm:$0xff]  ;;  %v7190_v25 = vld [vmem:[%s14350_s30 + $0x128] sm:$0xff] }
  0x35   : > { %1020 = vmatpush.msra.mxu2 %v640_v4  ;;  %1167 = vmatpush.msra.mxu3 %v640_v4  ;;  %v7220_v18 = vld [vmem:[%s14350_s30 + $0x198] sm:$0xff]  ;;  %v7189_v21 = vld [vmem:[%s14350_s30 + $0x120] sm:$0xff]  ;;  %v7222_v26 = vld [vmem:[%s14350_s30 + $0x1a8] sm:$0xff] }
  0x36   : > { %7201 = vmatmul.msk.f32.vlgmr.msra.gmra.mxu2 %vm638_vm0, %v7185_v5  ;;  %7233 = vmatmul.msk.f32.vlgmr.msra.gmra.mxu3 %vm638_vm0, %v7217_v6  ;;  %v648_v19 = vld [vmem:[%s14350_s30 + $0x18] sm:$0xff]  ;;  %v7221_v22 = vld [vmem:[%s14350_s30 + $0x1a0] sm:$0xff]  ;;  %v650_v27 = vld [vmem:[%s14350_s30 + $0x28] sm:$0xff] }
  0x37   : > { %1605 = vmatpush.msrb.mxu2 %v643_v0  ;;  %1752 = vmatpush.msrb.mxu3 %v643_v0  ;;  %v7156_v20 = vld [vmem:[%s14350_s30 + $0x98] sm:$0xff]  ;;  %v649_v23 = vld [vmem:[%s14350_s30 + $0x20] sm:$0xff]  ;;  %v7158_v28 = vld [vmem:[%s14350_s30 + $0xa8] sm:$0xff] }
  0x38   : > { %727 = vmatpush.msra.mxu0 %v640_v4  ;;  %873 = vmatpush.msra.mxu1 %v640_v4  ;;  %v7157_v24 = vld [vmem:[%s14350_s30 + $0xa0] sm:$0xff]  ;;  %v7191_v29 = vld [vmem:[%s14350_s30 + $0x130] sm:$0xff]  ;;  %v7192_v33 = vld [vmem:[%s14350_s30 + $0x138] sm:$0xff] }
  0x39   : > { %7137 = vmatmul.msk.f32.vlgmr.msra.gmra.mxu0 %vm638_vm0, %v645_v7  ;;  %7169 = vmatmul.msk.f32.vlgmr.msra.gmra.mxu1 %vm638_vm0, %v7153_v8  ;;  %v7223_v30 = vld [vmem:[%s14350_s30 + $0x1b0] sm:$0xff]  ;;  %v7224_v34 = vld [vmem:[%s14350_s30 + $0x1b8] sm:$0xff]  ;;  %v7193_v37 = vld [vmem:[%s14350_s30 + $0x140] sm:$0xff] }
  0x3a   : > { %1311 = vmatpush.msrb.mxu0 %v643_v0  ;;  %1458 = vmatpush.msrb.mxu1 %v643_v0  ;;  %v651_v31 = vld [vmem:[%s14350_s30 + $0x30] sm:$0xff]  ;;  %v652_v35 = vld [vmem:[%s14350_s30 + $0x38] sm:$0xff]  ;;  %v7225_v38 = vld [vmem:[%s14350_s30 + $0x1c0] sm:$0xff] }
  0x3b   : > { %1606 = vmatpush.msrb.mxu2 %v642_v1  ;;  %1753 = vmatpush.msrb.mxu3 %v642_v1  ;;  %v7159_v32 = vld [vmem:[%s14350_s30 + $0xb0] sm:$0xff]  ;;  %v7160_v36 = vld [vmem:[%s14350_s30 + $0xb8] sm:$0xff]  ;;  %v653_v39 = vld [vmem:[%s14350_s30 + $0x40] sm:$0xff] }
  0x3c   : > { %1312 = vmatpush.msrb.mxu0 %v642_v1  ;;  %1459 = vmatpush.msrb.mxu1 %v642_v1  ;;  %v7161_v40 = vld [vmem:[%s14350_s30 + $0xc0] sm:$0xff]  ;;  %v7194_v41 = vld [vmem:[%s14350_s30 + $0x148] sm:$0xff]  ;;  %v7195_v45 = vld [vmem:[%s14350_s30 + $0x150] sm:$0xff] }
  0x3d   : > { %1607 = vmatpush.msrb.mxu2 %v641_v3  ;;  %1754 = vmatpush.msrb.mxu3 %v641_v3  ;;  %v7226_v42 = vld [vmem:[%s14350_s30 + $0x1c8] sm:$0xff]  ;;  %v7227_v46 = vld [vmem:[%s14350_s30 + $0x1d0] sm:$0xff]  ;;  %v7196_v49 = vld [vmem:[%s14350_s30 + $0x158] sm:$0xff] }
  0x3e   : > { %7202 = vmatmul.msk.f32.gmra.mxu2 %vm638_vm0, %v7186_v9  ;;  %7234 = vmatmul.msk.f32.gmra.mxu3 %vm638_vm0, %v7218_v10  ;;  %v654_v43 = vld [vmem:[%s14350_s30 + $0x48] sm:$0xff]  ;;  %v655_v47 = vld [vmem:[%s14350_s30 + $0x50] sm:$0xff]  ;;  %v7228_v50 = vld [vmem:[%s14350_s30 + $0x1d8] sm:$0xff] }
  0x3f   : > { %1313 = vmatpush.msrb.mxu0 %v641_v3  ;;  %1460 = vmatpush.msrb.mxu1 %v641_v3  ;;  %v7162_v44 = vld [vmem:[%s14350_s30 + $0xc8] sm:$0xff]  ;;  %v7163_v48 = vld [vmem:[%s14350_s30 + $0xd0] sm:$0xff]  ;;  %v656_v51 = vld [vmem:[%s14350_s30 + $0x58] sm:$0xff] }
  0x40   : > { %1608 = vmatpush.msrb.mxu2 %v640_v4  ;;  %1755 = vmatpush.msrb.mxu3 %v640_v4  ;;  %v7164_v52 = vld [vmem:[%s14350_s30 + $0xd8] sm:$0xff]  ;;  %v7197_v53 = vld [vmem:[%s14350_s30 + $0x160] sm:$0xff]  ;;  %v7198_v57 = vld [vmem:[%s14350_s30 + $0x168] sm:$0xff] }
  0x41   : > { %7138 = vmatmul.msk.f32.gmra.mxu0 %vm638_vm0, %v646_v11  ;;  %7170 = vmatmul.msk.f32.gmra.mxu1 %vm638_vm0, %v7154_v12  ;;  %v7229_v54 = vld [vmem:[%s14350_s30 + $0x1e0] sm:$0xff]  ;;  %v7230_v58 = vld [vmem:[%s14350_s30 + $0x1e8] sm:$0xff]  ;;  %v7199_v61 = vld [vmem:[%s14350_s30 + $0x170] sm:$0xff] }
  0x42   : > { %1314 = vmatpush.msrb.mxu0 %v640_v4  ;;  %1461 = vmatpush.msrb.mxu1 %v640_v4  ;;  %v657_v55 = vld [vmem:[%s14350_s30 + $0x60] sm:$0xff]  ;;  %v658_v59 = vld [vmem:[%s14350_s30 + $0x68] sm:$0xff]  ;;  %v7231_v62 = vld [vmem:[%s14350_s30 + $0x1f0] sm:$0xff] }
  0x43   : > { %v7165_v56 = vld [vmem:[%s14350_s30 + $0xe0] sm:$0xff]  ;;  %v7166_v60 = vld [vmem:[%s14350_s30 + $0xe8] sm:$0xff]  ;;  %v659_v63 = vld [vmem:[%s14350_s30 + $0x70] sm:$0xff] }
  0x44   : > { %v7167_v0 = vld [vmem:[%s14350_s30 + $0xf0] sm:$0xff]  ;;  %v7200_v1 = vld [vmem:[%s14350_s30 + $0x178] sm:$0xff]  ;;  %v7313_v5 = vld [vmem:[%s14350_s30 + $0x300] sm:$0xff] }
  0x45   : > { %v7232_v2 = vld [vmem:[%s14350_s30 + $0x1f8] sm:$0xff]  ;;  %v7345_v6 = vld [vmem:[%s14350_s30 + $0x380] sm:$0xff] }
  0x46   : > { %7203 = vmatmul.msk.f32.gmra.mxu2 %vm638_vm0, %v7187_v13  ;;  %7235 = vmatmul.msk.f32.gmra.mxu3 %vm638_vm0, %v7219_v14  ;;  %v660_v3 = vld [vmem:[%s14350_s30 + $0x78] sm:$0xff]  ;;  %v8615_v7 = vld [vmem:[%s14351_s5] ss:$0 sm:$0xff] }
  0x47   : > { %v7168_v4 = vld [vmem:[%s14350_s30 + $0xf8] sm:$0xff]  ;;  %v7249_v10 = vld [vmem:[%s14350_s30 + $0x200] sm:$0xff] }
  0x48   : > { %v7281_v11 = vld [vmem:[%s14350_s30 + $0x280] sm:$0xff] }
  0x49   : > { %7139 = vmatmul.msk.f32.gmra.mxu0 %vm638_vm0, %v647_v15  ;;  %7171 = vmatmul.msk.f32.gmra.mxu1 %vm638_vm0, %v7155_v16 }
  0x4e   : > { %7204 = vmatmul.msk.f32.gmra.mxu2 %vm638_vm0, %v7188_v17  ;;  %7236 = vmatmul.msk.f32.gmra.mxu3 %vm638_vm0, %v7220_v18  ;;  %v7314_v18 = vld [vmem:[%s14350_s30 + $0x308] sm:$0xff] }
  0x51   : > { %7140 = vmatmul.msk.f32.gmra.mxu0 %vm638_vm0, %v648_v19  ;;  %7172 = vmatmul.msk.f32.gmra.mxu1 %vm638_vm0, %v7156_v20  ;;  %v7346_v19 = vld [vmem:[%s14350_s30 + $0x388] sm:$0xff] }
  0x56   : > { %7205 = vmatmul.msk.f32.gmra.mxu2 %vm638_vm0, %v7189_v21  ;;  %7237 = vmatmul.msk.f32.gmra.mxu3 %vm638_vm0, %v7221_v22  ;;  %v7250_v22 = vld [vmem:[%s14350_s30 + $0x208] sm:$0xff] }
  0x59   : > { %7141 = vmatmul.msk.f32.gmra.mxu0 %vm638_vm0, %v649_v23  ;;  %7173 = vmatmul.msk.f32.gmra.mxu1 %vm638_vm0, %v7157_v24  ;;  %v7282_v23 = vld [vmem:[%s14350_s30 + $0x288] sm:$0xff] }
  0x5e   : > { %7206 = vmatmul.msk.f32.gmra.mxu2 %vm638_vm0, %v7190_v25  ;;  %7238 = vmatmul.msk.f32.gmra.mxu3 %vm638_vm0, %v7222_v26 }
  0x61   : > { %7142 = vmatmul.msk.f32.gmra.mxu0 %vm638_vm0, %v650_v27  ;;  %7174 = vmatmul.msk.f32.gmra.mxu1 %vm638_vm0, %v7158_v28 }
  0x66   : > { %7207 = vmatmul.msk.f32.gmra.mxu2 %vm638_vm0, %v7191_v29  ;;  %7239 = vmatmul.msk.f32.gmra.mxu3 %vm638_vm0, %v7223_v30  ;;  %v7315_v30 = vld [vmem:[%s14350_s30 + $0x310] sm:$0xff] }
  0x69   : > { %7143 = vmatmul.msk.f32.gmra.mxu0 %vm638_vm0, %v651_v31  ;;  %7175 = vmatmul.msk.f32.gmra.mxu1 %vm638_vm0, %v7159_v32  ;;  %v7347_v31 = vld [vmem:[%s14350_s30 + $0x390] sm:$0xff] }
  0x6e   : > { %7208 = vmatmul.msk.f32.gmra.mxu2 %vm638_vm0, %v7192_v33  ;;  %7240 = vmatmul.msk.f32.gmra.mxu3 %vm638_vm0, %v7224_v34  ;;  %v7251_v34 = vld [vmem:[%s14350_s30 + $0x210] sm:$0xff] }
  0x71   : > { %7144 = vmatmul.msk.f32.gmra.mxu0 %vm638_vm0, %v652_v35  ;;  %7176 = vmatmul.msk.f32.gmra.mxu1 %vm638_vm0, %v7160_v36  ;;  %v7283_v35 = vld [vmem:[%s14350_s30 + $0x290] sm:$0xff] }
  0x76   : > { %7209 = vmatmul.msk.f32.gmra.mxu2 %vm638_vm0, %v7193_v37  ;;  %7241 = vmatmul.msk.f32.gmra.mxu3 %vm638_vm0, %v7225_v38 }
  0x79   : > { %7145 = vmatmul.msk.f32.gmra.mxu0 %vm638_vm0, %v653_v39  ;;  %7177 = vmatmul.msk.f32.gmra.mxu1 %vm638_vm0, %v7161_v40 }
  0x7e   : > { %7210 = vmatmul.msk.f32.gmra.mxu2 %vm638_vm0, %v7194_v41  ;;  %7242 = vmatmul.msk.f32.gmra.mxu3 %vm638_vm0, %v7226_v42  ;;  %v7316_v42 = vld [vmem:[%s14350_s30 + $0x318] sm:$0xff] }
  0x81   : > { %7146 = vmatmul.msk.f32.gmra.mxu0 %vm638_vm0, %v654_v43  ;;  %7178 = vmatmul.msk.f32.gmra.mxu1 %vm638_vm0, %v7162_v44  ;;  %v7348_v43 = vld [vmem:[%s14350_s30 + $0x398] sm:$0xff] }
  0x86   : > { %7211 = vmatmul.msk.f32.gmra.mxu2 %vm638_vm0, %v7195_v45  ;;  %7243 = vmatmul.msk.f32.gmra.mxu3 %vm638_vm0, %v7227_v46  ;;  %v7252_v46 = vld [vmem:[%s14350_s30 + $0x218] sm:$0xff] }
  0x89   : > { %7147 = vmatmul.msk.f32.gmra.mxu0 %vm638_vm0, %v655_v47  ;;  %7179 = vmatmul.msk.f32.gmra.mxu1 %vm638_vm0, %v7163_v48  ;;  %v7284_v47 = vld [vmem:[%s14350_s30 + $0x298] sm:$0xff] }
  0x8e   : > { %7212 = vmatmul.msk.f32.gmra.mxu2 %vm638_vm0, %v7196_v49  ;;  %7244 = vmatmul.msk.f32.gmra.mxu3 %vm638_vm0, %v7228_v50 }
  0x91   : > { %7148 = vmatmul.msk.f32.gmra.mxu0 %vm638_vm0, %v656_v51  ;;  %7180 = vmatmul.msk.f32.gmra.mxu1 %vm638_vm0, %v7164_v52 }
  0x96   : > { %7213 = vmatmul.msk.f32.gmra.mxu2 %vm638_vm0, %v7197_v53  ;;  %7245 = vmatmul.msk.f32.gmra.mxu3 %vm638_vm0, %v7229_v54  ;;  %v7317_v54 = vld [vmem:[%s14350_s30 + $0x320] sm:$0xff] }
  0x99   : > { %7149 = vmatmul.msk.f32.gmra.mxu0 %vm638_vm0, %v657_v55  ;;  %7181 = vmatmul.msk.f32.gmra.mxu1 %vm638_vm0, %v7165_v56  ;;  %v7349_v55 = vld [vmem:[%s14350_s30 + $0x3a0] sm:$0xff] }
  0x9e   : > { %7214 = vmatmul.msk.f32.gmra.mxu2 %vm638_vm0, %v7198_v57  ;;  %7246 = vmatmul.msk.f32.gmra.mxu3 %vm638_vm0, %v7230_v58  ;;  %v7253_v58 = vld [vmem:[%s14350_s30 + $0x220] sm:$0xff] }
  0xa1   : > { %7150 = vmatmul.msk.f32.gmra.mxu0 %vm638_vm0, %v658_v59  ;;  %7182 = vmatmul.msk.f32.gmra.mxu1 %vm638_vm0, %v7166_v60  ;;  %v7285_v59 = vld [vmem:[%s14350_s30 + $0x2a0] sm:$0xff] }
  0xa6   : > { %7215 = vmatmul.msk.f32.gmra.mxu2 %vm638_vm0, %v7199_v61  ;;  %7247 = vmatmul.msk.f32.gmra.mxu3 %vm638_vm0, %v7231_v62 }
  0xa9   : > { %7151 = vmatmul.msk.f32.gmra.mxu0 %vm638_vm0, %v659_v63  ;;  %7183 = vmatmul.msk.f32.gmra.mxu1 %vm638_vm0, %v7167_v0 }
  0xae   : > { %7216 = vmatmul.msk.f32.gmra.mxu2 %vm638_vm0, %v7200_v1  ;;  %7248 = vmatmul.msk.f32.gmra.mxu3 %vm638_vm0, %v7232_v2  ;;  %v7318_v2 = vld [vmem:[%s14350_s30 + $0x328] sm:$0xff] }
  0xb1   : > { %7152 = vmatmul.msk.f32.gmra.mxu0 %vm638_vm0, %v660_v3  ;;  %7184 = vmatmul.msk.f32.gmra.mxu1 %vm638_vm0, %v7168_v4  ;;  %v7350_v3 = vld [vmem:[%s14350_s30 + $0x3a8] sm:$0xff] }
  0xb6   : > { %7329 = vmatmul.msk.f32.vlgmr.msrb.gmra.mxu2 %vm638_vm0, %v7313_v5  ;;  %7361 = vmatmul.msk.f32.vlgmr.msrb.gmra.mxu3 %vm638_vm0, %v7345_v6  ;;  %v729_v8 = vpop.f32.mrf.mxu0  ;;  %v875_v9 = vpop.f32.mrf.mxu1  ;;  %v7254_v6 = vld [vmem:[%s14350_s30 + $0x228] sm:$0xff] }
  0xb7   : > { %v730_v12 = vadd.f32 %v8615_v7, %v729_v8  ;;  %v876_v13 = vadd.f32 %v8615_v7, %v875_v9  ;;  %v7286_v8 = vld [vmem:[%s14350_s30 + $0x2a8] sm:$0xff] }
  0xb9   : > { %777 = vst.msk [vmem:[#allocation3] sm:$0xff] %vm638_vm0, %v730_v12  ;;  %v1022_v14 = vpop.f32.mrf.mxu2  ;;  %v1169_v15 = vpop.f32.mrf.mxu3  ;;  %7265 = vmatmul.msk.f32.vlgmr.msrb.gmra.mxu0 %vm638_vm0, %v7249_v10  ;;  %7297 = vmatmul.msk.f32.vlgmr.msrb.gmra.mxu1 %vm638_vm0, %v7281_v11 }
  0xba   : > { %924 = vst.msk [vmem:[#allocation3 + $0x80] sm:$0xff] %vm638_vm0, %v876_v13  ;;  %v1023_v16 = vadd.f32 %v8615_v7, %v1022_v14  ;;  %v1170_v17 = vadd.f32 %v8615_v7, %v1169_v15  ;;  %v7319_v15 = vld [vmem:[%s14350_s30 + $0x330] sm:$0xff] }
  0xbc   : > { %1071 = vst.msk [vmem:[#allocation3 + $0x100] sm:$0xff] %vm638_vm0, %v1023_v16  ;;  %v7351_v16 = vld [vmem:[%s14350_s30 + $0x3b0] sm:$0xff] }
  0xbd   : > { %1218 = vst.msk [vmem:[#allocation3 + $0x180] sm:$0xff] %vm638_vm0, %v1170_v17 }
  0xbe   : > { %7330 = vmatmul.msk.f32.gmra.mxu2 %vm638_vm0, %v7314_v18  ;;  %7362 = vmatmul.msk.f32.gmra.mxu3 %vm638_vm0, %v7346_v19  ;;  %v732_v20 = vpop.f32.mrf.mxu0  ;;  %v878_v21 = vpop.f32.mrf.mxu1  ;;  %v7255_v19 = vld [vmem:[%s14350_s30 + $0x230] sm:$0xff] }
  0xbf   : > { %v733_v24 = vadd.f32 %v8615_v7, %v732_v20  ;;  %v879_v25 = vadd.f32 %v8615_v7, %v878_v21  ;;  %v7287_v20 = vld [vmem:[%s14350_s30 + $0x2b0] sm:$0xff] }
  0xc1   : > { %778 = vst.msk [vmem:[#allocation3 + $0x8] sm:$0xff] %vm638_vm0, %v733_v24  ;;  %v1025_v26 = vpop.f32.mrf.mxu2  ;;  %v1172_v27 = vpop.f32.mrf.mxu3  ;;  %7266 = vmatmul.msk.f32.gmra.mxu0 %vm638_vm0, %v7250_v22  ;;  %7298 = vmatmul.msk.f32.gmra.mxu1 %vm638_vm0, %v7282_v23 }
  0xc2   : > { %925 = vst.msk [vmem:[#allocation3 + $0x88] sm:$0xff] %vm638_vm0, %v879_v25  ;;  %v1026_v28 = vadd.f32 %v8615_v7, %v1025_v26  ;;  %v1173_v29 = vadd.f32 %v8615_v7, %v1172_v27  ;;  %v7320_v27 = vld [vmem:[%s14350_s30 + $0x338] sm:$0xff] }
  0xc4   : > { %1072 = vst.msk [vmem:[#allocation3 + $0x108] sm:$0xff] %vm638_vm0, %v1026_v28  ;;  %v7352_v28 = vld [vmem:[%s14350_s30 + $0x3b8] sm:$0xff] }
  0xc5   : > { %1219 = vst.msk [vmem:[#allocation3 + $0x188] sm:$0xff] %vm638_vm0, %v1173_v29 }
  0xc6   : > { %7331 = vmatmul.msk.f32.gmra.mxu2 %vm638_vm0, %v7315_v30  ;;  %7363 = vmatmul.msk.f32.gmra.mxu3 %vm638_vm0, %v7347_v31  ;;  %v735_v32 = vpop.f32.mrf.mxu0  ;;  %v881_v33 = vpop.f32.mrf.mxu1  ;;  %v7256_v31 = vld [vmem:[%s14350_s30 + $0x238] sm:$0xff] }
  0xc7   : > { %v736_v36 = vadd.f32 %v8615_v7, %v735_v32  ;;  %v882_v37 = vadd.f32 %v8615_v7, %v881_v33  ;;  %v7288_v32 = vld [vmem:[%s14350_s30 + $0x2b8] sm:$0xff] }
  0xc9   : > { %779 = vst.msk [vmem:[#allocation3 + $0x10] sm:$0xff] %vm638_vm0, %v736_v36  ;;  %v1028_v38 = vpop.f32.mrf.mxu2  ;;  %v1175_v39 = vpop.f32.mrf.mxu3  ;;  %7267 = vmatmul.msk.f32.gmra.mxu0 %vm638_vm0, %v7251_v34  ;;  %7299 = vmatmul.msk.f32.gmra.mxu1 %vm638_vm0, %v7283_v35 }
  0xca   : > { %926 = vst.msk [vmem:[#allocation3 + $0x90] sm:$0xff] %vm638_vm0, %v882_v37  ;;  %v1029_v40 = vadd.f32 %v8615_v7, %v1028_v38  ;;  %v1176_v41 = vadd.f32 %v8615_v7, %v1175_v39  ;;  %v7321_v39 = vld [vmem:[%s14350_s30 + $0x340] sm:$0xff] }
  0xcc   : > { %1073 = vst.msk [vmem:[#allocation3 + $0x110] sm:$0xff] %vm638_vm0, %v1029_v40  ;;  %v7353_v40 = vld [vmem:[%s14350_s30 + $0x3c0] sm:$0xff] }
  0xcd   : > { %1220 = vst.msk [vmem:[#allocation3 + $0x190] sm:$0xff] %vm638_vm0, %v1176_v41 }
  0xce   : > { %7332 = vmatmul.msk.f32.gmra.mxu2 %vm638_vm0, %v7316_v42  ;;  %7364 = vmatmul.msk.f32.gmra.mxu3 %vm638_vm0, %v7348_v43  ;;  %v738_v44 = vpop.f32.mrf.mxu0  ;;  %v884_v45 = vpop.f32.mrf.mxu1  ;;  %v7257_v43 = vld [vmem:[%s14350_s30 + $0x240] sm:$0xff] }
  0xcf   : > { %v739_v48 = vadd.f32 %v8615_v7, %v738_v44  ;;  %v885_v49 = vadd.f32 %v8615_v7, %v884_v45  ;;  %v7289_v44 = vld [vmem:[%s14350_s30 + $0x2c0] sm:$0xff] }
  0xd1   : > { %780 = vst.msk [vmem:[#allocation3 + $0x18] sm:$0xff] %vm638_vm0, %v739_v48  ;;  %v1031_v50 = vpop.f32.mrf.mxu2  ;;  %v1178_v51 = vpop.f32.mrf.mxu3  ;;  %7268 = vmatmul.msk.f32.gmra.mxu0 %vm638_vm0, %v7252_v46  ;;  %7300 = vmatmul.msk.f32.gmra.mxu1 %vm638_vm0, %v7284_v47 }
  0xd2   : > { %927 = vst.msk [vmem:[#allocation3 + $0x98] sm:$0xff] %vm638_vm0, %v885_v49  ;;  %v1032_v52 = vadd.f32 %v8615_v7, %v1031_v50  ;;  %v1179_v53 = vadd.f32 %v8615_v7, %v1178_v51  ;;  %v7322_v51 = vld [vmem:[%s14350_s30 + $0x348] sm:$0xff] }
  0xd4   : > { %1074 = vst.msk [vmem:[#allocation3 + $0x118] sm:$0xff] %vm638_vm0, %v1032_v52  ;;  %v7354_v52 = vld [vmem:[%s14350_s30 + $0x3c8] sm:$0xff] }
  0xd5   : > { %1221 = vst.msk [vmem:[#allocation3 + $0x198] sm:$0xff] %vm638_vm0, %v1179_v53 }
  0xd6   : > { %7333 = vmatmul.msk.f32.gmra.mxu2 %vm638_vm0, %v7317_v54  ;;  %7365 = vmatmul.msk.f32.gmra.mxu3 %vm638_vm0, %v7349_v55  ;;  %v741_v56 = vpop.f32.mrf.mxu0  ;;  %v887_v57 = vpop.f32.mrf.mxu1  ;;  %v7258_v55 = vld [vmem:[%s14350_s30 + $0x248] sm:$0xff] }
  0xd7   : > { %v742_v60 = vadd.f32 %v8615_v7, %v741_v56  ;;  %v888_v61 = vadd.f32 %v8615_v7, %v887_v57  ;;  %v7290_v56 = vld [vmem:[%s14350_s30 + $0x2c8] sm:$0xff] }
  0xd9   : > { %781 = vst.msk [vmem:[#allocation3 + $0x20] sm:$0xff] %vm638_vm0, %v742_v60  ;;  %v1034_v62 = vpop.f32.mrf.mxu2  ;;  %v1181_v63 = vpop.f32.mrf.mxu3  ;;  %7269 = vmatmul.msk.f32.gmra.mxu0 %vm638_vm0, %v7253_v58  ;;  %7301 = vmatmul.msk.f32.gmra.mxu1 %vm638_vm0, %v7285_v59 }
  0xda   : > { %928 = vst.msk [vmem:[#allocation3 + $0xa0] sm:$0xff] %vm638_vm0, %v888_v61  ;;  %v1035_v0 = vadd.f32 %v8615_v7, %v1034_v62  ;;  %v1182_v1 = vadd.f32 %v8615_v7, %v1181_v63  ;;  %v7323_v63 = vld [vmem:[%s14350_s30 + $0x350] sm:$0xff] }
  0xdc   : > { %1075 = vst.msk [vmem:[#allocation3 + $0x120] sm:$0xff] %vm638_vm0, %v1035_v0  ;;  %v7355_v0 = vld [vmem:[%s14350_s30 + $0x3d0] sm:$0xff] }
  0xdd   : > { %1222 = vst.msk [vmem:[#allocation3 + $0x1a0] sm:$0xff] %vm638_vm0, %v1182_v1 }
  0xde   : > { %7334 = vmatmul.msk.f32.gmra.mxu2 %vm638_vm0, %v7318_v2  ;;  %7366 = vmatmul.msk.f32.gmra.mxu3 %vm638_vm0, %v7350_v3  ;;  %v744_v4 = vpop.f32.mrf.mxu0  ;;  %v890_v5 = vpop.f32.mrf.mxu1  ;;  %v7259_v3 = vld [vmem:[%s14350_s30 + $0x250] sm:$0xff] }
  0xdf   : > { %v745_v9 = vadd.f32 %v8615_v7, %v744_v4  ;;  %v891_v10 = vadd.f32 %v8615_v7, %v890_v5  ;;  %v7291_v4 = vld [vmem:[%s14350_s30 + $0x2d0] sm:$0xff] }
  0xe1   : > { %782 = vst.msk [vmem:[#allocation3 + $0x28] sm:$0xff] %vm638_vm0, %v745_v9  ;;  %v1037_v11 = vpop.f32.mrf.mxu2  ;;  %v1184_v12 = vpop.f32.mrf.mxu3  ;;  %7270 = vmatmul.msk.f32.gmra.mxu0 %vm638_vm0, %v7254_v6  ;;  %7302 = vmatmul.msk.f32.gmra.mxu1 %vm638_vm0, %v7286_v8 }
  0xe2   : > { %929 = vst.msk [vmem:[#allocation3 + $0xa8] sm:$0xff] %vm638_vm0, %v891_v10  ;;  %v1038_v13 = vadd.f32 %v8615_v7, %v1037_v11  ;;  %v1185_v14 = vadd.f32 %v8615_v7, %v1184_v12  ;;  %v7324_v12 = vld [vmem:[%s14350_s30 + $0x358] sm:$0xff] }
  0xe4   : > { %1076 = vst.msk [vmem:[#allocation3 + $0x128] sm:$0xff] %vm638_vm0, %v1038_v13  ;;  %v7356_v13 = vld [vmem:[%s14350_s30 + $0x3d8] sm:$0xff] }
  0xe5   : > { %1223 = vst.msk [vmem:[#allocation3 + $0x1a8] sm:$0xff] %vm638_vm0, %v1185_v14 }
  0xe6   : > { %7335 = vmatmul.msk.f32.gmra.mxu2 %vm638_vm0, %v7319_v15  ;;  %7367 = vmatmul.msk.f32.gmra.mxu3 %vm638_vm0, %v7351_v16  ;;  %v747_v17 = vpop.f32.mrf.mxu0  ;;  %v893_v18 = vpop.f32.mrf.mxu1  ;;  %v7260_v16 = vld [vmem:[%s14350_s30 + $0x258] sm:$0xff] }
  0xe7   : > { %v748_v21 = vadd.f32 %v8615_v7, %v747_v17  ;;  %v894_v22 = vadd.f32 %v8615_v7, %v893_v18  ;;  %v7292_v17 = vld [vmem:[%s14350_s30 + $0x2d8] sm:$0xff] }
  0xe9   : > { %783 = vst.msk [vmem:[#allocation3 + $0x30] sm:$0xff] %vm638_vm0, %v748_v21  ;;  %v1040_v23 = vpop.f32.mrf.mxu2  ;;  %v1187_v24 = vpop.f32.mrf.mxu3  ;;  %7271 = vmatmul.msk.f32.gmra.mxu0 %vm638_vm0, %v7255_v19  ;;  %7303 = vmatmul.msk.f32.gmra.mxu1 %vm638_vm0, %v7287_v20 }
  0xea   : > { %930 = vst.msk [vmem:[#allocation3 + $0xb0] sm:$0xff] %vm638_vm0, %v894_v22  ;;  %v1041_v25 = vadd.f32 %v8615_v7, %v1040_v23  ;;  %v1188_v26 = vadd.f32 %v8615_v7, %v1187_v24  ;;  %v7325_v24 = vld [vmem:[%s14350_s30 + $0x360] sm:$0xff] }
  0xec   : > { %1077 = vst.msk [vmem:[#allocation3 + $0x130] sm:$0xff] %vm638_vm0, %v1041_v25  ;;  %v7357_v25 = vld [vmem:[%s14350_s30 + $0x3e0] sm:$0xff] }
  0xed   : > { %1224 = vst.msk [vmem:[#allocation3 + $0x1b0] sm:$0xff] %vm638_vm0, %v1188_v26 }
  0xee   : > { %7336 = vmatmul.msk.f32.gmra.mxu2 %vm638_vm0, %v7320_v27  ;;  %7368 = vmatmul.msk.f32.gmra.mxu3 %vm638_vm0, %v7352_v28  ;;  %v750_v29 = vpop.f32.mrf.mxu0  ;;  %v896_v30 = vpop.f32.mrf.mxu1  ;;  %v7261_v28 = vld [vmem:[%s14350_s30 + $0x260] sm:$0xff] }
  0xef   : > { %v751_v33 = vadd.f32 %v8615_v7, %v750_v29  ;;  %v897_v34 = vadd.f32 %v8615_v7, %v896_v30  ;;  %v7293_v29 = vld [vmem:[%s14350_s30 + $0x2e0] sm:$0xff] }
  0xf1   : > { %784 = vst.msk [vmem:[#allocation3 + $0x38] sm:$0xff] %vm638_vm0, %v751_v33  ;;  %v1043_v35 = vpop.f32.mrf.mxu2  ;;  %v1190_v36 = vpop.f32.mrf.mxu3  ;;  %7272 = vmatmul.msk.f32.gmra.mxu0 %vm638_vm0, %v7256_v31  ;;  %7304 = vmatmul.msk.f32.gmra.mxu1 %vm638_vm0, %v7288_v32 }
  0xf2   : > { %931 = vst.msk [vmem:[#allocation3 + $0xb8] sm:$0xff] %vm638_vm0, %v897_v34  ;;  %v1044_v37 = vadd.f32 %v8615_v7, %v1043_v35  ;;  %v1191_v38 = vadd.f32 %v8615_v7, %v1190_v36  ;;  %v7326_v36 = vld [vmem:[%s14350_s30 + $0x368] sm:$0xff] }
  0xf4   : > { %1078 = vst.msk [vmem:[#allocation3 + $0x138] sm:$0xff] %vm638_vm0, %v1044_v37  ;;  %v7358_v37 = vld [vmem:[%s14350_s30 + $0x3e8] sm:$0xff] }
  0xf5   : > { %1225 = vst.msk [vmem:[#allocation3 + $0x1b8] sm:$0xff] %vm638_vm0, %v1191_v38 }
  0xf6   : > { %7337 = vmatmul.msk.f32.gmra.mxu2 %vm638_vm0, %v7321_v39  ;;  %7369 = vmatmul.msk.f32.gmra.mxu3 %vm638_vm0, %v7353_v40  ;;  %v753_v41 = vpop.f32.mrf.mxu0  ;;  %v899_v42 = vpop.f32.mrf.mxu1  ;;  %v7262_v40 = vld [vmem:[%s14350_s30 + $0x268] sm:$0xff] }
  0xf7   : > { %v754_v45 = vadd.f32 %v8615_v7, %v753_v41  ;;  %v900_v46 = vadd.f32 %v8615_v7, %v899_v42  ;;  %v7294_v41 = vld [vmem:[%s14350_s30 + $0x2e8] sm:$0xff] }
  0xf9   : > { %785 = vst.msk [vmem:[#allocation3 + $0x40] sm:$0xff] %vm638_vm0, %v754_v45  ;;  %v1046_v47 = vpop.f32.mrf.mxu2  ;;  %v1193_v48 = vpop.f32.mrf.mxu3  ;;  %7273 = vmatmul.msk.f32.gmra.mxu0 %vm638_vm0, %v7257_v43  ;;  %7305 = vmatmul.msk.f32.gmra.mxu1 %vm638_vm0, %v7289_v44 }
  0xfa   : > { %932 = vst.msk [vmem:[#allocation3 + $0xc0] sm:$0xff] %vm638_vm0, %v900_v46  ;;  %v1047_v49 = vadd.f32 %v8615_v7, %v1046_v47  ;;  %v1194_v50 = vadd.f32 %v8615_v7, %v1193_v48  ;;  %v7327_v48 = vld [vmem:[%s14350_s30 + $0x370] sm:$0xff] }
  0xfc   : > { %1079 = vst.msk [vmem:[#allocation3 + $0x140] sm:$0xff] %vm638_vm0, %v1047_v49  ;;  %v7359_v49 = vld [vmem:[%s14350_s30 + $0x3f0] sm:$0xff] }
  0xfd   : > { %1226 = vst.msk [vmem:[#allocation3 + $0x1c0] sm:$0xff] %vm638_vm0, %v1194_v50 }
  0xfe   : > { %7338 = vmatmul.msk.f32.gmra.mxu2 %vm638_vm0, %v7322_v51  ;;  %7370 = vmatmul.msk.f32.gmra.mxu3 %vm638_vm0, %v7354_v52  ;;  %v756_v53 = vpop.f32.mrf.mxu0  ;;  %v902_v54 = vpop.f32.mrf.mxu1  ;;  %v7263_v52 = vld [vmem:[%s14350_s30 + $0x270] sm:$0xff] }
  0xff   : > { %v757_v57 = vadd.f32 %v8615_v7, %v756_v53  ;;  %v903_v58 = vadd.f32 %v8615_v7, %v902_v54  ;;  %v7295_v53 = vld [vmem:[%s14350_s30 + $0x2f0] sm:$0xff] }
 0x101   : > { %786 = vst.msk [vmem:[#allocation3 + $0x48] sm:$0xff] %vm638_vm0, %v757_v57  ;;  %v1049_v59 = vpop.f32.mrf.mxu2  ;;  %v1196_v60 = vpop.f32.mrf.mxu3  ;;  %7274 = vmatmul.msk.f32.gmra.mxu0 %vm638_vm0, %v7258_v55  ;;  %7306 = vmatmul.msk.f32.gmra.mxu1 %vm638_vm0, %v7290_v56 }
 0x102   : > { %933 = vst.msk [vmem:[#allocation3 + $0xc8] sm:$0xff] %vm638_vm0, %v903_v58  ;;  %v1050_v61 = vadd.f32 %v8615_v7, %v1049_v59  ;;  %v1197_v62 = vadd.f32 %v8615_v7, %v1196_v60  ;;  %v7328_v60 = vld [vmem:[%s14350_s30 + $0x378] sm:$0xff] }
 0x104   : > { %1080 = vst.msk [vmem:[#allocation3 + $0x148] sm:$0xff] %vm638_vm0, %v1050_v61  ;;  %v7360_v61 = vld [vmem:[%s14350_s30 + $0x3f8] sm:$0xff] }
 0x105   : > { %1227 = vst.msk [vmem:[#allocation3 + $0x1c8] sm:$0xff] %vm638_vm0, %v1197_v62 }
 0x106   : > { %7339 = vmatmul.msk.f32.gmra.mxu2 %vm638_vm0, %v7323_v63  ;;  %7371 = vmatmul.msk.f32.gmra.mxu3 %vm638_vm0, %v7355_v0  ;;  %v759_v1 = vpop.f32.mrf.mxu0  ;;  %v905_v2 = vpop.f32.mrf.mxu1  ;;  %v7264_v0 = vld [vmem:[%s14350_s30 + $0x278] sm:$0xff] }
 0x107   : > { %v760_v5 = vadd.f32 %v8615_v7, %v759_v1  ;;  %v906_v6 = vadd.f32 %v8615_v7, %v905_v2  ;;  %v7296_v1 = vld [vmem:[%s14350_s30 + $0x2f8] sm:$0xff] }
 0x109   : > { %787 = vst.msk [vmem:[#allocation3 + $0x50] sm:$0xff] %vm638_vm0, %v760_v5  ;;  %v1052_v8 = vpop.f32.mrf.mxu2  ;;  %v1199_v9 = vpop.f32.mrf.mxu3  ;;  %7275 = vmatmul.msk.f32.gmra.mxu0 %vm638_vm0, %v7259_v3  ;;  %7307 = vmatmul.msk.f32.gmra.mxu1 %vm638_vm0, %v7291_v4 }
 0x10a   : > { %934 = vst.msk [vmem:[#allocation3 + $0xd0] sm:$0xff] %vm638_vm0, %v906_v6  ;;  %v1053_v10 = vadd.f32 %v8615_v7, %v1052_v8  ;;  %v1200_v11 = vadd.f32 %v8615_v7, %v1199_v9 }
 0x10c   : > { %1081 = vst.msk [vmem:[#allocation3 + $0x150] sm:$0xff] %vm638_vm0, %v1053_v10 }
 0x10d   : > { %1228 = vst.msk [vmem:[#allocation3 + $0x1d0] sm:$0xff] %vm638_vm0, %v1200_v11 }
 0x10e   : > { %7340 = vmatmul.msk.f32.gmra.mxu2 %vm638_vm0, %v7324_v12  ;;  %7372 = vmatmul.msk.f32.gmra.mxu3 %vm638_vm0, %v7356_v13  ;;  %v762_v14 = vpop.f32.mrf.mxu0  ;;  %v908_v15 = vpop.f32.mrf.mxu1 }
 0x10f   : > { %v763_v18 = vadd.f32 %v8615_v7, %v762_v14  ;;  %v909_v19 = vadd.f32 %v8615_v7, %v908_v15 }
 0x111   : > { %788 = vst.msk [vmem:[#allocation3 + $0x58] sm:$0xff] %vm638_vm0, %v763_v18  ;;  %v1055_v20 = vpop.f32.mrf.mxu2  ;;  %v1202_v21 = vpop.f32.mrf.mxu3  ;;  %7276 = vmatmul.msk.f32.gmra.mxu0 %vm638_vm0, %v7260_v16  ;;  %7308 = vmatmul.msk.f32.gmra.mxu1 %vm638_vm0, %v7292_v17 }
 0x112   : > { %935 = vst.msk [vmem:[#allocation3 + $0xd8] sm:$0xff] %vm638_vm0, %v909_v19  ;;  %v1056_v22 = vadd.f32 %v8615_v7, %v1055_v20  ;;  %v1203_v23 = vadd.f32 %v8615_v7, %v1202_v21 }
 0x114   : > { %1082 = vst.msk [vmem:[#allocation3 + $0x158] sm:$0xff] %vm638_vm0, %v1056_v22 }
 0x115   : > { %1229 = vst.msk [vmem:[#allocation3 + $0x1d8] sm:$0xff] %vm638_vm0, %v1203_v23 }
 0x116   : > { %7341 = vmatmul.msk.f32.gmra.mxu2 %vm638_vm0, %v7325_v24  ;;  %7373 = vmatmul.msk.f32.gmra.mxu3 %vm638_vm0, %v7357_v25  ;;  %v765_v26 = vpop.f32.mrf.mxu0  ;;  %v911_v27 = vpop.f32.mrf.mxu1 }
 0x117   : > { %v766_v30 = vadd.f32 %v8615_v7, %v765_v26  ;;  %v912_v31 = vadd.f32 %v8615_v7, %v911_v27 }
 0x119   : > { %789 = vst.msk [vmem:[#allocation3 + $0x60] sm:$0xff] %vm638_vm0, %v766_v30  ;;  %v1058_v32 = vpop.f32.mrf.mxu2  ;;  %v1205_v33 = vpop.f32.mrf.mxu3  ;;  %7277 = vmatmul.msk.f32.gmra.mxu0 %vm638_vm0, %v7261_v28  ;;  %7309 = vmatmul.msk.f32.gmra.mxu1 %vm638_vm0, %v7293_v29 }
 0x11a   : > { %936 = vst.msk [vmem:[#allocation3 + $0xe0] sm:$0xff] %vm638_vm0, %v912_v31  ;;  %v1059_v34 = vadd.f32 %v8615_v7, %v1058_v32  ;;  %v1206_v35 = vadd.f32 %v8615_v7, %v1205_v33 }
 0x11c   : > { %1083 = vst.msk [vmem:[#allocation3 + $0x160] sm:$0xff] %vm638_vm0, %v1059_v34 }
 0x11d   : > { %1230 = vst.msk [vmem:[#allocation3 + $0x1e0] sm:$0xff] %vm638_vm0, %v1206_v35 }
 0x11e   : > { %7342 = vmatmul.msk.f32.gmra.mxu2 %vm638_vm0, %v7326_v36  ;;  %7374 = vmatmul.msk.f32.gmra.mxu3 %vm638_vm0, %v7358_v37  ;;  %v768_v38 = vpop.f32.mrf.mxu0  ;;  %v914_v39 = vpop.f32.mrf.mxu1 }
 0x11f   : > { %v769_v42 = vadd.f32 %v8615_v7, %v768_v38  ;;  %v915_v43 = vadd.f32 %v8615_v7, %v914_v39 }
 0x121   : > { %790 = vst.msk [vmem:[#allocation3 + $0x68] sm:$0xff] %vm638_vm0, %v769_v42  ;;  %v1061_v44 = vpop.f32.mrf.mxu2  ;;  %v1208_v45 = vpop.f32.mrf.mxu3  ;;  %7278 = vmatmul.msk.f32.gmra.mxu0 %vm638_vm0, %v7262_v40  ;;  %7310 = vmatmul.msk.f32.gmra.mxu1 %vm638_vm0, %v7294_v41 }
 0x122   : > { %937 = vst.msk [vmem:[#allocation3 + $0xe8] sm:$0xff] %vm638_vm0, %v915_v43  ;;  %v1062_v46 = vadd.f32 %v8615_v7, %v1061_v44  ;;  %v1209_v47 = vadd.f32 %v8615_v7, %v1208_v45 }
 0x124   : > { %1084 = vst.msk [vmem:[#allocation3 + $0x168] sm:$0xff] %vm638_vm0, %v1062_v46 }
 0x125   : > { %1231 = vst.msk [vmem:[#allocation3 + $0x1e8] sm:$0xff] %vm638_vm0, %v1209_v47 }
 0x126   : > { %7343 = vmatmul.msk.f32.gmra.mxu2 %vm638_vm0, %v7327_v48  ;;  %7375 = vmatmul.msk.f32.gmra.mxu3 %vm638_vm0, %v7359_v49  ;;  %v771_v50 = vpop.f32.mrf.mxu0  ;;  %v917_v51 = vpop.f32.mrf.mxu1 }
 0x127   : > { %v772_v54 = vadd.f32 %v8615_v7, %v771_v50  ;;  %v918_v55 = vadd.f32 %v8615_v7, %v917_v51 }
 0x129   : > { %791 = vst.msk [vmem:[#allocation3 + $0x70] sm:$0xff] %vm638_vm0, %v772_v54  ;;  %v1064_v56 = vpop.f32.mrf.mxu2  ;;  %v1211_v57 = vpop.f32.mrf.mxu3  ;;  %7279 = vmatmul.msk.f32.gmra.mxu0 %vm638_vm0, %v7263_v52  ;;  %7311 = vmatmul.msk.f32.gmra.mxu1 %vm638_vm0, %v7295_v53 }
 0x12a   : > { %938 = vst.msk [vmem:[#allocation3 + $0xf0] sm:$0xff] %vm638_vm0, %v918_v55  ;;  %v1065_v58 = vadd.f32 %v8615_v7, %v1064_v56  ;;  %v1212_v59 = vadd.f32 %v8615_v7, %v1211_v57 }
 0x12c   : > { %1085 = vst.msk [vmem:[#allocation3 + $0x170] sm:$0xff] %vm638_vm0, %v1065_v58 }
 0x12d   : > { %1232 = vst.msk [vmem:[#allocation3 + $0x1f0] sm:$0xff] %vm638_vm0, %v1212_v59 }
 0x12e   : > { %7344 = vmatmul.msk.f32.gmra.mxu2 %vm638_vm0, %v7328_v60  ;;  %7376 = vmatmul.msk.f32.gmra.mxu3 %vm638_vm0, %v7360_v61  ;;  %v774_v62 = vpop.f32.mrf.mxu0  ;;  %v920_v63 = vpop.f32.mrf.mxu1 }
 0x12f   : > { %v775_v2 = vadd.f32 %v8615_v7, %v774_v62  ;;  %v921_v3 = vadd.f32 %v8615_v7, %v920_v63 }
 0x131   : > { %792 = vst.msk [vmem:[#allocation3 + $0x78] sm:$0xff] %vm638_vm0, %v775_v2  ;;  %v1067_v4 = vpop.f32.mrf.mxu2  ;;  %v1214_v5 = vpop.f32.mrf.mxu3  ;;  %7280 = vmatmul.msk.f32.gmra.mxu0 %vm638_vm0, %v7264_v0  ;;  %7312 = vmatmul.msk.f32.gmra.mxu1 %vm638_vm0, %v7296_v1 }
 0x132   : > { %939 = vst.msk [vmem:[#allocation3 + $0xf8] sm:$0xff] %vm638_vm0, %v921_v3  ;;  %v1068_v6 = vadd.f32 %v8615_v7, %v1067_v4  ;;  %v1215_v8 = vadd.f32 %v8615_v7, %v1214_v5 }
 0x134   : > { %1086 = vst.msk [vmem:[#allocation3 + $0x178] sm:$0xff] %vm638_vm0, %v1068_v6 }
 0x135   : > { %1233 = vst.msk [vmem:[#allocation3 + $0x1f8] sm:$0xff] %vm638_vm0, %v1215_v8 }
 0x136   : > { %v1316_v9 = vpop.f32.mrf.mxu0  ;;  %v1463_v10 = vpop.f32.mrf.mxu1 }
 0x137   : > { %v1317_v11 = vadd.f32 %v8615_v7, %v1316_v9  ;;  %v1464_v12 = vadd.f32 %v8615_v7, %v1463_v10 }
 0x139   : > { %1365 = vst.msk [vmem:[#allocation3 + $0x200] sm:$0xff] %vm638_vm0, %v1317_v11  ;;  %v1610_v13 = vpop.f32.mrf.mxu2  ;;  %v1757_v14 = vpop.f32.mrf.mxu3 }
 0x13a   : > { %1512 = vst.msk [vmem:[#allocation3 + $0x280] sm:$0xff] %vm638_vm0, %v1464_v12  ;;  %v1611_v15 = vadd.f32 %v8615_v7, %v1610_v13  ;;  %v1758_v16 = vadd.f32 %v8615_v7, %v1757_v14 }
 0x13c   : > { %1659 = vst.msk [vmem:[#allocation3 + $0x300] sm:$0xff] %vm638_vm0, %v1611_v15 }
 0x13d   : > { %1806 = vst.msk [vmem:[#allocation3 + $0x380] sm:$0xff] %vm638_vm0, %v1758_v16 }
 0x13e   : > { %v1319_v17 = vpop.f32.mrf.mxu0  ;;  %v1466_v18 = vpop.f32.mrf.mxu1 }
 0x13f   : > { %v1320_v19 = vadd.f32 %v8615_v7, %v1319_v17  ;;  %v1467_v20 = vadd.f32 %v8615_v7, %v1466_v18 }
 0x141   : > { %1366 = vst.msk [vmem:[#allocation3 + $0x208] sm:$0xff] %vm638_vm0, %v1320_v19  ;;  %v1613_v21 = vpop.f32.mrf.mxu2  ;;  %v1760_v22 = vpop.f32.mrf.mxu3 }
 0x142   : > { %1513 = vst.msk [vmem:[#allocation3 + $0x288] sm:$0xff] %vm638_vm0, %v1467_v20  ;;  %v1614_v23 = vadd.f32 %v8615_v7, %v1613_v21  ;;  %v1761_v24 = vadd.f32 %v8615_v7, %v1760_v22 }
 0x144   : > { %1660 = vst.msk [vmem:[#allocation3 + $0x308] sm:$0xff] %vm638_vm0, %v1614_v23 }
 0x145   : > { %1807 = vst.msk [vmem:[#allocation3 + $0x388] sm:$0xff] %vm638_vm0, %v1761_v24 }
 0x146   : > { %v1322_v25 = vpop.f32.mrf.mxu0  ;;  %v1469_v26 = vpop.f32.mrf.mxu1 }
 0x147   : > { %v1323_v27 = vadd.f32 %v8615_v7, %v1322_v25  ;;  %v1470_v28 = vadd.f32 %v8615_v7, %v1469_v26 }
 0x149   : > { %1367 = vst.msk [vmem:[#allocation3 + $0x210] sm:$0xff] %vm638_vm0, %v1323_v27  ;;  %v1616_v29 = vpop.f32.mrf.mxu2  ;;  %v1763_v30 = vpop.f32.mrf.mxu3 }
 0x14a   : > { %1514 = vst.msk [vmem:[#allocation3 + $0x290] sm:$0xff] %vm638_vm0, %v1470_v28  ;;  %v1617_v31 = vadd.f32 %v8615_v7, %v1616_v29  ;;  %v1764_v32 = vadd.f32 %v8615_v7, %v1763_v30 }
 0x14c   : > { %1661 = vst.msk [vmem:[#allocation3 + $0x310] sm:$0xff] %vm638_vm0, %v1617_v31 }
 0x14d   : > { %1808 = vst.msk [vmem:[#allocation3 + $0x390] sm:$0xff] %vm638_vm0, %v1764_v32 }
 0x14e   : > { %v1325_v33 = vpop.f32.mrf.mxu0  ;;  %v1472_v34 = vpop.f32.mrf.mxu1 }
 0x14f   : > { %v1326_v35 = vadd.f32 %v8615_v7, %v1325_v33  ;;  %v1473_v36 = vadd.f32 %v8615_v7, %v1472_v34 }
 0x151   : > { %1368 = vst.msk [vmem:[#allocation3 + $0x218] sm:$0xff] %vm638_vm0, %v1326_v35  ;;  %v1619_v37 = vpop.f32.mrf.mxu2  ;;  %v1766_v38 = vpop.f32.mrf.mxu3 }
 0x152   : > { %1515 = vst.msk [vmem:[#allocation3 + $0x298] sm:$0xff] %vm638_vm0, %v1473_v36  ;;  %v1620_v39 = vadd.f32 %v8615_v7, %v1619_v37  ;;  %v1767_v40 = vadd.f32 %v8615_v7, %v1766_v38 }
 0x154   : > { %1662 = vst.msk [vmem:[#allocation3 + $0x318] sm:$0xff] %vm638_vm0, %v1620_v39 }
 0x155   : > { %1809 = vst.msk [vmem:[#allocation3 + $0x398] sm:$0xff] %vm638_vm0, %v1767_v40 }
 0x156   : > { %v1328_v41 = vpop.f32.mrf.mxu0  ;;  %v1475_v42 = vpop.f32.mrf.mxu1 }
 0x157   : > { %v1329_v43 = vadd.f32 %v8615_v7, %v1328_v41  ;;  %v1476_v44 = vadd.f32 %v8615_v7, %v1475_v42 }
 0x159   : > { %1369 = vst.msk [vmem:[#allocation3 + $0x220] sm:$0xff] %vm638_vm0, %v1329_v43  ;;  %v1622_v45 = vpop.f32.mrf.mxu2  ;;  %v1769_v46 = vpop.f32.mrf.mxu3 }
 0x15a   : > { %1516 = vst.msk [vmem:[#allocation3 + $0x2a0] sm:$0xff] %vm638_vm0, %v1476_v44  ;;  %v1623_v47 = vadd.f32 %v8615_v7, %v1622_v45  ;;  %v1770_v48 = vadd.f32 %v8615_v7, %v1769_v46 }
 0x15c   : > { %1663 = vst.msk [vmem:[#allocation3 + $0x320] sm:$0xff] %vm638_vm0, %v1623_v47 }
 0x15d   : > { %1810 = vst.msk [vmem:[#allocation3 + $0x3a0] sm:$0xff] %vm638_vm0, %v1770_v48 }
 0x15e   : > { %v1331_v49 = vpop.f32.mrf.mxu0  ;;  %v1478_v50 = vpop.f32.mrf.mxu1 }
 0x15f   : > { %v1332_v51 = vadd.f32 %v8615_v7, %v1331_v49  ;;  %v1479_v52 = vadd.f32 %v8615_v7, %v1478_v50 }
 0x161   : > { %1370 = vst.msk [vmem:[#allocation3 + $0x228] sm:$0xff] %vm638_vm0, %v1332_v51  ;;  %v1625_v53 = vpop.f32.mrf.mxu2  ;;  %v1772_v54 = vpop.f32.mrf.mxu3 }
 0x162   : > { %1517 = vst.msk [vmem:[#allocation3 + $0x2a8] sm:$0xff] %vm638_vm0, %v1479_v52  ;;  %v1626_v55 = vadd.f32 %v8615_v7, %v1625_v53  ;;  %v1773_v56 = vadd.f32 %v8615_v7, %v1772_v54 }
 0x164   : > { %1664 = vst.msk [vmem:[#allocation3 + $0x328] sm:$0xff] %vm638_vm0, %v1626_v55 }
 0x165   : > { %1811 = vst.msk [vmem:[#allocation3 + $0x3a8] sm:$0xff] %vm638_vm0, %v1773_v56 }
 0x166   : > { %v1334_v57 = vpop.f32.mrf.mxu0  ;;  %v1481_v58 = vpop.f32.mrf.mxu1 }
 0x167   : > { %v1335_v59 = vadd.f32 %v8615_v7, %v1334_v57  ;;  %v1482_v60 = vadd.f32 %v8615_v7, %v1481_v58 }
 0x169   : > { %1371 = vst.msk [vmem:[#allocation3 + $0x230] sm:$0xff] %vm638_vm0, %v1335_v59  ;;  %v1628_v61 = vpop.f32.mrf.mxu2  ;;  %v1775_v62 = vpop.f32.mrf.mxu3 }
 0x16a   : > { %1518 = vst.msk [vmem:[#allocation3 + $0x2b0] sm:$0xff] %vm638_vm0, %v1482_v60  ;;  %v1629_v63 = vadd.f32 %v8615_v7, %v1628_v61  ;;  %v1776_v0 = vadd.f32 %v8615_v7, %v1775_v62 }
 0x16c   : > { %1665 = vst.msk [vmem:[#allocation3 + $0x330] sm:$0xff] %vm638_vm0, %v1629_v63 }
 0x16d   : > { %1812 = vst.msk [vmem:[#allocation3 + $0x3b0] sm:$0xff] %vm638_vm0, %v1776_v0 }
 0x16e   : > { %v1337_v1 = vpop.f32.mrf.mxu0  ;;  %v1484_v2 = vpop.f32.mrf.mxu1 }
 0x16f   : > { %v1338_v3 = vadd.f32 %v8615_v7, %v1337_v1  ;;  %v1485_v4 = vadd.f32 %v8615_v7, %v1484_v2 }
 0x171   : > { %1372 = vst.msk [vmem:[#allocation3 + $0x238] sm:$0xff] %vm638_vm0, %v1338_v3  ;;  %v1631_v5 = vpop.f32.mrf.mxu2  ;;  %v1778_v6 = vpop.f32.mrf.mxu3 }
 0x172   : > { %1519 = vst.msk [vmem:[#allocation3 + $0x2b8] sm:$0xff] %vm638_vm0, %v1485_v4  ;;  %v1632_v8 = vadd.f32 %v8615_v7, %v1631_v5  ;;  %v1779_v9 = vadd.f32 %v8615_v7, %v1778_v6 }
 0x174   : > { %1666 = vst.msk [vmem:[#allocation3 + $0x338] sm:$0xff] %vm638_vm0, %v1632_v8 }
 0x175   : > { %1813 = vst.msk [vmem:[#allocation3 + $0x3b8] sm:$0xff] %vm638_vm0, %v1779_v9 }
 0x176   : > { %v1340_v10 = vpop.f32.mrf.mxu0  ;;  %v1487_v11 = vpop.f32.mrf.mxu1 }
 0x177   : > { %v1341_v12 = vadd.f32 %v8615_v7, %v1340_v10  ;;  %v1488_v13 = vadd.f32 %v8615_v7, %v1487_v11 }
 0x179   : > { %1373 = vst.msk [vmem:[#allocation3 + $0x240] sm:$0xff] %vm638_vm0, %v1341_v12  ;;  %v1634_v14 = vpop.f32.mrf.mxu2  ;;  %v1781_v15 = vpop.f32.mrf.mxu3 }
 0x17a   : > { %1520 = vst.msk [vmem:[#allocation3 + $0x2c0] sm:$0xff] %vm638_vm0, %v1488_v13  ;;  %v1635_v16 = vadd.f32 %v8615_v7, %v1634_v14  ;;  %v1782_v17 = vadd.f32 %v8615_v7, %v1781_v15 }
 0x17c   : > { %1667 = vst.msk [vmem:[#allocation3 + $0x340] sm:$0xff] %vm638_vm0, %v1635_v16 }
 0x17d   : > { %1814 = vst.msk [vmem:[#allocation3 + $0x3c0] sm:$0xff] %vm638_vm0, %v1782_v17 }
 0x17e   : > { %v1343_v18 = vpop.f32.mrf.mxu0  ;;  %v1490_v19 = vpop.f32.mrf.mxu1 }
 0x17f   : > { %v1344_v20 = vadd.f32 %v8615_v7, %v1343_v18  ;;  %v1491_v21 = vadd.f32 %v8615_v7, %v1490_v19 }
 0x181   : > { %1374 = vst.msk [vmem:[#allocation3 + $0x248] sm:$0xff] %vm638_vm0, %v1344_v20  ;;  %v1637_v22 = vpop.f32.mrf.mxu2  ;;  %v1784_v23 = vpop.f32.mrf.mxu3 }
 0x182   : > { %1521 = vst.msk [vmem:[#allocation3 + $0x2c8] sm:$0xff] %vm638_vm0, %v1491_v21  ;;  %v1638_v24 = vadd.f32 %v8615_v7, %v1637_v22  ;;  %v1785_v25 = vadd.f32 %v8615_v7, %v1784_v23 }
 0x184   : > { %1668 = vst.msk [vmem:[#allocation3 + $0x348] sm:$0xff] %vm638_vm0, %v1638_v24 }
 0x185   : > { %1815 = vst.msk [vmem:[#allocation3 + $0x3c8] sm:$0xff] %vm638_vm0, %v1785_v25 }
 0x186   : > { %v1346_v26 = vpop.f32.mrf.mxu0  ;;  %v1493_v27 = vpop.f32.mrf.mxu1 }
 0x187   : > { %v1347_v28 = vadd.f32 %v8615_v7, %v1346_v26  ;;  %v1494_v29 = vadd.f32 %v8615_v7, %v1493_v27 }
 0x189   : > { %1375 = vst.msk [vmem:[#allocation3 + $0x250] sm:$0xff] %vm638_vm0, %v1347_v28  ;;  %v1640_v30 = vpop.f32.mrf.mxu2  ;;  %v1787_v31 = vpop.f32.mrf.mxu3 }
 0x18a   : > { %1522 = vst.msk [vmem:[#allocation3 + $0x2d0] sm:$0xff] %vm638_vm0, %v1494_v29  ;;  %v1641_v32 = vadd.f32 %v8615_v7, %v1640_v30  ;;  %v1788_v33 = vadd.f32 %v8615_v7, %v1787_v31 }
 0x18c   : > { %1669 = vst.msk [vmem:[#allocation3 + $0x350] sm:$0xff] %vm638_vm0, %v1641_v32 }
 0x18d   : > { %1816 = vst.msk [vmem:[#allocation3 + $0x3d0] sm:$0xff] %vm638_vm0, %v1788_v33 }
 0x18e   : > { %v1349_v34 = vpop.f32.mrf.mxu0  ;;  %v1496_v35 = vpop.f32.mrf.mxu1 }
 0x18f   : > { %v1350_v36 = vadd.f32 %v8615_v7, %v1349_v34  ;;  %v1497_v37 = vadd.f32 %v8615_v7, %v1496_v35 }
 0x191   : > { %1376 = vst.msk [vmem:[#allocation3 + $0x258] sm:$0xff] %vm638_vm0, %v1350_v36  ;;  %v1643_v38 = vpop.f32.mrf.mxu2  ;;  %v1790_v39 = vpop.f32.mrf.mxu3 }
 0x192   : > { %1523 = vst.msk [vmem:[#allocation3 + $0x2d8] sm:$0xff] %vm638_vm0, %v1497_v37  ;;  %v1644_v40 = vadd.f32 %v8615_v7, %v1643_v38  ;;  %v1791_v41 = vadd.f32 %v8615_v7, %v1790_v39 }
 0x194   : > { %1670 = vst.msk [vmem:[#allocation3 + $0x358] sm:$0xff] %vm638_vm0, %v1644_v40 }
 0x195   : > { %1817 = vst.msk [vmem:[#allocation3 + $0x3d8] sm:$0xff] %vm638_vm0, %v1791_v41 }
 0x196   : > { %v1352_v42 = vpop.f32.mrf.mxu0  ;;  %v1499_v43 = vpop.f32.mrf.mxu1 }
 0x197   : > { %v1353_v44 = vadd.f32 %v8615_v7, %v1352_v42  ;;  %v1500_v45 = vadd.f32 %v8615_v7, %v1499_v43 }
 0x199   : > { %1377 = vst.msk [vmem:[#allocation3 + $0x260] sm:$0xff] %vm638_vm0, %v1353_v44  ;;  %v1646_v46 = vpop.f32.mrf.mxu2  ;;  %v1793_v47 = vpop.f32.mrf.mxu3 }
 0x19a   : > { %1524 = vst.msk [vmem:[#allocation3 + $0x2e0] sm:$0xff] %vm638_vm0, %v1500_v45  ;;  %v1647_v48 = vadd.f32 %v8615_v7, %v1646_v46  ;;  %v1794_v49 = vadd.f32 %v8615_v7, %v1793_v47 }
 0x19c   : > { %1671 = vst.msk [vmem:[#allocation3 + $0x360] sm:$0xff] %vm638_vm0, %v1647_v48 }
 0x19d   : > { %1818 = vst.msk [vmem:[#allocation3 + $0x3e0] sm:$0xff] %vm638_vm0, %v1794_v49 }
 0x19e   : > { %v1355_v50 = vpop.f32.mrf.mxu0  ;;  %v1502_v51 = vpop.f32.mrf.mxu1 }
 0x19f   : > { %v1356_v52 = vadd.f32 %v8615_v7, %v1355_v50  ;;  %v1503_v53 = vadd.f32 %v8615_v7, %v1502_v51 }
 0x1a1   : > { %1378 = vst.msk [vmem:[#allocation3 + $0x268] sm:$0xff] %vm638_vm0, %v1356_v52  ;;  %v1649_v54 = vpop.f32.mrf.mxu2  ;;  %v1796_v55 = vpop.f32.mrf.mxu3 }
 0x1a2   : > { %1525 = vst.msk [vmem:[#allocation3 + $0x2e8] sm:$0xff] %vm638_vm0, %v1503_v53  ;;  %v1650_v56 = vadd.f32 %v8615_v7, %v1649_v54  ;;  %v1797_v57 = vadd.f32 %v8615_v7, %v1796_v55 }
 0x1a4   : > { %1672 = vst.msk [vmem:[#allocation3 + $0x368] sm:$0xff] %vm638_vm0, %v1650_v56 }
 0x1a5   : > { %1819 = vst.msk [vmem:[#allocation3 + $0x3e8] sm:$0xff] %vm638_vm0, %v1797_v57 }
 0x1a6   : > { %v1358_v58 = vpop.f32.mrf.mxu0  ;;  %v1505_v59 = vpop.f32.mrf.mxu1 }
 0x1a7   : > { %v1359_v60 = vadd.f32 %v8615_v7, %v1358_v58  ;;  %v1506_v61 = vadd.f32 %v8615_v7, %v1505_v59 }
 0x1a9   : > { %1379 = vst.msk [vmem:[#allocation3 + $0x270] sm:$0xff] %vm638_vm0, %v1359_v60  ;;  %v1652_v62 = vpop.f32.mrf.mxu2  ;;  %v1799_v63 = vpop.f32.mrf.mxu3 }
 0x1aa   : > { %1526 = vst.msk [vmem:[#allocation3 + $0x2f0] sm:$0xff] %vm638_vm0, %v1506_v61  ;;  %v1653_v0 = vadd.f32 %v8615_v7, %v1652_v62  ;;  %v1800_v1 = vadd.f32 %v8615_v7, %v1799_v63 }
 0x1ac   : > { %1673 = vst.msk [vmem:[#allocation3 + $0x370] sm:$0xff] %vm638_vm0, %v1653_v0 }
 0x1ad   : > { %1820 = vst.msk [vmem:[#allocation3 + $0x3f0] sm:$0xff] %vm638_vm0, %v1800_v1 }
 0x1ae   : > { %v1361_v2 = vpop.f32.mrf.mxu0  ;;  %v1508_v3 = vpop.f32.mrf.mxu1 }
 0x1af   : > { %v1362_v4 = vadd.f32 %v8615_v7, %v1361_v2  ;;  %v1509_v5 = vadd.f32 %v8615_v7, %v1508_v3 }
 0x1b1   : > { %1380 = vst.msk [vmem:[#allocation3 + $0x278] sm:$0xff] %vm638_vm0, %v1362_v4  ;;  %v1655_v6 = vpop.f32.mrf.mxu2  ;;  %v1802_v8 = vpop.f32.mrf.mxu3 }
 0x1b2   : > { %1527 = vst.msk [vmem:[#allocation3 + $0x2f8] sm:$0xff] %vm638_vm0, %v1509_v5  ;;  %v1656_v9 = vadd.f32 %v8615_v7, %v1655_v6  ;;  %v1803_v10 = vadd.f32 %v8615_v7, %v1802_v8 }
 0x1b4   : > { %1674 = vst.msk [vmem:[#allocation3 + $0x378] sm:$0xff] %vm638_vm0, %v1656_v9 }
 0x1b5   : > { %1821 = vst.msk [vmem:[#allocation3 + $0x3f8] sm:$0xff] %vm638_vm0, %v1803_v10 }
 0x1b6 PF: > { %s14352_s6 = sld [smem:[#allocation217_spill]]  ;;  %v1823_v14 = vld [vmem:[#allocation2] sm:$0xff]  ;;  %vm14175_vm1 = vcmask 261120   ;;  %v1988_v18 = vld [vmem:[#allocation3 + $0x20] sm:$0xff]  ;;  %v1986_v20 = vld [vmem:[#allocation3 + $0x10] sm:$0xff]  ;;  %vm3668_vm2 = vcmask 130112  }
 0x1b7   : > { %s14353_s7 = sld [smem:[#allocation218_spill]]  ;;  %v1984_v21 = vld [vmem:[#allocation3] sm:$0xff]  ;;  %v1989_v22 = vld [vmem:[#allocation3 + $0x28] sm:$0xff]  ;;  %v1987_v24 = vld [vmem:[#allocation3 + $0x18] sm:$0xff]  ;;  %vm3672_vm3 = vcmask 195712   ;;  %vm3676_vm4 = vcmask 261312  }
 0x1b8   : > { %v1985_v27 = vld [vmem:[#allocation3 + $0x8] sm:$0xff]  ;;  %s14354_s8 = sld [smem:[#allocation219_spill]]  ;;  %v1992_v32 = vld [vmem:[#allocation3 + $0x40] sm:$0xff]  ;;  %v1991_v34 = vld [vmem:[#allocation3 + $0x38] sm:$0xff]  ;;  %vm14325_vm5 = vcmask 326912   ;;  %vm14324_vm6 = vcmask 392512  }
 0x1b9   : > { %v1990_v37 = vld [vmem:[#allocation3 + $0x30] sm:$0xff]  ;;  %v1995_v51 = vld [vmem:[#allocation3 + $0x58] sm:$0xff]  ;;  %v1993_v55 = vld [vmem:[#allocation3 + $0x48] sm:$0xff]  ;;  %s14392_s28 = sld [smem:[#allocation214_spill]]  ;;  %vm3688_vm7 = vcmask 458112   ;;  %vm3692_vm8 = vcmask 523712  }
 0x1ba   : > { %v1994_v53 = vld [vmem:[#allocation3 + $0x50] sm:$0xff]  ;;  %v1997_v4 = vld [vmem:[#allocation3 + $0x68] sm:$0xff]  ;;  %v1996_v6 = vld [vmem:[#allocation3 + $0x60] sm:$0xff]  ;;  %vm3696_vm9 = vcmask 589312   ;;  %vm14179_vm10 = vcmask 654912   ;;  %vm14177_vm11 = vcmask 720512  }
 0x1bb   : > { %v1998_v2 = vld [vmem:[#allocation3 + $0x70] sm:$0xff]  ;;  %vm14178_vm12 = vcmask 786112   ;;  %vm14181_vm13 = vcmask 851712   ;;  %vm3716_vm14 = vcmask 917312   ;;  %vm3720_vm15 = vcmask 982912   ;;  %s15202_s18 = sld [smem:[#allocation213_spill]] }
 0x1bc   : > { %v1955_v11 = vld [vmem:[%s14352_s6 + $0x18] sm:$0xff]  ;;  %v1954_v12 = vld [vmem:[%s14352_s6 + $0x10] sm:$0xff]  ;;  %v1953_v13 = vld [vmem:[%s14352_s6 + $0x8] sm:$0xff]  ;;  %vm3724_vm0 = vcmask 1048512   ;;  %s6984_s1 = sand.u32 1, %s8288_s2   ;;  %s7417_s22 = sshll.u32 %s8288_s2, 3 }
 0x1bd   : > { %1976 = vmatpush.msra.mxu0 %v1955_v11  ;;  %v1952_v7 = vld [vmem:[%s14352_s6] sm:$0xff]  ;;  %s7009_s3 = scalar_lea.hbm %s14028_s19, %s7417_s22  ;;  %s6985_s21 = scalar_lea.sflag [#allocation7], %s6984_s1 }
 0x1be   : > { %v7495_v15 = vld [vmem:[%s14353_s7] ss:$0 sm:$0xff]  ;;  %s7013_s27 = sshll.u32 %s7009_s3, 4  ;;  %s8052_s5 = scalar_lea.hbm %s14028_s19, 32  ;;  %s7014_s27 = int_to_ptr.hbm [resolvable:$true] %s7013_s27 }
 0x1bf   : > { %1977 = vmatpush.msra.mxu0 %v1954_v12  ;;  %v9153_v31 = vld [vmem:[%s14354_s8] ss:$0 sm:$0xff]  ;;  %s8046_s25 = sshra.s32 %s7014_s27, 4  ;;  %s8047_s25 = int_to_ptr.hbm [resolvable:$true] %s8046_s25 }
 0x1c0   : > { %p8053_p1 = scmp.lt.s32.totalorder %s8047_s25, %s14028_s19 }
 0x1c1   : > { %1978 = vmatpush.msra.mxu0 %v1953_v13 }
 0x1c3   : > { %1979 = vmatpush.msra.mxu0 %v1952_v7 }
 0x1c4   : > { %7377 = vmatmul.msk.f32.vlgmr.msra.gmra.mxu0 %vm14175_vm1, %v1823_v14 }
 0x241   : > { %v1981_v16 = vpop.f32.mrf.mxu0 }
 0x242   : > { %v9139_v17 = vadd.f32 %v7495_v15, %v1981_v16 }
 0x244   : > { %v9142_v19 = vperm.slane %v9139_v17, 0  ;;  %v2113_v8 = vrot.slane %v9139_v17, 1 }
 0x246   : > { %v2140_v23 = vadd.f32 %v9142_v19, %v1988_v18  ;;  %v2138_v25 = vadd.f32 %v9142_v19, %v1986_v20  ;;  %v2136_v26 = vadd.f32 %v9142_v19, %v1984_v21  ;;  %v2141_v28 = vadd.f32 %v9142_v19, %v1989_v22  ;;  %v2001_v21 = vld [vmem:[#allocation3 + $0x88] sm:$0xff] }
 0x247   : > { %v2139_v29 = vadd.f32 %v9142_v19, %v1987_v24  ;;  %v2137_v30 = vadd.f32 %v9142_v19, %v1985_v27  ;;  %v2144_v40 = vadd.f32 %v9142_v19, %v1992_v32  ;;  %v2143_v43 = vadd.f32 %v9142_v19, %v1991_v34 }
 0x248   : > { %7506 = vtanh.f32 %v2140_v23  ;;  %v2142_v46 = vadd.f32 %v9142_v19, %v1990_v37  ;;  %v2147_v56 = vadd.f32 %v9142_v19, %v1995_v51  ;;  %v2146_v58 = vadd.f32 %v9142_v19, %v1994_v53  ;;  %v2000_v23 = vld [vmem:[#allocation3 + $0x80] sm:$0xff]  ;;  %v2007_v51 = vld [vmem:[#allocation3 + $0xb8] sm:$0xff]  ;;  %v2006_v53 = vld [vmem:[#allocation3 + $0xb0] sm:$0xff] }
 0x249   : > { %7508 = vtanh.f32 %v2138_v25  ;;  %v2145_v61 = vadd.f32 %v9142_v19, %v1993_v55  ;;  %v2150_v9 = vadd.f32 %v9142_v19, %v1998_v2  ;;  %v2149_v11 = vadd.f32 %v9142_v19, %v1997_v4  ;;  %v1999_v25 = vld [vmem:[#allocation3 + $0x78] sm:$0xff]  ;;  %v2004_v37 = vld [vmem:[#allocation3 + $0xa0] sm:$0xff]  ;;  %v2005_v55 = vld [vmem:[#allocation3 + $0xa8] sm:$0xff] }
 0x24a   : > { %7510 = vtanh.f32 %v2136_v26  ;;  %v2148_v7 = vadd.f32 %v9142_v19, %v1996_v6  ;;  %v9183_v18 = vperm.slane %v2113_v8, 0  ;;  %v2151_v32 = vadd.f32 %v9142_v19, %v1999_v25  ;;  %v2010_v2 = vld [vmem:[#allocation3 + $0xd0] sm:$0xff]  ;;  %v2009_v4 = vld [vmem:[#allocation3 + $0xc8] sm:$0xff]  ;;  %v2008_v6 = vld [vmem:[#allocation3 + $0xc0] sm:$0xff] }
 0x24b   : > { %7512 = vtanh.f32 %v2141_v28  ;;  %v2114_v25 = vrot.slane %v9139_v17, 2 }
 0x24c   : > { %7514 = vtanh.f32 %v2139_v29  ;;  %v2153_v26 = vadd.f32 %v9183_v18, %v2001_v21  ;;  %v2152_v28 = vadd.f32 %v9183_v18, %v2000_v23  ;;  %v2156_v19 = vadd.f32 %v9183_v18, %v2004_v37 }
 0x24d   : > { %7516 = vtanh.f32 %v2137_v30  ;;  %v2162_v8 = vadd.f32 %v9183_v18, %v2010_v2  ;;  %v2022_v2 = vld [vmem:[#allocation3 + $0x130] sm:$0xff] }
 0x24e   : > { %v7507_v33 = vpop.eup %7506  ;;  %7518 = vtanh.f32 %v2144_v40 }
 0x24f   : > { %v7509_v35 = vpop.eup %7508  ;;  %v2400_v36 = vmul.f32 %v7507_v33, %v9153_v31  ;;  %7520 = vtanh.f32 %v2143_v43 }
 0x250   : > { %v7511_v38 = vpop.eup %7510  ;;  %v2398_v39 = vmul.f32 %v7509_v35, %v9153_v31  ;;  %7522 = vtanh.f32 %v2142_v46 }
 0x251   : > { %v2536_v41 = vsel %vm14175_vm1, %v2400_v36, 0.0  ;;  %v2396_v42 = vmul.f32 %v7511_v38, %v9153_v31  ;;  %v7513_v44 = vpop.eup %7512  ;;  %7524 = vtanh.f32 %v2147_v56  ;;  %v2159_v56 = vadd.f32 %v9183_v18, %v2007_v51 }
 0x252   : > { %2537 = vadd.xlane.f32.xlu2 %v2536_v41  ;;  %v2530_v45 = vsel %vm14175_vm1, %v2398_v39, 0.0  ;;  %v7515_v47 = vpop.eup %7514  ;;  %v2401_v50 = vmul.f32 %v7513_v44, %v9153_v31  ;;  %7526 = vtanh.f32 %v2146_v58  ;;  %v2003_v39 = vld [vmem:[#allocation3 + $0x98] sm:$0xff]  ;;  %v2002_v41 = vld [vmem:[#allocation3 + $0x90] sm:$0xff]  ;;  %v2158_v58 = vadd.f32 %v9183_v18, %v2006_v53 }
 0x253   : > { %2531 = vadd.xlane.f32.xlu1 %v2530_v45  ;;  %v2524_v48 = vsel %vm14175_vm1, %v2396_v42, 0.0  ;;  %v7517_v49 = vpop.eup %7516  ;;  %v2399_v52 = vmul.f32 %v7515_v47, %v9153_v31  ;;  %7528 = vtanh.f32 %v2145_v61  ;;  %v2155_v43 = vadd.f32 %v9183_v18, %v2003_v39 }
 0x254   : > { %2525 = vadd.xlane.f32.xlu0 %v2524_v48  ;;  %v2397_v54 = vmul.f32 %v7517_v49, %v9153_v31  ;;  %v2539_v57 = vsel %vm14175_vm1, %v2401_v50, 0.0  ;;  %v7519_v59 = vpop.eup %7518  ;;  %7530 = vtanh.f32 %v2150_v9  ;;  %v2154_v46 = vadd.f32 %v9183_v18, %v2002_v41 }
 0x255   : > { %v2533_v60 = vsel %vm14175_vm1, %v2399_v52, 0.0  ;;  %v7521_v62 = vpop.eup %7520  ;;  %v2404_v1 = vmul.f32 %v7519_v59, %v9153_v31  ;;  %7532 = vtanh.f32 %v2149_v11  ;;  %v2157_v61 = vadd.f32 %v9183_v18, %v2005_v55 }
 0x256   : > { %v2527_v63 = vsel %vm14175_vm1, %v2397_v54, 0.0  ;;  %v7523_v0 = vpop.eup %7522  ;;  %v2403_v3 = vmul.f32 %v7521_v62, %v9153_v31  ;;  %7534 = vtanh.f32 %v2148_v7 }
 0x257   : > { %v2402_v5 = vmul.f32 %v7523_v0, %v9153_v31  ;;  %v2548_v10 = vsel %vm14175_vm1, %v2404_v1, 0.0  ;;  %v7525_v12 = vpop.eup %7524  ;;  %7536 = vtanh.f32 %v2153_v26 }
 0x258   : > { %v2545_v13 = vsel %vm14175_vm1, %v2403_v3, 0.0  ;;  %v7527_v14 = vpop.eup %7526  ;;  %v2407_v20 = vmul.f32 %v7525_v12, %v9153_v31  ;;  %7538 = vtanh.f32 %v2152_v28 }
 0x259   : > { %v2542_v15 = vsel %vm14175_vm1, %v2402_v5, 0.0  ;;  %v7529_v16 = vpop.eup %7528  ;;  %v2406_v22 = vmul.f32 %v7527_v14, %v9153_v31  ;;  %7540 = vtanh.f32 %v2151_v32 }
 0x25a   : > { %2540 = vadd.xlane.f32.xlu2 %v2539_v57  ;;  %v2405_v24 = vmul.f32 %v7529_v16, %v9153_v31  ;;  %v2557_v27 = vsel %vm14175_vm1, %v2407_v20, 0.0  ;;  %v7531_v29 = vpop.eup %7530  ;;  %7542 = vtanh.f32 %v2156_v19  ;;  %v2013_v20 = vld [vmem:[#allocation3 + $0xe8] sm:$0xff]  ;;  %v2014_v19 = vld [vmem:[#allocation3 + $0xf0] sm:$0xff] }
 0x25b   : > { %2534 = vadd.xlane.f32.xlu1 %v2533_v60  ;;  %v2554_v30 = vsel %vm14175_vm1, %v2406_v22, 0.0  ;;  %v7533_v33 = vpop.eup %7532  ;;  %v2410_v36 = vmul.f32 %v7531_v29, %v9153_v31  ;;  %7544 = vtanh.f32 %v2155_v43  ;;  %v2012_v22 = vld [vmem:[#allocation3 + $0xe0] sm:$0xff]  ;;  %v2165_v26 = vadd.f32 %v9183_v18, %v2013_v20  ;;  %v2025_v20 = vld [vmem:[#allocation3 + $0x148] sm:$0xff] }
 0x25c   : > { %2528 = vadd.xlane.f32.xlu0 %v2527_v63  ;;  %v2551_v34 = vsel %vm14175_vm1, %v2405_v24, 0.0  ;;  %v7535_v35 = vpop.eup %7534  ;;  %v2409_v38 = vmul.f32 %v7533_v33, %v9153_v31  ;;  %7546 = vtanh.f32 %v2154_v46  ;;  %v2011_v24 = vld [vmem:[#allocation3 + $0xd8] sm:$0xff]  ;;  %v2164_v28 = vadd.f32 %v9183_v18, %v2012_v22  ;;  %v2024_v22 = vld [vmem:[#allocation3 + $0x140] sm:$0xff] }
 0x25d   : > { %v2408_v40 = vmul.f32 %v7535_v35, %v9153_v31  ;;  %v2566_v42 = vsel %vm14175_vm1, %v2410_v36, 0.0  ;;  %v7537_v44 = vpop.eup %7536  ;;  %7548 = vtanh.f32 %v2159_v56  ;;  %v2163_v32 = vadd.f32 %v9183_v18, %v2011_v24  ;;  %v2017_v56 = vld [vmem:[#allocation3 + $0x108] sm:$0xff]  ;;  %v2023_v24 = vld [vmem:[#allocation3 + $0x138] sm:$0xff] }
 0x25e   : > { %v2563_v45 = vsel %vm14175_vm1, %v2409_v38, 0.0  ;;  %v7539_v47 = vpop.eup %7538  ;;  %v2413_v50 = vmul.f32 %v7537_v44, %v9153_v31  ;;  %7550 = vtanh.f32 %v2158_v58  ;;  %v9231_v36 = vperm.slane %v2114_v25, 0  ;;  %v2016_v38 = vld [vmem:[#allocation3 + $0x100] sm:$0xff] }
 0x25f   : > { %v2560_v48 = vsel %vm14175_vm1, %v2408_v40, 0.0  ;;  %v7541_v49 = vpop.eup %7540  ;;  %v2412_v52 = vmul.f32 %v7539_v47, %v9153_v31  ;;  %7552 = vtanh.f32 %v2157_v61  ;;  %v2015_v40 = vld [vmem:[#allocation3 + $0xf8] sm:$0xff]  ;;  %v2166_v47 = vadd.f32 %v9183_v18, %v2014_v19 }
 0x260   : > { %v2411_v54 = vmul.f32 %v7541_v49, %v9153_v31  ;;  %v2575_v57 = vsel %vm14175_vm1, %v2413_v50, 0.0  ;;  %v7543_v59 = vpop.eup %7542  ;;  %7554 = vtanh.f32 %v2162_v8  ;;  %v2167_v44 = vadd.f32 %v9183_v18, %v2015_v40 }
 0x261   : > { %v2572_v60 = vsel %vm14175_vm1, %v2412_v52, 0.0  ;;  %v7545_v62 = vpop.eup %7544  ;;  %v2416_v1 = vmul.f32 %v7543_v59, %v9153_v31  ;;  %v2019_v52 = vld [vmem:[#allocation3 + $0x118] sm:$0xff]  ;;  %v2169_v61 = vadd.f32 %v9231_v36, %v2017_v56  ;;  %v2174_v8 = vadd.f32 %v9231_v36, %v2022_v2 }
 0x262   : > { %2549 = vadd.xlane.f32.xlu2 %v2548_v10  ;;  %v2569_v63 = vsel %vm14175_vm1, %v2411_v54, 0.0  ;;  %v7547_v0 = vpop.eup %7546  ;;  %v2415_v3 = vmul.f32 %v7545_v62, %v9153_v31  ;;  %v2161_v10 = vadd.f32 %v9183_v18, %v2009_v4  ;;  %v2018_v54 = vld [vmem:[#allocation3 + $0x110] sm:$0xff]  ;;  %v2021_v4 = vld [vmem:[#allocation3 + $0x128] sm:$0xff]  ;;  %v2177_v25 = vadd.f32 %v9231_v36, %v2025_v20 }
 0x263   : > { %2546 = vadd.xlane.f32.xlu1 %v2545_v13  ;;  %v2414_v5 = vmul.f32 %v7547_v0, %v9153_v31  ;;  %v2584_v9 = vsel %vm14175_vm1, %v2416_v1, 0.0  ;;  %v7549_v11 = vpop.eup %7548  ;;  %v2160_v13 = vadd.f32 %v9183_v18, %v2008_v6  ;;  %v2171_v18 = vadd.f32 %v9231_v36, %v2019_v52  ;;  %v2020_v6 = vld [vmem:[#allocation3 + $0x120] sm:$0xff] }
 0x264   : > { %2543 = vadd.xlane.f32.xlu0 %v2542_v15  ;;  %v2581_v12 = vsel %vm14175_vm1, %v2415_v3, 0.0  ;;  %v7551_v7 = vpop.eup %7550  ;;  %v2419_v16 = vmul.f32 %v7549_v11, %v9153_v31  ;;  %7556 = vtanh.f32 %v2161_v10  ;;  %v2170_v58 = vadd.f32 %v9231_v36, %v2018_v54 }
 0x265   : > { %v2578_v14 = vsel %vm14175_vm1, %v2414_v5, 0.0  ;;  %v7553_v15 = vpop.eup %7552  ;;  %v2418_v21 = vmul.f32 %v7551_v7, %v9153_v31  ;;  %7558 = vtanh.f32 %v2160_v13  ;;  %v2173_v10 = vadd.f32 %v9231_v36, %v2021_v4 }
 0x266   : > { %v2417_v23 = vmul.f32 %v7553_v15, %v9153_v31  ;;  %v7555_v29 = vpop.eup %7554  ;;  %7560 = vtanh.f32 %v2165_v26  ;;  %v2172_v13 = vadd.f32 %v9231_v36, %v2020_v6  ;;  %v2115_v56 = vrot.slane %v9139_v17, 3 }
 0x267   : > { %v2422_v37 = vmul.f32 %v7555_v29, %v9153_v31  ;;  %7562 = vtanh.f32 %v2164_v28 }
 0x268   : > { %7564 = vtanh.f32 %v2163_v32 }
 0x269   : > { %v2602_v43 = vsel %vm14175_vm1, %v2422_v37, 0.0  ;;  %v2028_v37 = vld [vmem:[#allocation3 + $0x160] sm:$0xff] }
 0x26a   : > { %2558 = vadd.xlane.f32.xlu2 %v2557_v27  ;;  %v2593_v27 = vsel %vm14175_vm1, %v2419_v16, 0.0  ;;  %v7557_v33 = vpop.eup %7556  ;;  %v2180_v19 = vadd.f32 %v9231_v36, %v2028_v37 }
 0x26b   : > { %2555 = vadd.xlane.f32.xlu1 %v2554_v30  ;;  %v2590_v30 = vsel %vm14175_vm1, %v2418_v21, 0.0  ;;  %v7559_v35 = vpop.eup %7558  ;;  %v2421_v39 = vmul.f32 %v7557_v33, %v9153_v31 }
 0x26c   : > { %2552 = vadd.xlane.f32.xlu0 %v2551_v34  ;;  %v2587_v34 = vsel %vm14175_vm1, %v2417_v23, 0.0  ;;  %v2420_v41 = vmul.f32 %v7559_v35, %v9153_v31 }
 0x26d   : > { %v2599_v46 = vsel %vm14175_vm1, %v2421_v39, 0.0  ;;  %v2027_v39 = vld [vmem:[#allocation3 + $0x158] sm:$0xff] }
 0x26e   : > { %v2596_v49 = vsel %vm14175_vm1, %v2420_v41, 0.0  ;;  %v2026_v41 = vld [vmem:[#allocation3 + $0x150] sm:$0xff] }
 0x272   : > { %2567 = vadd.xlane.f32.xlu2 %v2566_v42  ;;  %v2168_v42 = vadd.f32 %v9231_v36, %v2016_v38 }
 0x273   : > { %2564 = vadd.xlane.f32.xlu1 %v2563_v45  ;;  %v7561_v45 = vpop.eup %7560 }
 0x274   : > { %2561 = vadd.xlane.f32.xlu0 %v2560_v48  ;;  %v7563_v48 = vpop.eup %7562  ;;  %7566 = vtanh.f32 %v2168_v42  ;;  %v2425_v51 = vmul.f32 %v7561_v45, %v9153_v31 }
 0x275   : > { %v7565_v50 = vpop.eup %7564  ;;  %7568 = vtanh.f32 %v2167_v44  ;;  %v2424_v53 = vmul.f32 %v7563_v48, %v9153_v31 }
 0x276   : > { %7570 = vtanh.f32 %v2166_v47  ;;  %v2423_v55 = vmul.f32 %v7565_v50, %v9153_v31 }
 0x277   : > { %7572 = vtanh.f32 %v2171_v18 }
 0x278   : > { %7574 = vtanh.f32 %v2170_v58 }
 0x279   : > { %7576 = vtanh.f32 %v2169_v61 }
 0x27a   : > { %2576 = vadd.xlane.f32.xlu2 %v2575_v57  ;;  %v2611_v57 = vsel %vm14175_vm1, %v2425_v51, 0.0  ;;  %v7567_v59 = vpop.eup %7566  ;;  %7578 = vtanh.f32 %v2174_v8  ;;  %v2031_v51 = vld [vmem:[#allocation3 + $0x178] sm:$0xff] }
 0x27b   : > { %2573 = vadd.xlane.f32.xlu1 %v2572_v60  ;;  %v2608_v60 = vsel %vm14175_vm1, %v2424_v53, 0.0  ;;  %v7569_v62 = vpop.eup %7568  ;;  %v2428_v1 = vmul.f32 %v7567_v59, %v9153_v31  ;;  %7580 = vtanh.f32 %v2173_v10  ;;  %v2030_v53 = vld [vmem:[#allocation3 + $0x170] sm:$0xff]  ;;  %v2183_v18 = vadd.f32 %v9231_v36, %v2031_v51 }
 0x27c   : > { %2570 = vadd.xlane.f32.xlu0 %v2569_v63  ;;  %v2605_v63 = vsel %vm14175_vm1, %v2423_v55, 0.0  ;;  %v7571_v0 = vpop.eup %7570  ;;  %v2427_v3 = vmul.f32 %v7569_v62, %v9153_v31  ;;  %7582 = vtanh.f32 %v2172_v13  ;;  %v2029_v55 = vld [vmem:[#allocation3 + $0x168] sm:$0xff]  ;;  %v2182_v58 = vadd.f32 %v9231_v36, %v2030_v53 }
 0x27d   : > { %v2426_v5 = vmul.f32 %v7571_v0, %v9153_v31  ;;  %v7573_v11 = vpop.eup %7572  ;;  %7584 = vtanh.f32 %v2177_v25  ;;  %v2181_v61 = vadd.f32 %v9231_v36, %v2029_v55 }
 0x27e   : > { %v7575_v7 = vpop.eup %7574  ;;  %v2431_v16 = vmul.f32 %v7573_v11, %v9153_v31 }
 0x27f   : > { %v7577_v15 = vpop.eup %7576  ;;  %v2430_v21 = vmul.f32 %v7575_v7, %v9153_v31 }
 0x280   : > { %v2429_v23 = vmul.f32 %v7577_v15, %v9153_v31  ;;  %v2629_v26 = vsel %vm14175_vm1, %v2431_v16, 0.0  ;;  %v7579_v28 = vpop.eup %7578 }
 0x281   : > { %v2626_v29 = vsel %vm14175_vm1, %v2430_v21, 0.0  ;;  %v7581_v32 = vpop.eup %7580  ;;  %v2434_v35 = vmul.f32 %v7579_v28, %v9153_v31  ;;  %v2037_v21 = vld [vmem:[#allocation3 + $0x1a8] sm:$0xff] }
 0x282   : > { %2585 = vadd.xlane.f32.xlu2 %v2584_v9  ;;  %v2620_v9 = vsel %vm14175_vm1, %v2428_v1, 0.0  ;;  %v2623_v33 = vsel %vm14175_vm1, %v2429_v23, 0.0  ;;  %v2433_v38 = vmul.f32 %v7581_v32, %v9153_v31  ;;  %v9288_v1 = vperm.slane %v2115_v56, 0 }
 0x283   : > { %2582 = vadd.xlane.f32.xlu1 %v2581_v12  ;;  %v2617_v12 = vsel %vm14175_vm1, %v2427_v3, 0.0  ;;  %v2638_v42 = vsel %vm14175_vm1, %v2434_v35, 0.0  ;;  %v2034_v3 = vld [vmem:[#allocation3 + $0x190] sm:$0xff] }
 0x284   : > { %2579 = vadd.xlane.f32.xlu0 %v2578_v14  ;;  %v2614_v14 = vsel %vm14175_vm1, %v2426_v5, 0.0  ;;  %v2635_v45 = vsel %vm14175_vm1, %v2433_v38, 0.0  ;;  %v2033_v5 = vld [vmem:[#allocation3 + $0x188] sm:$0xff]  ;;  %v2186_v8 = vadd.f32 %v9288_v1, %v2034_v3  ;;  %v2189_v28 = vadd.f32 %v9288_v1, %v2037_v21  ;;  %v2044_v21 = vld [vmem:[#allocation3 + $0x1e0] sm:$0xff] }
 0x285   : > { %v2185_v10 = vadd.f32 %v9288_v1, %v2033_v5 }
 0x28a   : > { %2594 = vadd.xlane.f32.xlu2 %v2593_v27  ;;  %v2176_v27 = vadd.f32 %v9231_v36, %v2024_v22 }
 0x28b   : > { %2591 = vadd.xlane.f32.xlu1 %v2590_v30  ;;  %v2175_v30 = vadd.f32 %v9231_v36, %v2023_v24  ;;  %v2036_v24 = vld [vmem:[#allocation3 + $0x1a0] sm:$0xff] }
 0x28c   : > { %2588 = vadd.xlane.f32.xlu0 %v2587_v34  ;;  %v7583_v34 = vpop.eup %7582  ;;  %7586 = vtanh.f32 %v2176_v27  ;;  %v2035_v27 = vld [vmem:[#allocation3 + $0x198] sm:$0xff] }
 0x28d   : > { %7588 = vtanh.f32 %v2175_v30  ;;  %v2432_v40 = vmul.f32 %v7583_v34, %v9153_v31  ;;  %v7585_v44 = vpop.eup %7584  ;;  %v2188_v30 = vadd.f32 %v9288_v1, %v2036_v24  ;;  %v2187_v34 = vadd.f32 %v9288_v1, %v2035_v27 }
 0x28e   : > { %7590 = vtanh.f32 %v2180_v19  ;;  %v2437_v50 = vmul.f32 %v7585_v44, %v9153_v31 }
 0x28f   : > { %v2632_v48 = vsel %vm14175_vm1, %v2432_v40, 0.0 }
 0x292   : > { %2603 = vadd.xlane.f32.xlu2 %v2602_v43  ;;  %v2179_v43 = vadd.f32 %v9231_v36, %v2027_v39  ;;  %v7587_v47 = vpop.eup %7586 }
 0x293   : > { %2600 = vadd.xlane.f32.xlu1 %v2599_v46  ;;  %v2178_v46 = vadd.f32 %v9231_v36, %v2026_v41  ;;  %v2436_v52 = vmul.f32 %v7587_v47, %v9153_v31  ;;  %v2032_v36 = vld [vmem:[#allocation3 + $0x180] sm:$0xff] }
 0x294   : > { %2597 = vadd.xlane.f32.xlu0 %v2596_v49  ;;  %v7589_v49 = vpop.eup %7588  ;;  %7592 = vtanh.f32 %v2179_v43  ;;  %v2184_v13 = vadd.f32 %v9288_v1, %v2032_v36  ;;  %v2040_v41 = vld [vmem:[#allocation3 + $0x1c0] sm:$0xff]  ;;  %v2039_v43 = vld [vmem:[#allocation3 + $0x1b8] sm:$0xff] }
 0x295   : > { %7594 = vtanh.f32 %v2178_v46  ;;  %v2435_v54 = vmul.f32 %v7589_v49, %v9153_v31  ;;  %v7591_v59 = vpop.eup %7590  ;;  %v2038_v46 = vld [vmem:[#allocation3 + $0x1b0] sm:$0xff]  ;;  %v2192_v47 = vadd.f32 %v9288_v1, %v2040_v41  ;;  %v2191_v49 = vadd.f32 %v9288_v1, %v2039_v43  ;;  %v2048_v43 = vld [vmem:[#allocation3 + $0x200] sm:$0xff] }
 0x296   : > { %7596 = vtanh.f32 %v2183_v18  ;;  %v2440_v2 = vmul.f32 %v7591_v59, %v9153_v31 }
 0x297   : > { %7598 = vtanh.f32 %v2182_v58 }
 0x298   : > { %7600 = vtanh.f32 %v2181_v61 }
 0x299   : > { %7602 = vtanh.f32 %v2186_v8 }
 0x29a   : > { %2612 = vadd.xlane.f32.xlu2 %v2611_v57  ;;  %v2647_v57 = vsel %vm14175_vm1, %v2437_v50, 0.0  ;;  %v7593_v62 = vpop.eup %7592  ;;  %7604 = vtanh.f32 %v2185_v10 }
 0x29b   : > { %2609 = vadd.xlane.f32.xlu1 %v2608_v60  ;;  %v2644_v60 = vsel %vm14175_vm1, %v2436_v52, 0.0  ;;  %v7595_v0 = vpop.eup %7594  ;;  %v2439_v4 = vmul.f32 %v7593_v62, %v9153_v31  ;;  %7606 = vtanh.f32 %v2184_v13  ;;  %v2190_v52 = vadd.f32 %v9288_v1, %v2038_v46 }
 0x29c   : > { %2606 = vadd.xlane.f32.xlu0 %v2605_v63  ;;  %v2641_v63 = vsel %vm14175_vm1, %v2435_v54, 0.0  ;;  %v2438_v6 = vmul.f32 %v7595_v0, %v9153_v31  ;;  %v7597_v11 = vpop.eup %7596  ;;  %7608 = vtanh.f32 %v2189_v28 }
 0x29d   : > { %v7599_v7 = vpop.eup %7598  ;;  %v2443_v20 = vmul.f32 %v7597_v11, %v9153_v31  ;;  %7610 = vtanh.f32 %v2188_v30  ;;  %v2196_v30 = vadd.f32 %v9288_v1, %v2044_v21  ;;  %v2055_v21 = vld [vmem:[#allocation3 + $0x238] sm:$0xff] }
 0x29e   : > { %v7601_v15 = vpop.eup %7600  ;;  %v2442_v23 = vmul.f32 %v7599_v7, %v9153_v31  ;;  %7612 = vtanh.f32 %v2187_v34 }
 0x29f   : > { %v7603_v32 = vpop.eup %7602  ;;  %7614 = vtanh.f32 %v2192_v47  ;;  %v2047_v47 = vld [vmem:[#allocation3 + $0x1f8] sm:$0xff] }
 0x2a0   : > { %v7605_v35 = vpop.eup %7604  ;;  %v2446_v40 = vmul.f32 %v7603_v32, %v9153_v31  ;;  %7616 = vtanh.f32 %v2191_v49 }
 0x2a1   : > { %v7607_v38 = vpop.eup %7606  ;;  %7618 = vtanh.f32 %v2190_v52 }
 0x2a2   : > { %2621 = vadd.xlane.f32.xlu2 %v2620_v9  ;;  %v2656_v9 = vsel %vm14175_vm1, %v2440_v2, 0.0  ;;  %v7609_v50 = vpop.eup %7608 }
 0x2a3   : > { %2618 = vadd.xlane.f32.xlu1 %v2617_v12  ;;  %v2653_v12 = vsel %vm14175_vm1, %v2439_v4, 0.0  ;;  %v7611_v53 = vpop.eup %7610  ;;  %v2449_v18 = vmul.f32 %v7609_v50, %v9153_v31 }
 0x2a4   : > { %2615 = vadd.xlane.f32.xlu0 %v2614_v14  ;;  %v2650_v14 = vsel %vm14175_vm1, %v2438_v6, 0.0  ;;  %v7613_v55 = vpop.eup %7612  ;;  %v2448_v59 = vmul.f32 %v7611_v53, %v9153_v31  ;;  %v2199_v53 = vadd.f32 %v9288_v1, %v2047_v47 }
 0x2a5   : > { %v2447_v62 = vmul.f32 %v7613_v55, %v9153_v31  ;;  %v2683_v2 = vsel %vm14175_vm1, %v2449_v18, 0.0  ;;  %v7615_v4 = vpop.eup %7614 }
 0x2a6   : > { %v2680_v5 = vsel %vm14175_vm1, %v2448_v59, 0.0  ;;  %v7617_v36 = vpop.eup %7616  ;;  %v2452_v11 = vmul.f32 %v7615_v4, %v9153_v31 }
 0x2a7   : > { %v2677_v8 = vsel %vm14175_vm1, %v2447_v62, 0.0  ;;  %v2451_v7 = vmul.f32 %v7617_v36, %v9153_v31 }
 0x2aa   : > { %2630 = vadd.xlane.f32.xlu2 %v2629_v26  ;;  %v2441_v26 = vmul.f32 %v7601_v15, %v9153_v31 }
 0x2ab   : > { %2627 = vadd.xlane.f32.xlu1 %v2626_v29  ;;  %v2665_v29 = vsel %vm14175_vm1, %v2443_v20, 0.0 }
 0x2ac   : > { %2624 = vadd.xlane.f32.xlu0 %v2623_v33  ;;  %v2662_v33 = vsel %vm14175_vm1, %v2442_v23, 0.0  ;;  %v2659_v37 = vsel %vm14175_vm1, %v2441_v26, 0.0  ;;  %v2116_v23 = vrot.slane %v9139_v17, 4  ;;  %v2692_v26 = vsel %vm14175_vm1, %v2452_v11, 0.0 }
 0x2b2   : > { %2639 = vadd.xlane.f32.xlu2 %v2638_v42  ;;  %v2445_v42 = vmul.f32 %v7605_v35, %v9153_v31  ;;  %v9360_v35 = vperm.slane %v2116_v23, 0 }
 0x2b3   : > { %2636 = vadd.xlane.f32.xlu1 %v2635_v45  ;;  %v2444_v45 = vmul.f32 %v7607_v38, %v9153_v31 }
 0x2b4   : > { %2633 = vadd.xlane.f32.xlu0 %v2632_v48  ;;  %v2674_v48 = vsel %vm14175_vm1, %v2446_v40, 0.0  ;;  %v2671_v51 = vsel %vm14175_vm1, %v2445_v42, 0.0  ;;  %v2049_v40 = vld [vmem:[#allocation3 + $0x208] sm:$0xff]  ;;  %v2200_v50 = vadd.f32 %v9360_v35, %v2048_v43 }
 0x2b5   : > { %v2668_v54 = vsel %vm14175_vm1, %v2444_v45, 0.0 }
 0x2ba   : > { %2648 = vadd.xlane.f32.xlu2 %v2647_v57  ;;  %v2043_v57 = vld [vmem:[#allocation3 + $0x1d8] sm:$0xff] }
 0x2bb   : > { %2645 = vadd.xlane.f32.xlu1 %v2644_v60  ;;  %v2042_v60 = vld [vmem:[#allocation3 + $0x1d0] sm:$0xff]  ;;  %v2195_v0 = vadd.f32 %v9288_v1, %v2043_v57 }
 0x2bc   : > { %2642 = vadd.xlane.f32.xlu0 %v2641_v63  ;;  %v2041_v63 = vld [vmem:[#allocation3 + $0x1c8] sm:$0xff]  ;;  %v2194_v3 = vadd.f32 %v9288_v1, %v2042_v60  ;;  %v2052_v60 = vld [vmem:[#allocation3 + $0x220] sm:$0xff] }
 0x2bd   : > { %v2193_v6 = vadd.f32 %v9288_v1, %v2041_v63  ;;  %7620 = vtanh.f32 %v2195_v0  ;;  %v2051_v0 = vld [vmem:[#allocation3 + $0x218] sm:$0xff]  ;;  %v2204_v4 = vadd.f32 %v9360_v35, %v2052_v60 }
 0x2be   : > { %7622 = vtanh.f32 %v2194_v3  ;;  %v2050_v3 = vld [vmem:[#allocation3 + $0x210] sm:$0xff] }
 0x2bf   : > { %7624 = vtanh.f32 %v2193_v6  ;;  %v2203_v6 = vadd.f32 %v9360_v35, %v2051_v0 }
 0x2c2   : > { %2657 = vadd.xlane.f32.xlu2 %v2656_v9  ;;  %v7619_v9 = vpop.eup %7618 }
 0x2c3   : > { %2654 = vadd.xlane.f32.xlu1 %v2653_v12  ;;  %v2046_v12 = vld [vmem:[#allocation3 + $0x1f0] sm:$0xff]  ;;  %v2450_v20 = vmul.f32 %v7619_v9, %v9153_v31  ;;  %v7621_v28 = vpop.eup %7620  ;;  %v2202_v9 = vadd.f32 %v9360_v35, %v2050_v3 }
 0x2c4   : > { %2651 = vadd.xlane.f32.xlu0 %v2650_v14  ;;  %v2045_v14 = vld [vmem:[#allocation3 + $0x1e8] sm:$0xff]  ;;  %v2198_v24 = vadd.f32 %v9288_v1, %v2046_v12  ;;  %v7623_v32 = vpop.eup %7622  ;;  %v2455_v38 = vmul.f32 %v7621_v28, %v9153_v31 }
 0x2c5   : > { %v9299_v16 = vpop.xlane.xlu2 %2537  ;;  %v2197_v27 = vadd.f32 %v9288_v1, %v2045_v14  ;;  %v7625_v34 = vpop.eup %7624  ;;  %v2454_v42 = vmul.f32 %v7623_v32, %v9153_v31 }
 0x2c6   : > { %v9302_v22 = vpop.xlane.xlu1 %2531  ;;  %7626 = vtanh.f32 %v2198_v24  ;;  %v2453_v46 = vmul.f32 %v7625_v34, %v9153_v31  ;;  %v2701_v49 = vsel %vm14175_vm1, %v2455_v38, 0.0 }
 0x2c7   : > { %v9305_v25 = vpop.xlane.xlu0 %2525  ;;  %7628 = vtanh.f32 %v2197_v27  ;;  %v2698_v52 = vsel %vm14175_vm1, %v2454_v42, 0.0 }
 0x2c8   : > { %7630 = vtanh.f32 %v2196_v30  ;;  %v2695_v55 = vsel %vm14175_vm1, %v2453_v46, 0.0  ;;  %v2207_v30 = vadd.f32 %v9360_v35, %v2055_v21  ;;  %v2059_v21 = vld [vmem:[#allocation3 + $0x258] sm:$0xff] }
 0x2ca   : > { %2666 = vadd.xlane.f32.xlu2 %v2665_v29  ;;  %v2689_v29 = vsel %vm14175_vm1, %v2451_v7, 0.0 }
 0x2cb   : > { %2663 = vadd.xlane.f32.xlu1 %v2662_v33  ;;  %v2686_v33 = vsel %vm14175_vm1, %v2450_v20, 0.0 }
 0x2cc   : > { %2660 = vadd.xlane.f32.xlu0 %v2659_v37 }
 0x2cd   : > { %v9314_v39 = vpop.xlane.xlu2 %2540 }
 0x2ce   : > { %v9317_v19 = vpop.xlane.xlu1 %2534 }
 0x2cf   : > { %v9320_v44 = vpop.xlane.xlu0 %2528 }
 0x2d2   : > { %2675 = vadd.xlane.f32.xlu2 %v2674_v48  ;;  %v2201_v48 = vadd.f32 %v9360_v35, %v2049_v40 }
 0x2d3   : > { %2672 = vadd.xlane.f32.xlu1 %v2671_v51  ;;  %v7627_v51 = vpop.eup %7626 }
 0x2d4   : > { %2669 = vadd.xlane.f32.xlu0 %v2668_v54  ;;  %v7629_v54 = vpop.eup %7628  ;;  %7632 = vtanh.f32 %v2201_v48  ;;  %v2458_v59 = vmul.f32 %v7627_v51, %v9153_v31 }
 0x2d5   : > { %v9329_v56 = vpop.xlane.xlu2 %2549  ;;  %v7631_v18 = vpop.eup %7630  ;;  %7634 = vtanh.f32 %v2200_v50  ;;  %v2457_v63 = vmul.f32 %v7629_v54, %v9153_v31 }
 0x2d6   : > { %v9332_v58 = vpop.xlane.xlu1 %2546  ;;  %7636 = vtanh.f32 %v2199_v53 }
 0x2d7   : > { %v9335_v61 = vpop.xlane.xlu0 %2543  ;;  %7638 = vtanh.f32 %v2204_v4 }
 0x2d8   : > { %7640 = vtanh.f32 %v2203_v6  ;;  %v9427_v6 = vld [vmem:[%s14354_s8] ss:$0 sm:$0xff] }
 0x2d9   : > { %7642 = vtanh.f32 %v2202_v9 }
 0x2da   : > { %2684 = vadd.xlane.f32.xlu2 %v2683_v2  ;;  %v2456_v2 = vmul.f32 %v7631_v18, %v9153_v31  ;;  %v7633_v36 = vpop.eup %7632  ;;  %7644 = vtanh.f32 %v2207_v30 }
 0x2db   : > { %2681 = vadd.xlane.f32.xlu1 %v2680_v5  ;;  %v2710_v5 = vsel %vm14175_vm1, %v2458_v59, 0.0  ;;  %v7635_v11 = vpop.eup %7634  ;;  %v2461_v20 = vmul.f32 %v7633_v36, %v9153_v31 }
 0x2dc   : > { %2678 = vadd.xlane.f32.xlu0 %v2677_v8  ;;  %v2707_v8 = vsel %vm14175_vm1, %v2457_v63, 0.0  ;;  %v2704_v12 = vsel %vm14175_vm1, %v2456_v2, 0.0  ;;  %v7637_v7 = vpop.eup %7636  ;;  %v2460_v24 = vmul.f32 %v7635_v11, %v9153_v31 }
 0x2dd   : > { %v9344_v10 = vpop.xlane.xlu2 %2558  ;;  %v2459_v28 = vmul.f32 %v7637_v7, %v9153_v31  ;;  %v2719_v32 = vsel %vm14175_vm1, %v2461_v20, 0.0  ;;  %v7639_v34 = vpop.eup %7638 }
 0x2de   : > { %v9347_v13 = vpop.xlane.xlu1 %2555  ;;  %v2716_v38 = vsel %vm14175_vm1, %v2460_v24, 0.0  ;;  %v7641_v42 = vpop.eup %7640  ;;  %v2464_v48 = vmul.f32 %v7639_v34, %v9153_v31  ;;  %v2117_v24 = vrot.slane %v9139_v17, 5 }
 0x2df   : > { %v9350_v15 = vpop.xlane.xlu0 %2552  ;;  %v2713_v43 = vsel %vm14175_vm1, %v2459_v28, 0.0  ;;  %v7643_v46 = vpop.eup %7642  ;;  %v2463_v51 = vmul.f32 %v7641_v42, %v9153_v31 }
 0x2e0   : > { %v2462_v54 = vmul.f32 %v7643_v46, %v9153_v31  ;;  %v2728_v59 = vsel %vm14175_vm1, %v2464_v48, 0.0  ;;  %v7645_v63 = vpop.eup %7644  ;;  %v9443_v42 = vperm.slane %v2117_v24, 0  ;;  %v2064_v48 = vld [vmem:[#allocation3 + $0x280] sm:$0xff]  ;;  %v2066_v24 = vld [vmem:[#allocation3 + $0x290] sm:$0xff] }
 0x2e1   : > { %v2725_v0 = vsel %vm14175_vm1, %v2463_v51, 0.0  ;;  %v2467_v36 = vmul.f32 %v9427_v6, %v7645_v63 }
 0x2e2   : > { %2693 = vadd.xlane.f32.xlu2 %v2692_v26  ;;  %v2054_v26 = vld [vmem:[#allocation3 + $0x230] sm:$0xff]  ;;  %v2722_v4 = vsel %vm14175_vm1, %v2462_v54, 0.0 }
 0x2e3   : > { %2690 = vadd.xlane.f32.xlu1 %v2689_v29  ;;  %v2053_v29 = vld [vmem:[#allocation3 + $0x228] sm:$0xff]  ;;  %v2737_v28 = vsel %vm14175_vm1, %v2467_v36, 0.0 }
 0x2e4   : > { %2687 = vadd.xlane.f32.xlu0 %v2686_v33  ;;  %v2206_v33 = vadd.f32 %v9360_v35, %v2054_v26  ;;  %v2205_v40 = vadd.f32 %v9360_v35, %v2053_v29 }
 0x2e5   : > { %v9362_v37 = vpop.xlane.xlu2 %2567 }
 0x2e6   : > { %v9365_v41 = vpop.xlane.xlu1 %2564  ;;  %7646 = vtanh.f32 %v2206_v33  ;;  %v2211_v33 = vadd.f32 %v9360_v35, %v2059_v21 }
 0x2e7   : > { %v9368_v45 = vpop.xlane.xlu0 %2561  ;;  %7648 = vtanh.f32 %v2205_v40 }
 0x2ea   : > { %2702 = vadd.xlane.f32.xlu2 %v2701_v49  ;;  %v2058_v49 = vld [vmem:[#allocation3 + $0x250] sm:$0xff] }
 0x2eb   : > { %2699 = vadd.xlane.f32.xlu1 %v2698_v52  ;;  %v2057_v52 = vld [vmem:[#allocation3 + $0x248] sm:$0xff]  ;;  %v2210_v18 = vadd.f32 %v9360_v35, %v2058_v49 }
 0x2ec   : > { %2696 = vadd.xlane.f32.xlu0 %v2695_v55  ;;  %v2056_v55 = vld [vmem:[#allocation3 + $0x240] sm:$0xff]  ;;  %v2209_v60 = vadd.f32 %v9360_v35, %v2057_v52  ;;  %v7647_v3 = vpop.eup %7646  ;;  %v2063_v52 = vld [vmem:[#allocation3 + $0x278] sm:$0xff] }
 0x2ed   : > { %v9377_v57 = vpop.xlane.xlu2 %2576  ;;  %v2208_v2 = vadd.f32 %v9360_v35, %v2056_v55  ;;  %7650 = vtanh.f32 %v2210_v18  ;;  %v2466_v11 = vmul.f32 %v9427_v6, %v7647_v3  ;;  %v2062_v18 = vld [vmem:[#allocation3 + $0x270] sm:$0xff]  ;;  %v2215_v63 = vadd.f32 %v9360_v35, %v2063_v52 }
 0x2ee   : > { %v9380_v62 = vpop.xlane.xlu1 %2573  ;;  %7652 = vtanh.f32 %v2209_v60  ;;  %v2214_v3 = vadd.f32 %v9360_v35, %v2062_v18 }
 0x2ef   : > { %v9383_v1 = vpop.xlane.xlu0 %2570  ;;  %7654 = vtanh.f32 %v2208_v2 }
 0x2f2   : > { %2711 = vadd.xlane.f32.xlu2 %v2710_v5  ;;  %v7649_v5 = vpop.eup %7648 }
 0x2f3   : > { %2708 = vadd.xlane.f32.xlu1 %v2707_v8  ;;  %v2061_v8 = vld [vmem:[#allocation3 + $0x268] sm:$0xff]  ;;  %v2465_v20 = vmul.f32 %v9427_v6, %v7649_v5  ;;  %v7651_v30 = vpop.eup %7650 }
 0x2f4   : > { %2705 = vadd.xlane.f32.xlu0 %v2704_v12  ;;  %v2060_v12 = vld [vmem:[#allocation3 + $0x260] sm:$0xff]  ;;  %v2213_v26 = vadd.f32 %v9360_v35, %v2061_v8  ;;  %v7653_v34 = vpop.eup %7652  ;;  %v2470_v46 = vmul.f32 %v9427_v6, %v7651_v30 }
 0x2f5   : > { %v9392_v14 = vpop.xlane.xlu2 %2585  ;;  %v2212_v29 = vadd.f32 %v9360_v35, %v2060_v12  ;;  %v7655_v40 = vpop.eup %7654  ;;  %v2469_v51 = vmul.f32 %v9427_v6, %v7653_v34  ;;  %v2067_v12 = vld [vmem:[#allocation3 + $0x298] sm:$0xff] }
 0x2f6   : > { %v9395_v23 = vpop.xlane.xlu1 %2582  ;;  %7656 = vtanh.f32 %v2213_v26  ;;  %v2468_v55 = vmul.f32 %v9427_v6, %v7655_v40  ;;  %v2746_v60 = vsel %vm14175_vm1, %v2470_v46, 0.0 }
 0x2f7   : > { %v9398_v27 = vpop.xlane.xlu0 %2579  ;;  %7658 = vtanh.f32 %v2212_v29  ;;  %v2743_v2 = vsel %vm14175_vm1, %v2469_v51, 0.0  ;;  %v2219_v29 = vadd.f32 %v9443_v42, %v2067_v12 }
 0x2f8   : > { %7660 = vtanh.f32 %v2211_v33  ;;  %v2740_v5 = vsel %vm14175_vm1, %v2468_v55, 0.0  ;;  %v2070_v55 = vld [vmem:[#allocation3 + $0x2b0] sm:$0xff] }
 0x2fa   : > { %2720 = vadd.xlane.f32.xlu2 %v2719_v32  ;;  %v2734_v32 = vsel %vm14175_vm1, %v2466_v11, 0.0 }
 0x2fb   : > { %2717 = vadd.xlane.f32.xlu1 %v2716_v38  ;;  %v2731_v38 = vsel %vm14175_vm1, %v2465_v20, 0.0 }
 0x2fc   : > { %2714 = vadd.xlane.f32.xlu0 %v2713_v43 }
 0x2fd   : > { %v9407_v47 = vpop.xlane.xlu2 %2594 }
 0x2fe   : > { %v9410_v50 = vpop.xlane.xlu1 %2591 }
 0x2ff   : > { %v9413_v53 = vpop.xlane.xlu0 %2588 }
 0x302   : > { %2729 = vadd.xlane.f32.xlu2 %v2728_v59  ;;  %v2216_v59 = vadd.f32 %v9443_v42, %v2064_v48 }
 0x303   : > { %2726 = vadd.xlane.f32.xlu1 %v2725_v0  ;;  %v7657_v0 = vpop.eup %7656 }
 0x304   : > { %2723 = vadd.xlane.f32.xlu0 %v2722_v4  ;;  %v7659_v4 = vpop.eup %7658  ;;  %7662 = vtanh.f32 %v2216_v59  ;;  %v2473_v11 = vmul.f32 %v9427_v6, %v7657_v0 }
 0x305   : > { %v9422_v31 = vpop.xlane.xlu2 %2603  ;;  %v7661_v36 = vpop.eup %7660  ;;  %7664 = vtanh.f32 %v2215_v63  ;;  %v2472_v21 = vmul.f32 %v9427_v6, %v7659_v4 }
 0x306   : > { %v9430_v9 = vpop.xlane.xlu1 %2600  ;;  %7666 = vtanh.f32 %v2214_v3  ;;  %v2471_v26 = vmul.f32 %v9427_v6, %v7661_v36  ;;  %v2755_v30 = vsel %vm14175_vm1, %v2473_v11, 0.0  ;;  %v2222_v3 = vadd.f32 %v9443_v42, %v2070_v55 }
 0x307   : > { %v9433_v7 = vpop.xlane.xlu0 %2597  ;;  %v2752_v34 = vsel %vm14175_vm1, %v2472_v21, 0.0  ;;  %7668 = vtanh.f32 %v2219_v29 }
 0x308   : > { %v2749_v46 = vsel %vm14175_vm1, %v2471_v26, 0.0 }
 0x30a   : > { %2738 = vadd.xlane.f32.xlu2 %v2737_v28  ;;  %v2065_v28 = vld [vmem:[#allocation3 + $0x288] sm:$0xff]  ;;  %v7663_v33 = vpop.eup %7662 }
 0x30b   : > { %2735 = vadd.xlane.f32.xlu1 %v2734_v32  ;;  %v2218_v32 = vadd.f32 %v9443_v42, %v2066_v24  ;;  %v7665_v40 = vpop.eup %7664  ;;  %v2476_v52 = vmul.f32 %v9427_v6, %v7663_v33 }
 0x30c   : > { %2732 = vadd.xlane.f32.xlu0 %v2731_v38  ;;  %v2217_v38 = vadd.f32 %v9443_v42, %v2065_v28  ;;  %v7667_v48 = vpop.eup %7666  ;;  %v2475_v59 = vmul.f32 %v9427_v6, %v7665_v40 }
 0x30d   : > { %v9445_v43 = vpop.xlane.xlu2 %2612  ;;  %7670 = vtanh.f32 %v2218_v32  ;;  %v2474_v0 = vmul.f32 %v9427_v6, %v7667_v48  ;;  %v2764_v4 = vsel %vm14175_vm1, %v2476_v52, 0.0  ;;  %v7669_v36 = vpop.eup %7668 }
 0x30e   : > { %v9448_v49 = vpop.xlane.xlu1 %2609  ;;  %7672 = vtanh.f32 %v2217_v38  ;;  %v2761_v11 = vsel %vm14175_vm1, %v2475_v59, 0.0  ;;  %v2479_v29 = vmul.f32 %v9427_v6, %v7669_v36 }
 0x30f   : > { %v9451_v54 = vpop.xlane.xlu0 %2606  ;;  %v2758_v24 = vsel %vm14175_vm1, %v2474_v0, 0.0  ;;  %7674 = vtanh.f32 %v2222_v3 }
 0x310   : > { %v2773_v52 = vsel %vm14175_vm1, %v2479_v29, 0.0 }
 0x312   : > { %2747 = vadd.xlane.f32.xlu2 %v2746_v60  ;;  %v2069_v60 = vld [vmem:[#allocation3 + $0x2a8] sm:$0xff] }
 0x313   : > { %2744 = vadd.xlane.f32.xlu1 %v2743_v2  ;;  %v2068_v2 = vld [vmem:[#allocation3 + $0x2a0] sm:$0xff]  ;;  %v7671_v21 = vpop.eup %7670 }
 0x314   : > { %2741 = vadd.xlane.f32.xlu0 %v2740_v5  ;;  %v2221_v5 = vadd.f32 %v9443_v42, %v2069_v60  ;;  %v2220_v12 = vadd.f32 %v9443_v42, %v2068_v2  ;;  %v7673_v26 = vpop.eup %7672  ;;  %v2478_v33 = vmul.f32 %v9427_v6, %v7671_v21 }
 0x315   : > { %v9460_v8 = vpop.xlane.xlu2 %2621  ;;  %v2477_v40 = vmul.f32 %v9427_v6, %v7673_v26  ;;  %v7675_v59 = vpop.eup %7674 }
 0x316   : > { %v9463_v20 = vpop.xlane.xlu1 %2618  ;;  %7676 = vtanh.f32 %v2221_v5  ;;  %v2770_v60 = vsel %vm14175_vm1, %v2478_v33, 0.0  ;;  %v2482_v36 = vmul.f32 %v9427_v6, %v7675_v59 }
 0x317   : > { %v9466_v35 = vpop.xlane.xlu0 %2615  ;;  %7678 = vtanh.f32 %v2220_v12  ;;  %v2767_v3 = vsel %vm14175_vm1, %v2477_v40, 0.0 }
 0x31a   : > { %2756 = vadd.xlane.f32.xlu2 %v2755_v30  ;;  %v2073_v30 = vld [vmem:[#allocation3 + $0x2c8] sm:$0xff] }
 0x31b   : > { %2753 = vadd.xlane.f32.xlu1 %v2752_v34  ;;  %v2072_v34 = vld [vmem:[#allocation3 + $0x2c0] sm:$0xff]  ;;  %v2225_v48 = vadd.f32 %v9443_v42, %v2073_v30  ;;  %v2074_v30 = vld [vmem:[#allocation3 + $0x2d0] sm:$0xff] }
 0x31c   : > { %2750 = vadd.xlane.f32.xlu0 %v2749_v46  ;;  %v2071_v46 = vld [vmem:[#allocation3 + $0x2b8] sm:$0xff]  ;;  %v2224_v55 = vadd.f32 %v9443_v42, %v2072_v34  ;;  %v7677_v2 = vpop.eup %7676  ;;  %v2782_v34 = vsel %vm14175_vm1, %v2482_v36, 0.0 }
 0x31d   : > { %v9475_v51 = vpop.xlane.xlu2 %2630  ;;  %v2223_v0 = vadd.f32 %v9443_v42, %v2071_v46  ;;  %7680 = vtanh.f32 %v2225_v48  ;;  %v2481_v21 = vmul.f32 %v9427_v6, %v7677_v2 }
 0x31e   : > { %v9478_v18 = vpop.xlane.xlu1 %2627  ;;  %7682 = vtanh.f32 %v2224_v55 }
 0x31f   : > { %v9481_v63 = vpop.xlane.xlu0 %2624  ;;  %7684 = vtanh.f32 %v2223_v0  ;;  %v2779_v48 = vsel %vm14175_vm1, %v2481_v21, 0.0 }
 0x322   : > { %2765 = vadd.xlane.f32.xlu2 %v2764_v4  ;;  %v7679_v4 = vpop.eup %7678 }
 0x323   : > { %2762 = vadd.xlane.f32.xlu1 %v2761_v11  ;;  %v2076_v11 = vld [vmem:[#allocation3 + $0x2e0] sm:$0xff]  ;;  %v2480_v29 = vmul.f32 %v9427_v6, %v7679_v4  ;;  %v7681_v46 = vpop.eup %7680 }
 0x324   : > { %2759 = vadd.xlane.f32.xlu0 %v2758_v24  ;;  %v2075_v24 = vld [vmem:[#allocation3 + $0x2d8] sm:$0xff]  ;;  %v2228_v33 = vadd.f32 %v9443_v42, %v2076_v11  ;;  %v7683_v55 = vpop.eup %7682  ;;  %v2485_v2 = vmul.f32 %v9427_v6, %v7681_v46  ;;  %v2078_v11 = vld [vmem:[#allocation3 + $0x2f0] sm:$0xff] }
 0x325   : > { %v9490_v28 = vpop.xlane.xlu2 %2639  ;;  %v2227_v40 = vadd.f32 %v9443_v42, %v2075_v24  ;;  %v2776_v59 = vsel %vm14175_vm1, %v2480_v29, 0.0  ;;  %v2484_v36 = vmul.f32 %v9427_v6, %v7683_v55  ;;  %v2077_v29 = vld [vmem:[#allocation3 + $0x2e8] sm:$0xff] }
 0x326   : > { %v9493_v32 = vpop.xlane.xlu1 %2636  ;;  %7686 = vtanh.f32 %v2228_v33 }
 0x327   : > { %v9496_v38 = vpop.xlane.xlu0 %2633  ;;  %7688 = vtanh.f32 %v2227_v40  ;;  %v2230_v40 = vadd.f32 %v9443_v42, %v2078_v11  ;;  %v2082_v11 = vld [vmem:[#allocation3 + $0x310] sm:$0xff] }
 0x32a   : > { %2774 = vadd.xlane.f32.xlu2 %v2773_v52  ;;  %v2226_v52 = vadd.f32 %v9443_v42, %v2074_v30  ;;  %v2118_v30 = vrot.slane %v9139_v17, 6 }
 0x32b   : > { %2771 = vadd.xlane.f32.xlu1 %v2770_v60  ;;  %v7685_v60 = vpop.eup %7684 }
 0x32c   : > { %2768 = vadd.xlane.f32.xlu0 %v2767_v3  ;;  %v2079_v3 = vld [vmem:[#allocation3 + $0x2f8] sm:$0xff]  ;;  %7690 = vtanh.f32 %v2226_v52  ;;  %v2483_v24 = vmul.f32 %v9427_v6, %v7685_v60  ;;  %v7687_v46 = vpop.eup %7686  ;;  %v2229_v52 = vadd.f32 %v9443_v42, %v2077_v29 }
 0x32d   : > { %v9505_v5 = vpop.xlane.xlu2 %2648  ;;  %v2231_v33 = vadd.f32 %v9443_v42, %v2079_v3  ;;  %v7689_v55 = vpop.eup %7688  ;;  %v2081_v42 = vld [vmem:[#allocation3 + $0x308] sm:$0xff] }
 0x32e   : > { %v9508_v12 = vpop.xlane.xlu1 %2645 }
 0x32f   : > { %v9511_v26 = vpop.xlane.xlu0 %2642  ;;  %7692 = vtanh.f32 %v2231_v33 }
 0x330   : > { %14355 = vst [vmem:[#allocation19_spill] sm:$0xff] %v9511_v26  ;;  %7694 = vtanh.f32 %v2230_v40 }
 0x331   : > { %7696 = vtanh.f32 %v2229_v52 }
 0x332   : > { %2783 = vadd.xlane.f32.xlu2 %v2782_v34  ;;  %v2791_v34 = vsel %vm14175_vm1, %v2485_v2, 0.0  ;;  %v7691_v60 = vpop.eup %7690  ;;  %v2488_v2 = vmul.f32 %v9427_v6, %v7687_v46 }
 0x333   : > { %2780 = vadd.xlane.f32.xlu1 %v2779_v48  ;;  %v2788_v48 = vsel %vm14175_vm1, %v2484_v36, 0.0  ;;  %v2487_v36 = vmul.f32 %v9427_v6, %v7689_v55 }
 0x334   : > { %2777 = vadd.xlane.f32.xlu0 %v2776_v59  ;;  %v2785_v59 = vsel %vm14175_vm1, %v2483_v24, 0.0  ;;  %v2486_v24 = vmul.f32 %v9427_v6, %v7691_v60  ;;  %v2800_v33 = vsel %vm14175_vm1, %v2488_v2, 0.0  ;;  %v2085_v2 = vld [vmem:[#allocation3 + $0x328] sm:$0xff] }
 0x335   : > { %v9520_v0 = vpop.xlane.xlu2 %2657  ;;  %v7693_v46 = vpop.eup %7692  ;;  %v2797_v40 = vsel %vm14175_vm1, %v2487_v36, 0.0  ;;  %v2084_v36 = vld [vmem:[#allocation3 + $0x320] sm:$0xff] }
 0x336   : > { %v9523_v4 = vpop.xlane.xlu1 %2654  ;;  %v7695_v55 = vpop.eup %7694  ;;  %v2794_v52 = vsel %vm14175_vm1, %v2486_v24, 0.0 }
 0x337   : > { %v9526_v21 = vpop.xlane.xlu0 %2651 }
 0x338   : > { %14356 = vst [vmem:[#allocation20_spill] sm:$0xff] %v9526_v21  ;;  %v9536_v21 = vperm.slane %v2118_v30, 0  ;;  %v2080_v30 = vld [vmem:[#allocation3 + $0x300] sm:$0xff] }
 0x33a   : > { %2792 = vadd.xlane.f32.xlu2 %v2791_v34 }
 0x33b   : > { %2789 = vadd.xlane.f32.xlu1 %v2788_v48  ;;  %v2234_v48 = vadd.f32 %v9536_v21, %v2082_v11  ;;  %v2491_v11 = vmul.f32 %v9427_v6, %v7693_v46 }
 0x33c   : > { %2786 = vadd.xlane.f32.xlu0 %v2785_v59  ;;  %v2233_v59 = vadd.f32 %v9536_v21, %v2081_v42 }
 0x33d   : > { %v9538_v3 = vpop.xlane.xlu2 %2666  ;;  %7698 = vtanh.f32 %v2234_v48  ;;  %v2809_v48 = vsel %vm14175_vm1, %v2491_v11, 0.0  ;;  %v2088_v11 = vld [vmem:[#allocation3 + $0x340] sm:$0xff] }
 0x33e   : > { %14357 = vst [vmem:[#allocation21_spill] sm:$0xff] %v9538_v3  ;;  %v9541_v34 = vpop.xlane.xlu1 %2663  ;;  %v2232_v3 = vadd.f32 %v9536_v21, %v2080_v30  ;;  %7700 = vtanh.f32 %v2233_v59 }
 0x33f   : > { %v9544_v29 = vpop.xlane.xlu0 %2660 }
 0x340   : > { %14358 = vst [vmem:[#allocation22_spill] sm:$0xff] %v9544_v29  ;;  %v7697_v29 = vpop.eup %7696  ;;  %7702 = vtanh.f32 %v2232_v3 }
 0x341   : > { %v2489_v24 = vmul.f32 %v9427_v6, %v7697_v29 }
 0x342   : > { %2801 = vadd.xlane.f32.xlu2 %v2800_v33  ;;  %v2490_v33 = vmul.f32 %v9427_v6, %v7695_v55 }
 0x343   : > { %2798 = vadd.xlane.f32.xlu1 %v2797_v40  ;;  %v2083_v40 = vld [vmem:[#allocation3 + $0x318] sm:$0xff]  ;;  %v7699_v46 = vpop.eup %7698  ;;  %v2803_v3 = vsel %vm14175_vm1, %v2489_v24, 0.0 }
 0x344   : > { %2795 = vadd.xlane.f32.xlu0 %v2794_v52  ;;  %v2237_v52 = vadd.f32 %v9536_v21, %v2085_v2  ;;  %v2806_v59 = vsel %vm14175_vm1, %v2490_v33, 0.0  ;;  %v7701_v55 = vpop.eup %7700  ;;  %v2494_v2 = vmul.f32 %v9427_v6, %v7699_v46  ;;  %v2087_v33 = vld [vmem:[#allocation3 + $0x338] sm:$0xff] }
 0x345   : > { %v9553_v60 = vpop.xlane.xlu2 %2675 }
 0x346   : > { %14359 = vst [vmem:[#allocation23_spill] sm:$0xff] %v9553_v60  ;;  %v9556_v42 = vpop.xlane.xlu1 %2672  ;;  %v2236_v60 = vadd.f32 %v9536_v21, %v2084_v36  ;;  %7704 = vtanh.f32 %v2237_v52  ;;  %v2818_v52 = vsel %vm14175_vm1, %v2494_v2, 0.0  ;;  %v2091_v2 = vld [vmem:[#allocation3 + $0x358] sm:$0xff] }
 0x347   : > { %14360 = vst [vmem:[#allocation24_spill] sm:$0xff] %v9556_v42  ;;  %v9559_v30 = vpop.xlane.xlu0 %2669  ;;  %v2235_v42 = vadd.f32 %v9536_v21, %v2083_v40 }
 0x348   : > { %14361 = vst [vmem:[#allocation25_spill] sm:$0xff] %v9559_v30  ;;  %v7703_v30 = vpop.eup %7702  ;;  %7706 = vtanh.f32 %v2236_v60 }
 0x349   : > { %7708 = vtanh.f32 %v2235_v42  ;;  %v2492_v24 = vmul.f32 %v9427_v6, %v7703_v30 }
 0x34a   : > { %2810 = vadd.xlane.f32.xlu2 %v2809_v48  ;;  %v2493_v48 = vmul.f32 %v9427_v6, %v7701_v55 }
 0x34b   : > { %2807 = vadd.xlane.f32.xlu1 %v2806_v59  ;;  %v2086_v59 = vld [vmem:[#allocation3 + $0x330] sm:$0xff]  ;;  %v2812_v42 = vsel %vm14175_vm1, %v2492_v24, 0.0 }
 0x34c   : > { %2804 = vadd.xlane.f32.xlu0 %v2803_v3  ;;  %v2240_v3 = vadd.f32 %v9536_v21, %v2088_v11  ;;  %v7705_v46 = vpop.eup %7704  ;;  %v2815_v60 = vsel %vm14175_vm1, %v2493_v48, 0.0  ;;  %v2090_v48 = vld [vmem:[#allocation3 + $0x350] sm:$0xff] }
 0x34d   : > { %v9568_v29 = vpop.xlane.xlu2 %2684  ;;  %v2497_v11 = vmul.f32 %v9427_v6, %v7705_v46 }
 0x34e   : > { %14362 = vst [vmem:[#allocation26_spill] sm:$0xff] %v9568_v29  ;;  %v9571_v36 = vpop.xlane.xlu1 %2681  ;;  %v2239_v29 = vadd.f32 %v9536_v21, %v2087_v33  ;;  %v7707_v55 = vpop.eup %7706  ;;  %7710 = vtanh.f32 %v2240_v3 }
 0x34f   : > { %14363 = vst [vmem:[#allocation27_spill] sm:$0xff] %v9571_v36  ;;  %v9574_v40 = vpop.xlane.xlu0 %2678  ;;  %v2238_v36 = vadd.f32 %v9536_v21, %v2086_v59  ;;  %v2827_v3 = vsel %vm14175_vm1, %v2497_v11, 0.0  ;;  %v2094_v11 = vld [vmem:[#allocation3 + $0x370] sm:$0xff] }
 0x350   : > { %14364 = vst [vmem:[#allocation28_spill] sm:$0xff] %v9574_v40  ;;  %v7709_v40 = vpop.eup %7708  ;;  %7712 = vtanh.f32 %v2239_v29 }
 0x351   : > { %7714 = vtanh.f32 %v2238_v36  ;;  %v2495_v24 = vmul.f32 %v9427_v6, %v7709_v40 }
 0x352   : > { %2819 = vadd.xlane.f32.xlu2 %v2818_v52  ;;  %v2496_v52 = vmul.f32 %v9427_v6, %v7707_v55 }
 0x353   : > { %2816 = vadd.xlane.f32.xlu1 %v2815_v60  ;;  %v2089_v60 = vld [vmem:[#allocation3 + $0x348] sm:$0xff]  ;;  %v2821_v36 = vsel %vm14175_vm1, %v2495_v24, 0.0 }
 0x354   : > { %2813 = vadd.xlane.f32.xlu0 %v2812_v42  ;;  %v2243_v42 = vadd.f32 %v9536_v21, %v2091_v2  ;;  %v7711_v46 = vpop.eup %7710  ;;  %v2824_v29 = vsel %vm14175_vm1, %v2496_v52, 0.0  ;;  %v2093_v52 = vld [vmem:[#allocation3 + $0x368] sm:$0xff] }
 0x355   : > { %v9583_v30 = vpop.xlane.xlu2 %2693  ;;  %v2500_v2 = vmul.f32 %v9427_v6, %v7711_v46 }
 0x356   : > { %14365 = vst [vmem:[#allocation29_spill] sm:$0xff] %v9583_v30  ;;  %v9586_v33 = vpop.xlane.xlu1 %2690  ;;  %v2242_v30 = vadd.f32 %v9536_v21, %v2090_v48  ;;  %v7713_v55 = vpop.eup %7712  ;;  %7716 = vtanh.f32 %v2243_v42  ;;  %v2246_v42 = vadd.f32 %v9536_v21, %v2094_v11  ;;  %v2097_v11 = vld [vmem:[#allocation3 + $0x388] sm:$0xff] }
 0x357   : > { %14366 = vst [vmem:[#allocation30_spill] sm:$0xff] %v9586_v33  ;;  %v9589_v59 = vpop.xlane.xlu0 %2687  ;;  %v2241_v33 = vadd.f32 %v9536_v21, %v2089_v60 }
 0x358   : > { %14367 = vst [vmem:[#allocation31_spill] sm:$0xff] %v9589_v59  ;;  %v7715_v59 = vpop.eup %7714  ;;  %7718 = vtanh.f32 %v2242_v30  ;;  %v2245_v30 = vadd.f32 %v9536_v21, %v2093_v52  ;;  %v2096_v52 = vld [vmem:[#allocation3 + $0x380] sm:$0xff] }
 0x359   : > { %7720 = vtanh.f32 %v2241_v33  ;;  %v2498_v24 = vmul.f32 %v9427_v6, %v7715_v59 }
 0x35a   : > { %2828 = vadd.xlane.f32.xlu2 %v2827_v3  ;;  %v2499_v3 = vmul.f32 %v9427_v6, %v7713_v55  ;;  %7722 = vtanh.f32 %v2246_v42 }
 0x35b   : > { %2825 = vadd.xlane.f32.xlu1 %v2824_v29  ;;  %v2092_v29 = vld [vmem:[#allocation3 + $0x360] sm:$0xff]  ;;  %7724 = vtanh.f32 %v2245_v30 }
 0x35c   : > { %2822 = vadd.xlane.f32.xlu0 %v2821_v36  ;;  %v2119_v36 = vrot.slane %v9139_v17, 7  ;;  %v7717_v46 = vpop.eup %7716  ;;  %v2244_v33 = vadd.f32 %v9536_v21, %v2092_v29 }
 0x35d   : > { %v9598_v40 = vpop.xlane.xlu2 %2702 }
 0x35e   : > { %14368 = vst [vmem:[#allocation32_spill] sm:$0xff] %v9598_v40  ;;  %v9601_v48 = vpop.xlane.xlu1 %2699  ;;  %v2836_v40 = vsel %vm14175_vm1, %v2500_v2, 0.0  ;;  %v7719_v55 = vpop.eup %7718  ;;  %v9614_v26 = vperm.slane %v2119_v36, 0  ;;  %v2503_v2 = vmul.f32 %v9427_v6, %v7717_v46  ;;  %7726 = vtanh.f32 %v2244_v33 }
 0x35f   : > { %14369 = vst [vmem:[#allocation33_spill] sm:$0xff] %v9601_v48  ;;  %v9604_v60 = vpop.xlane.xlu0 %2696  ;;  %v2833_v48 = vsel %vm14175_vm1, %v2499_v3, 0.0  ;;  %v7721_v59 = vpop.eup %7720  ;;  %v2502_v3 = vmul.f32 %v9427_v6, %v7719_v55 }
 0x360   : > { %14370 = vst [vmem:[#allocation34_spill] sm:$0xff] %v9604_v60  ;;  %v2830_v60 = vsel %vm14175_vm1, %v2498_v24, 0.0  ;;  %v2095_v24 = vld [vmem:[#allocation3 + $0x378] sm:$0xff]  ;;  %v2845_v36 = vsel %vm14175_vm1, %v2503_v2, 0.0  ;;  %v2248_v42 = vadd.f32 %v9614_v26, %v2096_v52  ;;  %v7723_v46 = vpop.eup %7722  ;;  %v2100_v2 = vld [vmem:[#allocation3 + $0x3a0] sm:$0xff] }
 0x361   : > { %v2842_v30 = vsel %vm14175_vm1, %v2502_v3, 0.0  ;;  %v7725_v55 = vpop.eup %7724  ;;  %v2099_v3 = vld [vmem:[#allocation3 + $0x398] sm:$0xff] }
 0x362   : > { %2837 = vadd.xlane.f32.xlu2 %v2836_v40 }
 0x363   : > { %2834 = vadd.xlane.f32.xlu1 %v2833_v48  ;;  %v2501_v48 = vmul.f32 %v9427_v6, %v7721_v59 }
 0x364   : > { %2831 = vadd.xlane.f32.xlu0 %v2830_v60  ;;  %v2249_v60 = vadd.f32 %v9614_v26, %v2097_v11  ;;  %v2506_v11 = vmul.f32 %v9427_v6, %v7723_v46 }
 0x365   : > { %v9616_v17 = vpop.xlane.xlu2 %2711  ;;  %v2839_v33 = vsel %vm14175_vm1, %v2501_v48, 0.0 }
 0x366   : > { %14371 = vst [vmem:[#allocation35_spill] sm:$0xff] %v9616_v17  ;;  %v9619_v40 = vpop.xlane.xlu1 %2708  ;;  %v2247_v17 = vadd.f32 %v9536_v21, %v2095_v24  ;;  %7728 = vtanh.f32 %v2249_v60  ;;  %v2098_v24 = vld [vmem:[#allocation3 + $0x390] sm:$0xff]  ;;  %v2854_v60 = vsel %vm14175_vm1, %v2506_v11, 0.0  ;;  %v2103_v11 = vld [vmem:[#allocation3 + $0x3b8] sm:$0xff] }
 0x367   : > { %v9622_v29 = vpop.xlane.xlu0 %2705  ;;  %7730 = vtanh.f32 %v2248_v42 }
 0x368   : > { %14372 = vst [vmem:[#allocation36_spill] sm:$0xff] %v9622_v29  ;;  %v7727_v29 = vpop.eup %7726  ;;  %7732 = vtanh.f32 %v2247_v17 }
 0x369   : > { %v2504_v48 = vmul.f32 %v9427_v6, %v7727_v29 }
 0x36a   : > { %2846 = vadd.xlane.f32.xlu2 %v2845_v36  ;;  %v2505_v36 = vmul.f32 %v9427_v6, %v7725_v55 }
 0x36b   : > { %2843 = vadd.xlane.f32.xlu1 %v2842_v30  ;;  %v2252_v30 = vadd.f32 %v9614_v26, %v2100_v2  ;;  %v2848_v17 = vsel %vm14175_vm1, %v2504_v48, 0.0 }
 0x36c   : > { %2840 = vadd.xlane.f32.xlu0 %v2839_v33  ;;  %v2251_v33 = vadd.f32 %v9614_v26, %v2099_v3  ;;  %v7729_v46 = vpop.eup %7728  ;;  %v2851_v42 = vsel %vm14175_vm1, %v2505_v36, 0.0  ;;  %v2102_v36 = vld [vmem:[#allocation3 + $0x3b0] sm:$0xff] }
 0x36d   : > { %v9631_v59 = vpop.xlane.xlu2 %2720  ;;  %v7731_v55 = vpop.eup %7730  ;;  %7734 = vtanh.f32 %v2252_v30  ;;  %v2509_v2 = vmul.f32 %v9427_v6, %v7729_v46 }
 0x36e   : > { %14373 = vst [vmem:[#allocation37_spill] sm:$0xff] %v9631_v59  ;;  %v9634_v52 = vpop.xlane.xlu1 %2717  ;;  %v2250_v59 = vadd.f32 %v9614_v26, %v2098_v24  ;;  %7736 = vtanh.f32 %v2251_v33 }
 0x36f   : > { %14374 = vst [vmem:[#allocation38_spill] sm:$0xff] %v9634_v52  ;;  %v9637_v21 = vpop.xlane.xlu0 %2714  ;;  %v2863_v30 = vsel %vm14175_vm1, %v2509_v2, 0.0  ;;  %v2106_v2 = vld [vmem:[#allocation3 + $0x3d0] sm:$0xff]  ;;  %v14044_v52 = vlaneseq }
 0x370   : > { %14375 = vst [vmem:[#allocation39_spill] sm:$0xff] %v9637_v21  ;;  %v7733_v21 = vpop.eup %7732  ;;  %7738 = vtanh.f32 %v2250_v59 }
 0x371   : > { %v2507_v48 = vmul.f32 %v9427_v6, %v7733_v21 }
 0x372   : > { %2855 = vadd.xlane.f32.xlu2 %v2854_v60  ;;  %v2508_v60 = vmul.f32 %v9427_v6, %v7731_v55 }
 0x373   : > { %2852 = vadd.xlane.f32.xlu1 %v2851_v42  ;;  %v2101_v42 = vld [vmem:[#allocation3 + $0x3a8] sm:$0xff]  ;;  %v7735_v46 = vpop.eup %7734  ;;  %v2857_v59 = vsel %vm14175_vm1, %v2507_v48, 0.0 }
 0x374   : > { %2849 = vadd.xlane.f32.xlu0 %v2848_v17  ;;  %v2255_v17 = vadd.f32 %v9614_v26, %v2103_v11  ;;  %v2860_v33 = vsel %vm14175_vm1, %v2508_v60, 0.0  ;;  %v7737_v55 = vpop.eup %7736  ;;  %v2512_v11 = vmul.f32 %v9427_v6, %v7735_v46  ;;  %v2105_v60 = vld [vmem:[#allocation3 + $0x3c8] sm:$0xff] }
 0x375   : > { %v9646_v29 = vpop.xlane.xlu2 %2729 }
 0x376   : > { %14376 = vst [vmem:[#allocation40_spill] sm:$0xff] %v9646_v29  ;;  %v9649_v3 = vpop.xlane.xlu1 %2726  ;;  %v2254_v29 = vadd.f32 %v9614_v26, %v2102_v36  ;;  %7740 = vtanh.f32 %v2255_v17  ;;  %v2872_v17 = vsel %vm14175_vm1, %v2512_v11, 0.0  ;;  %v2109_v11 = vld [vmem:[#allocation3 + $0x3e8] sm:$0xff] }
 0x377   : > { %14377 = vst [vmem:[#allocation41_spill] sm:$0xff] %v9649_v3  ;;  %v9652_v24 = vpop.xlane.xlu0 %2723  ;;  %v2253_v3 = vadd.f32 %v9614_v26, %v2101_v42 }
 0x378   : > { %14378 = vst [vmem:[#allocation42_spill] sm:$0xff] %v9652_v24  ;;  %v7739_v24 = vpop.eup %7738  ;;  %7742 = vtanh.f32 %v2254_v29 }
 0x379   : > { %7744 = vtanh.f32 %v2253_v3  ;;  %v2510_v48 = vmul.f32 %v9427_v6, %v7739_v24 }
 0x37a   : > { %2864 = vadd.xlane.f32.xlu2 %v2863_v30  ;;  %v2511_v30 = vmul.f32 %v9427_v6, %v7737_v55 }
 0x37b   : > { %2861 = vadd.xlane.f32.xlu1 %v2860_v33  ;;  %v2104_v33 = vld [vmem:[#allocation3 + $0x3c0] sm:$0xff]  ;;  %v2866_v3 = vsel %vm14175_vm1, %v2510_v48, 0.0 }
 0x37c   : > { %2858 = vadd.xlane.f32.xlu0 %v2857_v59  ;;  %v2258_v59 = vadd.f32 %v9614_v26, %v2106_v2  ;;  %v7741_v46 = vpop.eup %7740  ;;  %v2869_v29 = vsel %vm14175_vm1, %v2511_v30, 0.0  ;;  %v2108_v30 = vld [vmem:[#allocation3 + $0x3e0] sm:$0xff] }
 0x37d   : > { %v9661_v21 = vpop.xlane.xlu2 %2738  ;;  %v2515_v2 = vmul.f32 %v9427_v6, %v7741_v46  ;;  %v2260_v46 = vadd.f32 %v9614_v26, %v2108_v30 }
 0x37e   : > { %14379 = vst [vmem:[#allocation43_spill] sm:$0xff] %v9661_v21  ;;  %v9664_v36 = vpop.xlane.xlu1 %2735  ;;  %v2257_v21 = vadd.f32 %v9614_v26, %v2105_v60  ;;  %v7743_v55 = vpop.eup %7742  ;;  %7746 = vtanh.f32 %v2258_v59  ;;  %v2261_v59 = vadd.f32 %v9614_v26, %v2109_v11 }
 0x37f   : > { %14380 = vst [vmem:[#allocation44_spill] sm:$0xff] %v9664_v36  ;;  %v9667_v42 = vpop.xlane.xlu0 %2732  ;;  %v2256_v36 = vadd.f32 %v9614_v26, %v2104_v33 }
 0x380   : > { %14381 = vst [vmem:[#allocation45_spill] sm:$0xff] %v9667_v42  ;;  %v7745_v42 = vpop.eup %7744  ;;  %7748 = vtanh.f32 %v2257_v21  ;;  %v9689_v21 = vshrl.u32 %v14044_v52, 7 }
 0x381   : > { %7750 = vtanh.f32 %v2256_v36  ;;  %v2513_v48 = vmul.f32 %v9427_v6, %v7745_v42 }
 0x382   : > { %2873 = vadd.xlane.f32.xlu2 %v2872_v17  ;;  %v2514_v17 = vmul.f32 %v9427_v6, %v7743_v55  ;;  %7752 = vtanh.f32 %v2261_v59 }
 0x383   : > { %2870 = vadd.xlane.f32.xlu1 %v2869_v29  ;;  %v2107_v29 = vld [vmem:[#allocation3 + $0x3d8] sm:$0xff]  ;;  %v2875_v42 = vsel %vm14175_vm1, %v2513_v48, 0.0  ;;  %7476 = vset.pattern.permute.xlu2 %v9689_v21  ;;  %7754 = vtanh.f32 %v2260_v46 }
 0x384   : > { %2867 = vadd.xlane.f32.xlu0 %v2866_v3  ;;  %v2881_v3 = vsel %vm14175_vm1, %v2515_v2, 0.0  ;;  %v2878_v36 = vsel %vm14175_vm1, %v2514_v17, 0.0  ;;  %v2259_v55 = vadd.f32 %v9614_v26, %v2107_v29  ;;  %v2111_v29 = vld [vmem:[#allocation3 + $0x3f8] sm:$0xff] }
 0x385   : > { %v9676_v24 = vpop.xlane.xlu2 %2747 }
 0x386   : > { %14382 = vst [vmem:[#allocation46_spill] sm:$0xff] %v9676_v24  ;;  %v9679_v60 = vpop.xlane.xlu1 %2744  ;;  %v7747_v24 = vpop.eup %7746  ;;  %7756 = vtanh.f32 %v2259_v55  ;;  %v2925_v55 = vadd.s32 16, %v9689_v21 }
 0x387   : > { %14383 = vst [vmem:[#allocation47_spill] sm:$0xff] %v9679_v60  ;;  %v9682_v33 = vpop.xlane.xlu0 %2741  ;;  %v2518_v30 = vmul.f32 %v9427_v6, %v7747_v24  ;;  %v2919_v60 = vadd.s32 8, %v9689_v21 }
 0x388   : > { %14384 = vst [vmem:[#allocation48_spill] sm:$0xff] %v9682_v33  ;;  %v7749_v33 = vpop.eup %7748  ;;  %7478 = vset.pattern.permute.xlu1 %v2925_v55 }
 0x389   : > { %v7751_v11 = vpop.eup %7750  ;;  %v2517_v17 = vmul.f32 %v9427_v6, %v7749_v33  ;;  %v2890_v59 = vsel %vm14175_vm1, %v2518_v30, 0.0  ;;  %7477 = vset.pattern.permute.xlu0 %v2919_v60 }
 0x38a   : > { %2882 = vadd.xlane.f32.xlu2 %v2881_v3  ;;  %v2516_v48 = vmul.f32 %v9427_v6, %v7751_v11  ;;  %v7753_v24 = vpop.eup %7752 }
 0x38b   : > { %2879 = vadd.xlane.f32.xlu1 %v2878_v36  ;;  %v2110_v36 = vld [vmem:[#allocation3 + $0x3f0] sm:$0xff]  ;;  %v2887_v46 = vsel %vm14175_vm1, %v2517_v17, 0.0  ;;  %v2521_v30 = vmul.f32 %v9427_v6, %v7753_v24 }
 0x38c   : > { %2876 = vadd.xlane.f32.xlu0 %v2875_v42  ;;  %v2263_v42 = vadd.f32 %v9614_v26, %v2111_v29  ;;  %v2262_v33 = vadd.f32 %v9614_v26, %v2110_v36 }
 0x38d   : > { %v9695_v2 = vpop.xlane.xlu2 %2756 }
 0x38e   : > { %14385 = vst [vmem:[#allocation49_spill] sm:$0xff] %v9695_v2  ;;  %v9698_v52 = vpop.xlane.xlu1 %2753  ;;  %v7755_v2 = vpop.eup %7754  ;;  %7758 = vtanh.f32 %v2263_v42 }
 0x38f   : > { %14386 = vst [vmem:[#allocation50_spill] sm:$0xff] %v9698_v52  ;;  %v9701_v3 = vpop.xlane.xlu0 %2750  ;;  %v7757_v11 = vpop.eup %7756  ;;  %v2520_v17 = vmul.f32 %v9427_v6, %v7755_v2  ;;  %7760 = vtanh.f32 %v2262_v33 }
 0x390   : > { %14387 = vst [vmem:[#allocation51_spill] sm:$0xff] %v9701_v3  ;;  %v2884_v3 = vsel %vm14175_vm1, %v2516_v48, 0.0  ;;  %v2519_v29 = vmul.f32 %v9427_v6, %v7757_v11  ;;  %v2899_v48 = vsel %vm14175_vm1, %v2521_v30, 0.0 }
 0x392   : > { %2891 = vadd.xlane.f32.xlu2 %v2890_v59  ;;  %v2893_v59 = vsel %vm14175_vm1, %v2519_v29, 0.0 }
 0x393   : > { %2888 = vadd.xlane.f32.xlu1 %v2887_v46 }
 0x394   : > { %2885 = vadd.xlane.f32.xlu0 %v2884_v3  ;;  %v2896_v3 = vsel %vm14175_vm1, %v2520_v17, 0.0  ;;  %v7759_v36 = vpop.eup %7758 }
 0x395   : > { %v9711_v52 = vpop.xlane.xlu2 %2765  ;;  %v7761_v24 = vpop.eup %7760  ;;  %v2523_v2 = vmul.f32 %v9427_v6, %v7759_v36 }
 0x396   : > { %v9714_v60 = vpop.xlane.xlu1 %2762  ;;  %v2522_v55 = vmul.f32 %v9427_v6, %v7761_v24  ;;  %v9746_v6 = vld [vmem:[%s14392_s28] ss:$0 sm:$0xff]  ;;  %s8048_s28 = scalar_lea.hbm %s8047_s25, 8 }
 0x397   : > { %v9717_v26 = vpop.xlane.xlu0 %2759  ;;  %v2905_v11 = vsel %vm14175_vm1, %v2523_v2, 0.0  ;;  %p8049_p12 = scmp.ne.s32.totalorder %s8047_s25, %s8048_s28  ;;  %p8054_p3 = scmp.lt.s32.totalorder %s8052_s5, %s8048_s28 }
 0x398   : > { %v2902_v30 = vsel %vm14175_vm1, %v2522_v55, 0.0  ;;  %v2931_v55 = vadd.s32 24, %v9689_v21  ;;  %vm14176_vm1 = vcmask 1041409  }
 0x399   : > { %p8050_p13 = pnand %p8049_p12, %p8309_p5  ;;  %p8055_p4 = por %p8054_p3, %p8053_p1 }
 0x39a   : > { %2900 = vadd.xlane.f32.xlu2 %v2899_v48 }
 0x39b   : > { %2897 = vadd.xlane.f32.xlu1 %v2896_v3  ;;  %p8051_p0 = pneg %p8050_p13 }
 0x39c   : > { %2894 = vadd.xlane.f32.xlu0 %v2893_v59 }
 0x39d   : > { %v9723_v42 = vpop.xlane.xlu2 %2774  ;;  %p8056_p7 = pnand %p8055_p4, %p8051_p0 }
 0x39e   : > { %v9725_v46 = vpop.xlane.xlu1 %2771 }
 0x39f   : > { %v9728_v33 = vpop.xlane.xlu0 %2768 }
 0x3a0   : > { %14388 = vst [vmem:[#allocation52_spill] sm:$0xff] %v9728_v33 }
 0x3a3   : > { %2906 = vadd.xlane.f32.xlu1 %v2905_v11 }
 0x3a4   : > { %2903 = vadd.xlane.f32.xlu0 %v2902_v30  ;;  %v2961_v30 = vadd.s32 64, %v9689_v21 }
 0x3a5   : > { %v9733_v17 = vpop.xlane.xlu2 %2783 }
 0x3a6   : > { %v9735_v29 = vpop.xlane.xlu1 %2780 }
 0x3a7   : > { %v9737_v48 = vpop.xlane.xlu0 %2777 }
 0x3a8   : > { %14389 = vst [vmem:[#allocation53_spill] sm:$0xff] %v9737_v48 }
 0x3ad   : > { %v9739_v3 = vpop.xlane.xlu2 %2792 }
 0x3ae   : > { %14390 = vst [vmem:[#allocation54_spill] sm:$0xff] %v9739_v3  ;;  %v9741_v59 = vpop.xlane.xlu1 %2789 }
 0x3af   : > { %14391 = vst [vmem:[#allocation55_spill] sm:$0xff] %v9741_v59  ;;  %v9748_v36 = vpop.xlane.xlu0 %2786 }
 0x3b0   : > { %14393 = vst [vmem:[#allocation56_spill] sm:$0xff] %v9748_v36 }
 0x3b2   : > { %2915 = vperm.xlu2 %7476, %v9746_v6  }
 0x3b5   : > { %v9751_v24 = vpop.xlane.xlu2 %2801 }
 0x3b6   : > { %14394 = vst [vmem:[#allocation57_spill] sm:$0xff] %v9751_v24  ;;  %v9753_v2 = vpop.xlane.xlu1 %2798  ;;  %v2943_v24 = vadd.s32 40, %v9689_v21 }
 0x3b7   : > { %14395 = vst [vmem:[#allocation58_spill] sm:$0xff] %v9753_v2  ;;  %v9756_v11 = vpop.xlane.xlu0 %2795 }
 0x3b8   : > { %14396 = vst [vmem:[#allocation59_spill] sm:$0xff] %v9756_v11  ;;  %2921 = vperm.xlu0 %7477, %v9746_v6  }
 0x3ba   : > { %7479 = vset.pattern.permute.xlu2 %v2931_v55  ;;  %v2937_v55 = vadd.s32 32, %v9689_v21 }
 0x3bc   : > { %2927 = vperm.xlu1 %7478, %v9746_v6  }
 0x3bd   : > { %v9761_v48 = vpop.xlane.xlu2 %2810 }
 0x3be   : > { %14397 = vst [vmem:[#allocation60_spill] sm:$0xff] %v9761_v48  ;;  %v9763_v36 = vpop.xlane.xlu1 %2807 }
 0x3bf   : > { %14398 = vst [vmem:[#allocation61_spill] sm:$0xff] %v9763_v36  ;;  %v9765_v3 = vpop.xlane.xlu0 %2804 }
 0x3c0   : > { %14399 = vst [vmem:[#allocation62_spill] sm:$0xff] %v9765_v3  ;;  %7484 = vset.pattern.permute.xlu0 %v2961_v30  ;;  %v2991_v30 = vadd.s32 104, %v9689_v21 }
 0x3c2   : > { %2933 = vperm.xlu2 %7479, %v9746_v6  }
 0x3c4   : > { %7481 = vset.pattern.permute.xlu1 %v2943_v24 }
 0x3c5   : > { %v9769_v11 = vpop.xlane.xlu2 %2819 }
 0x3c6   : > { %14400 = vst [vmem:[#allocation63_spill] sm:$0xff] %v9769_v11  ;;  %v9771_v2 = vpop.xlane.xlu1 %2816  ;;  %v2955_v11 = vadd.s32 56, %v9689_v21 }
 0x3c7   : > { %14401 = vst [vmem:[#allocation64_spill] sm:$0xff] %v9771_v2  ;;  %v9774_v33 = vpop.xlane.xlu0 %2813 }
 0x3c8   : > { %14402 = vst [vmem:[#allocation65_spill] sm:$0xff] %v9774_v33  ;;  %2963 = vperm.xlu0 %7484, %v9746_v6  }
 0x3ca   : > { %7480 = vset.pattern.permute.xlu2 %v2937_v55  ;;  %v2949_v55 = vadd.s32 48, %v9689_v21 }
 0x3cc   : > { %2945 = vperm.xlu1 %7481, %v9746_v6  }
 0x3cd   : > { %v9779_v3 = vpop.xlane.xlu2 %2828 }
 0x3ce   : > { %14403 = vst [vmem:[#allocation66_spill] sm:$0xff] %v9779_v3  ;;  %v9781_v48 = vpop.xlane.xlu1 %2825 }
 0x3cf   : > { %14404 = vst [vmem:[#allocation67_spill] sm:$0xff] %v9781_v48  ;;  %v9783_v24 = vpop.xlane.xlu0 %2822  ;;  %v8160_v48 = vmov 0  }
 0x3d0   : > { %14405 = vst [vmem:[#allocation68_spill] sm:$0xff] %v9783_v24  ;;  %7489 = vset.pattern.permute.xlu0 %v2991_v30 }
 0x3d2   : > { %2939 = vperm.xlu2 %7480, %v9746_v6  }
 0x3d4   : > { %7483 = vset.pattern.permute.xlu1 %v2955_v11  ;;  %v2973_v11 = vadd.s32 80, %v9689_v21 }
 0x3d5   : > { %v9787_v33 = vpop.xlane.xlu2 %2837 }
 0x3d6   : > { %14406 = vst [vmem:[#allocation69_spill] sm:$0xff] %v9787_v33  ;;  %v9789_v2 = vpop.xlane.xlu1 %2834 }
 0x3d7   : > { %14407 = vst [vmem:[#allocation70_spill] sm:$0xff] %v9789_v2  ;;  %v9792_v36 = vpop.xlane.xlu0 %2831 }
 0x3d8   : > { %14408 = vst [vmem:[#allocation71_spill] sm:$0xff] %v9792_v36  ;;  %2993 = vperm.xlu0 %7489, %v9746_v6   ;;  %v2967_v36 = vadd.s32 72, %v9689_v21 }
 0x3da   : > { %7482 = vset.pattern.permute.xlu2 %v2949_v55 }
 0x3dc   : > { %2957 = vperm.xlu1 %7483, %v9746_v6  }
 0x3dd   : > { %v9796_v24 = vpop.xlane.xlu2 %2846 }
 0x3de   : > { %14409 = vst [vmem:[#allocation72_spill] sm:$0xff] %v9796_v24  ;;  %v9800_v3 = vpop.xlane.xlu1 %2843 }
 0x3df   : > { %v9798_v30 = vpop.xlane.xlu0 %2840  ;;  %14411 = vst [vmem:[#allocation74_spill] sm:$0xff] %v9800_v3  ;;  %v2985_v3 = vadd.s32 96, %v9689_v21 }
 0x3e0   : > { %14410 = vst [vmem:[#allocation73_spill] sm:$0xff] %v9798_v30  ;;  %7494 = vset.pattern.permute.xlu0 %v8160_v48 }
 0x3e2   : > { %2951 = vperm.xlu2 %7482, %v9746_v6  }
 0x3e4   : > { %7486 = vset.pattern.permute.xlu1 %v2973_v11 }
 0x3e5   : > { %v9804_v33 = vpop.xlane.xlu2 %2855 }
 0x3e6   : > { %14412 = vst [vmem:[#allocation75_spill] sm:$0xff] %v9804_v33  ;;  %v9809_v55 = vpop.xlane.xlu1 %2852 }
 0x3e7   : > { %v9807_v2 = vpop.xlane.xlu0 %2849  ;;  %14414 = vst [vmem:[#allocation77_spill] sm:$0xff] %v9809_v55  ;;  %v3003_v55 = vadd.s32 120, %v9689_v21 }
 0x3e8   : > { %14413 = vst [vmem:[#allocation76_spill] sm:$0xff] %v9807_v2  ;;  %v2979_v2 = vadd.s32 88, %v9689_v21 }
 0x3ea   : > { %7485 = vset.pattern.permute.xlu2 %v2967_v36 }
 0x3ec   : > { %2975 = vperm.xlu1 %7486, %v9746_v6  }
 0x3ed   : > { %v9812_v24 = vpop.xlane.xlu2 %2864 }
 0x3ee   : > { %14415 = vst [vmem:[#allocation78_spill] sm:$0xff] %v9812_v24  ;;  %v9818_v11 = vpop.xlane.xlu1 %2861 }
 0x3ef   : > { %v9814_v30 = vpop.xlane.xlu0 %2858  ;;  %14417 = vst [vmem:[#allocation80_spill] sm:$0xff] %v9818_v11  ;;  %v2997_v11 = vadd.s32 112, %v9689_v21 }
 0x3f0   : > { %14416 = vst [vmem:[#allocation79_spill] sm:$0xff] %v9814_v30 }
 0x3f2   : > { %2969 = vperm.xlu2 %7485, %v9746_v6  }
 0x3f4   : > { %7488 = vset.pattern.permute.xlu1 %v2985_v3 }
 0x3f5   : > { %v9820_v33 = vpop.xlane.xlu2 %2873 }
 0x3f6   : > { %14418 = vst [vmem:[#allocation81_spill] sm:$0xff] %v9820_v33  ;;  %v9828_v30 = vpop.xlane.xlu1 %2870 }
 0x3f7   : > { %v9823_v36 = vpop.xlane.xlu0 %2867 }
 0x3f8   : > { %14419 = vst [vmem:[#allocation82_spill] sm:$0xff] %v9823_v36 }
 0x3fa   : > { %7487 = vset.pattern.permute.xlu2 %v2979_v2 }
 0x3fc   : > { %2987 = vperm.xlu1 %7488, %v9746_v6  }
 0x3fd   : > { %v9826_v24 = vpop.xlane.xlu2 %2882 }
 0x3fe   : > { %14420 = vst [vmem:[#allocation83_spill] sm:$0xff] %v9826_v24  ;;  %v9837_v59 = vpop.xlane.xlu1 %2879 }
 0x3ff   : > { %v9832_v3 = vpop.xlane.xlu0 %2876 }
 0x400   : > { %14421 = vst [vmem:[#allocation84_spill] sm:$0xff] %v9832_v3 }
 0x402   : > { %2981 = vperm.xlu2 %7487, %v9746_v6  }
 0x404   : > { %7491 = vset.pattern.permute.xlu1 %v3003_v55 }
 0x405   : > { %v9834_v33 = vpop.xlane.xlu2 %2891 }
 0x406   : > { %14422 = vst [vmem:[#allocation85_spill] sm:$0xff] %v9834_v33  ;;  %v9844_v24 = vpop.xlane.xlu1 %2888 }
 0x407   : > { %v9842_v36 = vpop.xlane.xlu0 %2885 }
 0x408   : > { %14424 = vst [vmem:[#allocation87_spill] sm:$0xff] %v9842_v36 }
 0x40a   : > { %7490 = vset.pattern.permute.xlu2 %v2997_v11 }
 0x40c   : > { %3005 = vperm.xlu1 %7491, %v9746_v6  }
 0x40d   : > { %v9840_v2 = vpop.xlane.xlu2 %2900 }
 0x40e   : > { %14423 = vst [vmem:[#allocation86_spill] sm:$0xff] %v9840_v2  ;;  %v9856_v11 = vpop.xlane.xlu1 %2897 }
 0x40f   : > { %v9849_v55 = vpop.xlane.xlu0 %2894 }
 0x410   : > { %14425 = vst [vmem:[#allocation88_spill] sm:$0xff] %v9849_v55 }
 0x412   : > { %2999 = vperm.xlu2 %7490, %v9746_v6  }
 0x414   : > { %7493 = vset.pattern.permute.xlu1 %v8160_v48 }
 0x415   : > { %v9847_v3 = vpop.permute.xlu2 %2915 }
 0x416   : > { %v9853_v21 = vadd.f32 %v9847_v3, %v9305_v25  ;;  %v9867_v55 = vpop.xlane.xlu1 %2906 }
 0x417   : > { %v9864_v6 = vpop.xlane.xlu0 %2903 }
 0x418   : > { %14426 = vst [vmem:[#allocation89_spill] sm:$0xff] %v9853_v21 }
 0x419   : > { %14428 = vst [vmem:[#allocation91_spill] sm:$0xff] %v9864_v6 }
 0x41a   : > { %7492 = vset.pattern.permute.xlu2 %v8160_v48 }
 0x41b   : > { %3280 = vperm.xlu2 %7492, %v9853_v21  }
 0x41d   : > { %v9858_v2 = vpop.permute.xlu2 %2933 }
 0x41e   : > { %v9862_v36 = vadd.f32 %v9858_v2, %v9317_v19 }
 0x420   : > { %14427 = vst [vmem:[#allocation90_spill] sm:$0xff] %v9862_v36 }
 0x423   : > { %3289 = vperm.xlu2 %7492, %v9862_v36  }
 0x42a   : > { %v9869_v33 = vpop.permute.xlu0 %2921 }
 0x42b   : > { %v9873_v25 = vadd.f32 %v9869_v33, %v9320_v44 }
 0x42c   : > { %v9882_v21 = vpop.permute.xlu2 %2939 }
 0x42d   : > { %14429 = vst [vmem:[#allocation92_spill] sm:$0xff] %v9873_v25  ;;  %3283 = vperm.xlu1 %7493, %v9873_v25   ;;  %v9887_v36 = vadd.f32 %v9882_v21, %v9299_v16 }
 0x42e   : > { %v9876_v48 = vpop.permute.xlu1 %2927 }
 0x42f   : > { %v9880_v19 = vadd.f32 %v9876_v48, %v9302_v22  ;;  %14431 = vst [vmem:[#allocation94_spill] sm:$0xff] %v9887_v36 }
 0x431   : > { %14430 = vst [vmem:[#allocation93_spill] sm:$0xff] %v9880_v19  ;;  %3286 = vperm.xlu0 %7494, %v9880_v19  }
 0x435   : > { %3292 = vperm.xlu1 %7493, %v9887_v36  }
 0x43a   : > { %v9904_v16 = vpop.permute.xlu0 %2963 }
 0x43b   : > { %v9908_v36 = vadd.f32 %v9904_v16, %v9329_v56 }
 0x43c   : > { %v9890_v44 = vpop.permute.xlu2 %2951 }
 0x43d   : > { %v9894_v25 = vadd.f32 %v9890_v44, %v9335_v61  ;;  %14434 = vst [vmem:[#allocation97_spill] sm:$0xff] %v9908_v36 }
 0x43e   : > { %v9896_v6 = vpop.permute.xlu1 %2945 }
 0x43f   : > { %14432 = vst [vmem:[#allocation95_spill] sm:$0xff] %v9894_v25  ;;  %3298 = vperm.xlu1 %7493, %v9894_v25   ;;  %v9901_v22 = vadd.f32 %v9896_v6, %v9314_v39 }
 0x441   : > { %14433 = vst [vmem:[#allocation96_spill] sm:$0xff] %v9901_v22  ;;  %3295 = vperm.xlu2 %7492, %v9901_v22  }
 0x449   : > { %3304 = vperm.xlu2 %7492, %v9908_v36  }
 0x44c   : > { %v9911_v61 = vpop.permute.xlu2 %2969 }
 0x44d   : > { %v9915_v19 = vadd.f32 %v9911_v61, %v9350_v15 }
 0x44e   : > { %v9917_v25 = vpop.permute.xlu1 %2957 }
 0x44f   : > { %14435 = vst [vmem:[#allocation98_spill] sm:$0xff] %v9915_v19  ;;  %3307 = vperm.xlu1 %7493, %v9915_v19   ;;  %v9922_v39 = vadd.f32 %v9917_v25, %v9332_v58  ;;  %v9939_v58 = vpop.permute.xlu0 %2993 }
 0x450   : > { %v9943_v19 = vadd.f32 %v9939_v58, %v9365_v41 }
 0x451   : > { %14436 = vst [vmem:[#allocation99_spill] sm:$0xff] %v9922_v39  ;;  %3301 = vperm.xlu0 %7494, %v9922_v39  }
 0x452   : > { %14439 = vst [vmem:[#allocation102_spill] sm:$0xff] %v9943_v19 }
 0x45c   : > { %v9925_v56 = vpop.permute.xlu2 %2981 }
 0x45d   : > { %v9929_v36 = vadd.f32 %v9925_v56, %v9344_v10 }
 0x45e   : > { %v9931_v22 = vpop.permute.xlu1 %2975 }
 0x45f   : > { %14437 = vst [vmem:[#allocation100_spill] sm:$0xff] %v9929_v36  ;;  %3313 = vperm.xlu2 %7492, %v9929_v36   ;;  %v9936_v15 = vadd.f32 %v9931_v22, %v9347_v13  ;;  %v9957_v13 = vadd.f32 %v9847_v3, %v9380_v62 }
 0x461   : > { %14438 = vst [vmem:[#allocation101_spill] sm:$0xff] %v9936_v15  ;;  %3310 = vperm.xlu0 %7494, %v9936_v15   ;;  %v14512_v15 = vld [vmem:[#allocation37_spill] sm:$0xff] }
 0x462   : > { %14441 = vst [vmem:[#allocation104_spill] sm:$0xff] %v9957_v13 }
 0x469   : > { %3319 = vperm.xlu0 %7494, %v9943_v19   ;;  %v9972_v19 = vadd.f32 %v9858_v2, %v9395_v23  ;;  %v9999_v23 = vadd.f32 %v9911_v61, %v9430_v9  ;;  %v10018_v9 = vadd.f32 %v9896_v6, %v9413_v53 }
 0x46b   : > { %14444 = vst [vmem:[#allocation107_spill] sm:$0xff] %v9972_v19 }
 0x46c   : > { %v9946_v10 = vpop.permute.xlu2 %2999  ;;  %14449 = vst [vmem:[#allocation112_spill] sm:$0xff] %v9999_v23 }
 0x46d   : > { %v9950_v39 = vadd.f32 %v9946_v10, %v9362_v37  ;;  %v9967_v37 = vadd.f32 %v9869_v33, %v9377_v57  ;;  %v9984_v57 = vadd.f32 %v9890_v44, %v9410_v50  ;;  %v10003_v50 = vadd.f32 %v9876_v48, %v9398_v27  ;;  %14453 = vst [vmem:[#allocation116_spill] sm:$0xff] %v10018_v9 }
 0x46e   : > { %v9952_v36 = vpop.permute.xlu1 %2987  ;;  %v10024_v27 = vadd.f32 %v9939_v58, %v9445_v43  ;;  %v10041_v43 = vadd.f32 %v9847_v3, %v9460_v8 }
 0x46f   : > { %14440 = vst [vmem:[#allocation103_spill] sm:$0xff] %v9950_v39  ;;  %3322 = vperm.xlu2 %7492, %v9950_v39   ;;  %v9961_v41 = vadd.f32 %v9952_v36, %v9368_v45  ;;  %v9977_v45 = vadd.f32 %v9882_v21, %v9392_v14  ;;  %v9994_v14 = vadd.f32 %v9917_v25, %v9407_v47  ;;  %v14508_v39 = vld [vmem:[#allocation34_spill] sm:$0xff] }
 0x470   : > { %14443 = vst [vmem:[#allocation106_spill] sm:$0xff] %v9967_v37  ;;  %v10014_v47 = vadd.f32 %v9952_v36, %v9448_v49  ;;  %v10033_v49 = vadd.f32 %v9904_v16, %v9433_v7  ;;  %v10050_v7 = vadd.f32 %v9925_v56, %v9451_v54  ;;  %v10067_v54 = vadd.f32 %v9946_v10, %v9466_v35 }
 0x471   : > { %14442 = vst [vmem:[#allocation105_spill] sm:$0xff] %v9961_v41  ;;  %3328 = vperm.xlu0 %7494, %v9957_v13   ;;  %3316 = vperm.xlu1 %7493, %v9961_v41   ;;  %v10084_v35 = vadd.f32 %v9869_v33, %v9481_v63  ;;  %v14516_v41 = vld [vmem:[#allocation36_spill] sm:$0xff] }
 0x472   : > { %14445 = vst [vmem:[#allocation108_spill] sm:$0xff] %v9977_v45 }
 0x473   : > { %14446 = vst [vmem:[#allocation109_spill] sm:$0xff] %v9984_v57 }
 0x474   : > { %14448 = vst [vmem:[#allocation111_spill] sm:$0xff] %v9994_v14 }
 0x475   : > { %14450 = vst [vmem:[#allocation113_spill] sm:$0xff] %v10003_v50  ;;  %v10037_v53 = vpop.permute.xlu2 %3280 }
 0x476   : > { %14452 = vst [vmem:[#allocation115_spill] sm:$0xff] %v10014_v47 }
 0x477   : > { %3331 = vperm.xlu2 %7492, %v9967_v37   ;;  %14454 = vst [vmem:[#allocation117_spill] sm:$0xff] %v10024_v27 }
 0x478   : > { %14456 = vst [vmem:[#allocation119_spill] sm:$0xff] %v10033_v49 }
 0x479   : > { %3337 = vperm.xlu0 %7494, %v9972_v19   ;;  %14457 = vst [vmem:[#allocation120_spill] sm:$0xff] %v10041_v43  ;;  %v14497_v19 = vld [vmem:[#allocation28_spill] sm:$0xff] }
 0x47a   : > { %14459 = vst [vmem:[#allocation122_spill] sm:$0xff] %v10050_v7 }
 0x47b   : > { %14462 = vst [vmem:[#allocation125_spill] sm:$0xff] %v10067_v54 }
 0x47c   : > { %14465 = vst [vmem:[#allocation128_spill] sm:$0xff] %v10084_v35 }
 0x47d   : > { %v10058_v8 = vpop.permute.xlu2 %3289 }
 0x47e   : > { %v9979_v62 = vpop.permute.xlu1 %3005 }
 0x47f   : > { %3340 = vperm.xlu2 %7492, %v9977_v45   ;;  %v9988_v37 = vadd.f32 %v9979_v62, %v9383_v1  ;;  %v10009_v1 = vadd.f32 %v9931_v22, %v9422_v31  ;;  %v10029_v31 = vadd.f32 %v9979_v62, %v9463_v20  ;;  %v10046_v20 = vadd.f32 %v9876_v48, %v9478_v18  ;;  %v14490_v45 = vld [vmem:[#allocation25_spill] sm:$0xff] }
 0x480   : > { %v10063_v18 = vadd.f32 %v9896_v6, %v9493_v32  ;;  %v10080_v32 = vadd.f32 %v9904_v16, %v9508_v12  ;;  %v10099_v12 = vadd.f32 %v9882_v21, %v9496_v38 }
 0x481   : > { %14447 = vst [vmem:[#allocation110_spill] sm:$0xff] %v9988_v37  ;;  %3346 = vperm.xlu0 %7494, %v9984_v57   ;;  %3325 = vperm.xlu1 %7493, %v9988_v37   ;;  %v14499_v37 = vld [vmem:[#allocation32_spill] sm:$0xff] }
 0x482   : > { %14451 = vst [vmem:[#allocation114_spill] sm:$0xff] %v10009_v1 }
 0x483   : > { %14455 = vst [vmem:[#allocation118_spill] sm:$0xff] %v10029_v31 }
 0x484   : > { %14458 = vst [vmem:[#allocation121_spill] sm:$0xff] %v10046_v20 }
 0x485   : > { %14461 = vst [vmem:[#allocation124_spill] sm:$0xff] %v10063_v18 }
 0x486   : > { %14464 = vst [vmem:[#allocation127_spill] sm:$0xff] %v10080_v32 }
 0x487   : > { %3349 = vperm.xlu2 %7492, %v9994_v14   ;;  %14468 = vst [vmem:[#allocation131_spill] sm:$0xff] %v10099_v12 }
 0x489   : > { %3355 = vperm.xlu0 %7494, %v9999_v23   ;;  %3334 = vperm.xlu1 %7493, %v10003_v50   ;;  %v14486_v23 = vld [vmem:[#allocation26_spill] sm:$0xff]  ;;  %v14525_v50 = vld [vmem:[#allocation43_spill] sm:$0xff] }
 0x48f   : > { %3358 = vperm.xlu2 %7492, %v10009_v1   ;;  %v14484_v1 = vld [vmem:[#allocation22_spill] sm:$0xff] }
 0x491   : > { %3364 = vperm.xlu0 %7494, %v10014_v47   ;;  %3343 = vperm.xlu1 %7493, %v10018_v9   ;;  %v10156_v47 = vadd.f32 %v9939_v58, %v14484_v1 }
 0x493   : > { %14485 = vst [vmem:[#allocation22_spill] sm:$0xff] %v10156_v47 }
 0x497   : > { %3367 = vperm.xlu2 %7492, %v10024_v27   ;;  %v10056_v27 = vadd.f32 %v9858_v2, %v9475_v51  ;;  %v10073_v51 = vadd.f32 %v9890_v44, %v9490_v28  ;;  %v10090_v28 = vadd.f32 %v9911_v61, %v9505_v5  ;;  %v10107_v5 = vadd.f32 %v9952_v36, %v9520_v0  ;;  %v14473_v0 = vld [vmem:[#allocation21_spill] sm:$0xff] }
 0x499   : > { %3373 = vperm.xlu0 %7494, %v10029_v31   ;;  %3352 = vperm.xlu1 %7493, %v10033_v49   ;;  %14460 = vst [vmem:[#allocation123_spill] sm:$0xff] %v10056_v27  ;;  %v14480_v31 = vld [vmem:[#allocation23_spill] sm:$0xff] }
 0x49a   : > { %14463 = vst [vmem:[#allocation126_spill] sm:$0xff] %v10073_v51  ;;  %v14522_v49 = vld [vmem:[#allocation39_spill] sm:$0xff] }
 0x49b   : > { %14466 = vst [vmem:[#allocation129_spill] sm:$0xff] %v10090_v28 }
 0x49c   : > { %14469 = vst [vmem:[#allocation132_spill] sm:$0xff] %v10107_v5 }
 0x49f   : > { %3376 = vperm.xlu2 %7492, %v10041_v43   ;;  %v10075_v43 = vpop.permute.xlu2 %3295 }
 0x4a1   : > { %3382 = vperm.xlu0 %7494, %v10046_v20   ;;  %3361 = vperm.xlu1 %7493, %v10050_v7   ;;  %v10137_v20 = vpop.permute.xlu1 %3283  ;;  %v14518_v7 = vld [vmem:[#allocation40_spill] sm:$0xff] }
 0x4a7   : > { %3385 = vperm.xlu2 %7492, %v10056_v27   ;;  %v10101_v63 = vpop.permute.xlu2 %3304  ;;  %v10126_v27 = vadd.f32 %v9979_v62, %v14473_v0 }
 0x4a9   : > { %3391 = vperm.xlu0 %7494, %v10063_v18   ;;  %3370 = vperm.xlu1 %7493, %v10067_v54   ;;  %14474 = vst [vmem:[#allocation21_spill] sm:$0xff] %v10126_v27  ;;  %v10162_v14 = vpop.permute.xlu1 %3292 }
 0x4af   : > { %3394 = vperm.xlu2 %7492, %v10073_v51   ;;  %v10095_v51 = vadd.f32 %v9925_v56, %v9523_v4  ;;  %v10112_v4 = vadd.f32 %v9946_v10, %v9541_v34  ;;  %v14475_v34 = vld [vmem:[#allocation24_spill] sm:$0xff] }
 0x4b1   : > { %3400 = vperm.xlu0 %7494, %v10080_v32   ;;  %3379 = vperm.xlu1 %7493, %v10084_v35   ;;  %14467 = vst [vmem:[#allocation130_spill] sm:$0xff] %v10095_v51  ;;  %v10183_v57 = vpop.permute.xlu1 %3298 }
 0x4b2   : > { %14470 = vst [vmem:[#allocation133_spill] sm:$0xff] %v10112_v4 }
 0x4b7   : > { %3403 = vperm.xlu2 %7492, %v10090_v28   ;;  %v14471_v28 = vld [vmem:[#allocation19_spill] sm:$0xff] }
 0x4b8   : > { %v10116_v38 = vadd.f32 %v9917_v25, %v14471_v28  ;;  %v14477_v28 = vld [vmem:[#allocation20_spill] sm:$0xff] }
 0x4b9   : > { %3409 = vperm.xlu0 %7494, %v10095_v51   ;;  %3388 = vperm.xlu1 %7493, %v10099_v12   ;;  %v10118_v32 = vpop.permute.xlu2 %3313  ;;  %v10122_v51 = vpop.permute.xlu0 %3286  ;;  %v10135_v18 = vadd.f32 %v9931_v22, %v14477_v28  ;;  %v14504_v12 = vld [vmem:[#allocation35_spill] sm:$0xff] }
 0x4ba   : > { %14472 = vst [vmem:[#allocation19_spill] sm:$0xff] %v10116_v38 }
 0x4bb   : > { %14478 = vst [vmem:[#allocation20_spill] sm:$0xff] %v10135_v18 }
 0x4bf   : > { %3412 = vperm.xlu2 %7492, %v10107_v5   ;;  %v10131_v5 = vadd.f32 %v9869_v33, %v14475_v34  ;;  %v14482_v34 = vld [vmem:[#allocation27_spill] sm:$0xff] }
 0x4c0   : > { %v10152_v28 = vadd.f32 %v9882_v21, %v14482_v34  ;;  %v14488_v34 = vld [vmem:[#allocation30_spill] sm:$0xff] }
 0x4c1   : > { %3418 = vperm.xlu0 %7494, %v10112_v4   ;;  %3397 = vperm.xlu1 %7493, %v10116_v38   ;;  %14476 = vst [vmem:[#allocation24_spill] sm:$0xff] %v10131_v5  ;;  %v10173_v1 = vadd.f32 %v9917_v25, %v14488_v34  ;;  %v14495_v34 = vld [vmem:[#allocation33_spill] sm:$0xff]  ;;  %v10204_v38 = vpop.permute.xlu1 %3307 }
 0x4c2   : > { %14483 = vst [vmem:[#allocation27_spill] sm:$0xff] %v10152_v28 }
 0x4c3   : > { %v10143_v0 = vpop.permute.xlu0 %3301  ;;  %14489 = vst [vmem:[#allocation30_spill] sm:$0xff] %v10173_v1 }
 0x4c7   : > { %3421 = vperm.xlu2 %7492, %v10126_v27   ;;  %v10147_v27 = vadd.f32 %v9876_v48, %v14480_v31 }
 0x4c9   : > { %3427 = vperm.xlu0 %7494, %v10131_v5   ;;  %3406 = vperm.xlu1 %7493, %v10135_v18   ;;  %v10141_v4 = vpop.permute.xlu2 %3322  ;;  %14481 = vst [vmem:[#allocation23_spill] sm:$0xff] %v10147_v27  ;;  %v14493_v18 = vld [vmem:[#allocation29_spill] sm:$0xff] }
 0x4ca   : > { %14479 = vst [vmem:[#allocation134_spill] sm:$0xff] %v10141_v4  ;;  %v14529_v4 = vld [vmem:[#allocation42_spill] sm:$0xff] }
 0x4cf   : > { %3430 = vperm.xlu2 %7492, %v10147_v27   ;;  %v10168_v27 = vadd.f32 %v9896_v6, %v14486_v23 }
 0x4d1   : > { %3436 = vperm.xlu0 %7494, %v10152_v28   ;;  %3415 = vperm.xlu1 %7493, %v10156_v47   ;;  %v10160_v5 = vpop.permute.xlu2 %3331  ;;  %14487 = vst [vmem:[#allocation26_spill] sm:$0xff] %v10168_v27  ;;  %v10177_v28 = vadd.f32 %v9847_v3, %v14490_v45  ;;  %v10194_v45 = vadd.f32 %v9931_v22, %v14495_v34  ;;  %v14502_v34 = vld [vmem:[#allocation31_spill] sm:$0xff] }
 0x4d3   : > { %v10164_v31 = vpop.permute.xlu0 %3310  ;;  %14491 = vst [vmem:[#allocation25_spill] sm:$0xff] %v10177_v28 }
 0x4d4   : > { %14496 = vst [vmem:[#allocation33_spill] sm:$0xff] %v10194_v45 }
 0x4d7   : > { %3439 = vperm.xlu2 %7492, %v10168_v27   ;;  %v10189_v27 = vadd.f32 %v9904_v16, %v14493_v18 }
 0x4d9   : > { %3445 = vperm.xlu0 %7494, %v10173_v1   ;;  %3424 = vperm.xlu1 %7493, %v10177_v28   ;;  %v10181_v47 = vpop.permute.xlu2 %3340  ;;  %14494 = vst [vmem:[#allocation29_spill] sm:$0xff] %v10189_v27  ;;  %v10198_v1 = vadd.f32 %v9858_v2, %v14497_v19  ;;  %v10215_v19 = vadd.f32 %v9939_v58, %v9619_v40  ;;  %v14506_v40 = vld [vmem:[#allocation38_spill] sm:$0xff] }
 0x4db   : > { %v10185_v23 = vpop.permute.xlu0 %3319  ;;  %14498 = vst [vmem:[#allocation28_spill] sm:$0xff] %v10198_v1 }
 0x4dc   : > { %14492 = vst [vmem:[#allocation135_spill] sm:$0xff] %v10185_v23  ;;  %v14532_v23 = vld [vmem:[#allocation46_spill] sm:$0xff] }
 0x4dd   : > { %14501 = vst [vmem:[#allocation136_spill] sm:$0xff] %v10215_v19 }
 0x4df   : > { %3448 = vperm.xlu2 %7492, %v10189_v27   ;;  %v10210_v27 = vadd.f32 %v9925_v56, %v14499_v37 }
 0x4e1   : > { %3454 = vperm.xlu0 %7494, %v10194_v45   ;;  %3433 = vperm.xlu1 %7493, %v10198_v1   ;;  %v10202_v28 = vpop.permute.xlu2 %3349  ;;  %14500 = vst [vmem:[#allocation32_spill] sm:$0xff] %v10210_v27  ;;  %v10219_v45 = vadd.f32 %v9890_v44, %v14502_v34  ;;  %v10236_v34 = vadd.f32 %v9847_v3, %v14506_v40  ;;  %v14514_v40 = vld [vmem:[#allocation41_spill] sm:$0xff] }
 0x4e3   : > { %v10206_v18 = vpop.permute.xlu0 %3328  ;;  %14503 = vst [vmem:[#allocation31_spill] sm:$0xff] %v10219_v45  ;;  %v10225_v13 = vpop.permute.xlu1 %3316 }
 0x4e4   : > { %14507 = vst [vmem:[#allocation38_spill] sm:$0xff] %v10236_v34 }
 0x4e7   : > { %3457 = vperm.xlu2 %7492, %v10210_v27   ;;  %v10231_v27 = vadd.f32 %v9946_v10, %v14504_v12 }
 0x4e9   : > { %3463 = vperm.xlu0 %7494, %v10215_v19   ;;  %3442 = vperm.xlu1 %7493, %v10219_v45   ;;  %v10223_v1 = vpop.permute.xlu2 %3358  ;;  %14505 = vst [vmem:[#allocation35_spill] sm:$0xff] %v10231_v27  ;;  %v10240_v19 = vadd.f32 %v9911_v61, %v14508_v39  ;;  %v10257_v39 = vadd.f32 %v9858_v2, %v14514_v40  ;;  %v14520_v40 = vld [vmem:[#allocation44_spill] sm:$0xff] }
 0x4eb   : > { %v10227_v37 = vpop.permute.xlu0 %3337  ;;  %14509 = vst [vmem:[#allocation34_spill] sm:$0xff] %v10240_v19 }
 0x4ec   : > { %14515 = vst [vmem:[#allocation41_spill] sm:$0xff] %v10257_v39 }
 0x4ef   : > { %3466 = vperm.xlu2 %7492, %v10231_v27   ;;  %v10252_v27 = vadd.f32 %v9869_v33, %v14512_v15 }
 0x4f1   : > { %3472 = vperm.xlu0 %7494, %v10236_v34   ;;  %3451 = vperm.xlu1 %7493, %v10240_v19   ;;  %v10244_v45 = vpop.permute.xlu2 %3367  ;;  %14513 = vst [vmem:[#allocation37_spill] sm:$0xff] %v10252_v27  ;;  %v10261_v34 = vadd.f32 %v9952_v36, %v14516_v41  ;;  %v10278_v41 = vadd.f32 %v9890_v44, %v14520_v40  ;;  %v14527_v40 = vld [vmem:[#allocation47_spill] sm:$0xff] }
 0x4f2   : > { %14510 = vst [vmem:[#allocation137_spill] sm:$0xff] %v10244_v45  ;;  %v14536_v45 = vld [vmem:[#allocation45_spill] sm:$0xff] }
 0x4f3   : > { %v10246_v35 = vpop.permute.xlu0 %3346  ;;  %v10248_v12 = vpop.permute.xlu1 %3325  ;;  %14517 = vst [vmem:[#allocation36_spill] sm:$0xff] %v10261_v34 }
 0x4f4   : > { %14511 = vst [vmem:[#allocation138_spill] sm:$0xff] %v10248_v12 }
 0x4f5   : > { %14521 = vst [vmem:[#allocation44_spill] sm:$0xff] %v10278_v41 }
 0x4f7   : > { %3475 = vperm.xlu2 %7492, %v10252_v27   ;;  %v10273_v27 = vadd.f32 %v9882_v21, %v14518_v7 }
 0x4f9   : > { %3481 = vperm.xlu0 %7494, %v10257_v39   ;;  %3460 = vperm.xlu1 %7493, %v10261_v34   ;;  %v10265_v19 = vpop.permute.xlu2 %3376  ;;  %14519 = vst [vmem:[#allocation40_spill] sm:$0xff] %v10273_v27  ;;  %v10282_v39 = vadd.f32 %v9979_v62, %v14522_v49  ;;  %v10299_v49 = vadd.f32 %v9911_v61, %v14527_v40  ;;  %v14534_v40 = vld [vmem:[#allocation50_spill] sm:$0xff] }
 0x4fb   : > { %v10267_v54 = vpop.permute.xlu0 %3355  ;;  %v10269_v15 = vpop.permute.xlu1 %3334  ;;  %14523 = vst [vmem:[#allocation39_spill] sm:$0xff] %v10282_v39 }
 0x4fc   : > { %14528 = vst [vmem:[#allocation47_spill] sm:$0xff] %v10299_v49 }
 0x4ff   : > { %3484 = vperm.xlu2 %7492, %v10273_v27   ;;  %v10294_v27 = vadd.f32 %v9917_v25, %v14525_v50 }
 0x501   : > { %3490 = vperm.xlu0 %7494, %v10278_v41   ;;  %3469 = vperm.xlu1 %7493, %v10282_v39   ;;  %v10286_v34 = vpop.permute.xlu2 %3385  ;;  %14526 = vst [vmem:[#allocation43_spill] sm:$0xff] %v10294_v27  ;;  %v10303_v41 = vadd.f32 %v9876_v48, %v14529_v4  ;;  %v10320_v4 = vadd.f32 %v9952_v36, %v14534_v40  ;;  %v14542_v40 = vld [vmem:[#allocation48_spill] sm:$0xff] }
 0x503   : > { %v10288_v9 = vpop.permute.xlu0 %3364  ;;  %v10290_v7 = vpop.permute.xlu1 %3343  ;;  %14530 = vst [vmem:[#allocation42_spill] sm:$0xff] %v10303_v41 }
 0x504   : > { %14524 = vst [vmem:[#allocation139_spill] sm:$0xff] %v10288_v9  ;;  %v14539_v9 = vld [vmem:[#allocation49_spill] sm:$0xff] }
 0x505   : > { %14535 = vst [vmem:[#allocation50_spill] sm:$0xff] %v10320_v4 }
 0x507   : > { %3493 = vperm.xlu2 %7492, %v10294_v27   ;;  %v10315_v27 = vadd.f32 %v9931_v22, %v14532_v23 }
 0x509   : > { %3499 = vperm.xlu0 %7494, %v10299_v49   ;;  %3478 = vperm.xlu1 %7493, %v10303_v41   ;;  %v10307_v39 = vpop.permute.xlu2 %3394  ;;  %14533 = vst [vmem:[#allocation46_spill] sm:$0xff] %v10315_v27  ;;  %v10324_v49 = vadd.f32 %v9896_v6, %v14536_v45  ;;  %v10341_v45 = vadd.f32 %v9979_v62, %v9714_v60 }
 0x50a   : > { %v10362_v60 = vadd.f32 %v9876_v48, %v9725_v46  ;;  %v10383_v46 = vadd.f32 %v9896_v6, %v9735_v29  ;;  %v14558_v29 = vld [vmem:[#allocation55_spill] sm:$0xff] }
 0x50b   : > { %v10309_v12 = vpop.permute.xlu0 %3373  ;;  %v10311_v50 = vpop.permute.xlu1 %3352  ;;  %14537 = vst [vmem:[#allocation45_spill] sm:$0xff] %v10324_v49 }
 0x50c   : > { %14531 = vst [vmem:[#allocation140_spill] sm:$0xff] %v10309_v12 }
 0x50d   : > { %14541 = vst [vmem:[#allocation142_spill] sm:$0xff] %v10341_v45 }
 0x50e   : > { %14547 = vst [vmem:[#allocation146_spill] sm:$0xff] %v10362_v60 }
 0x50f   : > { %3502 = vperm.xlu2 %7492, %v10315_v27   ;;  %v10336_v27 = vadd.f32 %v9939_v58, %v14539_v9  ;;  %14553 = vst [vmem:[#allocation150_spill] sm:$0xff] %v10383_v46 }
 0x511   : > { %3508 = vperm.xlu0 %7494, %v10320_v4   ;;  %3487 = vperm.xlu1 %7493, %v10324_v49   ;;  %v10328_v41 = vpop.permute.xlu2 %3403  ;;  %14540 = vst [vmem:[#allocation49_spill] sm:$0xff] %v10336_v27  ;;  %v10345_v4 = vadd.f32 %v9904_v16, %v14542_v40  ;;  %v14548_v40 = vld [vmem:[#allocation51_spill] sm:$0xff] }
 0x512   : > { %14538 = vst [vmem:[#allocation141_spill] sm:$0xff] %v10328_v41 }
 0x513   : > { %v10330_v12 = vpop.permute.xlu0 %3382  ;;  %v10332_v23 = vpop.permute.xlu1 %3361  ;;  %14543 = vst [vmem:[#allocation48_spill] sm:$0xff] %v10345_v4 }
 0x517   : > { %3511 = vperm.xlu2 %7492, %v10336_v27   ;;  %v10357_v27 = vadd.f32 %v9847_v3, %v9711_v52 }
 0x519   : > { %3517 = vperm.xlu0 %7494, %v10341_v45   ;;  %3496 = vperm.xlu1 %7493, %v10345_v4   ;;  %v10349_v49 = vpop.permute.xlu2 %3412  ;;  %14546 = vst [vmem:[#allocation145_spill] sm:$0xff] %v10357_v27  ;;  %v10366_v45 = vadd.f32 %v9925_v56, %v14548_v40  ;;  %v10387_v40 = vadd.f32 %v9946_v10, %v9717_v26 }
 0x51a   : > { %14544 = vst [vmem:[#allocation143_spill] sm:$0xff] %v10349_v49  ;;  %v10404_v26 = vadd.f32 %v9904_v16, %v14558_v29  ;;  %v14566_v29 = vld [vmem:[#allocation58_spill] sm:$0xff] }
 0x51b   : > { %v10351_v41 = vpop.permute.xlu0 %3391  ;;  %v10353_v9 = vpop.permute.xlu1 %3370  ;;  %14549 = vst [vmem:[#allocation51_spill] sm:$0xff] %v10366_v45 }
 0x51c   : > { %14545 = vst [vmem:[#allocation144_spill] sm:$0xff] %v10353_v9  ;;  %v14577_v9 = vld [vmem:[#allocation56_spill] sm:$0xff] }
 0x51d   : > { %14554 = vst [vmem:[#allocation151_spill] sm:$0xff] %v10387_v40 }
 0x51e   : > { %14559 = vst [vmem:[#allocation55_spill] sm:$0xff] %v10404_v26 }
 0x51f   : > { %3520 = vperm.xlu2 %7492, %v10357_v27   ;;  %v10378_v27 = vadd.f32 %v9858_v2, %v9723_v42 }
 0x521   : > { %3526 = vperm.xlu0 %7494, %v10362_v60   ;;  %3505 = vperm.xlu1 %7493, %v10366_v45   ;;  %v10370_v4 = vpop.permute.xlu2 %3421  ;;  %14552 = vst [vmem:[#allocation149_spill] sm:$0xff] %v10378_v27 }
 0x522   : > { %14550 = vst [vmem:[#allocation147_spill] sm:$0xff] %v10370_v4  ;;  %v14560_v4 = vld [vmem:[#allocation52_spill] sm:$0xff] }
 0x523   : > { %v10372_v49 = vpop.permute.xlu0 %3400  ;;  %v10374_v52 = vpop.permute.xlu1 %3379 }
 0x524   : > { %14551 = vst [vmem:[#allocation148_spill] sm:$0xff] %v10372_v49  ;;  %v14568_v49 = vld [vmem:[#allocation53_spill] sm:$0xff] }
 0x527   : > { %3529 = vperm.xlu2 %7492, %v10378_v27   ;;  %v10399_v27 = vadd.f32 %v9890_v44, %v9733_v17 }
 0x529   : > { %3535 = vperm.xlu0 %7494, %v10383_v46   ;;  %3514 = vperm.xlu1 %7493, %v10387_v40   ;;  %v10391_v60 = vpop.permute.xlu2 %3430  ;;  %14557 = vst [vmem:[#allocation154_spill] sm:$0xff] %v10399_v27  ;;  %v10408_v46 = vadd.f32 %v9869_v33, %v14560_v4  ;;  %v10425_v4 = vadd.f32 %v9925_v56, %v14566_v29  ;;  %v14575_v29 = vld [vmem:[#allocation61_spill] sm:$0xff] }
 0x52a   : > { %14555 = vst [vmem:[#allocation152_spill] sm:$0xff] %v10391_v60 }
 0x52b   : > { %v10393_v45 = vpop.permute.xlu0 %3409  ;;  %v10395_v42 = vpop.permute.xlu1 %3388  ;;  %14561 = vst [vmem:[#allocation52_spill] sm:$0xff] %v10408_v46 }
 0x52c   : > { %14556 = vst [vmem:[#allocation153_spill] sm:$0xff] %v10393_v45  ;;  %v14564_v45 = vld [vmem:[#allocation54_spill] sm:$0xff] }
 0x52d   : > { %14567 = vst [vmem:[#allocation58_spill] sm:$0xff] %v10425_v4 }
 0x52f   : > { %3538 = vperm.xlu2 %7492, %v10399_v27   ;;  %v10420_v27 = vadd.f32 %v9911_v61, %v14564_v45 }
 0x531   : > { %3544 = vperm.xlu0 %7494, %v10404_v26   ;;  %3523 = vperm.xlu1 %7493, %v10408_v46   ;;  %v10412_v40 = vpop.permute.xlu2 %3439  ;;  %14565 = vst [vmem:[#allocation54_spill] sm:$0xff] %v10420_v27  ;;  %v10429_v26 = vadd.f32 %v9882_v21, %v14568_v49  ;;  %v10446_v49 = vadd.f32 %v9946_v10, %v14575_v29  ;;  %v14584_v29 = vld [vmem:[#allocation64_spill] sm:$0xff] }
 0x532   : > { %14562 = vst [vmem:[#allocation155_spill] sm:$0xff] %v10412_v40  ;;  %v14573_v40 = vld [vmem:[#allocation57_spill] sm:$0xff] }
 0x533   : > { %v10414_v60 = vpop.permute.xlu0 %3418  ;;  %v10416_v17 = vpop.permute.xlu1 %3397  ;;  %14569 = vst [vmem:[#allocation53_spill] sm:$0xff] %v10429_v26 }
 0x534   : > { %14563 = vst [vmem:[#allocation156_spill] sm:$0xff] %v10414_v60 }
 0x535   : > { %14576 = vst [vmem:[#allocation61_spill] sm:$0xff] %v10446_v49 }
 0x537   : > { %3547 = vperm.xlu2 %7492, %v10420_v27   ;;  %v10441_v27 = vadd.f32 %v9952_v36, %v14573_v40 }
 0x539   : > { %3553 = vperm.xlu0 %7494, %v10425_v4   ;;  %3532 = vperm.xlu1 %7493, %v10429_v26   ;;  %v10433_v46 = vpop.permute.xlu2 %3448  ;;  %14574 = vst [vmem:[#allocation57_spill] sm:$0xff] %v10441_v27  ;;  %v10450_v4 = vadd.f32 %v9917_v25, %v14577_v9  ;;  %v10467_v9 = vadd.f32 %v9869_v33, %v14584_v29  ;;  %v14593_v29 = vld [vmem:[#allocation67_spill] sm:$0xff] }
 0x53a   : > { %14570 = vst [vmem:[#allocation157_spill] sm:$0xff] %v10433_v46 }
 0x53b   : > { %v10435_v60 = vpop.permute.xlu0 %3427  ;;  %v10437_v45 = vpop.permute.xlu1 %3406  ;;  %14578 = vst [vmem:[#allocation56_spill] sm:$0xff] %v10450_v4 }
 0x53c   : > { %14571 = vst [vmem:[#allocation158_spill] sm:$0xff] %v10435_v60  ;;  %v14582_v60 = vld [vmem:[#allocation60_spill] sm:$0xff] }
 0x53d   : > { %14572 = vst [vmem:[#allocation159_spill] sm:$0xff] %v10437_v45  ;;  %v14586_v45 = vld [vmem:[#allocation59_spill] sm:$0xff] }
 0x53e   : > { %14585 = vst [vmem:[#allocation64_spill] sm:$0xff] %v10467_v9 }
 0x53f   : > { %3556 = vperm.xlu2 %7492, %v10441_v27   ;;  %v10462_v27 = vadd.f32 %v9979_v62, %v14582_v60 }
 0x541   : > { %3562 = vperm.xlu0 %7494, %v10446_v49   ;;  %3541 = vperm.xlu1 %7493, %v10450_v4   ;;  %v10454_v26 = vpop.permute.xlu2 %3457  ;;  %14583 = vst [vmem:[#allocation60_spill] sm:$0xff] %v10462_v27  ;;  %v10471_v49 = vadd.f32 %v9931_v22, %v14586_v45  ;;  %v10488_v45 = vadd.f32 %v9882_v21, %v14593_v29  ;;  %v14602_v29 = vld [vmem:[#allocation70_spill] sm:$0xff] }
 0x542   : > { %14579 = vst [vmem:[#allocation160_spill] sm:$0xff] %v10454_v26 }
 0x543   : > { %v10456_v46 = vpop.permute.xlu0 %3436  ;;  %v10458_v40 = vpop.permute.xlu1 %3415  ;;  %14587 = vst [vmem:[#allocation59_spill] sm:$0xff] %v10471_v49 }
 0x544   : > { %14580 = vst [vmem:[#allocation161_spill] sm:$0xff] %v10456_v46  ;;  %v14591_v46 = vld [vmem:[#allocation63_spill] sm:$0xff] }
 0x545   : > { %14581 = vst [vmem:[#allocation162_spill] sm:$0xff] %v10458_v40  ;;  %v14595_v40 = vld [vmem:[#allocation62_spill] sm:$0xff] }
 0x546   : > { %14594 = vst [vmem:[#allocation67_spill] sm:$0xff] %v10488_v45 }
 0x547   : > { %3565 = vperm.xlu2 %7492, %v10462_v27   ;;  %v10483_v27 = vadd.f32 %v9876_v48, %v14591_v46 }
 0x549   : > { %3571 = vperm.xlu0 %7494, %v10467_v9   ;;  %3550 = vperm.xlu1 %7493, %v10471_v49   ;;  %v10475_v4 = vpop.permute.xlu2 %3466  ;;  %14592 = vst [vmem:[#allocation63_spill] sm:$0xff] %v10483_v27  ;;  %v10492_v9 = vadd.f32 %v9939_v58, %v14595_v40  ;;  %v10509_v40 = vadd.f32 %v9917_v25, %v14602_v29  ;;  %v14611_v29 = vld [vmem:[#allocation74_spill] sm:$0xff] }
 0x54a   : > { %14588 = vst [vmem:[#allocation163_spill] sm:$0xff] %v10475_v4 }
 0x54b   : > { %v10477_v26 = vpop.permute.xlu0 %3445  ;;  %v10479_v60 = vpop.permute.xlu1 %3424  ;;  %14596 = vst [vmem:[#allocation62_spill] sm:$0xff] %v10492_v9 }
 0x54c   : > { %14589 = vst [vmem:[#allocation164_spill] sm:$0xff] %v10477_v26  ;;  %v14600_v26 = vld [vmem:[#allocation66_spill] sm:$0xff] }
 0x54d   : > { %14590 = vst [vmem:[#allocation165_spill] sm:$0xff] %v10479_v60  ;;  %v14604_v60 = vld [vmem:[#allocation65_spill] sm:$0xff] }
 0x54e   : > { %14603 = vst [vmem:[#allocation70_spill] sm:$0xff] %v10509_v40 }
 0x54f   : > { %3574 = vperm.xlu2 %7492, %v10483_v27   ;;  %v10504_v27 = vadd.f32 %v9896_v6, %v14600_v26 }
 0x551   : > { %3580 = vperm.xlu0 %7494, %v10488_v45   ;;  %3559 = vperm.xlu1 %7493, %v10492_v9   ;;  %v10496_v49 = vpop.permute.xlu2 %3475  ;;  %14601 = vst [vmem:[#allocation66_spill] sm:$0xff] %v10504_v27  ;;  %v10513_v45 = vadd.f32 %v9847_v3, %v14604_v60  ;;  %v10530_v60 = vadd.f32 %v9931_v22, %v14611_v29  ;;  %v14620_v29 = vld [vmem:[#allocation77_spill] sm:$0xff] }
 0x552   : > { %14597 = vst [vmem:[#allocation166_spill] sm:$0xff] %v10496_v49  ;;  %v14609_v49 = vld [vmem:[#allocation69_spill] sm:$0xff] }
 0x553   : > { %v10498_v4 = vpop.permute.xlu0 %3454  ;;  %v10500_v46 = vpop.permute.xlu1 %3433  ;;  %14605 = vst [vmem:[#allocation65_spill] sm:$0xff] %v10513_v45 }
 0x554   : > { %14598 = vst [vmem:[#allocation167_spill] sm:$0xff] %v10498_v4 }
 0x555   : > { %14599 = vst [vmem:[#allocation168_spill] sm:$0xff] %v10500_v46  ;;  %v14613_v46 = vld [vmem:[#allocation68_spill] sm:$0xff] }
 0x556   : > { %14612 = vst [vmem:[#allocation74_spill] sm:$0xff] %v10530_v60 }
 0x557   : > { %3583 = vperm.xlu2 %7492, %v10504_v27   ;;  %v10525_v27 = vadd.f32 %v9904_v16, %v14609_v49 }
 0x559   : > { %3589 = vperm.xlu0 %7494, %v10509_v40   ;;  %3568 = vperm.xlu1 %7493, %v10513_v45   ;;  %v10517_v9 = vpop.permute.xlu2 %3484  ;;  %14610 = vst [vmem:[#allocation69_spill] sm:$0xff] %v10525_v27  ;;  %v10534_v40 = vadd.f32 %v9858_v2, %v14613_v46  ;;  %v10551_v46 = vadd.f32 %v9939_v58, %v14620_v29  ;;  %v14628_v29 = vld [vmem:[#allocation80_spill] sm:$0xff] }
 0x55a   : > { %14606 = vst [vmem:[#allocation169_spill] sm:$0xff] %v10517_v9  ;;  %v14618_v9 = vld [vmem:[#allocation72_spill] sm:$0xff] }
 0x55b   : > { %v10519_v4 = vpop.permute.xlu0 %3463  ;;  %v10521_v26 = vpop.permute.xlu1 %3442  ;;  %14614 = vst [vmem:[#allocation68_spill] sm:$0xff] %v10534_v40 }
 0x55c   : > { %14607 = vst [vmem:[#allocation170_spill] sm:$0xff] %v10519_v4 }
 0x55d   : > { %14608 = vst [vmem:[#allocation171_spill] sm:$0xff] %v10521_v26  ;;  %v14622_v26 = vld [vmem:[#allocation71_spill] sm:$0xff] }
 0x55e   : > { %14621 = vst [vmem:[#allocation77_spill] sm:$0xff] %v10551_v46 }
 0x55f   : > { %3592 = vperm.xlu2 %7492, %v10525_v27   ;;  %v10546_v27 = vadd.f32 %v9925_v56, %v14618_v9  ;;  %v14625_v9 = vld [vmem:[#allocation75_spill] sm:$0xff] }
 0x561   : > { %3598 = vperm.xlu0 %7494, %v10530_v60   ;;  %3577 = vperm.xlu1 %7493, %v10534_v40   ;;  %v10542_v49 = vpop.permute.xlu2 %3493  ;;  %14619 = vst [vmem:[#allocation72_spill] sm:$0xff] %v10546_v27  ;;  %v10555_v60 = vadd.f32 %v9890_v44, %v14622_v26  ;;  %v10572_v26 = vadd.f32 %v9847_v3, %v14628_v29 }
 0x562   : > { %14617 = vst [vmem:[#allocation174_spill] sm:$0xff] %v10542_v49  ;;  %v10591_v3 = vadd.f32 %v9858_v2, %v9828_v30  ;;  %v10612_v30 = vadd.f32 %v9890_v44, %v9837_v59  ;;  %v14643_v2 = vld [vmem:[#allocation79_spill] sm:$0xff]  ;;  %v10633_v59 = vadd.f32 %v9911_v61, %v9844_v24  ;;  %v14649_v44 = vld [vmem:[#allocation82_spill] sm:$0xff]  ;;  %v10654_v24 = vadd.f32 %v9952_v36, %v9856_v11 }
 0x563   : > { %v10538_v45 = vpop.permute.xlu0 %3472  ;;  %v10540_v4 = vpop.permute.xlu1 %3451  ;;  %14623 = vst [vmem:[#allocation71_spill] sm:$0xff] %v10555_v60  ;;  %v14661_v11 = vld [vmem:[#allocation87_spill] sm:$0xff] }
 0x564   : > { %14615 = vst [vmem:[#allocation172_spill] sm:$0xff] %v10538_v45  ;;  %v14630_v45 = vld [vmem:[#allocation73_spill] sm:$0xff] }
 0x565   : > { %14616 = vst [vmem:[#allocation173_spill] sm:$0xff] %v10540_v4  ;;  %v10565_v4 = vadd.f32 %v9946_v10, %v14625_v9 }
 0x566   : > { %14629 = vst [vmem:[#allocation80_spill] sm:$0xff] %v10572_v26 }
 0x567   : > { %3601 = vperm.xlu2 %7492, %v10546_v27   ;;  %14626 = vst [vmem:[#allocation75_spill] sm:$0xff] %v10565_v4 }
 0x568   : > { %14635 = vst [vmem:[#allocation178_spill] sm:$0xff] %v10591_v3 }
 0x569   : > { %3607 = vperm.xlu0 %7494, %v10551_v46   ;;  %3586 = vperm.xlu1 %7493, %v10555_v60   ;;  %v10567_v27 = vpop.permute.xlu2 %3502  ;;  %v10576_v46 = vadd.f32 %v9911_v61, %v14630_v45  ;;  %v14636_v45 = vld [vmem:[#allocation76_spill] sm:$0xff]  ;;  %14642 = vst [vmem:[#allocation181_spill] sm:$0xff] %v10612_v30 }
 0x56a   : > { %14627 = vst [vmem:[#allocation176_spill] sm:$0xff] %v10567_v27  ;;  %v10595_v29 = vadd.f32 %v9952_v36, %v14636_v45  ;;  %v10616_v45 = vadd.f32 %v9979_v62, %v14643_v2  ;;  %v10637_v2 = vadd.f32 %v9876_v48, %v14649_v44  ;;  %v14655_v48 = vld [vmem:[#allocation84_spill] sm:$0xff]  ;;  %v10675_v36 = vadd.f32 %v9979_v62, %v9867_v55  ;;  %v14668_v62 = vld [vmem:[#allocation91_spill] sm:$0xff] }
 0x56b   : > { %v10559_v40 = vpop.permute.xlu0 %3481  ;;  %v10561_v49 = vpop.permute.xlu1 %3460  ;;  %14631 = vst [vmem:[#allocation73_spill] sm:$0xff] %v10576_v46  ;;  %v10658_v61 = vadd.f32 %v9896_v6, %v14655_v48  ;;  %v10679_v6 = vadd.f32 %v9904_v16, %v14661_v11  ;;  %v10700_v11 = vadd.f32 %v9946_v10, %v14668_v62 }
 0x56c   : > { %14624 = vst [vmem:[#allocation175_spill] sm:$0xff] %v10561_v49  ;;  %v14633_v49 = vld [vmem:[#allocation78_spill] sm:$0xff] }
 0x56d   : > { %v10586_v27 = vadd.f32 %v9869_v33, %v14633_v49  ;;  %14637 = vst [vmem:[#allocation76_spill] sm:$0xff] %v10595_v29  ;;  %v14640_v49 = vld [vmem:[#allocation81_spill] sm:$0xff] }
 0x56e   : > { %14644 = vst [vmem:[#allocation79_spill] sm:$0xff] %v10616_v45 }
 0x56f   : > { %3610 = vperm.xlu2 %7492, %v10565_v4   ;;  %14634 = vst [vmem:[#allocation78_spill] sm:$0xff] %v10586_v27 }
 0x570   : > { %14648 = vst [vmem:[#allocation183_spill] sm:$0xff] %v10633_v59 }
 0x571   : > { %3616 = vperm.xlu0 %7494, %v10572_v26   ;;  %3595 = vperm.xlu1 %7493, %v10576_v46   ;;  %v10597_v4 = vpop.permute.xlu2 %3511  ;;  %14650 = vst [vmem:[#allocation82_spill] sm:$0xff] %v10637_v2 }
 0x572   : > { %14638 = vst [vmem:[#allocation179_spill] sm:$0xff] %v10597_v4 }
 0x573   : > { %v10580_v60 = vpop.permute.xlu0 %3490  ;;  %v10582_v9 = vpop.permute.xlu1 %3469  ;;  %14654 = vst [vmem:[#allocation185_spill] sm:$0xff] %v10654_v24 }
 0x574   : > { %14632 = vst [vmem:[#allocation177_spill] sm:$0xff] %v10582_v9  ;;  %v14676_v9 = vlaneseq }
 0x575   : > { %14656 = vst [vmem:[#allocation84_spill] sm:$0xff] %v10658_v61 }
 0x576   : > { %14660 = vst [vmem:[#allocation187_spill] sm:$0xff] %v10675_v36 }
 0x577   : > { %3619 = vperm.xlu2 %7492, %v10586_v27   ;;  %v10607_v27 = vadd.f32 %v9882_v21, %v14640_v49  ;;  %v14646_v49 = vld [vmem:[#allocation83_spill] sm:$0xff]  ;;  %14662 = vst [vmem:[#allocation87_spill] sm:$0xff] %v10679_v6 }
 0x578   : > { %14669 = vst [vmem:[#allocation91_spill] sm:$0xff] %v10700_v11 }
 0x579   : > { %3625 = vperm.xlu0 %7494, %v10591_v3   ;;  %3604 = vperm.xlu1 %7493, %v10595_v29   ;;  %14641 = vst [vmem:[#allocation81_spill] sm:$0xff] %v10607_v27  ;;  %v10620_v3 = vpop.permute.xlu2 %3520 }
 0x57b   : > { %v10601_v26 = vpop.permute.xlu0 %3499  ;;  %v10603_v33 = vpop.permute.xlu1 %3478 }
 0x57c   : > { %14639 = vst [vmem:[#allocation180_spill] sm:$0xff] %v10601_v26 }
 0x57f   : > { %3628 = vperm.xlu2 %7492, %v10607_v27   ;;  %v10628_v27 = vadd.f32 %v9917_v25, %v14646_v49  ;;  %v14652_v49 = vld [vmem:[#allocation85_spill] sm:$0xff] }
 0x581   : > { %3634 = vperm.xlu0 %7494, %v10612_v30   ;;  %3613 = vperm.xlu1 %7493, %v10616_v45   ;;  %14647 = vst [vmem:[#allocation83_spill] sm:$0xff] %v10628_v27  ;;  %v10645_v25 = vpop.permute.xlu2 %3529 }
 0x583   : > { %v10622_v29 = vpop.permute.xlu0 %3508  ;;  %v10624_v21 = vpop.permute.xlu1 %3487 }
 0x584   : > { %14645 = vst [vmem:[#allocation182_spill] sm:$0xff] %v10622_v29 }
 0x587   : > { %3637 = vperm.xlu2 %7492, %v10628_v27   ;;  %v10649_v27 = vadd.f32 %v9931_v22, %v14652_v49  ;;  %v14658_v22 = vld [vmem:[#allocation86_spill] sm:$0xff] }
 0x588   : > { %v10668_v49 = vadd.f32 %v9939_v58, %v14658_v22  ;;  %v14664_v22 = vld [vmem:[#allocation88_spill] sm:$0xff] }
 0x589   : > { %3643 = vperm.xlu0 %7494, %v10633_v59   ;;  %3622 = vperm.xlu1 %7493, %v10637_v2   ;;  %14653 = vst [vmem:[#allocation85_spill] sm:$0xff] %v10649_v27 }
 0x58a   : > { %14659 = vst [vmem:[#allocation86_spill] sm:$0xff] %v10668_v49 }
 0x58b   : > { %v10641_v30 = vpop.permute.xlu0 %3517  ;;  %v10643_v45 = vpop.permute.xlu1 %3496 }
 0x58c   : > { %14651 = vst [vmem:[#allocation184_spill] sm:$0xff] %v10641_v30 }
 0x58f   : > { %3646 = vperm.xlu2 %7492, %v10649_v27   ;;  %v10670_v27 = vpop.permute.xlu2 %3538 }
 0x591   : > { %3652 = vperm.xlu0 %7494, %v10654_v24   ;;  %3631 = vperm.xlu1 %7493, %v10658_v61   ;;  %v10689_v24 = vadd.f32 %v9925_v56, %v14664_v22 }
 0x593   : > { %v10662_v44 = vpop.permute.xlu0 %3526  ;;  %v10664_v59 = vpop.permute.xlu1 %3505  ;;  %14665 = vst [vmem:[#allocation88_spill] sm:$0xff] %v10689_v24 }
 0x594   : > { %14657 = vst [vmem:[#allocation186_spill] sm:$0xff] %v10664_v59 }
 0x597   : > { %3655 = vperm.xlu2 %7492, %v10668_v49   ;;  %v10691_v49 = vpop.permute.xlu2 %3547 }
 0x598   : > { %14666 = vst [vmem:[#allocation189_spill] sm:$0xff] %v10691_v49 }
 0x599   : > { %3661 = vperm.xlu0 %7494, %v10675_v36   ;;  %3640 = vperm.xlu1 %7493, %v10679_v6  }
 0x59b   : > { %v10683_v48 = vpop.permute.xlu0 %3535  ;;  %v10685_v58 = vpop.permute.xlu1 %3514 }
 0x59c   : > { %14663 = vst [vmem:[#allocation188_spill] sm:$0xff] %v10685_v58  ;;  %v10728_v58 = vand.u32 127, %v14676_v9 }
 0x59e   : > { %v3726_v29 = vperm.slane %v10206_v18, %v10728_v58  ;;  %v3665_v49 = vperm.slane %v10037_v53, %v10728_v58 }
 0x59f   : > { %v10703_v36 = vpop.permute.xlu2 %3556 }
 0x5a0   : > { %14670 = vst [vmem:[#allocation191_spill] sm:$0xff] %v10703_v36  ;;  %v10738_v36 = vadd.s32 4294967280, %v10728_v58 }
 0x5a1   : > { %3649 = vperm.xlu1 %7493, %v10689_v24  }
 0x5a2   : > { %v3671_v59 = vperm.slane %v10122_v51, %v10738_v36  ;;  %v10765_v51 = vadd.s32 4294967256, %v10728_v58 }
 0x5a3   : > { %v10694_v55 = vpop.permute.xlu0 %3544  ;;  %v10696_v16 = vpop.permute.xlu1 %3523 }
 0x5a4   : > { %14667 = vst [vmem:[#allocation190_spill] sm:$0xff] %v10694_v55 }
 0x5a7   : > { %v10713_v24 = vpop.permute.xlu2 %3565 }
 0x5a8   : > { %14673 = vst [vmem:[#allocation194_spill] sm:$0xff] %v10713_v24  ;;  %v10735_v24 = vadd.s32 4294967288, %v10728_v58 }
 0x5a9   : > { %3658 = vperm.xlu1 %7493, %v10700_v11  }
 0x5aa   : > { %v3667_v9 = vperm.slane %v10137_v20, %v10735_v24  ;;  %v10759_v20 = vadd.s32 4294967264, %v10728_v58 }
 0x5ab   : > { %v10705_v6 = vpop.permute.xlu0 %3553  ;;  %v10707_v56 = vpop.permute.xlu1 %3532 }
 0x5ac   : > { %14671 = vst [vmem:[#allocation192_spill] sm:$0xff] %v10705_v6  ;;  %v3727_v6 = vperm.slane %v10160_v5, %v10735_v24  ;;  %v3669_v53 = vsel %vm3668_vm2, %v3667_v9, %v3665_v49  ;;  %v10781_v49 = vadd.s32 4294967248, %v10728_v58  ;;  %v10787_v9 = vadd.s32 4294967240, %v10728_v58 }
 0x5ae   : > { %v3728_v18 = vsel %vm3668_vm2, %v3727_v6, %v3726_v29  ;;  %v3673_v29 = vsel %vm3672_vm3, %v3671_v59, %v3669_v53  ;;  %v3687_v53 = vperm.slane %v10183_v57, %v10781_v49 }
 0x5af   : > { %v10719_v10 = vpop.permute.xlu2 %3574 }
 0x5b3   : > { %v10709_v22 = vpop.permute.xlu0 %3562  ;;  %v10711_v61 = vpop.permute.xlu1 %3541 }
 0x5b4   : > { %14672 = vst [vmem:[#allocation193_spill] sm:$0xff] %v10709_v22 }
 0x5b7   : > { %v10725_v30 = vpop.permute.xlu2 %3583 }
 0x5bb   : > { %v10715_v2 = vpop.permute.xlu0 %3571  ;;  %v10717_v46 = vpop.permute.xlu1 %3550 }
 0x5bc   : > { %14674 = vst [vmem:[#allocation195_spill] sm:$0xff] %v10717_v46  ;;  %v10753_v46 = vadd.s32 4294967272, %v10728_v58 }
 0x5be   : > { %v3675_v6 = vperm.slane %v10058_v8, %v10753_v46  ;;  %v3758_v8 = vperm.slane %v10374_v52, %v10735_v24 }
 0x5c0   : > { %v3677_v59 = vsel %vm3676_vm4, %v3675_v6, %v3673_v29  ;;  %v3737_v29 = vperm.slane %v10246_v35, %v10781_v49  ;;  %v3683_v6 = vperm.slane %v10075_v43, %v10765_v51  ;;  %v3760_v35 = vperm.slane %v10330_v12, %v10738_v36 }
 0x5c1   : > { %v10819_v43 = vadd.s32 4294967224, %v10728_v58 }
 0x5c3   : > { %v10721_v62 = vpop.permute.xlu0 %3580  ;;  %v10723_v11 = vpop.permute.xlu1 %3559 }
 0x5c4   : > { %14675 = vst [vmem:[#allocation196_spill] sm:$0xff] %v10723_v11  ;;  %v3729_v11 = vperm.slane %v10269_v15, %v10738_v36  ;;  %v10756_v15 = vpop.permute.xlu2 %3592 }
 0x5c5   : > { %14678 = vst [vmem:[#allocation198_spill] sm:$0xff] %v10756_v15  ;;  %v3679_v15 = vperm.slane %v10162_v14, %v10759_v20  ;;  %v3757_v14 = vperm.slane %v10265_v19, %v10728_v58  ;;  %v3691_v19 = vperm.slane %v10143_v0, %v10787_v9  ;;  %v3739_v0 = vperm.slane %v10202_v28, %v10787_v9 }
 0x5c6   : > { %v3730_v5 = vsel %vm3672_vm3, %v3729_v11, %v3728_v18  ;;  %v3735_v18 = vperm.slane %v10290_v7, %v10765_v51 }
 0x5cb   : > { %v10730_v22 = vpop.permute.xlu0 %3589  ;;  %v10732_v4 = vpop.permute.xlu1 %3568 }
 0x5cc   : > { %14677 = vst [vmem:[#allocation197_spill] sm:$0xff] %v10730_v22  ;;  %v3731_v22 = vperm.slane %v10227_v37, %v10753_v46  ;;  %v3733_v37 = vperm.slane %v10181_v47, %v10759_v20  ;;  %v3681_v47 = vsel %vm14325_vm5, %v3679_v15, %v3677_v59 }
 0x5ce   : > { %v3732_v11 = vsel %vm3676_vm4, %v3731_v22, %v3730_v5  ;;  %v10796_v5 = vadd.s32 4294967232, %v10728_v58 }
 0x5cf   : > { %v3734_v7 = vsel %vm14325_vm5, %v3733_v37, %v3732_v11  ;;  %v3759_v11 = vsel %vm3668_vm2, %v3758_v8, %v3757_v14  ;;  %v3685_v37 = vsel %vm14324_vm6, %v3683_v6, %v3681_v47  ;;  %v10831_v14 = vadd.s32 4294967216, %v10728_v58 }
 0x5d0   : > { %v3736_v22 = vsel %vm14324_vm6, %v3735_v18, %v3734_v7  ;;  %v10810_v18 = vpop.permute.xlu2 %3601  ;;  %v3741_v57 = vperm.slane %v10311_v50, %v10796_v5  ;;  %v3689_v8 = vsel %vm3688_vm7, %v3687_v53, %v3685_v37  ;;  %v3761_v7 = vsel %vm3672_vm3, %v3760_v35, %v3759_v11 }
 0x5d1   : > { %v3738_v15 = vsel %vm3688_vm7, %v3737_v29, %v3736_v22  ;;  %v3764_v50 = vperm.slane %v10395_v42, %v10759_v20  ;;  %v3693_v12 = vsel %vm3692_vm8, %v3691_v19, %v3689_v8  ;;  %v3762_v22 = vperm.slane %v10286_v34, %v10753_v46 }
 0x5d2   : > { %v3740_v28 = vsel %vm3692_vm8, %v3739_v0, %v3738_v15  ;;  %v3695_v47 = vperm.slane %v10101_v63, %v10796_v5  ;;  %v10840_v29 = vadd.s32 4294967208, %v10728_v58  ;;  %v3743_v42 = vperm.slane %v10267_v54, %v10819_v43 }
 0x5d3   : > { %v10762_v26 = vpop.permute.xlu1 %3577  ;;  %v10770_v55 = vpop.permute.xlu0 %3598  ;;  %v3742_v53 = vsel %vm3696_vm9, %v3741_v57, %v3740_v28  ;;  %v3763_v6 = vsel %vm3676_vm4, %v3762_v22, %v3761_v7  ;;  %v10847_v34 = vadd.s32 4294967200, %v10728_v58  ;;  %v3703_v63 = vperm.slane %v10164_v31, %v10831_v14 }
 0x5d4   : > { %v3697_v19 = vsel %vm3696_vm9, %v3695_v47, %v3693_v12  ;;  %v3765_v11 = vsel %vm14325_vm5, %v3764_v50, %v3763_v6  ;;  %v3744_v57 = vsel %vm14179_vm10, %v3743_v42, %v3742_v53  ;;  %v3747_v54 = vperm.slane %v10332_v23, %v10840_v29 }
 0x5d5   : > { %v3766_v35 = vperm.slane %v10351_v41, %v10765_v51  ;;  %v3699_v37 = vperm.slane %v10204_v38, %v10819_v43  ;;  %v3745_v0 = vperm.slane %v10223_v1, %v10831_v14  ;;  %v10864_v8 = vadd.s32 4294967184, %v10728_v58 }
 0x5d6   : > { %v3770_v7 = vperm.slane %v10416_v17, %v10787_v9  ;;  %v3768_v38 = vperm.slane %v10307_v39, %v10781_v49  ;;  %v3707_v1 = vperm.slane %v10118_v32, %v10840_v29  ;;  %v3711_v22 = vperm.slane %v10225_v13, %v10847_v34  ;;  %v14681_v39 = vld [vmem:[#allocation139_spill] sm:$0xff]  ;;  %v14682_v13 = vld [vmem:[#allocation144_spill] sm:$0xff] }
 0x5d7   : > { %14679 = vst [vmem:[#allocation199_spill] sm:$0xff] %v10864_v8  ;;  %v3767_v31 = vsel %vm14324_vm6, %v3766_v35, %v3765_v11  ;;  %v3701_v23 = vsel %vm14179_vm10, %v3699_v37, %v3697_v19  ;;  %v3746_v41 = vsel %vm14177_vm11, %v3745_v0, %v3744_v57  ;;  %v10884_v47 = vadd.s32 4294967192, %v10728_v58  ;;  %v14684_v37 = vld [vmem:[#allocation137_spill] sm:$0xff] }
 0x5d8   : > { %v10869_v50 = vpop.permute.xlu2 %3610  ;;  %v3705_v12 = vsel %vm14177_vm11, %v3703_v63, %v3701_v23  ;;  %v3748_v17 = vsel %vm14178_vm12, %v3747_v54, %v3746_v41  ;;  %v3749_v53 = vperm.slane %v14681_v39, %v10847_v34  ;;  %v3769_v42 = vsel %vm3688_vm7, %v3768_v38, %v3767_v31  ;;  %v14683_v63 = vld [vmem:[#allocation148_spill] sm:$0xff]  ;;  %v14687_v41 = vld [vmem:[#allocation159_spill] sm:$0xff]  ;;  %v14689_v39 = vld [vmem:[#allocation165_spill] sm:$0xff] }
 0x5d9   : > { %14680 = vst [vmem:[#allocation200_spill] sm:$0xff] %v10869_v50  ;;  %v3771_v32 = vsel %vm3692_vm8, %v3770_v7, %v3769_v42  ;;  %v3709_v6 = vsel %vm14178_vm12, %v3707_v1, %v3705_v12  ;;  %v3753_v11 = vperm.slane %v14682_v13, %v10864_v8  ;;  %v3772_v57 = vperm.slane %v14683_v63, %v10796_v5  ;;  %v14686_v7 = vld [vmem:[#allocation135_spill] sm:$0xff]  ;;  %v14688_v12 = vld [vmem:[#allocation141_spill] sm:$0xff]  ;;  %v14690_v13 = vld [vmem:[#allocation138_spill] sm:$0xff] }
 0x5da   : > { %v3750_v19 = vsel %vm14181_vm13, %v3749_v53, %v3748_v17  ;;  %v3713_v35 = vsel %vm14181_vm13, %v3711_v22, %v3709_v6  ;;  %v3751_v0 = vperm.slane %v14684_v37, %v10884_v47  ;;  %v10902_v31 = vadd.s32 4294967176, %v10728_v58  ;;  %v14692_v37 = vld [vmem:[#allocation158_spill] sm:$0xff] }
 0x5db   : > { %v10803_v52 = vpop.permute.xlu1 %3586  ;;  %v10823_v59 = vpop.permute.xlu0 %3607  ;;  %v3715_v23 = vperm.slane %v14686_v7, %v10884_v47  ;;  %v3773_v38 = vsel %vm3696_vm9, %v3772_v57, %v3771_v32  ;;  %v3776_v1 = vperm.slane %v14687_v41, %v10831_v14  ;;  %v3774_v17 = vperm.slane %v14688_v12, %v10819_v43  ;;  %v14691_v32 = vld [vmem:[#allocation140_spill] sm:$0xff] }
 0x5dc   : > { %14685 = vst [vmem:[#allocation139_spill] sm:$0xff] %v10902_v31  ;;  %v3752_v22 = vsel %vm3716_vm14, %v3751_v0, %v3750_v19  ;;  %v3788_v53 = vperm.slane %v14689_v39, %v10728_v58  ;;  %v3723_v63 = vperm.slane %v14690_v13, %v10902_v31  ;;  %v3755_v57 = vperm.slane %v14691_v32, %v10902_v31  ;;  %v14693_v19 = vld [vmem:[#allocation134_spill] sm:$0xff]  ;;  %v14695_v13 = vld [vmem:[#allocation168_spill] sm:$0xff] }
 0x5dd   : > { %v3717_v42 = vsel %vm3716_vm14, %v3715_v23, %v3713_v35  ;;  %v3754_v6 = vsel %vm3720_vm15, %v3753_v11, %v3752_v22  ;;  %v3789_v7 = vperm.slane %v14692_v37, %v10735_v24  ;;  %v3775_v41 = vsel %vm14179_vm10, %v3774_v17, %v3773_v38  ;;  %v14694_v23 = vld [vmem:[#allocation153_spill] sm:$0xff]  ;;  %v14696_v37 = vld [vmem:[#allocation152_spill] sm:$0xff] }
 0x5de   : > { %v3719_v0 = vperm.slane %v14693_v19, %v10864_v8  ;;  %v3777_v11 = vsel %vm14177_vm11, %v3776_v1, %v3775_v41  ;;  %v3756_v35 = vsel %vm3724_vm0, %v3755_v57, %v3754_v6  ;;  %v3778_v22 = vperm.slane %v14694_v23, %v10840_v29  ;;  %v14697_v57 = vld [vmem:[#allocation162_spill] sm:$0xff] }
 0x5df   : > { %v3790_v39 = vsel %vm3668_vm2, %v3789_v7, %v3788_v53  ;;  %v3793_v32 = vperm.slane %v14695_v13, %v10753_v46  ;;  %v3791_v19 = vperm.slane %v14696_v37, %v10738_v36  ;;  %v3782_v41 = vperm.slane %v14697_v57, %v10884_v47  ;;  %v14698_v7 = vld [vmem:[#allocation143_spill] sm:$0xff]  ;;  %v14700_v13 = vld [vmem:[#allocation172_spill] sm:$0xff] }
 0x5e0   : > { %v10923_v12 = vpop.permute.xlu2 %3619  ;;  %v3721_v17 = vsel %vm3720_vm15, %v3719_v0, %v3717_v42  ;;  %v3779_v6 = vsel %vm14178_vm12, %v3778_v22, %v3777_v11  ;;  %v3851_v53 = vperm.slane %v10696_v16, %v10735_v24  ;;  %v3780_v23 = vperm.slane %v14698_v7, %v10847_v34  ;;  %v14702_v57 = vld [vmem:[#allocation155_spill] sm:$0xff]  ;;  %v14704_v7 = vld [vmem:[#allocation166_spill] sm:$0xff] }
 0x5e1   : > { %v3725_v1 = vsel %vm3724_vm0, %v3723_v63, %v3721_v17  ;;  %v3792_v0 = vsel %vm3672_vm3, %v3791_v19, %v3790_v39  ;;  %v3819_v37 = vperm.slane %v14700_v13, %v10728_v58  ;;  %v14701_v63 = vld [vmem:[#allocation147_spill] sm:$0xff]  ;;  %v3850_v17 = vperm.slane %v10620_v3, %v10728_v58 }
 0x5e2   : > { %v10950_v42 = vsel %vm14176_vm1, %v3756_v35, %v3725_v1  ;;  %v3786_v11 = vperm.slane %v14701_v63, %v10902_v31  ;;  %v3794_v22 = vsel %vm3676_vm4, %v3793_v32, %v3792_v0  ;;  %v3822_v16 = vperm.slane %v10603_v33, %v10738_v36  ;;  %v14703_v1 = vld [vmem:[#allocation161_spill] sm:$0xff]  ;;  %v14705_v63 = vld [vmem:[#allocation156_spill] sm:$0xff] }
 0x5e3   : > { %v10850_v15 = vpop.permute.xlu1 %3595  ;;  %v10881_v28 = vpop.permute.xlu0 %3616  ;;  %14699 = vst [vmem:[#allocation144_spill] sm:$0xff] %v10950_v42  ;;  %v3797_v35 = vperm.slane %v14702_v57, %v10765_v51  ;;  %v3795_v39 = vperm.slane %v14703_v1, %v10759_v20  ;;  %v3781_v19 = vsel %vm14181_vm13, %v3780_v23, %v3779_v6  ;;  %v3820_v13 = vperm.slane %v14704_v7, %v10735_v24  ;;  %v14706_v57 = vld [vmem:[#allocation157_spill] sm:$0xff]  ;;  %v14707_v7 = vld [vmem:[#allocation160_spill] sm:$0xff] }
 0x5e4   : > { %v3784_v32 = vperm.slane %v14705_v63, %v10864_v8  ;;  %v3783_v0 = vsel %vm3716_vm14, %v3782_v41, %v3781_v19  ;;  %v3852_v3 = vsel %vm3668_vm2, %v3851_v53, %v3850_v17  ;;  %v3881_v33 = vperm.slane %v10732_v4, %v10728_v58  ;;  %v14708_v41 = vld [vmem:[#allocation171_spill] sm:$0xff] }
 0x5e5   : > { %v3803_v42 = vperm.slane %v14706_v57, %v10796_v5  ;;  %v3796_v1 = vsel %vm14325_vm5, %v3795_v39, %v3794_v22  ;;  %v3821_v6 = vsel %vm3668_vm2, %v3820_v13, %v3819_v37  ;;  %v3853_v23 = vperm.slane %v10662_v44, %v10738_v36  ;;  %v14716_v57 = vld [vmem:[#allocation180_spill] sm:$0xff] }
 0x5e6   : > { %v3809_v63 = vperm.slane %v14707_v7, %v10840_v29  ;;  %v3799_v19 = vperm.slane %v14708_v41, %v10781_v49  ;;  %v3823_v53 = vsel %vm3672_vm3, %v3822_v16, %v3821_v6  ;;  %v3882_v4 = vperm.slane %v10715_v2, %v10735_v24 }
 0x5e7   : > { %v3785_v22 = vsel %vm3720_vm15, %v3784_v32, %v3783_v0  ;;  %v3824_v37 = vperm.slane %v10559_v40, %v10753_v46  ;;  %v3854_v44 = vsel %vm3672_vm3, %v3853_v23, %v3852_v3  ;;  %v3857_v39 = vperm.slane %v10707_v56, %v10759_v20  ;;  %v14710_v23 = vld [vmem:[#allocation164_spill] sm:$0xff] }
 0x5e8   : > { %v10988_v17 = vpop.permute.xlu2 %3628  ;;  %v3798_v41 = vsel %vm14324_vm6, %v3797_v35, %v3796_v1  ;;  %v3855_v16 = vperm.slane %v10645_v25, %v10753_v46  ;;  %v3883_v2 = vsel %vm3668_vm2, %v3882_v4, %v3881_v33  ;;  %v3886_v6 = vperm.slane %v10762_v26, %v10753_v46  ;;  %v14709_v25 = vld [vmem:[#allocation169_spill] sm:$0xff] }
 0x5e9   : > { %v3825_v40 = vsel %vm3676_vm4, %v3824_v37, %v3823_v53  ;;  %v3828_v0 = vperm.slane %v10624_v21, %v10765_v51  ;;  %v3884_v56 = vperm.slane %v10719_v10, %v10738_v36  ;;  %v3912_v35 = vperm.slane %v10881_v28, %v10728_v58 }
 0x5ea   : > { %v3826_v3 = vperm.slane %v14709_v25, %v10759_v20  ;;  %v3800_v33 = vsel %vm3688_vm7, %v3799_v19, %v3798_v41  ;;  %v3856_v26 = vsel %vm3676_vm4, %v3855_v16, %v3854_v44  ;;  %v3801_v53 = vperm.slane %v14710_v23, %v10787_v9 }
 0x5eb   : > { %v10896_v54 = vpop.permute.xlu1 %3604  ;;  %v10934_v38 = vpop.permute.xlu0 %3625  ;;  %v3858_v21 = vsel %vm14325_vm5, %v3857_v39, %v3856_v26  ;;  %v3913_v10 = vperm.slane %v10923_v12, %v10735_v24  ;;  %v3885_v4 = vsel %vm3672_vm3, %v3884_v56, %v3883_v2  ;;  %v11023_v28 = vsel %vm3724_vm0, %v3786_v11, %v3785_v22 }
 0x5ec   : > { %v3827_v37 = vsel %vm14325_vm5, %v3826_v3, %v3825_v40  ;;  %v3859_v19 = vperm.slane %v10683_v48, %v10765_v51  ;;  %v3887_v44 = vsel %vm3676_vm4, %v3886_v6, %v3885_v4  ;;  %v3888_v39 = vperm.slane %v10721_v62, %v10759_v20  ;;  %v14712_v3 = vld [vmem:[#allocation174_spill] sm:$0xff] }
 0x5ed   : > { %v3829_v41 = vsel %vm14324_vm6, %v3828_v0, %v3827_v37  ;;  %v3914_v12 = vsel %vm3668_vm2, %v3913_v10, %v3912_v35  ;;  %v3830_v11 = vperm.slane %v10580_v60, %v10781_v49  ;;  %v3863_v16 = vperm.slane %v10711_v61, %v10787_v9  ;;  %v14711_v60 = vld [vmem:[#allocation173_spill] sm:$0xff]  ;;  %v14714_v37 = vld [vmem:[#allocation190_spill] sm:$0xff] }
 0x5ee   : > { %v3860_v22 = vsel %vm14324_vm6, %v3859_v19, %v3858_v21  ;;  %v3861_v2 = vperm.slane %v10670_v27, %v10781_v49  ;;  %v3889_v6 = vsel %vm14325_vm5, %v3888_v39, %v3887_v44  ;;  %v3892_v62 = vperm.slane %v10803_v52, %v10781_v49 }
 0x5ef   : > { %v3917_v40 = vperm.slane %v10934_v38, %v10753_v46  ;;  %v3805_v56 = vperm.slane %v14711_v60, %v10819_v43  ;;  %v3831_v35 = vsel %vm3688_vm7, %v3830_v11, %v3829_v41  ;;  %v3834_v61 = vperm.slane %v10643_v45, %v10796_v5 }
 0x5f0   : > { %v3890_v27 = vperm.slane %v10725_v30, %v10765_v51  ;;  %v3638_v25 = vpop.permute.xlu2 %3637  ;;  %v3862_v52 = vsel %vm3688_vm7, %v3861_v2, %v3860_v22  ;;  %v3919_v45 = vperm.slane %v10988_v17, %v10759_v20  ;;  %v3865_v19 = vperm.slane %v14714_v37, %v10796_v5  ;;  %v14715_v17 = vld [vmem:[#allocation197_spill] sm:$0xff] }
 0x5f1   : > { %v3836_v22 = vperm.slane %v14716_v57, %v10819_v43  ;;  %v14718_v2 = vld [vmem:[#allocation189_spill] sm:$0xff]  ;;  %v14725_v57 = vld [vmem:[#allocation182_spill] sm:$0xff]  ;;  %vm14180_vm1 = vcmask 1042434  }
 0x5f2   : > { %v3891_v30 = vsel %vm14324_vm6, %v3890_v27, %v3889_v6  ;;  %v3867_v6 = vperm.slane %v14718_v2, %v10819_v43  ;;  %v14720_v27 = vld [vmem:[#allocation198_spill] sm:$0xff]  ;;  %v3842_v7 = vperm.slane %v14725_v57, %v10847_v34 }
 0x5f3   : > { %v10939_v50 = vpop.permute.xlu1 %3613  ;;  %v11002_v32 = vpop.permute.xlu0 %3634  ;;  %v3893_v44 = vsel %vm3688_vm7, %v3892_v62, %v3891_v30 }
 0x5f4   : > { %v3910_v57 = vperm.slane %v10939_v50, %v10902_v31 }
 0x5fb   : > { %v3623_v13 = vpop.permute.xlu1 %3622  ;;  %v3644_v21 = vpop.permute.xlu0 %3643 }
 0x5fc   : > { %v3915_v1 = vperm.slane %v3623_v13, %v10738_v36  ;;  %v3802_v13 = vsel %vm3692_vm8, %v3801_v53, %v3800_v33  ;;  %v3832_v33 = vperm.slane %v14712_v3, %v10787_v9  ;;  %v3864_v53 = vsel %vm3692_vm8, %v3863_v16, %v3862_v52  ;;  %v14721_v52 = vld [vmem:[#allocation186_spill] sm:$0xff] }
 0x5fd   : > { %v3804_v10 = vsel %vm3696_vm9, %v3803_v42, %v3802_v13  ;;  %v3866_v42 = vsel %vm3696_vm9, %v3865_v19, %v3864_v53  ;;  %v14717_v13 = vld [vmem:[#allocation195_spill] sm:$0xff]  ;;  %v3896_v3 = vperm.slane %v14720_v27, %v10796_v5  ;;  %v14724_v19 = vld [vmem:[#allocation192_spill] sm:$0xff] }
 0x5fe   : > { %v3916_v48 = vsel %vm3672_vm3, %v3915_v1, %v3914_v12  ;;  %v14713_v1 = vld [vmem:[#allocation167_spill] sm:$0xff]  ;;  %v3833_v4 = vsel %vm3692_vm8, %v3832_v33, %v3831_v35  ;;  %v3806_v41 = vsel %vm14179_vm10, %v3805_v56, %v3804_v10  ;;  %v3894_v12 = vperm.slane %v14715_v17, %v10787_v9  ;;  %v14723_v10 = vld [vmem:[#allocation170_spill] sm:$0xff] }
 0x5ff   : > { %v3918_v38 = vsel %vm3676_vm4, %v3917_v40, %v3916_v48  ;;  %v3807_v23 = vperm.slane %v14713_v1, %v10831_v14  ;;  %v3835_v39 = vsel %vm3696_vm9, %v3834_v61, %v3833_v4  ;;  %v3869_v16 = vperm.slane %v14717_v13, %v10831_v14  ;;  %v14719_v56 = vld [vmem:[#allocation175_spill] sm:$0xff]  ;;  %v14722_v1 = vld [vmem:[#allocation176_spill] sm:$0xff] }
 0x600   : > { %v3920_v11 = vsel %vm14325_vm5, %v3919_v45, %v3918_v38  ;;  %v3895_v62 = vsel %vm3692_vm8, %v3894_v12, %v3893_v44  ;;  %v3898_v40 = vperm.slane %v10850_v15, %v10819_v43  ;;  %v3811_v35 = vperm.slane %v14719_v56, %v10847_v34 }
 0x601   : > { %v3808_v60 = vsel %vm14177_vm11, %v3807_v23, %v3806_v41  ;;  %v3837_v61 = vsel %vm14179_vm10, %v3836_v22, %v3835_v39  ;;  %v3840_v38 = vperm.slane %v14721_v52, %v10840_v29  ;;  %v3838_v23 = vperm.slane %v14722_v1, %v10831_v14  ;;  %v3647_v39 = vpop.permute.xlu2 %3646 }
 0x602   : > { %v3925_v45 = vperm.slane %v3638_v25, %v10787_v9  ;;  %v3897_v30 = vsel %vm3696_vm9, %v3896_v3, %v3895_v62  ;;  %v3813_v4 = vperm.slane %v14723_v10, %v10884_v47  ;;  %v3810_v37 = vsel %vm14178_vm12, %v3809_v63, %v3808_v60  ;;  %v14727_v62 = vld [vmem:[#allocation163_spill] sm:$0xff] }
 0x603   : > { %v3632_v0 = vpop.permute.xlu1 %3631  ;;  %v3871_v44 = vperm.slane %v14724_v19, %v10840_v29  ;;  %v3899_v41 = vsel %vm14179_vm10, %v3898_v40, %v3897_v30  ;;  %v3812_v17 = vsel %vm14181_vm13, %v3811_v35, %v3810_v37  ;;  %v3839_v25 = vsel %vm14177_vm11, %v3838_v23, %v3837_v61  ;;  %v14728_v60 = vld [vmem:[#allocation191_spill] sm:$0xff]  ;;  %v14732_v30 = vld [vmem:[#allocation193_spill] sm:$0xff] }
 0x604   : > { %v3921_v26 = vperm.slane %v3632_v0, %v10765_v51  ;;  %v3923_v0 = vperm.slane %v11002_v32, %v10781_v49  ;;  %v3900_v12 = vperm.slane %v10770_v55, %v10831_v14  ;;  %v3841_v63 = vsel %vm14178_vm12, %v3840_v38, %v3839_v25  ;;  %v14729_v61 = vld [vmem:[#allocation179_spill] sm:$0xff] }
 0x605   : > { %v3904_v55 = vperm.slane %v10896_v54, %v10847_v34  ;;  %v3815_v40 = vperm.slane %v14727_v62, %v10864_v8  ;;  %v3873_v56 = vperm.slane %v14728_v60, %v10847_v34  ;;  %v3902_v35 = vperm.slane %v10810_v18, %v10840_v29  ;;  %v14730_v54 = vld [vmem:[#allocation188_spill] sm:$0xff]  ;;  %v14731_v18 = vld [vmem:[#allocation177_spill] sm:$0xff] }
 0x606   : > { %v3922_v48 = vsel %vm14324_vm6, %v3921_v26, %v3920_v11  ;;  %v3868_v26 = vsel %vm14179_vm10, %v3867_v6, %v3866_v42  ;;  %v3653_v42 = vpop.permute.xlu0 %3652  ;;  %v3901_v2 = vsel %vm14177_vm11, %v3900_v12, %v3899_v41  ;;  %v3929_v6 = vperm.slane %v3644_v21, %v10819_v43 }
 0x607   : > { %v3924_v15 = vsel %vm3688_vm7, %v3923_v0, %v3922_v48  ;;  %v3870_v53 = vsel %vm14177_vm11, %v3869_v16, %v3868_v26  ;;  %v14726_v16 = vld [vmem:[#allocation196_spill] sm:$0xff]  ;;  %v3814_v0 = vsel %vm3716_vm14, %v3813_v4, %v3812_v17  ;;  %v3844_v27 = vperm.slane %v14729_v61, %v10884_v47 }
 0x608   : > { %v3926_v11 = vsel %vm3692_vm8, %v3925_v45, %v3924_v15  ;;  %v3872_v22 = vsel %vm14178_vm12, %v3871_v44, %v3870_v53  ;;  %v3875_v48 = vperm.slane %v14726_v16, %v10884_v47  ;;  %v3843_v3 = vsel %vm14181_vm13, %v3842_v7, %v3841_v63  ;;  %v14733_v44 = vld [vmem:[#allocation184_spill] sm:$0xff]  ;;  %v14734_v63 = vld [vmem:[#allocation194_spill] sm:$0xff] }
 0x609   : > { %v3874_v38 = vsel %vm14181_vm13, %v3873_v56, %v3872_v22  ;;  %v3931_v26 = vperm.slane %v3647_v39, %v10831_v14  ;;  %v3903_v15 = vsel %vm14178_vm12, %v3902_v35, %v3901_v2  ;;  %v3817_v1 = vperm.slane %v14731_v18, %v10902_v31 }
 0x60a   : > { %v3876_v23 = vsel %vm3716_vm14, %v3875_v48, %v3874_v38  ;;  %v3905_v53 = vsel %vm14181_vm13, %v3904_v55, %v3903_v15  ;;  %v3845_v45 = vsel %vm3716_vm14, %v3844_v27, %v3843_v3  ;;  %v3877_v10 = vperm.slane %v14732_v30, %v10864_v8  ;;  %v14736_v48 = vld [vmem:[#allocation144_spill] sm:$0xff] }
 0x60b   : > { %v3641_v33 = vpop.permute.xlu1 %3640  ;;  %v3906_v4 = vperm.slane %v10823_v59, %v10884_v47  ;;  %v3816_v19 = vsel %vm3720_vm15, %v3815_v40, %v3814_v0  ;;  %v3848_v41 = vperm.slane %v14733_v44, %v10902_v31  ;;  %v3935_v59 = vperm.slane %v3653_v42, %v10847_v34  ;;  %v14741_v44 = vld [vmem:[#allocation90_spill] sm:$0xff] }
 0x60c   : > { %v3927_v32 = vperm.slane %v3641_v33, %v10796_v5  ;;  %v3846_v33 = vperm.slane %v14730_v54, %v10864_v8  ;;  %v3878_v25 = vsel %vm3720_vm15, %v3877_v10, %v3876_v23  ;;  %v3818_v7 = vsel %vm3724_vm0, %v3817_v1, %v3816_v19  ;;  %v14738_v1 = vld [vmem:[#allocation92_spill] sm:$0xff] }
 0x60d   : > { %v3907_v12 = vsel %vm3716_vm14, %v3906_v4, %v3905_v53  ;;  %v3879_v22 = vperm.slane %v14734_v63, %v10902_v31  ;;  %v3946_v2 = vsel %vm14180_vm1, %v11023_v28, %v14736_v48  ;;  %vm14322_vm1 = vcmask 1046534   ;;  %v14739_v53 = vld [vmem:[#allocation89_spill] sm:$0xff]  ;;  %v14746_v63 = vld [vmem:[#allocation116_spill] sm:$0xff]  ;;  %v14748_v48 = vld [vmem:[#allocation94_spill] sm:$0xff] }
 0x60e   : > { %v3928_v13 = vsel %vm3696_vm9, %v3927_v32, %v3926_v11  ;;  %v3847_v39 = vsel %vm3720_vm15, %v3846_v33, %v3845_v45  ;;  %v3656_v11 = vpop.permute.xlu2 %3655 }
 0x60f   : > { %v3930_v21 = vsel %vm14179_vm10, %v3929_v6, %v3928_v13  ;;  %v14735_v13 = vld [vmem:[#allocation200_spill] sm:$0xff]  ;;  %v3849_v55 = vsel %vm3724_vm0, %v3848_v41, %v3847_v39  ;;  %v3662_v6 = vpop.permute.xlu0 %3661  ;;  %v3937_v42 = vperm.slane %v3656_v11, %v10884_v47  ;;  %v3880_v40 = vsel %vm3724_vm0, %v3879_v22, %v3878_v25  ;;  %v14742_v39 = vld [vmem:[#allocation93_spill] sm:$0xff] }
 0x610   : > { %v3932_v37 = vsel %vm14177_vm11, %v3931_v26, %v3930_v21  ;;  %vm3947_vm11 = vcmask 1043459   ;;  %v3908_v16 = vperm.slane %v14735_v13, %v10864_v8  ;;  %vm14323_vm10 = vcmask 1045509   ;;  %v14747_v13 = vld [vmem:[#allocation96_spill] sm:$0xff] }
 0x611   : > { %v3948_v60 = vsel %vm3947_vm11, %v3818_v7, %v3946_v2  ;;  %v3941_v35 = vperm.slane %v3662_v6, %v10902_v31 }
 0x612   : > { %v3909_v0 = vsel %vm3720_vm15, %v3908_v16, %v3907_v12 }
 0x613   : > { %v3650_v52 = vpop.permute.xlu1 %3649  ;;  %v3911_v28 = vsel %vm3724_vm0, %v3910_v57, %v3909_v0  ;;  %v14752_v0 = vld [vmem:[#allocation119_spill] sm:$0xff] }
 0x614   : > { %v3933_v32 = vperm.slane %v3650_v52, %v10840_v29 }
 0x616   : > { %v3934_v17 = vsel %vm14178_vm12, %v3933_v32, %v3932_v37  ;;  %vm14326_vm12 = vcmask 1044484   ;;  %v14737_v32 = vld [vmem:[#allocation100_spill] sm:$0xff]  ;;  %v14740_v37 = vld [vmem:[#allocation113_spill] sm:$0xff] }
 0x617   : > { %v3936_v50 = vsel %vm14181_vm13, %v3935_v59, %v3934_v17  ;;  %v3950_v27 = vsel %vm14326_vm12, %v3849_v55, %v3948_v60  ;;  %vm14321_vm13 = vcmask 1047559  }
 0x618   : > { %v3938_v61 = vsel %vm3716_vm14, %v3937_v42, %v3936_v50  ;;  %v3952_v54 = vsel %vm14323_vm10, %v3880_v40, %v3950_v27 }
 0x619   : > { %v3954_v21 = vsel %vm14322_vm1, %v3911_v28, %v3952_v54  ;;  %vm15055_vm1 = vcmask 720512  }
 0x61b   : > { %v3659_v62 = vpop.permute.xlu1 %3658 }
 0x61c   : > { %v3939_v56 = vperm.slane %v3659_v62, %v10864_v8 }
 0x61e   : > { %v3940_v3 = vsel %vm3720_vm15, %v3939_v56, %v3938_v61  ;;  %v14753_v56 = vld [vmem:[#allocation99_spill] sm:$0xff] }
 0x61f   : > { %v3942_v33 = vsel %vm3724_vm0, %v3941_v35, %v3940_v3  ;;  %v14754_v35 = vld [vmem:[#allocation95_spill] sm:$0xff] }
 0x620   : > { %v3956_v52 = vsel %vm14321_vm13, %v3942_v33, %v3954_v21  ;;  %vm15054_vm13 = vcmask 654912  }
 0x621   : > { %3958 = vmax.xlane.f32.xlu2 %v3956_v52  ;;  %vm15057_vm10 = vmmov %vm15054_vm13 }
 0x694   : > { %v11193_v38 = vpop.xlane.xlu2 %3958 }
 0x695   : > { %v11196_v26 = vperm.slane %v11193_v38, 0  ;;  %v11199_v15 = vperm.slane %v11193_v38, 1 }
 0x697   : > { %v3988_v18 = vsub.f32 %v14737_v32, %v11196_v26  ;;  %v3978_v23 = vsub.f32 %v14738_v1, %v11196_v26  ;;  %v3977_v45 = vsub.f32 %v14739_v53, %v11196_v26  ;;  %v3995_v19 = vsub.f32 %v14740_v37, %v11199_v15  ;;  %v14758_v32 = vld [vmem:[#allocation122_spill] sm:$0xff]  ;;  %v14760_v53 = vld [vmem:[#allocation97_spill] sm:$0xff] }
 0x698   : > { %v3980_v41 = vsub.f32 %v14741_v44, %v11196_v26  ;;  %v3979_v17 = vsub.f32 %v14742_v39, %v11196_v26  ;;  %v3998_v22 = vsub.f32 %v14746_v63, %v11199_v15  ;;  %v3982_v16 = vsub.f32 %v14747_v13, %v11196_v26  ;;  %v14759_v1 = vld [vmem:[#allocation98_spill] sm:$0xff] }
 0x699   : > { %v4127_v30 = vmul.f32 1.442695, %v3988_v18  ;;  %v4107_v10 = vmul.f32 1.442695, %v3978_v23  ;;  %v4105_v4 = vmul.f32 1.442695, %v3977_v45  ;;  %v3981_v2 = vsub.f32 %v14748_v48, %v11196_v26 }
 0x69a   : > { %v4141_v25 = vmul.f32 1.442695, %v3995_v19  ;;  %v4111_v12 = vmul.f32 1.442695, %v3980_v41  ;;  %v4109_v57 = vmul.f32 1.442695, %v3979_v17  ;;  %v4001_v60 = vsub.f32 %v14752_v0, %v11199_v15 }
 0x69b   : > { %7762 = vpow2.f32 %v4127_v30  ;;  %v4147_v55 = vmul.f32 1.442695, %v3998_v22  ;;  %v4115_v6 = vmul.f32 1.442695, %v3982_v16  ;;  %v4113_v42 = vmul.f32 1.442695, %v3981_v2 }
 0x69c   : > { %7764 = vpow2.f32 %v4107_v10  ;;  %v3984_v28 = vsub.f32 %v14753_v56, %v11196_v26  ;;  %v3983_v61 = vsub.f32 %v14754_v35, %v11196_v26  ;;  %v4153_v27 = vmul.f32 1.442695, %v4001_v60  ;;  %v14764_v41 = vld [vmem:[#allocation125_spill] sm:$0xff]  ;;  %v14771_v0 = vld [vmem:[#allocation103_spill] sm:$0xff]  ;;  %v14772_v56 = vld [vmem:[#allocation102_spill] sm:$0xff] }
 0x69d   : > { %7766 = vpow2.f32 %v4105_v4  ;;  %v4004_v18 = vsub.f32 %v14758_v32, %v11199_v15  ;;  %v3986_v23 = vsub.f32 %v14759_v1, %v11196_v26  ;;  %v3985_v45 = vsub.f32 %v14760_v53, %v11196_v26  ;;  %v14765_v17 = vld [vmem:[#allocation105_spill] sm:$0xff] }
 0x69e   : > { %7768 = vpow2.f32 %v4141_v25  ;;  %v4119_v3 = vmul.f32 1.442695, %v3984_v28  ;;  %v4117_v33 = vmul.f32 1.442695, %v3983_v61  ;;  %v4007_v39 = vsub.f32 %v14764_v41, %v11199_v15 }
 0x69f   : > { %7770 = vpow2.f32 %v4111_v12  ;;  %v4159_v30 = vmul.f32 1.442695, %v4004_v18  ;;  %v4123_v10 = vmul.f32 1.442695, %v3986_v23  ;;  %v4121_v37 = vmul.f32 1.442695, %v3985_v45 }
 0x6a0   : > { %7772 = vpow2.f32 %v4109_v57  ;;  %v3989_v25 = vsub.f32 %v14765_v17, %v11196_v26  ;;  %v14766_v12 = vld [vmem:[#allocation101_spill] sm:$0xff]  ;;  %v11274_v63 = vperm.slane %v11193_v38, 2  ;;  %v4165_v22 = vmul.f32 1.442695, %v4007_v39  ;;  %v14776_v18 = vld [vmem:[#allocation131_spill] sm:$0xff]  ;;  %v14777_v23 = vld [vmem:[#allocation104_spill] sm:$0xff] }
 0x6a1   : > { %v11213_v11 = vpop.eup %7762  ;;  %7774 = vpow2.f32 %v4147_v55  ;;  %v3987_v57 = vsub.f32 %v14766_v12, %v11196_v26  ;;  %v3991_v60 = vsub.f32 %v14771_v0, %v11196_v26  ;;  %v3990_v28 = vsub.f32 %v14772_v56, %v11196_v26  ;;  %v14778_v45 = vld [vmem:[#allocation110_spill] sm:$0xff]  ;;  %v14782_v12 = vld [vmem:[#allocation19_spill] sm:$0xff] }
 0x6a2   : > { %14743 = vst [vmem:[#allocation148_spill] sm:$0xff] %v11213_v11  ;;  %v11215_v59 = vpop.eup %7764  ;;  %4523 = vperm.xlu2 %7492, %v11213_v11   ;;  %7776 = vpow2.f32 %v4115_v6  ;;  %v4129_v13 = vmul.f32 1.442695, %v3989_v25  ;;  %v14770_v6 = vld [vmem:[#allocation128_spill] sm:$0xff]  ;;  %v4013_v1 = vsub.f32 %v14776_v18, %v11274_v63  ;;  %v3993_v53 = vsub.f32 %v14777_v23, %v11199_v15 }
 0x6a3   : > { %14744 = vst [vmem:[#allocation137_spill] sm:$0xff] %v11215_v59  ;;  %v11218_v7 = vpop.eup %7766  ;;  %4493 = vperm.xlu0 %7494, %v11215_v59   ;;  %7778 = vpow2.f32 %v4113_v42  ;;  %v4125_v48 = vmul.f32 1.442695, %v3987_v57  ;;  %v4010_v42 = vsub.f32 %v14770_v6, %v11274_v63  ;;  %v4133_v61 = vmul.f32 1.442695, %v3991_v60 }
 0x6a4   : > { %14745 = vst [vmem:[#allocation135_spill] sm:$0xff] %v11218_v7  ;;  %4490 = vperm.xlu1 %7493, %v11218_v7   ;;  %v11228_v50 = vpop.eup %7768  ;;  %7780 = vpow2.f32 %v4153_v27  ;;  %v4016_v57 = vsub.f32 %v14782_v12, %v11274_v63  ;;  %v14794_v12 = vld [vmem:[#allocation22_spill] sm:$0xff] }
 0x6a5   : > { %14749 = vst [vmem:[#allocation159_spill] sm:$0xff] %v11228_v50  ;;  %v11230_v62 = vpop.eup %7770  ;;  %7782 = vpow2.f32 %v4119_v3  ;;  %v4171_v35 = vmul.f32 1.442695, %v4010_v42  ;;  %v4131_v3 = vmul.f32 1.442695, %v3990_v28 }
 0x6a6   : > { %14750 = vst [vmem:[#allocation141_spill] sm:$0xff] %v11230_v62  ;;  %v11233_v40 = vpop.eup %7772  ;;  %7784 = vpow2.f32 %v4117_v33  ;;  %v4183_v6 = vmul.f32 1.442695, %v4016_v57  ;;  %v4022_v57 = vsub.f32 %v14794_v12, %v11274_v63 }
 0x6a7   : > { %14751 = vst [vmem:[#allocation165_spill] sm:$0xff] %v11233_v40  ;;  %v11243_v54 = vpop.eup %7774  ;;  %7786 = vpow2.f32 %v4159_v30  ;;  %v3992_v30 = vsub.f32 %v14778_v45, %v11196_v26  ;;  %v14783_v26 = vld [vmem:[#allocation107_spill] sm:$0xff] }
 0x6a8   : > { %14755 = vst [vmem:[#allocation138_spill] sm:$0xff] %v11243_v54  ;;  %v11245_v21 = vpop.eup %7776  ;;  %7788 = vpow2.f32 %v4123_v10  ;;  %v4177_v10 = vmul.f32 1.442695, %v4013_v1  ;;  %v14790_v1 = vld [vmem:[#allocation108_spill] sm:$0xff] }
 0x6a9   : > { %14756 = vst [vmem:[#allocation140_spill] sm:$0xff] %v11245_v21  ;;  %v11248_v52 = vpop.eup %7778  ;;  %7790 = vpow2.f32 %v4121_v37  ;;  %v4137_v37 = vmul.f32 1.442695, %v3993_v53  ;;  %v4135_v39 = vmul.f32 1.442695, %v3992_v30  ;;  %v3997_v23 = vsub.f32 %v14790_v1, %v11199_v15  ;;  %v14800_v1 = vld [vmem:[#allocation25_spill] sm:$0xff] }
 0x6aa   : > { %4544 = vperm.xlu2 %7492, %v11228_v50   ;;  %14757 = vst [vmem:[#allocation158_spill] sm:$0xff] %v11248_v52  ;;  %v11258_v4 = vpop.eup %7780  ;;  %7792 = vpow2.f32 %v4165_v22  ;;  %v3996_v22 = vsub.f32 %v14783_v26, %v11199_v15  ;;  %v14795_v26 = vld [vmem:[#allocation112_spill] sm:$0xff] }
 0x6ab   : > { %4499 = vperm.xlu0 %7494, %v11230_v62   ;;  %14761 = vst [vmem:[#allocation134_spill] sm:$0xff] %v11258_v4  ;;  %v11260_v19 = vpop.eup %7782  ;;  %7794 = vpow2.f32 %v4129_v13  ;;  %v14784_v13 = vld [vmem:[#allocation106_spill] sm:$0xff] }
 0x6ac   : > { %4496 = vperm.xlu1 %7493, %v11233_v40   ;;  %14762 = vst [vmem:[#allocation153_spill] sm:$0xff] %v11260_v19  ;;  %v11263_v44 = vpop.eup %7784  ;;  %7796 = vpow2.f32 %v4125_v48  ;;  %v3994_v48 = vsub.f32 %v14784_v13, %v11199_v15  ;;  %v4143_v42 = vmul.f32 1.442695, %v3996_v22  ;;  %v4002_v22 = vsub.f32 %v14795_v26, %v11199_v15  ;;  %v14796_v13 = vld [vmem:[#allocation111_spill] sm:$0xff] }
 0x6ad   : > { %14763 = vst [vmem:[#allocation168_spill] sm:$0xff] %v11263_v44  ;;  %v11276_v16 = vpop.eup %7786  ;;  %7798 = vpow2.f32 %v4171_v35  ;;  %v14788_v35 = vld [vmem:[#allocation20_spill] sm:$0xff] }
 0x6ae   : > { %14767 = vst [vmem:[#allocation152_spill] sm:$0xff] %v11276_v16  ;;  %v11278_v2 = vpop.eup %7788  ;;  %7800 = vpow2.f32 %v4133_v61  ;;  %v4139_v60 = vmul.f32 1.442695, %v3994_v48  ;;  %v4019_v61 = vsub.f32 %v14788_v35, %v11274_v63  ;;  %v4000_v48 = vsub.f32 %v14796_v13, %v11199_v15 }
 0x6af   : > { %14768 = vst [vmem:[#allocation162_spill] sm:$0xff] %v11278_v2  ;;  %v11281_v55 = vpop.eup %7790  ;;  %7802 = vpow2.f32 %v4131_v3  ;;  %v14789_v3 = vld [vmem:[#allocation109_spill] sm:$0xff] }
 0x6b0   : > { %14769 = vst [vmem:[#allocation143_spill] sm:$0xff] %v11281_v55  ;;  %v11291_v27 = vpop.eup %7792  ;;  %7804 = vpow2.f32 %v4177_v10  ;;  %v3999_v18 = vsub.f32 %v14789_v3, %v11199_v15  ;;  %v4189_v53 = vmul.f32 1.442695, %v4019_v61  ;;  %v4145_v10 = vmul.f32 1.442695, %v3997_v23 }
 0x6b1   : > { %14773 = vst [vmem:[#allocation172_spill] sm:$0xff] %v11291_v27  ;;  %v11293_v33 = vpop.eup %7794  ;;  %7806 = vpow2.f32 %v4137_v37  ;;  %v4151_v61 = vmul.f32 1.442695, %v4000_v48 }
 0x6b2   : > { %4553 = vperm.xlu2 %7492, %v11243_v54   ;;  %14774 = vst [vmem:[#allocation147_spill] sm:$0xff] %v11293_v33  ;;  %v11296_v32 = vpop.eup %7796  ;;  %7808 = vpow2.f32 %v4135_v39  ;;  %v4149_v45 = vmul.f32 1.442695, %v3999_v18 }
 0x6b3   : > { %4505 = vperm.xlu0 %7494, %v11245_v21   ;;  %14775 = vst [vmem:[#allocation155_spill] sm:$0xff] %v11296_v32  ;;  %v11306_v41 = vpop.eup %7798  ;;  %7810 = vpow2.f32 %v4183_v6  ;;  %v11352_v6 = vperm.slane %v11193_v38, 3 }
 0x6b4   : > { %4502 = vperm.xlu1 %7493, %v11248_v52   ;;  %14779 = vst [vmem:[#allocation161_spill] sm:$0xff] %v11306_v41  ;;  %v11308_v17 = vpop.eup %7800  ;;  %7812 = vpow2.f32 %v4143_v42  ;;  %v4195_v42 = vmul.f32 1.442695, %v4022_v57 }
 0x6b5   : > { %14780 = vst [vmem:[#allocation166_spill] sm:$0xff] %v11308_v17  ;;  %v11311_v25 = vpop.eup %7802  ;;  %7814 = vpow2.f32 %v4139_v60  ;;  %v4155_v60 = vmul.f32 1.442695, %v4002_v22  ;;  %v4025_v23 = vsub.f32 %v14800_v1, %v11352_v6  ;;  %v14807_v1 = vld [vmem:[#allocation118_spill] sm:$0xff] }
 0x6b6   : > { %14781 = vst [vmem:[#allocation156_spill] sm:$0xff] %v11311_v25  ;;  %v11321_v0 = vpop.eup %7804  ;;  %7816 = vpow2.f32 %v4189_v53  ;;  %v14801_v53 = vld [vmem:[#allocation115_spill] sm:$0xff] }
 0x6b7   : > { %14785 = vst [vmem:[#allocation157_spill] sm:$0xff] %v11321_v0  ;;  %v11323_v56 = vpop.eup %7806  ;;  %7818 = vpow2.f32 %v4149_v45  ;;  %v4005_v45 = vsub.f32 %v14801_v53, %v11199_v15  ;;  %v4201_v57 = vmul.f32 1.442695, %v4025_v23  ;;  %v4008_v23 = vsub.f32 %v14807_v1, %v11199_v15  ;;  %v14808_v53 = vld [vmem:[#allocation117_spill] sm:$0xff] }
 0x6b8   : > { %14786 = vst [vmem:[#allocation160_spill] sm:$0xff] %v11323_v56  ;;  %v11326_v28 = vpop.eup %7808  ;;  %7820 = vpow2.f32 %v4145_v10  ;;  %v14802_v10 = vld [vmem:[#allocation114_spill] sm:$0xff] }
 0x6b9   : > { %14787 = vst [vmem:[#allocation171_spill] sm:$0xff] %v11326_v28  ;;  %v11336_v30 = vpop.eup %7810  ;;  %7822 = vpow2.f32 %v4195_v42  ;;  %v4003_v12 = vsub.f32 %v14802_v10, %v11199_v15  ;;  %v4161_v26 = vmul.f32 1.442695, %v4005_v45  ;;  %v4006_v45 = vsub.f32 %v14808_v53, %v11199_v15  ;;  %v14813_v15 = vld [vmem:[#allocation121_spill] sm:$0xff] }
 0x6ba   : > { %4562 = vperm.xlu2 %7492, %v11258_v4   ;;  %14791 = vst [vmem:[#allocation169_spill] sm:$0xff] %v11336_v30  ;;  %v11338_v37 = vpop.eup %7812  ;;  %7824 = vpow2.f32 %v4155_v60  ;;  %v14806_v60 = vld [vmem:[#allocation28_spill] sm:$0xff] }
 0x6bb   : > { %4511 = vperm.xlu0 %7494, %v11260_v19   ;;  %14792 = vst [vmem:[#allocation164_spill] sm:$0xff] %v11338_v37  ;;  %v11341_v39 = vpop.eup %7814  ;;  %7826 = vpow2.f32 %v4151_v61  ;;  %v4157_v13 = vmul.f32 1.442695, %v4003_v12  ;;  %v4028_v61 = vsub.f32 %v14806_v60, %v11352_v6  ;;  %v4167_v12 = vmul.f32 1.442695, %v4008_v23 }
 0x6bc   : > { %4508 = vperm.xlu1 %7493, %v11263_v44   ;;  %14793 = vst [vmem:[#allocation173_spill] sm:$0xff] %v11341_v39  ;;  %v11354_v35 = vpop.eup %7816  ;;  %7828 = vpow2.f32 %v4201_v57  ;;  %v4011_v60 = vsub.f32 %v14813_v15, %v11274_v63 }
 0x6bd   : > { %14797 = vst [vmem:[#allocation174_spill] sm:$0xff] %v11354_v35  ;;  %v11356_v3 = vpop.eup %7818  ;;  %7830 = vpow2.f32 %v4161_v26  ;;  %v4207_v10 = vmul.f32 1.442695, %v4028_v61  ;;  %v14812_v26 = vld [vmem:[#allocation31_spill] sm:$0xff]  ;;  %v14814_v61 = vld [vmem:[#allocation120_spill] sm:$0xff] }
 0x6be   : > { %14798 = vst [vmem:[#allocation167_spill] sm:$0xff] %v11356_v3  ;;  %v11359_v18 = vpop.eup %7820  ;;  %7832 = vpow2.f32 %v4157_v13  ;;  %v4031_v13 = vsub.f32 %v14812_v26, %v11352_v6  ;;  %v4009_v1 = vsub.f32 %v14814_v61, %v11274_v63  ;;  %v4173_v53 = vmul.f32 1.442695, %v4011_v60  ;;  %v14820_v60 = vld [vmem:[#allocation123_spill] sm:$0xff] }
 0x6bf   : > { %14799 = vst [vmem:[#allocation190_spill] sm:$0xff] %v11359_v18  ;;  %v11369_v22 = vpop.eup %7822  ;;  %7834 = vpow2.f32 %v4207_v10  ;;  %v4012_v61 = vsub.f32 %v14820_v60, %v11274_v63 }
 0x6c0   : > { %14803 = vst [vmem:[#allocation197_spill] sm:$0xff] %v11369_v22  ;;  %v11371_v48 = vpop.eup %7824  ;;  %7836 = vpow2.f32 %v4167_v12  ;;  %v4213_v23 = vmul.f32 1.442695, %v4031_v13  ;;  %v14819_v13 = vld [vmem:[#allocation124_spill] sm:$0xff] }
 0x6c1   : > { %14804 = vst [vmem:[#allocation180_spill] sm:$0xff] %v11371_v48  ;;  %v11374_v42 = vpop.eup %7826  ;;  %v4014_v15 = vsub.f32 %v14819_v13, %v11274_v63 }
 0x6c2   : > { %4571 = vperm.xlu2 %7492, %v11276_v16   ;;  %14805 = vst [vmem:[#allocation195_spill] sm:$0xff] %v11374_v42 }
 0x6c3   : > { %4517 = vperm.xlu0 %7494, %v11278_v2  }
 0x6c4   : > { %4514 = vperm.xlu1 %7493, %v11281_v55  }
 0x6ca   : > { %4580 = vperm.xlu2 %7492, %v11291_v27  }
 0x6cb   : > { %4526 = vperm.xlu0 %7494, %v11293_v33  }
 0x6cc   : > { %4520 = vperm.xlu1 %7493, %v11296_v32  }
 0x6d2   : > { %4589 = vperm.xlu2 %7492, %v11306_v41  }
 0x6d3   : > { %4532 = vperm.xlu0 %7494, %v11308_v17  }
 0x6d4   : > { %4529 = vperm.xlu1 %7493, %v11311_v25  }
 0x6da   : > { %4598 = vperm.xlu2 %7492, %v11321_v0  }
 0x6db   : > { %4538 = vperm.xlu0 %7494, %v11323_v56  }
 0x6dc   : > { %4535 = vperm.xlu1 %7493, %v11326_v28  }
 0x6e2   : > { %4607 = vperm.xlu2 %7492, %v11336_v30  }
 0x6e3   : > { %4547 = vperm.xlu0 %7494, %v11338_v37  }
 0x6e4   : > { %4541 = vperm.xlu1 %7493, %v11341_v39  }
 0x6ea   : > { %4616 = vperm.xlu2 %7492, %v11354_v35   ;;  %v4163_v35 = vmul.f32 1.442695, %v4006_v45 }
 0x6eb   : > { %4556 = vperm.xlu0 %7494, %v11356_v3  }
 0x6ec   : > { %4550 = vperm.xlu1 %7493, %v11359_v18   ;;  %7838 = vpow2.f32 %v4163_v35  ;;  %v14818_v35 = vld [vmem:[#allocation34_spill] sm:$0xff] }
 0x6ed   : > { %7840 = vpow2.f32 %v4213_v23  ;;  %v4034_v12 = vsub.f32 %v14818_v35, %v11352_v6  ;;  %v14825_v35 = vld [vmem:[#allocation127_spill] sm:$0xff] }
 0x6ee   : > { %7842 = vpow2.f32 %v4173_v53  ;;  %v14824_v53 = vld [vmem:[#allocation36_spill] sm:$0xff] }
 0x6f2   : > { %4625 = vperm.xlu2 %7492, %v11369_v22   ;;  %v11384_v22 = vpop.eup %7828 }
 0x6f3   : > { %4565 = vperm.xlu0 %7494, %v11371_v48   ;;  %14809 = vst [vmem:[#allocation189_spill] sm:$0xff] %v11384_v22  ;;  %v11386_v30 = vpop.eup %7830 }
 0x6f4   : > { %4559 = vperm.xlu1 %7493, %v11374_v42   ;;  %14810 = vst [vmem:[#allocation175_spill] sm:$0xff] %v11386_v30  ;;  %v11389_v57 = vpop.eup %7832  ;;  %v4175_v42 = vmul.f32 1.442695, %v4012_v61 }
 0x6f5   : > { %14811 = vst [vmem:[#allocation198_spill] sm:$0xff] %v11389_v57  ;;  %v11399_v45 = vpop.eup %7834 }
 0x6f6   : > { %14815 = vst [vmem:[#allocation186_spill] sm:$0xff] %v11399_v45 }
 0x6fa   : > { %4634 = vperm.xlu2 %7492, %v11384_v22   ;;  %v4169_v22 = vmul.f32 1.442695, %v4009_v1  ;;  %v4219_v1 = vmul.f32 1.442695, %v4034_v12  ;;  %v4017_v12 = vsub.f32 %v14825_v35, %v11274_v63 }
 0x6fb   : > { %4574 = vperm.xlu0 %7494, %v11386_v30   ;;  %v11401_v30 = vpop.eup %7836 }
 0x6fc   : > { %4568 = vperm.xlu1 %7493, %v11389_v57   ;;  %14816 = vst [vmem:[#allocation176_spill] sm:$0xff] %v11401_v30  ;;  %v11404_v10 = vpop.eup %7838  ;;  %v11406_v26 = vpop.permute.xlu2 %4523  ;;  %7844 = vpow2.f32 %v4169_v22  ;;  %v4179_v57 = vmul.f32 1.442695, %v4014_v15  ;;  %v4037_v22 = vsub.f32 %v14824_v53, %v11352_v6  ;;  %v14826_v15 = vld [vmem:[#allocation126_spill] sm:$0xff] }
 0x6fd   : > { %14817 = vst [vmem:[#allocation170_spill] sm:$0xff] %v11404_v10  ;;  %7846 = vpow2.f32 %v4219_v1  ;;  %v4015_v60 = vsub.f32 %v14826_v15, %v11274_v63  ;;  %v14832_v15 = vld [vmem:[#allocation129_spill] sm:$0xff] }
 0x6fe   : > { %7848 = vpow2.f32 %v4179_v57  ;;  %v4225_v61 = vmul.f32 1.442695, %v4037_v22  ;;  %v14830_v57 = vld [vmem:[#allocation39_spill] sm:$0xff]  ;;  %v14831_v22 = vld [vmem:[#allocation130_spill] sm:$0xff] }
 0x6ff   : > { %7850 = vpow2.f32 %v4175_v42  ;;  %v4181_v1 = vmul.f32 1.442695, %v4015_v60  ;;  %v4040_v42 = vsub.f32 %v14830_v57, %v11352_v6  ;;  %v4020_v35 = vsub.f32 %v14831_v22, %v11274_v63  ;;  %v14836_v22 = vld [vmem:[#allocation42_spill] sm:$0xff] }
 0x700   : > { %7852 = vpow2.f32 %v4225_v61  ;;  %v4018_v60 = vsub.f32 %v14832_v15, %v11274_v63 }
 0x701   : > { %v4231_v57 = vmul.f32 1.442695, %v4040_v42  ;;  %v14837_v42 = vld [vmem:[#allocation133_spill] sm:$0xff] }
 0x702   : > { %4643 = vperm.xlu2 %7492, %v11399_v45   ;;  %v11416_v45 = vpop.eup %7840 }
 0x703   : > { %4583 = vperm.xlu0 %7494, %v11401_v30   ;;  %14821 = vst [vmem:[#allocation192_spill] sm:$0xff] %v11416_v45  ;;  %v11418_v30 = vpop.eup %7842 }
 0x704   : > { %4577 = vperm.xlu1 %7493, %v11404_v10   ;;  %14822 = vst [vmem:[#allocation182_spill] sm:$0xff] %v11418_v30  ;;  %v11421_v23 = vpop.eup %7844  ;;  %v11429_v13 = vpop.permute.xlu2 %4544 }
 0x705   : > { %14823 = vst [vmem:[#allocation196_spill] sm:$0xff] %v11421_v23  ;;  %v11433_v10 = vpop.eup %7846 }
 0x706   : > { %14827 = vst [vmem:[#allocation163_spill] sm:$0xff] %v11433_v10 }
 0x70a   : > { %4652 = vperm.xlu2 %7492, %v11416_v45   ;;  %v4185_v45 = vmul.f32 1.442695, %v4017_v12 }
 0x70b   : > { %4592 = vperm.xlu0 %7494, %v11418_v30   ;;  %v11435_v30 = vpop.eup %7848 }
 0x70c   : > { %4586 = vperm.xlu1 %7493, %v11421_v23   ;;  %14828 = vst [vmem:[#allocation191_spill] sm:$0xff] %v11435_v30  ;;  %v11438_v53 = vpop.eup %7850  ;;  %7854 = vpow2.f32 %v4185_v45  ;;  %v11455_v61 = vpop.permute.xlu2 %4553  ;;  %v4191_v23 = vmul.f32 1.442695, %v4020_v35  ;;  %v4187_v45 = vmul.f32 1.442695, %v4018_v60  ;;  %v4023_v35 = vsub.f32 %v14837_v42, %v11274_v63  ;;  %v14838_v60 = vld [vmem:[#allocation132_spill] sm:$0xff] }
 0x70d   : > { %14829 = vst [vmem:[#allocation179_spill] sm:$0xff] %v11438_v53  ;;  %7856 = vpow2.f32 %v4181_v1 }
 0x70e   : > { %7858 = vpow2.f32 %v4231_v57 }
 0x70f   : > { %7860 = vpow2.f32 %v4191_v23 }
 0x710   : > { %7862 = vpow2.f32 %v4187_v45  ;;  %v14842_v45 = vld [vmem:[#allocation45_spill] sm:$0xff] }
 0x712   : > { %4661 = vperm.xlu2 %7492, %v11433_v10  }
 0x713   : > { %4601 = vperm.xlu0 %7494, %v11435_v30   ;;  %v11453_v30 = vperm.slane %v11193_v38, 4 }
 0x714   : > { %4595 = vperm.xlu1 %7493, %v11438_v53   ;;  %v11457_v53 = vpop.eup %7852  ;;  %v11478_v37 = vpop.permute.xlu2 %4562 }
 0x715   : > { %v11446_v12 = vpop.permute.xlu0 %4493  ;;  %14833 = vst [vmem:[#allocation188_spill] sm:$0xff] %v11457_v53  ;;  %v11459_v48 = vpop.eup %7854  ;;  %v4043_v15 = vsub.f32 %v14836_v22, %v11453_v30  ;;  %v4046_v42 = vsub.f32 %v14842_v45, %v11453_v30 }
 0x716   : > { %v11450_v10 = vpop.permute.xlu1 %4490  ;;  %14834 = vst [vmem:[#allocation177_spill] sm:$0xff] %v11459_v48  ;;  %v11462_v1 = vpop.eup %7856 }
 0x717   : > { %14835 = vst [vmem:[#allocation193_spill] sm:$0xff] %v11462_v1  ;;  %v4237_v39 = vmul.f32 1.442695, %v4043_v15  ;;  %v11476_v57 = vpop.eup %7858  ;;  %v14843_v15 = vld [vmem:[#allocation24_spill] sm:$0xff]  ;;  %v4243_v56 = vmul.f32 1.442695, %v4046_v42 }
 0x718   : > { %14839 = vst [vmem:[#allocation184_spill] sm:$0xff] %v11476_v57  ;;  %v14849_v42 = vld [vmem:[#allocation27_spill] sm:$0xff] }
 0x719   : > { %7864 = vpow2.f32 %v4237_v39 }
 0x71a   : > { %4670 = vperm.xlu2 %7492, %v11457_v53   ;;  %v4021_v53 = vsub.f32 %v14838_v60, %v11274_v63 }
 0x71b   : > { %4610 = vperm.xlu0 %7494, %v11459_v48   ;;  %v4197_v48 = vmul.f32 1.442695, %v4023_v35  ;;  %v4026_v35 = vsub.f32 %v14843_v15, %v11352_v6 }
 0x71c   : > { %4604 = vperm.xlu1 %7493, %v11462_v1   ;;  %v4193_v22 = vmul.f32 1.442695, %v4021_v53  ;;  %v11480_v1 = vpop.eup %7860  ;;  %v14844_v53 = vld [vmem:[#allocation21_spill] sm:$0xff]  ;;  %v11504_v15 = vpop.permute.xlu2 %4571 }
 0x71d   : > { %v11470_v18 = vpop.permute.xlu0 %4499  ;;  %14840 = vst [vmem:[#allocation194_spill] sm:$0xff] %v11480_v1  ;;  %v11483_v23 = vpop.eup %7862  ;;  %7866 = vpow2.f32 %v4197_v48 }
 0x71e   : > { %v11474_v3 = vpop.permute.xlu1 %4496  ;;  %14841 = vst [vmem:[#allocation200_spill] sm:$0xff] %v11483_v23  ;;  %7868 = vpow2.f32 %v4193_v22 }
 0x71f   : > { %v11497_v39 = vpop.eup %7864  ;;  %7870 = vpow2.f32 %v4243_v56 }
 0x720   : > { %14845 = vst [vmem:[#allocation144_spill] sm:$0xff] %v11497_v39 }
 0x722   : > { %4679 = vperm.xlu2 %7492, %v11476_v57   ;;  %v4024_v57 = vsub.f32 %v14844_v53, %v11274_v63  ;;  %v14848_v63 = vld [vmem:[#allocation48_spill] sm:$0xff]  ;;  %v14850_v53 = vld [vmem:[#allocation23_spill] sm:$0xff] }
 0x723   : > { %4619 = vperm.xlu0 %7494, %v11480_v1   ;;  %v4203_v1 = vmul.f32 1.442695, %v4026_v35  ;;  %v11499_v45 = vpop.eup %7866  ;;  %v4049_v22 = vsub.f32 %v14848_v63, %v11453_v30 }
 0x724   : > { %4613 = vperm.xlu1 %7493, %v11483_v23   ;;  %v4199_v0 = vmul.f32 1.442695, %v4024_v57  ;;  %14846 = vst [vmem:[#allocation100_spill] sm:$0xff] %v11499_v45  ;;  %v11502_v48 = vpop.eup %7868  ;;  %v4029_v57 = vsub.f32 %v14849_v42, %v11352_v6  ;;  %v4027_v23 = vsub.f32 %v14850_v53, %v11352_v6  ;;  %v11531_v53 = vpop.permute.xlu2 %4580 }
 0x725   : > { %v11491_v60 = vpop.permute.xlu0 %4505  ;;  %14847 = vst [vmem:[#allocation92_spill] sm:$0xff] %v11502_v48  ;;  %7872 = vpow2.f32 %v4203_v1  ;;  %v4249_v25 = vmul.f32 1.442695, %v4049_v22  ;;  %v11518_v56 = vpop.eup %7870  ;;  %v14855_v22 = vld [vmem:[#allocation30_spill] sm:$0xff] }
 0x726   : > { %v11495_v28 = vpop.permute.xlu1 %4502  ;;  %7874 = vpow2.f32 %v4199_v0  ;;  %14851 = vst [vmem:[#allocation89_spill] sm:$0xff] %v11518_v56  ;;  %v4205_v17 = vmul.f32 1.442695, %v4027_v23  ;;  %v14854_v0 = vld [vmem:[#allocation51_spill] sm:$0xff] }
 0x727   : > { %7876 = vpow2.f32 %v4249_v25  ;;  %v4052_v42 = vsub.f32 %v14854_v0, %v11453_v30  ;;  %14856 = vst [vmem:[#allocation93_spill] sm:$0xff] %v11531_v53 }
 0x729   : > { %v4255_v25 = vmul.f32 1.442695, %v4052_v42 }
 0x72a   : > { %4688 = vperm.xlu2 %7492, %v11497_v39  }
 0x72b   : > { %4628 = vperm.xlu0 %7494, %v11499_v45   ;;  %v4209_v45 = vmul.f32 1.442695, %v4029_v57  ;;  %v11520_v63 = vpop.eup %7872  ;;  %v4032_v57 = vsub.f32 %v14855_v22, %v11352_v6 }
 0x72c   : > { %4622 = vperm.xlu1 %7493, %v11502_v48   ;;  %14852 = vst [vmem:[#allocation113_spill] sm:$0xff] %v11520_v63  ;;  %v11523_v1 = vpop.eup %7874  ;;  %v14857_v48 = vld [vmem:[#allocation26_spill] sm:$0xff] }
 0x72d   : > { %v11512_v35 = vpop.permute.xlu0 %4511  ;;  %14853 = vst [vmem:[#allocation90_spill] sm:$0xff] %v11523_v1  ;;  %7878 = vpow2.f32 %v4209_v45  ;;  %v11539_v32 = vpop.eup %7876 }
 0x72e   : > { %v11516_v39 = vpop.permute.xlu1 %4508  ;;  %7880 = vpow2.f32 %v4205_v17  ;;  %14858 = vst [vmem:[#allocation116_spill] sm:$0xff] %v11539_v32  ;;  %v14861_v17 = vld [vmem:[#allocation151_spill] sm:$0xff] }
 0x72f   : > { %7882 = vpow2.f32 %v4255_v25  ;;  %v4055_v22 = vsub.f32 %v14861_v17, %v11453_v30  ;;  %v11561_v25 = vpop.permute.xlu2 %4589 }
 0x731   : > { %v4261_v17 = vmul.f32 1.442695, %v4055_v22  ;;  %v14869_v22 = vld [vmem:[#allocation136_spill] sm:$0xff] }
 0x732   : > { %4697 = vperm.xlu2 %7492, %v11518_v56   ;;  %v4030_v56 = vsub.f32 %v14857_v48, %v11352_v6  ;;  %v14862_v48 = vld [vmem:[#allocation33_spill] sm:$0xff] }
 0x733   : > { %4637 = vperm.xlu0 %7494, %v11520_v63   ;;  %v4215_v63 = vmul.f32 1.442695, %v4032_v57  ;;  %v4035_v42 = vsub.f32 %v14862_v48, %v11352_v6  ;;  %v14868_v48 = vld [vmem:[#allocation52_spill] sm:$0xff] }
 0x734   : > { %4631 = vperm.xlu1 %7493, %v11523_v1   ;;  %v4211_v0 = vmul.f32 1.442695, %v4030_v56  ;;  %v11541_v1 = vpop.eup %7878  ;;  %v14864_v56 = vld [vmem:[#allocation29_spill] sm:$0xff] }
 0x735   : > { %v11533_v23 = vpop.permute.xlu0 %4517  ;;  %14859 = vst [vmem:[#allocation96_spill] sm:$0xff] %v11541_v1  ;;  %v11544_v45 = vpop.eup %7880  ;;  %7884 = vpow2.f32 %v4215_v63  ;;  %v4221_v27 = vmul.f32 1.442695, %v4035_v42  ;;  %v4038_v42 = vsub.f32 %v14869_v22, %v11352_v6 }
 0x736   : > { %v11537_v41 = vpop.permute.xlu1 %4514  ;;  %14860 = vst [vmem:[#allocation94_spill] sm:$0xff] %v11544_v45  ;;  %7886 = vpow2.f32 %v4211_v0 }
 0x737   : > { %7888 = vpow2.f32 %v4261_v17  ;;  %v11584_v19 = vpop.permute.xlu2 %4598 }
 0x738   : > { %7890 = vpow2.f32 %v4221_v27 }
 0x73a   : > { %4706 = vperm.xlu2 %7492, %v11539_v32   ;;  %v4033_v32 = vsub.f32 %v14864_v56, %v11352_v6 }
 0x73b   : > { %4646 = vperm.xlu0 %7494, %v11541_v1   ;;  %v11559_v1 = vperm.slane %v11193_v38, 5 }
 0x73c   : > { %4640 = vperm.xlu1 %7493, %v11544_v45   ;;  %v11563_v45 = vpop.eup %7882  ;;  %v4217_v63 = vmul.f32 1.442695, %v4033_v32  ;;  %v14871_v32 = vld [vmem:[#allocation32_spill] sm:$0xff] }
 0x73d   : > { %v11552_v57 = vpop.permute.xlu0 %4526  ;;  %14865 = vst [vmem:[#allocation99_spill] sm:$0xff] %v11563_v45  ;;  %v11565_v55 = vpop.eup %7884  ;;  %v4058_v56 = vsub.f32 %v14868_v48, %v11559_v1 }
 0x73e   : > { %14863 = vst [vmem:[#allocation119_spill] sm:$0xff] %v11552_v57  ;;  %v11556_v33 = vpop.permute.xlu1 %4520  ;;  %v11568_v0 = vpop.eup %7886  ;;  %7892 = vpow2.f32 %v4217_v63  ;;  %v14875_v63 = vld [vmem:[#allocation53_spill] sm:$0xff] }
 0x73f   : > { %14866 = vst [vmem:[#allocation95_spill] sm:$0xff] %v11565_v55  ;;  %v4267_v44 = vmul.f32 1.442695, %v4058_v56  ;;  %v11582_v17 = vpop.eup %7888  ;;  %v4061_v22 = vsub.f32 %v14875_v63, %v11559_v1  ;;  %v14876_v56 = vld [vmem:[#allocation38_spill] sm:$0xff] }
 0x740   : > { %14867 = vst [vmem:[#allocation122_spill] sm:$0xff] %v11568_v0 }
 0x741   : > { %14872 = vst [vmem:[#allocation97_spill] sm:$0xff] %v11582_v17  ;;  %7894 = vpow2.f32 %v4267_v44  ;;  %v4273_v52 = vmul.f32 1.442695, %v4061_v22  ;;  %v14884_v22 = vld [vmem:[#allocation41_spill] sm:$0xff] }
 0x742   : > { %4715 = vperm.xlu2 %7492, %v11563_v45   ;;  %v4036_v45 = vsub.f32 %v14871_v32, %v11352_v6 }
 0x743   : > { %4655 = vperm.xlu0 %7494, %v11565_v55   ;;  %v4227_v55 = vmul.f32 1.442695, %v4038_v42  ;;  %v4041_v42 = vsub.f32 %v14876_v56, %v11453_v30  ;;  %v11610_v56 = vpop.permute.xlu2 %4607 }
 0x744   : > { %4649 = vperm.xlu1 %7493, %v11568_v0   ;;  %v4223_v48 = vmul.f32 1.442695, %v4036_v45  ;;  %v11586_v0 = vpop.eup %7890  ;;  %v14877_v45 = vld [vmem:[#allocation35_spill] sm:$0xff]  ;;  %14882 = vst [vmem:[#allocation131_spill] sm:$0xff] %v11610_v56 }
 0x745   : > { %v11576_v2 = vpop.permute.xlu0 %4532  ;;  %14873 = vst [vmem:[#allocation125_spill] sm:$0xff] %v11586_v0  ;;  %v11589_v27 = vpop.eup %7892  ;;  %7896 = vpow2.f32 %v4227_v55 }
 0x746   : > { %14870 = vst [vmem:[#allocation98_spill] sm:$0xff] %v11576_v2  ;;  %v11580_v16 = vpop.permute.xlu1 %4529  ;;  %7898 = vpow2.f32 %v4223_v48 }
 0x747   : > { %14874 = vst [vmem:[#allocation105_spill] sm:$0xff] %v11589_v27  ;;  %v11603_v44 = vpop.eup %7894  ;;  %7900 = vpow2.f32 %v4273_v52 }
 0x748   : > { %14879 = vst [vmem:[#allocation128_spill] sm:$0xff] %v11603_v44 }
 0x74a   : > { %4724 = vperm.xlu2 %7492, %v11582_v17   ;;  %v4039_v17 = vsub.f32 %v14877_v45, %v11352_v6  ;;  %v14883_v6 = vld [vmem:[#allocation56_spill] sm:$0xff]  ;;  %v14885_v45 = vld [vmem:[#allocation37_spill] sm:$0xff] }
 0x74b   : > { %4664 = vperm.xlu0 %7494, %v11586_v0   ;;  %v4233_v0 = vmul.f32 1.442695, %v4041_v42  ;;  %v11605_v63 = vpop.eup %7896  ;;  %v4064_v48 = vsub.f32 %v14883_v6, %v11559_v1 }
 0x74c   : > { %4658 = vperm.xlu1 %7493, %v11589_v27   ;;  %v4229_v21 = vmul.f32 1.442695, %v4039_v17  ;;  %14880 = vst [vmem:[#allocation103_spill] sm:$0xff] %v11605_v63  ;;  %v11608_v55 = vpop.eup %7898  ;;  %v4044_v17 = vsub.f32 %v14884_v22, %v11453_v30  ;;  %v4042_v27 = vsub.f32 %v14885_v45, %v11453_v30  ;;  %v11637_v45 = vpop.permute.xlu2 %4616 }
 0x74d   : > { %v11597_v32 = vpop.permute.xlu0 %4538  ;;  %14881 = vst [vmem:[#allocation102_spill] sm:$0xff] %v11608_v55  ;;  %7902 = vpow2.f32 %v4233_v0  ;;  %v4279_v54 = vmul.f32 1.442695, %v4064_v48  ;;  %v11624_v52 = vpop.eup %7900  ;;  %v14890_v48 = vld [vmem:[#allocation44_spill] sm:$0xff] }
 0x74e   : > { %v11601_v4 = vpop.permute.xlu1 %4535  ;;  %7904 = vpow2.f32 %v4229_v21  ;;  %14886 = vst [vmem:[#allocation104_spill] sm:$0xff] %v11624_v52  ;;  %v4235_v40 = vmul.f32 1.442695, %v4042_v27  ;;  %v14889_v21 = vld [vmem:[#allocation59_spill] sm:$0xff] }
 0x74f   : > { %14878 = vst [vmem:[#allocation101_spill] sm:$0xff] %v11601_v4  ;;  %7906 = vpow2.f32 %v4279_v54  ;;  %v4067_v22 = vsub.f32 %v14889_v21, %v11559_v1 }
 0x750   : > { %14891 = vst [vmem:[#allocation107_spill] sm:$0xff] %v11637_v45 }
 0x751   : > { %v4285_v54 = vmul.f32 1.442695, %v4067_v22 }
 0x752   : > { %4733 = vperm.xlu2 %7492, %v11603_v44  }
 0x753   : > { %4673 = vperm.xlu0 %7494, %v11605_v63   ;;  %v4239_v63 = vmul.f32 1.442695, %v4044_v17  ;;  %v11626_v6 = vpop.eup %7902  ;;  %v4047_v17 = vsub.f32 %v14890_v48, %v11453_v30 }
 0x754   : > { %4667 = vperm.xlu1 %7493, %v11608_v55   ;;  %14887 = vst [vmem:[#allocation110_spill] sm:$0xff] %v11626_v6  ;;  %v11629_v0 = vpop.eup %7904  ;;  %v14892_v55 = vld [vmem:[#allocation40_spill] sm:$0xff] }
 0x755   : > { %v11618_v42 = vpop.permute.xlu0 %4547  ;;  %14888 = vst [vmem:[#allocation19_spill] sm:$0xff] %v11629_v0  ;;  %7908 = vpow2.f32 %v4239_v63  ;;  %v11645_v50 = vpop.eup %7906 }
 0x756   : > { %v11622_v44 = vpop.permute.xlu1 %4541  ;;  %7910 = vpow2.f32 %v4235_v40  ;;  %14893 = vst [vmem:[#allocation106_spill] sm:$0xff] %v11645_v50  ;;  %v14896_v40 = vld [vmem:[#allocation62_spill] sm:$0xff] }
 0x757   : > { %7912 = vpow2.f32 %v4285_v54  ;;  %v4070_v48 = vsub.f32 %v14896_v40, %v11559_v1  ;;  %v11667_v54 = vpop.permute.xlu2 %4625 }
 0x758   : > { %14899 = vst [vmem:[#allocation108_spill] sm:$0xff] %v11667_v54 }
 0x759   : > { %v4291_v40 = vmul.f32 1.442695, %v4070_v48  ;;  %v14904_v48 = vld [vmem:[#allocation50_spill] sm:$0xff] }
 0x75a   : > { %4742 = vperm.xlu2 %7492, %v11624_v52   ;;  %v4045_v52 = vsub.f32 %v14892_v55, %v11453_v30  ;;  %v14897_v55 = vld [vmem:[#allocation47_spill] sm:$0xff] }
 0x75b   : > { %4682 = vperm.xlu0 %7494, %v11626_v6   ;;  %v4245_v6 = vmul.f32 1.442695, %v4047_v17  ;;  %v4050_v22 = vsub.f32 %v14897_v55, %v11453_v30  ;;  %v14903_v55 = vld [vmem:[#allocation65_spill] sm:$0xff] }
 0x75c   : > { %4676 = vperm.xlu1 %7493, %v11629_v0   ;;  %v4241_v21 = vmul.f32 1.442695, %v4045_v52  ;;  %v11647_v0 = vpop.eup %7908  ;;  %v14898_v52 = vld [vmem:[#allocation43_spill] sm:$0xff] }
 0x75d   : > { %v11639_v27 = vpop.permute.xlu0 %4556  ;;  %14894 = vst [vmem:[#allocation20_spill] sm:$0xff] %v11647_v0  ;;  %v11650_v63 = vpop.eup %7910  ;;  %7914 = vpow2.f32 %v4245_v6  ;;  %v4251_v59 = vmul.f32 1.442695, %v4050_v22  ;;  %v4053_v22 = vsub.f32 %v14904_v48, %v11453_v30 }
 0x75e   : > { %v11643_v62 = vpop.permute.xlu1 %4550  ;;  %14895 = vst [vmem:[#allocation109_spill] sm:$0xff] %v11650_v63  ;;  %7916 = vpow2.f32 %v4241_v21 }
 0x75f   : > { %7918 = vpow2.f32 %v4291_v40  ;;  %v11690_v4 = vpop.permute.xlu2 %4634 }
 0x760   : > { %7920 = vpow2.f32 %v4251_v59  ;;  %14908 = vst [vmem:[#allocation114_spill] sm:$0xff] %v11690_v4 }
 0x762   : > { %4751 = vperm.xlu2 %7492, %v11645_v50   ;;  %v4048_v50 = vsub.f32 %v14898_v52, %v11453_v30 }
 0x763   : > { %4691 = vperm.xlu0 %7494, %v11647_v0   ;;  %v11665_v0 = vperm.slane %v11193_v38, 6 }
 0x764   : > { %4685 = vperm.xlu1 %7493, %v11650_v63   ;;  %v11669_v63 = vpop.eup %7912  ;;  %v4247_v6 = vmul.f32 1.442695, %v4048_v50  ;;  %v14906_v50 = vld [vmem:[#allocation46_spill] sm:$0xff] }
 0x765   : > { %v11658_v17 = vpop.permute.xlu0 %4565  ;;  %14900 = vst [vmem:[#allocation22_spill] sm:$0xff] %v11669_v63  ;;  %v11671_v11 = vpop.eup %7914  ;;  %v4073_v52 = vsub.f32 %v14903_v55, %v11665_v0 }
 0x766   : > { %v11662_v7 = vpop.permute.xlu1 %4559  ;;  %14901 = vst [vmem:[#allocation112_spill] sm:$0xff] %v11671_v11  ;;  %v11674_v21 = vpop.eup %7916  ;;  %7922 = vpow2.f32 %v4247_v6  ;;  %v14911_v6 = vld [vmem:[#allocation68_spill] sm:$0xff] }
 0x767   : > { %14902 = vst [vmem:[#allocation111_spill] sm:$0xff] %v11674_v21  ;;  %v4297_v53 = vmul.f32 1.442695, %v4073_v52  ;;  %v11688_v40 = vpop.eup %7918  ;;  %v4076_v48 = vsub.f32 %v14911_v6, %v11665_v0  ;;  %v14912_v52 = vld [vmem:[#allocation142_spill] sm:$0xff] }
 0x768   : > { %14907 = vst [vmem:[#allocation115_spill] sm:$0xff] %v11688_v40 }
 0x769   : > { %7924 = vpow2.f32 %v4297_v53  ;;  %v4303_v31 = vmul.f32 1.442695, %v4076_v48  ;;  %v14921_v48 = vld [vmem:[#allocation146_spill] sm:$0xff] }
 0x76a   : > { %4760 = vperm.xlu2 %7492, %v11669_v63   ;;  %v4051_v63 = vsub.f32 %v14906_v50, %v11453_v30 }
 0x76b   : > { %4700 = vperm.xlu0 %7494, %v11671_v11   ;;  %v4257_v11 = vmul.f32 1.442695, %v4053_v22  ;;  %v4056_v22 = vsub.f32 %v14912_v52, %v11453_v30  ;;  %v11716_v52 = vpop.permute.xlu2 %4643 }
 0x76c   : > { %4694 = vperm.xlu1 %7493, %v11674_v21   ;;  %v4253_v55 = vmul.f32 1.442695, %v4051_v63  ;;  %v11692_v21 = vpop.eup %7920  ;;  %v14914_v63 = vld [vmem:[#allocation49_spill] sm:$0xff]  ;;  %14919 = vst [vmem:[#allocation124_spill] sm:$0xff] %v11716_v52 }
 0x76d   : > { %v11682_v54 = vpop.permute.xlu0 %4574  ;;  %14909 = vst [vmem:[#allocation28_spill] sm:$0xff] %v11692_v21  ;;  %v11695_v59 = vpop.eup %7922  ;;  %7926 = vpow2.f32 %v4257_v11 }
 0x76e   : > { %14905 = vst [vmem:[#allocation25_spill] sm:$0xff] %v11682_v54  ;;  %v11686_v45 = vpop.permute.xlu1 %4568  ;;  %7928 = vpow2.f32 %v4253_v55 }
 0x76f   : > { %14910 = vst [vmem:[#allocation118_spill] sm:$0xff] %v11695_v59  ;;  %v11709_v53 = vpop.eup %7924  ;;  %7930 = vpow2.f32 %v4303_v31 }
 0x770   : > { %14916 = vst [vmem:[#allocation121_spill] sm:$0xff] %v11709_v53 }
 0x772   : > { %4769 = vperm.xlu2 %7492, %v11688_v40   ;;  %v4054_v40 = vsub.f32 %v14914_v63, %v11453_v30  ;;  %v14920_v30 = vld [vmem:[#allocation71_spill] sm:$0xff]  ;;  %v14922_v63 = vld [vmem:[#allocation145_spill] sm:$0xff] }
 0x773   : > { %4709 = vperm.xlu0 %7494, %v11692_v21   ;;  %v4263_v21 = vmul.f32 1.442695, %v4056_v22  ;;  %v11711_v6 = vpop.eup %7926  ;;  %v4079_v55 = vsub.f32 %v14920_v30, %v11665_v0 }
 0x774   : > { %4703 = vperm.xlu1 %7493, %v11695_v59   ;;  %v4259_v54 = vmul.f32 1.442695, %v4054_v40  ;;  %14917 = vst [vmem:[#allocation120_spill] sm:$0xff] %v11711_v6  ;;  %v11714_v11 = vpop.eup %7928  ;;  %v4059_v40 = vsub.f32 %v14921_v48, %v11559_v1  ;;  %v4057_v59 = vsub.f32 %v14922_v63, %v11559_v1  ;;  %v11743_v63 = vpop.permute.xlu2 %4652 }
 0x775   : > { %v11703_v50 = vpop.permute.xlu0 %4583  ;;  %14918 = vst [vmem:[#allocation34_spill] sm:$0xff] %v11714_v11  ;;  %7932 = vpow2.f32 %v4263_v21  ;;  %v11730_v31 = vpop.eup %7930 }
 0x776   : > { %14913 = vst [vmem:[#allocation117_spill] sm:$0xff] %v11703_v50  ;;  %v11707_v4 = vpop.permute.xlu1 %4577  ;;  %7934 = vpow2.f32 %v4259_v54  ;;  %v4309_v50 = vmul.f32 1.442695, %v4079_v55  ;;  %v4265_v52 = vmul.f32 1.442695, %v4057_v59  ;;  %v14926_v54 = vld [vmem:[#allocation73_spill] sm:$0xff] }
 0x777   : > { %14915 = vst [vmem:[#allocation31_spill] sm:$0xff] %v11707_v4  ;;  %v4082_v48 = vsub.f32 %v14926_v54, %v11665_v0  ;;  %v14927_v55 = vld [vmem:[#allocation150_spill] sm:$0xff] }
 0x778   : > { %14923 = vst [vmem:[#allocation123_spill] sm:$0xff] %v11730_v31  ;;  %7936 = vpow2.f32 %v4309_v50 }
 0x779   : > { %14928 = vst [vmem:[#allocation126_spill] sm:$0xff] %v11743_v63  ;;  %v4315_v50 = vmul.f32 1.442695, %v4082_v48 }
 0x77a   : > { %4778 = vperm.xlu2 %7492, %v11709_v53  }
 0x77b   : > { %4718 = vperm.xlu0 %7494, %v11711_v6   ;;  %v4269_v6 = vmul.f32 1.442695, %v4059_v40  ;;  %v11732_v30 = vpop.eup %7932  ;;  %v4062_v40 = vsub.f32 %v14927_v55, %v11559_v1 }
 0x77c   : > { %4712 = vperm.xlu1 %7493, %v11714_v11   ;;  %14924 = vst [vmem:[#allocation36_spill] sm:$0xff] %v11732_v30  ;;  %v11735_v21 = vpop.eup %7934  ;;  %v14929_v11 = vld [vmem:[#allocation149_spill] sm:$0xff]  ;;  %v11770_v4 = vpop.permute.xlu2 %4661 }
 0x77d   : > { %v11724_v22 = vpop.permute.xlu0 %4592  ;;  %14925 = vst [vmem:[#allocation127_spill] sm:$0xff] %v11735_v21  ;;  %7938 = vpow2.f32 %v4269_v6 }
 0x77e   : > { %v11728_v53 = vpop.permute.xlu1 %4586  ;;  %7940 = vpow2.f32 %v4265_v52  ;;  %v11751_v8 = vpop.eup %7936  ;;  %v14933_v52 = vld [vmem:[#allocation76_spill] sm:$0xff]  ;;  %14937 = vst [vmem:[#allocation133_spill] sm:$0xff] %v11770_v4 }
 0x77f   : > { %14930 = vst [vmem:[#allocation39_spill] sm:$0xff] %v11751_v8  ;;  %7942 = vpow2.f32 %v4315_v50  ;;  %v4085_v55 = vsub.f32 %v14933_v52, %v11665_v0 }
 0x781   : > { %v4321_v50 = vmul.f32 1.442695, %v4085_v55  ;;  %v14942_v55 = vld [vmem:[#allocation58_spill] sm:$0xff] }
 0x782   : > { %4787 = vperm.xlu2 %7492, %v11730_v31   ;;  %v4060_v31 = vsub.f32 %v14929_v11, %v11559_v1  ;;  %v14934_v11 = vld [vmem:[#allocation55_spill] sm:$0xff] }
 0x783   : > { %4727 = vperm.xlu0 %7494, %v11732_v30   ;;  %v4275_v30 = vmul.f32 1.442695, %v4062_v40  ;;  %v4065_v48 = vsub.f32 %v14934_v11, %v11559_v1 }
 0x784   : > { %4721 = vperm.xlu1 %7493, %v11735_v21   ;;  %v4271_v54 = vmul.f32 1.442695, %v4060_v31  ;;  %v11753_v21 = vpop.eup %7938  ;;  %v14936_v31 = vld [vmem:[#allocation154_spill] sm:$0xff] }
 0x785   : > { %v11745_v59 = vpop.permute.xlu0 %4601  ;;  %14931 = vst [vmem:[#allocation130_spill] sm:$0xff] %v11753_v21  ;;  %v11756_v6 = vpop.eup %7940  ;;  %7944 = vpow2.f32 %v4275_v30 }
 0x786   : > { %v11749_v2 = vpop.permute.xlu1 %4595  ;;  %14932 = vst [vmem:[#allocation129_spill] sm:$0xff] %v11756_v6  ;;  %7946 = vpow2.f32 %v4271_v54  ;;  %v11772_v56 = vpop.eup %7942  ;;  %v14941_v54 = vld [vmem:[#allocation79_spill] sm:$0xff] }
 0x787   : > { %14938 = vst [vmem:[#allocation132_spill] sm:$0xff] %v11772_v56  ;;  %7948 = vpow2.f32 %v4321_v50  ;;  %v4088_v11 = vsub.f32 %v14941_v54, %v11665_v0 }
 0x789   : > { %v4327_v50 = vmul.f32 1.442695, %v4088_v11  ;;  %v14951_v11 = vld [vmem:[#allocation61_spill] sm:$0xff] }
 0x78a   : > { %4796 = vperm.xlu2 %7492, %v11751_v8   ;;  %v4063_v8 = vsub.f32 %v14936_v31, %v11559_v1 }
 0x78b   : > { %4736 = vperm.xlu0 %7494, %v11753_v21   ;;  %v4281_v21 = vmul.f32 1.442695, %v4065_v48  ;;  %v4068_v48 = vsub.f32 %v14942_v55, %v11559_v1  ;;  %v14950_v55 = vld [vmem:[#allocation82_spill] sm:$0xff] }
 0x78c   : > { %4730 = vperm.xlu1 %7493, %v11756_v6   ;;  %v4277_v52 = vmul.f32 1.442695, %v4063_v8  ;;  %v11774_v6 = vpop.eup %7944  ;;  %v14944_v8 = vld [vmem:[#allocation54_spill] sm:$0xff] }
 0x78d   : > { %v11764_v40 = vpop.permute.xlu0 %4610  ;;  %14939 = vst [vmem:[#allocation45_spill] sm:$0xff] %v11774_v6  ;;  %v11777_v30 = vpop.eup %7946  ;;  %7950 = vpow2.f32 %v4281_v21 }
 0x78e   : > { %14935 = vst [vmem:[#allocation42_spill] sm:$0xff] %v11764_v40  ;;  %v11768_v63 = vpop.permute.xlu1 %4604  ;;  %7952 = vpow2.f32 %v4277_v52  ;;  %v4287_v40 = vmul.f32 1.442695, %v4068_v48  ;;  %v11794_v54 = vpop.eup %7948  ;;  %v4071_v48 = vsub.f32 %v14951_v11, %v11559_v1 }
 0x78f   : > { %14940 = vst [vmem:[#allocation24_spill] sm:$0xff] %v11777_v30  ;;  %7954 = vpow2.f32 %v4327_v50 }
 0x790   : > { %14946 = vst [vmem:[#allocation27_spill] sm:$0xff] %v11794_v54  ;;  %7956 = vpow2.f32 %v4287_v40 }
 0x792   : > { %4805 = vperm.xlu2 %7492, %v11772_v56   ;;  %v4066_v56 = vsub.f32 %v14944_v8, %v11559_v1 }
 0x793   : > { %4745 = vperm.xlu0 %7494, %v11774_v6   ;;  %v11792_v6 = vperm.slane %v11193_v38, 7  ;;  %v11798_v57 = vpop.eup %7950 }
 0x794   : > { %4739 = vperm.xlu1 %7493, %v11777_v30   ;;  %v11796_v30 = vpop.permute.xlu2 %4670  ;;  %v4283_v21 = vmul.f32 1.442695, %v4066_v56  ;;  %14948 = vst [vmem:[#allocation51_spill] sm:$0xff] %v11798_v57  ;;  %v11801_v52 = vpop.eup %7952  ;;  %v14953_v56 = vld [vmem:[#allocation57_spill] sm:$0xff] }
 0x795   : > { %v11785_v31 = vpop.permute.xlu0 %4619  ;;  %14947 = vst [vmem:[#allocation23_spill] sm:$0xff] %v11796_v30  ;;  %v4091_v38 = vsub.f32 %v14950_v55, %v11792_v6  ;;  %v11815_v50 = vpop.eup %7954 }
 0x796   : > { %14943 = vst [vmem:[#allocation21_spill] sm:$0xff] %v11785_v31  ;;  %v11789_v4 = vpop.permute.xlu1 %4613  ;;  %7958 = vpow2.f32 %v4283_v21  ;;  %v11817_v55 = vpop.eup %7956  ;;  %v14959_v21 = vld [vmem:[#allocation84_spill] sm:$0xff] }
 0x797   : > { %14945 = vst [vmem:[#allocation48_spill] sm:$0xff] %v11789_v4  ;;  %v4333_v30 = vmul.f32 1.442695, %v4091_v38  ;;  %v14960_v38 = vld [vmem:[#allocation64_spill] sm:$0xff] }
 0x798   : > { %14949 = vst [vmem:[#allocation30_spill] sm:$0xff] %v11801_v52 }
 0x799   : > { %14955 = vst [vmem:[#allocation33_spill] sm:$0xff] %v11815_v50  ;;  %7960 = vpow2.f32 %v4333_v30 }
 0x79a   : > { %4814 = vperm.xlu2 %7492, %v11794_v54   ;;  %v4069_v54 = vsub.f32 %v14953_v56, %v11559_v1  ;;  %14956 = vst [vmem:[#allocation29_spill] sm:$0xff] %v11817_v55  ;;  %v4094_v56 = vsub.f32 %v14959_v21, %v11792_v6 }
 0x79b   : > { %4754 = vperm.xlu0 %7494, %v11798_v57   ;;  %v4293_v57 = vmul.f32 1.442695, %v4071_v48 }
 0x79c   : > { %4748 = vperm.xlu1 %7493, %v11801_v52   ;;  %v4289_v4 = vmul.f32 1.442695, %v4069_v54  ;;  %v11820_v40 = vpop.eup %7958  ;;  %v11822_v11 = vpop.permute.xlu2 %4679  ;;  %v4074_v54 = vsub.f32 %v14960_v38, %v11665_v0 }
 0x79d   : > { %v11809_v8 = vpop.permute.xlu0 %4628  ;;  %14957 = vst [vmem:[#allocation52_spill] sm:$0xff] %v11820_v40  ;;  %7962 = vpow2.f32 %v4293_v57 }
 0x79e   : > { %14952 = vst [vmem:[#allocation26_spill] sm:$0xff] %v11809_v8  ;;  %v11813_v31 = vpop.permute.xlu1 %4622  ;;  %7964 = vpow2.f32 %v4289_v4  ;;  %v14966_v4 = vld [vmem:[#allocation87_spill] sm:$0xff] }
 0x79f   : > { %14954 = vst [vmem:[#allocation151_spill] sm:$0xff] %v11813_v31  ;;  %v4339_v31 = vmul.f32 1.442695, %v4094_v56  ;;  %v11836_v30 = vpop.eup %7960  ;;  %v4097_v38 = vsub.f32 %v14966_v4, %v11792_v6 }
 0x7a0   : > { %14958 = vst [vmem:[#allocation136_spill] sm:$0xff] %v11822_v11 }
 0x7a1   : > { %14963 = vst [vmem:[#allocation53_spill] sm:$0xff] %v11836_v30  ;;  %7966 = vpow2.f32 %v4339_v31  ;;  %v4345_v31 = vmul.f32 1.442695, %v4097_v38  ;;  %v14976_v38 = vld [vmem:[#allocation70_spill] sm:$0xff] }
 0x7a2   : > { %4823 = vperm.xlu2 %7492, %v11815_v50   ;;  %v14961_v50 = vld [vmem:[#allocation60_spill] sm:$0xff] }
 0x7a3   : > { %4763 = vperm.xlu0 %7494, %v11817_v55   ;;  %v4072_v52 = vsub.f32 %v14961_v50, %v11559_v1  ;;  %v4299_v55 = vmul.f32 1.442695, %v4074_v54  ;;  %v11838_v21 = vpop.eup %7962  ;;  %v14967_v1 = vld [vmem:[#allocation67_spill] sm:$0xff] }
 0x7a4   : > { %4757 = vperm.xlu1 %7493, %v11820_v40   ;;  %14964 = vst [vmem:[#allocation38_spill] sm:$0xff] %v11838_v21  ;;  %v11841_v57 = vpop.eup %7964  ;;  %v4077_v50 = vsub.f32 %v14967_v1, %v11665_v0  ;;  %v11849_v56 = vpop.permute.xlu2 %4688  ;;  %v14970_v54 = vld [vmem:[#allocation63_spill] sm:$0xff] }
 0x7a5   : > { %v11830_v48 = vpop.permute.xlu0 %4637  ;;  %v4295_v11 = vmul.f32 1.442695, %v4072_v52  ;;  %14965 = vst [vmem:[#allocation35_spill] sm:$0xff] %v11841_v57  ;;  %7968 = vpow2.f32 %v4299_v55  ;;  %v4075_v40 = vsub.f32 %v14970_v54, %v11665_v0 }
 0x7a6   : > { %v11834_v8 = vpop.permute.xlu1 %4631  ;;  %14968 = vst [vmem:[#allocation56_spill] sm:$0xff] %v11849_v56 }
 0x7a7   : > { %14962 = vst [vmem:[#allocation32_spill] sm:$0xff] %v11834_v8  ;;  %7970 = vpow2.f32 %v4295_v11  ;;  %v11857_v8 = vpop.eup %7966  ;;  %v4301_v4 = vmul.f32 1.442695, %v4075_v40  ;;  %v14975_v11 = vld [vmem:[#allocation88_spill] sm:$0xff]  ;;  %v14978_v40 = vld [vmem:[#allocation66_spill] sm:$0xff] }
 0x7a8   : > { %14972 = vst [vmem:[#allocation59_spill] sm:$0xff] %v11857_v8  ;;  %7972 = vpow2.f32 %v4345_v31  ;;  %v4100_v1 = vsub.f32 %v14975_v11, %v11792_v6 }
 0x7aa   : > { %4832 = vperm.xlu2 %7492, %v11836_v30   ;;  %v4351_v31 = vmul.f32 1.442695, %v4100_v1  ;;  %v14985_v1 = vld [vmem:[#allocation74_spill] sm:$0xff] }
 0x7ab   : > { %4772 = vperm.xlu0 %7494, %v11838_v21   ;;  %v4305_v21 = vmul.f32 1.442695, %v4077_v50  ;;  %v4080_v50 = vsub.f32 %v14976_v38, %v11665_v0 }
 0x7ac   : > { %4766 = vperm.xlu1 %7493, %v11841_v57   ;;  %v11859_v57 = vpop.eup %7968  ;;  %v11876_v56 = vpop.permute.xlu2 %4697 }
 0x7ad   : > { %v11851_v52 = vpop.permute.xlu0 %4646  ;;  %14973 = vst [vmem:[#allocation44_spill] sm:$0xff] %v11859_v57  ;;  %v11862_v55 = vpop.eup %7970  ;;  %7974 = vpow2.f32 %v4305_v21 }
 0x7ae   : > { %14969 = vst [vmem:[#allocation41_spill] sm:$0xff] %v11851_v52  ;;  %v11855_v30 = vpop.permute.xlu1 %4640  ;;  %7976 = vpow2.f32 %v4301_v4  ;;  %v14984_v4 = vld [vmem:[#allocation91_spill] sm:$0xff] }
 0x7af   : > { %14971 = vst [vmem:[#allocation37_spill] sm:$0xff] %v11855_v30  ;;  %v11878_v30 = vpop.eup %7972  ;;  %7978 = vpow2.f32 %v4351_v31  ;;  %v4103_v38 = vsub.f32 %v14984_v4, %v11792_v6 }
 0x7b0   : > { %14974 = vst [vmem:[#allocation40_spill] sm:$0xff] %v11862_v55 }
 0x7b1   : > { %14980 = vst [vmem:[#allocation43_spill] sm:$0xff] %v11876_v56 }
 0x7b2   : > { %4841 = vperm.xlu2 %7492, %v11857_v8   ;;  %v4078_v8 = vsub.f32 %v14978_v40, %v11665_v0  ;;  %14981 = vst [vmem:[#allocation65_spill] sm:$0xff] %v11878_v30 }
 0x7b3   : > { %4781 = vperm.xlu0 %7494, %v11859_v57   ;;  %v4311_v57 = vmul.f32 1.442695, %v4080_v50  ;;  %v4083_v50 = vsub.f32 %v14985_v1, %v11665_v0 }
 0x7b4   : > { %4775 = vperm.xlu1 %7493, %v11862_v55   ;;  %v4307_v11 = vmul.f32 1.442695, %v4078_v8  ;;  %v11880_v55 = vpop.eup %7974  ;;  %v14987_v8 = vld [vmem:[#allocation69_spill] sm:$0xff]  ;;  %v11899_v56 = vpop.permute.xlu2 %4706 }
 0x7b5   : > { %v11870_v54 = vpop.permute.xlu0 %4655  ;;  %14982 = vst [vmem:[#allocation50_spill] sm:$0xff] %v11880_v55  ;;  %v11883_v21 = vpop.eup %7976  ;;  %7980 = vpow2.f32 %v4311_v57 }
 0x7b6   : > { %14977 = vst [vmem:[#allocation62_spill] sm:$0xff] %v11870_v54  ;;  %v11874_v52 = vpop.permute.xlu1 %4649  ;;  %7982 = vpow2.f32 %v4307_v11  ;;  %v11897_v31 = vpop.eup %7978  ;;  %v14993_v11 = vld [vmem:[#allocation77_spill] sm:$0xff] }
 0x7b7   : > { %14979 = vst [vmem:[#allocation47_spill] sm:$0xff] %v11874_v52  ;;  %v4357_v52 = vmul.f32 1.442695, %v4103_v38  ;;  %v4086_v38 = vsub.f32 %v14993_v11, %v11665_v0 }
 0x7b8   : > { %14983 = vst [vmem:[#allocation46_spill] sm:$0xff] %v11883_v21 }
 0x7b9   : > { %14989 = vst [vmem:[#allocation49_spill] sm:$0xff] %v11897_v31  ;;  %7984 = vpow2.f32 %v4357_v52 }
 0x7ba   : > { %4850 = vperm.xlu2 %7492, %v11878_v30   ;;  %v4081_v30 = vsub.f32 %v14987_v8, %v11665_v0  ;;  %14990 = vst [vmem:[#allocation71_spill] sm:$0xff] %v11899_v56 }
 0x7bb   : > { %4790 = vperm.xlu0 %7494, %v11880_v55   ;;  %v4317_v55 = vmul.f32 1.442695, %v4083_v50 }
 0x7bc   : > { %4784 = vperm.xlu1 %7493, %v11883_v21   ;;  %v4313_v4 = vmul.f32 1.442695, %v4081_v30  ;;  %v11901_v21 = vpop.eup %7980  ;;  %v14995_v30 = vld [vmem:[#allocation72_spill] sm:$0xff] }
 0x7bd   : > { %v11891_v40 = vpop.permute.xlu0 %4664  ;;  %14991 = vst [vmem:[#allocation146_spill] sm:$0xff] %v11901_v21  ;;  %v11904_v57 = vpop.eup %7982  ;;  %7986 = vpow2.f32 %v4317_v55  ;;  %v4084_v50 = vsub.f32 %v14995_v30, %v11665_v0  ;;  %v15002_v30 = vld [vmem:[#allocation75_spill] sm:$0xff] }
 0x7be   : > { %14986 = vst [vmem:[#allocation68_spill] sm:$0xff] %v11891_v40  ;;  %v11895_v54 = vpop.permute.xlu1 %4658  ;;  %7988 = vpow2.f32 %v4313_v4  ;;  %v11923_v55 = vpop.permute.xlu2 %4715  ;;  %v15001_v4 = vld [vmem:[#allocation80_spill] sm:$0xff] }
 0x7bf   : > { %14988 = vst [vmem:[#allocation142_spill] sm:$0xff] %v11895_v54  ;;  %v11916_v40 = vpop.eup %7984  ;;  %v4319_v54 = vmul.f32 1.442695, %v4084_v50  ;;  %v4089_v11 = vsub.f32 %v15001_v4, %v11792_v6  ;;  %v4087_v50 = vsub.f32 %v15002_v30, %v11665_v0  ;;  %v15009_v0 = vld [vmem:[#allocation78_spill] sm:$0xff] }
 0x7c0   : > { %14992 = vst [vmem:[#allocation145_spill] sm:$0xff] %v11904_v57 }
 0x7c1   : > { %14997 = vst [vmem:[#allocation149_spill] sm:$0xff] %v11916_v40 }
 0x7c2   : > { %4859 = vperm.xlu2 %7492, %v11897_v31   ;;  %v4323_v31 = vmul.f32 1.442695, %v4086_v38  ;;  %15000 = vst [vmem:[#allocation154_spill] sm:$0xff] %v11923_v55 }
 0x7c3   : > { %4799 = vperm.xlu0 %7494, %v11901_v21   ;;  %v11918_v21 = vpop.eup %7986 }
 0x7c4   : > { %4793 = vperm.xlu1 %7493, %v11904_v57   ;;  %14998 = vst [vmem:[#allocation76_spill] sm:$0xff] %v11918_v21  ;;  %v11921_v52 = vpop.eup %7988  ;;  %7990 = vpow2.f32 %v4323_v31  ;;  %v15006_v31 = vld [vmem:[#allocation178_spill] sm:$0xff] }
 0x7c5   : > { %v11910_v1 = vpop.permute.xlu0 %4673  ;;  %14999 = vst [vmem:[#allocation55_spill] sm:$0xff] %v11921_v52  ;;  %7992 = vpow2.f32 %v4319_v54  ;;  %v4092_v4 = vsub.f32 %v15006_v31, %v11792_v6 }
 0x7c6   : > { %14994 = vst [vmem:[#allocation73_spill] sm:$0xff] %v11910_v1  ;;  %v11914_v8 = vpop.permute.xlu1 %4667  ;;  %v4325_v1 = vmul.f32 1.442695, %v4087_v50  ;;  %v11943_v54 = vpop.permute.xlu2 %4724 }
 0x7c7   : > { %14996 = vst [vmem:[#allocation150_spill] sm:$0xff] %v11914_v8  ;;  %v4335_v50 = vmul.f32 1.442695, %v4092_v4 }
 0x7c8   : > { %15007 = vst [vmem:[#allocation82_spill] sm:$0xff] %v11943_v54 }
 0x7ca   : > { %4868 = vperm.xlu2 %7492, %v11916_v40   ;;  %v4329_v40 = vmul.f32 1.442695, %v4089_v11  ;;  %v11935_v8 = vpop.eup %7990  ;;  %v4090_v11 = vsub.f32 %v15009_v0, %v11792_v6  ;;  %v15014_v0 = vld [vmem:[#allocation81_spill] sm:$0xff] }
 0x7cb   : > { %4808 = vperm.xlu0 %7494, %v11918_v21   ;;  %15004 = vst [vmem:[#allocation58_spill] sm:$0xff] %v11935_v8  ;;  %v11937_v55 = vpop.eup %7992 }
 0x7cc   : > { %4802 = vperm.xlu1 %7493, %v11921_v52   ;;  %15005 = vst [vmem:[#allocation54_spill] sm:$0xff] %v11937_v55  ;;  %7994 = vpow2.f32 %v4329_v40  ;;  %v4331_v52 = vmul.f32 1.442695, %v4090_v11  ;;  %v15012_v40 = vld [vmem:[#allocation181_spill] sm:$0xff] }
 0x7cd   : > { %v11929_v38 = vpop.permute.xlu0 %4682  ;;  %7996 = vpow2.f32 %v4325_v1  ;;  %v4095_v31 = vsub.f32 %v15012_v40, %v11792_v6 }
 0x7ce   : > { %v11933_v57 = vpop.permute.xlu1 %4676  ;;  %7998 = vpow2.f32 %v4335_v50  ;;  %v11965_v11 = vpop.permute.xlu2 %4733 }
 0x7cf   : > { %15003 = vst [vmem:[#allocation79_spill] sm:$0xff] %v11933_v57  ;;  %8000 = vpow2.f32 %v4331_v52  ;;  %v4341_v54 = vmul.f32 1.442695, %v4095_v31  ;;  %v15019_v52 = vld [vmem:[#allocation183_spill] sm:$0xff] }
 0x7d0   : > { %15016 = vst [vmem:[#allocation87_spill] sm:$0xff] %v11965_v11  ;;  %v4098_v50 = vsub.f32 %v15019_v52, %v11792_v6 }
 0x7d1   : > { %8002 = vpow2.f32 %v4341_v54 }
 0x7d2   : > { %v11951_v57 = vpop.eup %7994 }
 0x7d3   : > { %4817 = vperm.xlu0 %7494, %v11935_v8   ;;  %15010 = vst [vmem:[#allocation57_spill] sm:$0xff] %v11951_v57  ;;  %v11953_v8 = vpop.eup %7996 }
 0x7d4   : > { %4811 = vperm.xlu1 %7493, %v11937_v55   ;;  %15011 = vst [vmem:[#allocation84_spill] sm:$0xff] %v11953_v8  ;;  %v4093_v55 = vsub.f32 %v15014_v0, %v11792_v6  ;;  %v11967_v56 = vpop.eup %7998  ;;  %v15021_v0 = vld [vmem:[#allocation83_spill] sm:$0xff] }
 0x7d5   : > { %v11945_v21 = vpop.permute.xlu0 %4691  ;;  %15017 = vst [vmem:[#allocation67_spill] sm:$0xff] %v11967_v56 }
 0x7d6   : > { %15008 = vst [vmem:[#allocation61_spill] sm:$0xff] %v11945_v21  ;;  %v11949_v30 = vpop.permute.xlu1 %4685  ;;  %v4337_v21 = vmul.f32 1.442695, %v4093_v55  ;;  %v4347_v55 = vmul.f32 1.442695, %v4098_v50  ;;  %v15028_v50 = vld [vmem:[#allocation85_spill] sm:$0xff] }
 0x7d8   : > { %8004 = vpow2.f32 %v4337_v21  ;;  %v15026_v21 = vld [vmem:[#allocation185_spill] sm:$0xff] }
 0x7d9   : > { %8006 = vpow2.f32 %v4347_v55  ;;  %v4101_v54 = vsub.f32 %v15026_v21, %v11792_v6 }
 0x7db   : > { %4826 = vperm.xlu0 %7494, %v11951_v57   ;;  %v11969_v57 = vpop.eup %8000 }
 0x7dc   : > { %4820 = vperm.xlu1 %7493, %v11953_v8   ;;  %15018 = vst [vmem:[#allocation63_spill] sm:$0xff] %v11969_v57  ;;  %v4096_v8 = vsub.f32 %v15021_v0, %v11792_v6  ;;  %v11983_v11 = vpop.eup %8002  ;;  %v4099_v0 = vsub.f32 %v15028_v50, %v11792_v6 }
 0x7dd   : > { %v11959_v1 = vpop.permute.xlu0 %4700  ;;  %15024 = vst [vmem:[#allocation91_spill] sm:$0xff] %v11983_v11 }
 0x7de   : > { %15013 = vst [vmem:[#allocation64_spill] sm:$0xff] %v11959_v1  ;;  %v11963_v4 = vpop.permute.xlu1 %4694  ;;  %v11981_v1 = vpop.permute.xlu2 %4742 }
 0x7df   : > { %15015 = vst [vmem:[#allocation60_spill] sm:$0xff] %v11963_v4  ;;  %v4343_v4 = vmul.f32 1.442695, %v4096_v8  ;;  %v4353_v8 = vmul.f32 1.442695, %v4101_v54  ;;  %v15035_v54 = vld [vmem:[#allocation86_spill] sm:$0xff] }
 0x7e0   : > { %15023 = vst [vmem:[#allocation66_spill] sm:$0xff] %v11981_v1  ;;  %v4102_v50 = vsub.f32 %v15035_v54, %v11792_v6 }
 0x7e1   : > { %8008 = vpow2.f32 %v4343_v4  ;;  %v15033_v4 = vld [vmem:[#allocation187_spill] sm:$0xff] }
 0x7e2   : > { %8010 = vpow2.f32 %v4353_v8  ;;  %v4104_v55 = vsub.f32 %v15033_v4, %v11792_v6 }
 0x7e3   : > { %4835 = vperm.xlu0 %7494, %v11967_v56   ;;  %v11985_v56 = vpop.eup %8004 }
 0x7e4   : > { %4829 = vperm.xlu1 %7493, %v11969_v57   ;;  %15025 = vst [vmem:[#allocation74_spill] sm:$0xff] %v11985_v56 }
 0x7e5   : > { %v11975_v40 = vpop.permute.xlu0 %4709 }
 0x7e6   : > { %15020 = vst [vmem:[#allocation88_spill] sm:$0xff] %v11975_v40  ;;  %v11979_v31 = vpop.permute.xlu1 %4703  ;;  %v4349_v40 = vmul.f32 1.442695, %v4099_v0 }
 0x7e7   : > { %15022 = vst [vmem:[#allocation70_spill] sm:$0xff] %v11979_v31  ;;  %v11997_v31 = vpop.eup %8006 }
 0x7e8   : > { %15030 = vst [vmem:[#allocation72_spill] sm:$0xff] %v11997_v31  ;;  %v11999_v1 = vpop.eup %8008  ;;  %8012 = vpow2.f32 %v4349_v40 }
 0x7e9   : > { %15031 = vst [vmem:[#allocation80_spill] sm:$0xff] %v11999_v1 }
 0x7eb   : > { %4844 = vperm.xlu0 %7494, %v11983_v11   ;;  %v12001_v11 = vpop.permute.xlu2 %4751 }
 0x7ec   : > { %4838 = vperm.xlu1 %7493, %v11985_v56   ;;  %15032 = vst [vmem:[#allocation75_spill] sm:$0xff] %v12001_v11  ;;  %v4359_v56 = vmul.f32 1.442695, %v4104_v55 }
 0x7ed   : > { %v11991_v52 = vpop.permute.xlu0 %4718 }
 0x7ee   : > { %15027 = vst [vmem:[#allocation69_spill] sm:$0xff] %v11991_v52  ;;  %v11995_v57 = vpop.permute.xlu1 %4712  ;;  %v4355_v52 = vmul.f32 1.442695, %v4102_v50  ;;  %8014 = vpow2.f32 %v4359_v56 }
 0x7ef   : > { %15029 = vst [vmem:[#allocation77_spill] sm:$0xff] %v11995_v57  ;;  %v12013_v57 = vpop.eup %8010 }
 0x7f0   : > { %15037 = vst [vmem:[#allocation181_spill] sm:$0xff] %v12013_v57  ;;  %v12015_v11 = vpop.eup %8012  ;;  %8016 = vpow2.f32 %v4355_v52 }
 0x7f1   : > { %15038 = vst [vmem:[#allocation81_spill] sm:$0xff] %v12015_v11 }
 0x7f3   : > { %4853 = vperm.xlu0 %7494, %v11997_v31   ;;  %v12019_v8 = vpop.permute.xlu2 %4760 }
 0x7f4   : > { %4847 = vperm.xlu1 %7493, %v11999_v1   ;;  %15039 = vst [vmem:[#allocation183_spill] sm:$0xff] %v12019_v8  ;;  %v12025_v6 = vpop.eup %8014 }
 0x7f5   : > { %v12007_v21 = vpop.permute.xlu0 %4727  ;;  %15040 = vst [vmem:[#allocation83_spill] sm:$0xff] %v12025_v6 }
 0x7f6   : > { %15034 = vst [vmem:[#allocation178_spill] sm:$0xff] %v12007_v21  ;;  %v12011_v0 = vpop.permute.xlu1 %4721  ;;  %v12027_v55 = vpop.eup %8016 }
 0x7f7   : > { %15036 = vst [vmem:[#allocation78_spill] sm:$0xff] %v12011_v0 }
 0x7f8   : > { %15041 = vst [vmem:[#allocation185_spill] sm:$0xff] %v12027_v55 }
 0x7fb   : > { %4862 = vperm.xlu0 %7494, %v12013_v57   ;;  %v12035_v56 = vpop.permute.xlu2 %4769 }
 0x7fc   : > { %4856 = vperm.xlu1 %7493, %v12015_v11   ;;  %15043 = vst [vmem:[#allocation187_spill] sm:$0xff] %v12035_v56 }
 0x7fd   : > { %v12021_v4 = vpop.permute.xlu0 %4736 }
 0x7fe   : > { %v12023_v40 = vpop.permute.xlu1 %4730 }
 0x803   : > { %4871 = vperm.xlu0 %7494, %v12025_v6   ;;  %v12041_v52 = vpop.permute.xlu2 %4778 }
 0x804   : > { %4865 = vperm.xlu1 %7493, %v12027_v55  }
 0x805   : > { %v12031_v54 = vpop.permute.xlu0 %4745 }
 0x806   : > { %15042 = vst [vmem:[#allocation85_spill] sm:$0xff] %v12031_v54  ;;  %v12033_v50 = vpop.permute.xlu1 %4739 }
 0x80b   : > { %v12047_v21 = vpop.permute.xlu2 %4787 }
 0x80d   : > { %v12037_v57 = vpop.permute.xlu0 %4754 }
 0x80e   : > { %15044 = vst [vmem:[#allocation86_spill] sm:$0xff] %v12037_v57  ;;  %v12039_v11 = vpop.permute.xlu1 %4748  ;;  %v4905_v57 = vperm.slane %v11622_v44, %v10735_v24 }
 0x80f   : > { %15045 = vst [vmem:[#allocation201_spill] sm:$0xff] %v12039_v11 }
 0x813   : > { %v12053_v0 = vpop.permute.xlu2 %4796 }
 0x814   : > { %15050 = vst [vmem:[#allocation206_spill] sm:$0xff] %v12053_v0 }
 0x815   : > { %v12043_v31 = vpop.permute.xlu0 %4763 }
 0x816   : > { %15046 = vst [vmem:[#allocation202_spill] sm:$0xff] %v12043_v31  ;;  %v12045_v1 = vpop.permute.xlu1 %4757  ;;  %v4874_v31 = vperm.slane %v11446_v12, %v10735_v24  ;;  %v4907_v12 = vperm.slane %v11429_v13, %v10738_v36  ;;  %v4882_v13 = vperm.slane %v11491_v60, %v10765_v51  ;;  %v4935_v60 = vperm.slane %v11728_v53, %v10728_v58 }
 0x817   : > { %15047 = vst [vmem:[#allocation203_spill] sm:$0xff] %v12045_v1  ;;  %v4873_v1 = vperm.slane %v11450_v10, %v10728_v58  ;;  %v4878_v10 = vperm.slane %v11470_v18, %v10753_v46  ;;  %v4888_v53 = vperm.slane %v11537_v41, %v10796_v5 }
 0x819   : > { %v4875_v11 = vsel %vm3668_vm2, %v4874_v31, %v4873_v1 }
 0x81d   : > { %v12049_v6 = vpop.permute.xlu0 %4772 }
 0x81e   : > { %15048 = vst [vmem:[#allocation204_spill] sm:$0xff] %v12049_v6  ;;  %v12051_v55 = vpop.permute.xlu1 %4766  ;;  %v4876_v6 = vperm.slane %v11474_v3, %v10738_v36  ;;  %v4880_v3 = vperm.slane %v11495_v28, %v10759_v20 }
 0x81f   : > { %15049 = vst [vmem:[#allocation205_spill] sm:$0xff] %v12051_v55  ;;  %v4904_v55 = vperm.slane %v11597_v32, %v10728_v58 }
 0x821   : > { %v4906_v44 = vsel %vm3668_vm2, %v4905_v57, %v4904_v55  ;;  %v4909_v57 = vperm.slane %v11618_v42, %v10753_v46  ;;  %v4913_v42 = vperm.slane %v11455_v61, %v10765_v51 }
 0x822   : > { %v4908_v32 = vsel %vm3672_vm3, %v4907_v12, %v4906_v44  ;;  %v4936_v44 = vperm.slane %v11561_v25, %v10735_v24  ;;  %v4886_v12 = vperm.slane %v11512_v35, %v10787_v9  ;;  %v4940_v35 = vperm.slane %v11749_v2, %v10753_v46 }
 0x823   : > { %v4892_v2 = vperm.slane %v11556_v33, %v10831_v14 }
 0x824   : > { %v4937_v25 = vsel %vm3668_vm2, %v4936_v44, %v4935_v60 }
 0x825   : > { %v12055_v8 = vpop.permute.xlu0 %4781 }
 0x826   : > { %v12057_v56 = vpop.permute.xlu1 %4775 }
 0x827   : > { %15051 = vst [vmem:[#allocation207_spill] sm:$0xff] %v12057_v56  ;;  %v12073_v56 = vpop.permute.xlu2 %4805 }
 0x828   : > { %15053 = vst [vmem:[#allocation209_spill] sm:$0xff] %v12073_v56  ;;  %v4911_v56 = vperm.slane %v11643_v62, %v10759_v20 }
 0x82d   : > { %v12065_v54 = vpop.permute.xlu0 %4790 }
 0x82e   : > { %15052 = vst [vmem:[#allocation208_spill] sm:$0xff] %v12065_v54  ;;  %v12071_v0 = vpop.permute.xlu1 %4784  ;;  %v4877_v54 = vsel %vm3672_vm3, %v4876_v6, %v4875_v11  ;;  %v4910_v11 = vsel %vm3676_vm4, %v4909_v57, %v4908_v32  ;;  %v4884_v6 = vperm.slane %v11516_v39, %v10781_v49 }
 0x82f   : > { %v4879_v1 = vsel %vm3676_vm4, %v4878_v10, %v4877_v54  ;;  %v4912_v62 = vsel %vm14325_vm5, %v4911_v56, %v4910_v11  ;;  %v12106_v54 = vpop.permute.xlu2 %4814  ;;  %v4917_v56 = vperm.slane %v11662_v7, %v10787_v9  ;;  %v4915_v10 = vperm.slane %v11639_v27, %v10781_v49 }
 0x830   : > { %v4881_v18 = vsel %vm14325_vm5, %v4880_v3, %v4879_v1  ;;  %v4914_v39 = vsel %vm14324_vm6, %v4913_v42, %v4912_v62  ;;  %v4938_v3 = vperm.slane %v11724_v22, %v10738_v36  ;;  %v4890_v7 = vperm.slane %v11533_v23, %v10819_v43 }
 0x831   : > { %v4883_v55 = vsel %vm14324_vm6, %v4882_v13, %v4881_v18  ;;  %v4916_v32 = vsel %vm3688_vm7, %v4915_v10, %v4914_v39  ;;  %v4919_v22 = vperm.slane %v11478_v37, %v10796_v5  ;;  %v4942_v23 = vperm.slane %v11584_v19, %v10759_v20  ;;  %v15060_v10 = vld [vmem:[#allocation119_spill] sm:$0xff] }
 0x832   : > { %v4885_v61 = vsel %vm3688_vm7, %v4884_v6, %v4883_v55  ;;  %v4918_v13 = vsel %vm3692_vm8, %v4917_v56, %v4916_v32  ;;  %v4939_v18 = vsel %vm3672_vm3, %v4938_v3, %v4937_v25  ;;  %v4923_v62 = vperm.slane %v11686_v45, %v10831_v14  ;;  %v15061_v25 = vld [vmem:[#allocation131_spill] sm:$0xff] }
 0x833   : > { %v4887_v41 = vsel %vm3692_vm8, %v4886_v12, %v4885_v61  ;;  %v4941_v11 = vsel %vm3676_vm4, %v4940_v35, %v4939_v18  ;;  %v4920_v6 = vsel %vm3696_vm9, %v4919_v22, %v4918_v13  ;;  %v4921_v37 = vperm.slane %v11658_v17, %v10819_v43  ;;  %v15065_v13 = vld [vmem:[#allocation98_spill] sm:$0xff] }
 0x834   : > { %v4889_v1 = vsel %vm3696_vm9, %v4888_v53, %v4887_v41  ;;  %v4943_v33 = vsel %vm14325_vm5, %v4942_v23, %v4941_v11  ;;  %v4946_v55 = vperm.slane %v11768_v63, %v10781_v49  ;;  %v4894_v19 = vperm.slane %v11406_v26, %v10840_v29  ;;  %v15064_v41 = vld [vmem:[#allocation199_spill] sm:$0xff]  ;;  %v15069_v23 = vld [vmem:[#allocation101_spill] sm:$0xff] }
 0x835   : > { %v12092_v31 = vpop.permute.xlu0 %4799  ;;  %v4891_v42 = vsel %vm15054_vm13, %v4890_v7, %v4889_v1  ;;  %v4922_v12 = vsel %vm15057_vm10, %v4921_v37, %v4920_v6  ;;  %v4944_v45 = vperm.slane %v11745_v59, %v10765_v51  ;;  %vm15058_vm13 = vmmov %vm15055_vm1  ;;  %v4925_v56 = vperm.slane %v11504_v15, %v10840_v29  ;;  %v15063_v15 = vld [vmem:[#allocation31_spill] sm:$0xff]  ;;  %v15067_v1 = vld [vmem:[#allocation25_spill] sm:$0xff] }
 0x836   : > { %v12096_v28 = vpop.permute.xlu1 %4793  ;;  %v4893_v60 = vsel %vm15055_vm1, %v4892_v2, %v4891_v42  ;;  %v4924_v39 = vsel %vm15058_vm13, %v4923_v62, %v4922_v12  ;;  %vm15059_vm1 = vcmask 786112   ;;  %v4898_v63 = vperm.slane %v11580_v16, %v10884_v47  ;;  %v15068_v11 = vld [vmem:[#allocation139_spill] sm:$0xff]  ;;  %v15070_v42 = vld [vmem:[#allocation48_spill] sm:$0xff]  ;;  %v15073_v12 = vld [vmem:[#allocation93_spill] sm:$0xff] }
 0x837   : > { %v12153_v44 = vpop.permute.xlu2 %4823  ;;  %v4895_v61 = vsel %vm15059_vm1, %v4894_v19, %v4893_v60  ;;  %v4945_v53 = vsel %vm14324_vm6, %v4944_v45, %v4943_v33  ;;  %v4896_v3 = vperm.slane %v15060_v10, %v10847_v34  ;;  %v4948_v35 = vperm.slane %v15061_v25, %v10787_v9  ;;  %vm15062_vm10 = vmmov %vm15059_vm1  ;;  %v15072_v33 = vld [vmem:[#allocation42_spill] sm:$0xff] }
 0x838   : > { %15056 = vst [vmem:[#allocation210_spill] sm:$0xff] %v12153_v44  ;;  %v4947_v59 = vsel %vm3688_vm7, %v4946_v55, %v4945_v53  ;;  %v4926_v32 = vsel %vm15062_vm10, %v4925_v56, %v4924_v39  ;;  %v4929_v7 = vperm.slane %v15063_v15, %v10884_v47  ;;  %v4900_v16 = vperm.slane %v15065_v13, %v15064_v41  ;;  %v15074_v53 = vld [vmem:[#allocation107_spill] sm:$0xff]  ;;  %v15077_v15 = vld [vmem:[#allocation114_spill] sm:$0xff]  ;;  %v15078_v13 = vld [vmem:[#allocation124_spill] sm:$0xff] }
 0x839   : > { %vm15066_vm13 = vcmask 851712   ;;  %v4927_v2 = vperm.slane %v15067_v1, %v10847_v34  ;;  %v4902_v6 = vperm.slane %v15069_v23, %v15068_v11  ;;  %v4949_v62 = vsel %vm3692_vm8, %v4948_v35, %v4947_v59  ;;  %v15080_v23 = vld [vmem:[#allocation133_spill] sm:$0xff] }
 0x83a   : > { %v4897_v22 = vsel %vm15066_vm13, %v4896_v3, %v4895_v61  ;;  %v4952_v37 = vperm.slane %v15070_v42, %v10819_v43  ;;  %vm15071_vm1 = vmmov %vm15066_vm13  ;;  %v4950_v55 = vperm.slane %v15072_v33, %v10796_v5  ;;  %v4931_v45 = vperm.slane %v15073_v12, %v15064_v41  ;;  %v15075_v3 = vld [vmem:[#allocation108_spill] sm:$0xff] }
 0x83b   : > { %v4899_v18 = vsel %vm3716_vm14, %v4898_v63, %v4897_v22  ;;  %v4928_v60 = vsel %vm15071_vm1, %v4927_v2, %v4926_v32  ;;  %v4954_v10 = vperm.slane %v15074_v53, %v10831_v14  ;;  %v4960_v59 = vperm.slane %v15075_v3, %v10884_v47  ;;  %v15079_v2 = vld [vmem:[#allocation126_spill] sm:$0xff]  ;;  %v15086_v53 = vld [vmem:[#allocation56_spill] sm:$0xff]  ;;  %v15087_v3 = vld [vmem:[#allocation21_spill] sm:$0xff] }
 0x83c   : > { %v4930_v19 = vsel %vm3716_vm14, %v4929_v7, %v4928_v60  ;;  %v4901_v39 = vsel %vm3720_vm15, %v4900_v16, %v4899_v18  ;;  %v4951_v56 = vsel %vm3696_vm9, %v4950_v55, %v4949_v62  ;;  %vm15076_vm10 = vcmask 654912   ;;  %v15081_v62 = vld [vmem:[#allocation117_spill] sm:$0xff]  ;;  %v15082_v60 = vld [vmem:[#allocation23_spill] sm:$0xff] }
 0x83d   : > { %v12126_v57 = vpop.permute.xlu0 %4808  ;;  %v12207_v25 = vsel %vm3724_vm0, %v4902_v6, %v4901_v39  ;;  %v4953_v35 = vsel %vm15076_vm10, %v4952_v37, %v4951_v56  ;;  %v4966_v7 = vperm.slane %v15077_v15, %v10728_v58  ;;  %v4971_v16 = vperm.slane %v15078_v13, %v10753_v46  ;;  %v15085_v39 = vld [vmem:[#allocation136_spill] sm:$0xff]  ;;  %v15089_v13 = vld [vmem:[#allocation151_spill] sm:$0xff] }
 0x83e   : > { %v12132_v27 = vpop.permute.xlu1 %4802  ;;  %v4932_v22 = vsel %vm3720_vm15, %v4931_v45, %v4930_v19  ;;  %v4998_v1 = vperm.slane %v11949_v30, %v10735_v24  ;;  %v4933_v42 = vperm.slane %v15081_v62, %v15068_v11  ;;  %v4967_v37 = vperm.slane %v11830_v48, %v10735_v24  ;;  %v15084_v19 = vld [vmem:[#allocation37_spill] sm:$0xff] }
 0x83f   : > { %v12198_v61 = vpop.permute.xlu2 %4832  ;;  %vm15083_vm13 = vcmask 720512   ;;  %v4969_v30 = vperm.slane %v15084_v19, %v10738_v36  ;;  %v4997_v12 = vperm.slane %v11929_v38, %v10728_v58  ;;  %v5000_v48 = vperm.slane %v15086_v53, %v10738_v36 }
 0x840   : > { %v4955_v55 = vsel %vm15083_vm13, %v4954_v10, %v4953_v35  ;;  %v12235_v45 = vsel %vm3724_vm0, %v4933_v42, %v4932_v22  ;;  %v4956_v15 = vperm.slane %v15087_v3, %v10840_v29  ;;  %v15088_v10 = vld [vmem:[#allocation43_spill] sm:$0xff]  ;;  %v4958_v62 = vperm.slane %v15089_v13, %v10847_v34 }
 0x841   : > { %v5006_v35 = vperm.slane %v15088_v10, %v10765_v51  ;;  %v4999_v38 = vsel %vm3668_vm2, %v4998_v1, %v4997_v12  ;;  %v5028_v22 = vperm.slane %v12023_v40, %v10728_v58  ;;  %v15090_v42 = vld [vmem:[#allocation71_spill] sm:$0xff]  ;;  %vm15091_vm1 = vcmask 786112   ;;  %v15092_v10 = vld [vmem:[#allocation154_spill] sm:$0xff] }
 0x842   : > { %v4957_v56 = vsel %vm15091_vm1, %v4956_v15, %v4955_v55  ;;  %v4968_v53 = vsel %vm3668_vm2, %v4967_v37, %v4966_v7  ;;  %v5060_v3 = vperm.slane %v12055_v8, %v10735_v24  ;;  %v15093_v13 = vld [vmem:[#allocation87_spill] sm:$0xff]  ;;  %v5062_v40 = vperm.slane %v12071_v0, %v10738_v36  ;;  %v15094_v8 = vld [vmem:[#allocation60_spill] sm:$0xff] }
 0x843   : > { %v5029_v6 = vperm.slane %v15093_v13, %v10735_v24  ;;  %v4970_v1 = vsel %vm3672_vm3, %v4969_v30, %v4968_v53  ;;  %v5059_v55 = vperm.slane %v12041_v52, %v10728_v58  ;;  %v5001_v7 = vsel %vm3672_vm3, %v5000_v48, %v4999_v38  ;;  %v15096_v30 = vld [vmem:[#allocation61_spill] sm:$0xff]  ;;  %v15097_v48 = vld [vmem:[#allocation26_spill] sm:$0xff] }
 0x844   : > { %v5004_v37 = vperm.slane %v15094_v8, %v10759_v20  ;;  %v5031_v15 = vperm.slane %v12021_v4, %v10738_v36  ;;  %vm15095_vm10 = vcmask 851712   ;;  %v5002_v53 = vperm.slane %v15096_v30, %v10753_v46  ;;  %v15098_v4 = vld [vmem:[#allocation47_spill] sm:$0xff] }
 0x845   : > { %v12161_v17 = vpop.permute.xlu0 %4817  ;;  %v4959_v13 = vsel %vm15095_vm10, %v4958_v62, %v4957_v56  ;;  %v5030_v0 = vsel %vm3668_vm2, %v5029_v6, %v5028_v22  ;;  %v5033_v19 = vperm.slane %v12033_v50, %v10753_v46  ;;  %v4962_v38 = vperm.slane %v15097_v48, %v15064_v41  ;;  %v15099_v62 = vld [vmem:[#allocation41_spill] sm:$0xff] }
 0x846   : > { %v12169_v26 = vpop.permute.xlu1 %4811  ;;  %v4972_v8 = vsel %vm3676_vm4, %v4971_v16, %v4970_v1  ;;  %v4975_v18 = vperm.slane %v15098_v4, %v10765_v51  ;;  %v5061_v56 = vsel %vm3668_vm2, %v5060_v3, %v5059_v55  ;;  %v4973_v30 = vperm.slane %v15099_v62, %v10759_v20  ;;  %v15100_v3 = vld [vmem:[#allocation66_spill] sm:$0xff] }
 0x847   : > { %v12278_v52 = vpop.permute.xlu2 %4841  ;;  %v5003_v6 = vsel %vm3676_vm4, %v5002_v53, %v5001_v7  ;;  %v5063_v22 = vsel %vm3672_vm3, %v5062_v40, %v5061_v56  ;;  %v12292_v44 = vsel %vm3716_vm14, %v4960_v59, %v4959_v13  ;;  %v5064_v16 = vperm.slane %v12047_v21, %v10753_v46  ;;  %v15101_v59 = vld [vmem:[#allocation62_spill] sm:$0xff] }
 0x848   : > { %v5005_v1 = vsel %vm14325_vm5, %v5004_v37, %v5003_v6  ;;  %v5032_v4 = vsel %vm3672_vm3, %v5031_v15, %v5030_v0  ;;  %v5035_v55 = vperm.slane %v15100_v3, %v10759_v20  ;;  %v4974_v62 = vsel %vm14325_vm5, %v4973_v30, %v4972_v8  ;;  %v15102_v53 = vld [vmem:[#allocation70_spill] sm:$0xff]  ;;  %v15104_v30 = vld [vmem:[#allocation64_spill] sm:$0xff] }
 0x849   : > { %v5034_v7 = vsel %vm3676_vm4, %v5033_v19, %v5032_v4  ;;  %v4979_v40 = vperm.slane %v15101_v59, %v10787_v9  ;;  %v4976_v13 = vsel %vm14324_vm6, %v4975_v18, %v4974_v62  ;;  %v5065_v21 = vsel %vm3676_vm4, %v5064_v16, %v5063_v22  ;;  %v15103_v19 = vld [vmem:[#allocation208_spill] sm:$0xff]  ;;  %v15108_v62 = vld [vmem:[#allocation85_spill] sm:$0xff] }
 0x84a   : > { %v5068_v37 = vperm.slane %v12096_v28, %v10765_v51  ;;  %v5007_v15 = vsel %vm14324_vm6, %v5006_v35, %v5005_v1  ;;  %v5010_v0 = vperm.slane %v15102_v53, %v10787_v9  ;;  %v5066_v8 = vperm.slane %v15103_v19, %v10759_v20  ;;  %v15105_v28 = vld [vmem:[#allocation201_spill] sm:$0xff] }
 0x84b   : > { %v5008_v6 = vperm.slane %v15104_v30, %v10781_v49  ;;  %v5093_v18 = vperm.slane %v12198_v61, %v10738_v36  ;;  %v5036_v22 = vsel %vm14325_vm5, %v5035_v55, %v5034_v7  ;;  %v5039_v35 = vperm.slane %v15105_v28, %v10781_v49 }
 0x84c   : > { %v15106_v1 = vperm.slane %v15079_v2, %v10781_v49  ;;  %v5067_v59 = vsel %vm14325_vm5, %v5066_v8, %v5065_v21  ;;  %v15109_v2 = vld [vmem:[#allocation206_spill] sm:$0xff]  ;;  %v15110_v21 = vld [vmem:[#allocation75_spill] sm:$0xff]  ;;  %vm15117_vm13 = vcmask 654912   ;;  %vm15122_vm10 = vcmask 720512  }
 0x84d   : > { %v12200_v63 = vpop.permute.xlu0 %4826  ;;  %v5009_v61 = vsel %vm3688_vm7, %v5008_v6, %v5007_v15  ;;  %v5069_v55 = vsel %vm14324_vm6, %v5068_v37, %v5067_v59  ;;  %v5070_v19 = vperm.slane %v15109_v2, %v10781_v49  ;;  %v5041_v15 = vperm.slane %v15110_v21, %v10787_v9  ;;  %v15111_v37 = vld [vmem:[#allocation68_spill] sm:$0xff]  ;;  %vm15120_vm1 = vmmov %vm15117_vm13 }
 0x84e   : > { %v12210_v32 = vpop.permute.xlu1 %4820  ;;  %v4978_v4 = vsel %vm3688_vm7, %v15106_v1, %v4976_v13  ;;  %v5011_v13 = vsel %vm3692_vm8, %v5010_v0, %v5009_v61  ;;  %v4985_v8 = vperm.slane %v15111_v37, %v10831_v14 }
 0x84f   : > { %v4851_v28 = vpop.permute.xlu2 %4850  ;;  %v5071_v0 = vsel %vm3688_vm7, %v5070_v19, %v5069_v55  ;;  %v15119_v19 = vld [vmem:[#allocation86_spill] sm:$0xff] }
 0x855   : > { %v12263_v12 = vpop.permute.xlu0 %4835 }
 0x856   : > { %v4830_v33 = vpop.permute.xlu1 %4829  ;;  %v5095_v1 = vperm.slane %v12263_v12, %v10753_v46  ;;  %v15112_v12 = vperm.slane %v15090_v42, %v10796_v5  ;;  %v15115_v42 = vld [vmem:[#allocation203_spill] sm:$0xff] }
 0x857   : > { %v5091_v50 = vperm.slane %v4830_v33, %v10735_v24  ;;  %v5090_v33 = vperm.slane %v12200_v63, %v10728_v58  ;;  %v5045_v61 = vperm.slane %v15115_v42, %v10819_v43 }
 0x859   : > { %v5092_v63 = vsel %vm3668_vm2, %v5091_v50, %v5090_v33  ;;  %v15107_v50 = vld [vmem:[#allocation142_spill] sm:$0xff]  ;;  %v5037_v33 = vperm.slane %v15108_v62, %v10765_v51  ;;  %v15113_v62 = vld [vmem:[#allocation77_spill] sm:$0xff] }
 0x85a   : > { %v4981_v3 = vperm.slane %v15107_v50, %v10796_v5  ;;  %v5094_v7 = vsel %vm3672_vm3, %v5093_v18, %v5092_v63  ;;  %v4980_v63 = vsel %vm3692_vm8, %v4979_v40, %v4978_v4  ;;  %v5013_v50 = vsel %vm3696_vm9, %v15112_v12, %v5011_v13  ;;  %v15114_v4 = vld [vmem:[#allocation88_spill] sm:$0xff] }
 0x85b   : > { %v5038_v30 = vsel %vm14324_vm6, %v5037_v33, %v5036_v22  ;;  %v5074_v22 = vperm.slane %v12132_v27, %v10796_v5  ;;  %v5016_v33 = vperm.slane %v15113_v62, %v10831_v14  ;;  %v5072_v40 = vperm.slane %v12092_v31, %v10787_v9  ;;  %v15118_v31 = vld [vmem:[#allocation150_spill] sm:$0xff] }
 0x85c   : > { %v5040_v6 = vsel %vm3688_vm7, %v5039_v35, %v5038_v30  ;;  %v4982_v18 = vsel %vm3696_vm9, %v4981_v3, %v4980_v63  ;;  %v5014_v3 = vperm.slane %v15114_v4, %v10819_v43  ;;  %v5099_v27 = vperm.slane %v12278_v52, %v10765_v51 }
 0x85d   : > { %v4845_v56 = vpop.permute.xlu0 %4844  ;;  %v5042_v59 = vsel %vm3692_vm8, %v5041_v15, %v5040_v6  ;;  %v5043_v13 = vperm.slane %v15119_v19, %v10796_v5  ;;  %v5073_v30 = vsel %vm3692_vm8, %v5072_v40, %v5071_v0  ;;  %v15123_v0 = vld [vmem:[#allocation82_spill] sm:$0xff]  ;;  %v15133_v19 = vld [vmem:[#allocation205_spill] sm:$0xff] }
 0x85e   : > { %v4839_v16 = vpop.permute.xlu1 %4838  ;;  %v5075_v21 = vsel %vm3696_vm9, %v5074_v22, %v5073_v30  ;;  %v5024_v12 = vperm.slane %v15123_v0, %v15064_v41 }
 0x85f   : > { %v5097_v53 = vperm.slane %v4839_v16, %v10759_v20  ;;  %v5096_v16 = vsel %vm3676_vm4, %v5095_v1, %v5094_v7  ;;  %v15116_v7 = vperm.slane %v15080_v23, %v10819_v43  ;;  %v5015_v1 = vsel %vm15120_vm1, %v5014_v3, %v5013_v50  ;;  %v15121_v23 = vld [vmem:[#allocation209_spill] sm:$0xff]  ;;  %v15124_v50 = vld [vmem:[#allocation183_spill] sm:$0xff] }
 0x860   : > { %v5076_v63 = vperm.slane %v15121_v23, %v10819_v43  ;;  %v5017_v6 = vsel %vm15122_vm10, %v5016_v33, %v5015_v1  ;;  %v5047_v62 = vperm.slane %v15124_v50, %v10831_v14  ;;  %v5080_v33 = vperm.slane %v12169_v26, %v10840_v29  ;;  %v15137_v1 = vld [vmem:[#allocation202_spill] sm:$0xff] }
 0x861   : > { %v5098_v35 = vsel %vm14325_vm5, %v5097_v53, %v5096_v16  ;;  %v4984_v2 = vsel %vm15117_vm13, %v15116_v7, %v4982_v18  ;;  %v4987_v53 = vperm.slane %v15118_v31, %v10840_v29  ;;  %v5044_v18 = vsel %vm3696_vm9, %v5043_v13, %v5042_v59  ;;  %vm15125_vm13 = vmmov %vm15122_vm10 }
 0x862   : > { %v5100_v15 = vsel %vm14324_vm6, %v5099_v27, %v5098_v35  ;;  %v5101_v16 = vperm.slane %v4845_v56, %v10781_v49  ;;  %v4986_v22 = vsel %vm15125_vm13, %v4985_v8, %v4984_v2  ;;  %v5046_v40 = vsel %vm15120_vm1, %v5045_v61, %v5044_v18  ;;  %vm15127_vm5 = vmmov %vm15120_vm1  ;;  %v15128_v56 = vld [vmem:[#allocation69_spill] sm:$0xff]  ;;  %v4860_v8 = vpop.permute.xlu2 %4859  ;;  %v15131_v2 = vld [vmem:[#allocation78_spill] sm:$0xff] }
 0x863   : > { %vm15126_vm6 = vcmask 786112   ;;  %v5077_v4 = vsel %vm15127_vm5, %v5076_v63, %v5075_v21  ;;  %v5020_v27 = vperm.slane %v15128_v56, %v10847_v34  ;;  %v15129_v59 = vperm.slane %v15092_v10, %v10840_v29  ;;  %vm15132_vm5 = vmmov %vm15125_vm13  ;;  %v15134_v10 = vld [vmem:[#allocation73_spill] sm:$0xff] }
 0x864   : > { %v4988_v35 = vsel %vm15126_vm6, %v4987_v53, %v4986_v22  ;;  %v5102_v3 = vsel %vm3688_vm7, %v5101_v16, %v5100_v15  ;;  %vm15130_vm10 = vmmov %vm15126_vm6  ;;  %v5078_v61 = vperm.slane %v12126_v57, %v10831_v14  ;;  %v5022_v31 = vperm.slane %v15131_v2, %v10884_v47  ;;  %v15142_v22 = vld [vmem:[#allocation32_spill] sm:$0xff] }
 0x865   : > { %v4854_v55 = vpop.permute.xlu0 %4853  ;;  %v5019_v42 = vsel %vm15130_vm10, %v15129_v59, %v5017_v6  ;;  %v5105_v26 = vperm.slane %v4851_v28, %v10796_v5  ;;  %v5048_v53 = vsel %vm15132_vm5, %v5047_v62, %v5046_v40  ;;  %v5051_v13 = vperm.slane %v15133_v19, %v10847_v34  ;;  %vm15138_vm13 = vmmov %vm15132_vm5  ;;  %v15139_v28 = vld [vmem:[#allocation79_spill] sm:$0xff]  ;;  %v15150_v19 = vld [vmem:[#allocation204_spill] sm:$0xff] }
 0x866   : > { %v4848_v52 = vpop.permute.xlu1 %4847  ;;  %v4991_v30 = vperm.slane %v15134_v10, %v10884_v47  ;;  %vm15136_vm6 = vcmask 851712   ;;  %v5049_v21 = vperm.slane %v15137_v1, %v10840_v29  ;;  %v5079_v15 = vsel %vm15138_vm13, %v5078_v61, %v5077_v4  ;;  %vm15141_vm5 = vmmov %vm15130_vm10  ;;  %v15154_v1 = vld [vmem:[#allocation210_spill] sm:$0xff] }
 0x867   : > { %v5103_v37 = vperm.slane %v4848_v52, %v10787_v9  ;;  %v15135_v52 = vperm.slane %v15082_v60, %v10847_v34  ;;  %v4993_v23 = vperm.slane %v15139_v28, %v15064_v41  ;;  %vm15140_vm1 = vmmov %vm15136_vm6  ;;  %v5081_v6 = vsel %vm15130_vm10, %v5080_v33, %v5079_v15 }
 0x868   : > { %v5021_v63 = vsel %vm15140_vm1, %v5020_v27, %v5019_v42  ;;  %v5082_v60 = vperm.slane %v12106_v54, %v10847_v34  ;;  %v5050_v0 = vsel %vm15141_vm5, %v5049_v21, %v5048_v53  ;;  %v5107_v50 = vperm.slane %v4854_v55, %v10819_v43  ;;  %vm15145_vm13 = vmmov %vm15140_vm1 }
 0x869   : > { %v5104_v7 = vsel %vm3692_vm8, %v5103_v37, %v5102_v3  ;;  %v4990_v57 = vsel %vm15136_vm6, %v15135_v52, %v4988_v35  ;;  %v4964_v40 = vperm.slane %v15142_v22, %v15068_v11  ;;  %v5023_v4 = vsel %vm3716_vm14, %v5022_v31, %v5021_v63  ;;  %vm15143_vm6 = vmmov %vm15140_vm1  ;;  %v15144_v3 = vld [vmem:[#allocation187_spill] sm:$0xff] }
 0x86a   : > { %v5106_v18 = vsel %vm3696_vm9, %v5105_v26, %v5104_v7  ;;  %v4992_v35 = vsel %vm3716_vm14, %v4991_v30, %v4990_v57  ;;  %v5052_v33 = vsel %vm15143_vm6, %v5051_v13, %v5050_v0  ;;  %v5053_v56 = vperm.slane %v15144_v3, %v10884_v47  ;;  %v15148_v26 = vld [vmem:[#allocation207_spill] sm:$0xff]  ;;  %v4869_v30 = vpop.permute.xlu2 %4868 }
 0x86b   : > { %v5083_v54 = vsel %vm15145_vm13, %v5082_v60, %v5081_v6  ;;  %v5086_v27 = vperm.slane %v12210_v32, %v15064_v41  ;;  %vm15146_vm1 = vcmask 654912   ;;  %v4963_v59 = vsel %vm3720_vm15, %v4962_v38, %v12292_v44  ;;  %v15149_v44 = vld [vmem:[#allocation178_spill] sm:$0xff] }
 0x86c   : > { %v5108_v55 = vsel %vm15146_vm1, %v5107_v50, %v5106_v18  ;;  %v4994_v42 = vsel %vm3720_vm15, %v4993_v23, %v4992_v35  ;;  %v5084_v61 = vperm.slane %v12161_v17, %v10884_v47  ;;  %vm15147_vm10 = vcmask 720512  }
 0x86d   : > { %v4863_v37 = vpop.permute.xlu0 %4862  ;;  %v5025_v2 = vsel %vm3720_vm15, %v5024_v12, %v5023_v4  ;;  %v5111_v31 = vperm.slane %v4860_v8, %v10840_v29  ;;  %v5054_v32 = vsel %vm3716_vm14, %v5053_v56, %v5052_v33  ;;  %v5057_v53 = vperm.slane %v15148_v26, %v15068_v11  ;;  %v15164_v26 = vld [vmem:[#allocation141_spill] sm:$0xff] }
 0x86e   : > { %v4857_v16 = vpop.permute.xlu1 %4856  ;;  %v4965_v48 = vsel %vm3724_vm0, %v4964_v40, %v4963_v59  ;;  %v5026_v38 = vperm.slane %v15149_v44, %v15068_v11  ;;  %v5055_v13 = vperm.slane %v15150_v19, %v15064_v41  ;;  %v5085_v17 = vsel %vm3716_vm14, %v5084_v61, %v5083_v54  ;;  %v15161_v59 = vld [vmem:[#allocation137_spill] sm:$0xff]  ;;  %v15162_v61 = vld [vmem:[#allocation135_spill] sm:$0xff] }
 0x86f   : > { %v5109_v62 = vperm.slane %v4857_v16, %v10831_v14  ;;  %vm15151_vm5 = vcmask 1041409   ;;  %v15152_v8 = vperm.slane %v15085_v39, %v15068_v11  ;;  %v5087_v52 = vsel %vm3720_vm15, %v5086_v27, %v5085_v17  ;;  %v15160_v27 = vld [vmem:[#allocation148_spill] sm:$0xff] }
 0x870   : > { %v5121_v12 = vsel %vm15151_vm5, %v12235_v45, %v12207_v25  ;;  %vm15153_vm6 = vcmask 786112   ;;  %v5088_v21 = vperm.slane %v15154_v1, %v15068_v11  ;;  %v5056_v15 = vsel %vm3720_vm15, %v5055_v13, %v5054_v32  ;;  %v15167_v13 = vld [vmem:[#allocation140_spill] sm:$0xff] }
 0x871   : > { %v5110_v7 = vsel %vm15147_vm10, %v5109_v62, %v5108_v55  ;;  %v4996_v10 = vsel %vm3724_vm0, %v15152_v8, %v4994_v42  ;;  %v5113_v28 = vperm.slane %v4863_v37, %v10847_v34  ;;  %v5027_v25 = vsel %vm3724_vm0, %v5026_v38, %v5025_v2  ;;  %v15166_v38 = vld [vmem:[#allocation138_spill] sm:$0xff]  ;;  %v15171_v1 = vld [vmem:[#allocation168_spill] sm:$0xff] }
 0x872   : > { %v5112_v57 = vsel %vm15153_vm6, %v5111_v31, %v5110_v7  ;;  %vm15155_vm13 = vcmask 1042434   ;;  %v5058_v39 = vsel %vm3724_vm0, %v5057_v53, %v5056_v15  ;;  %v5117_v18 = vperm.slane %v4869_v30, %v15064_v41  ;;  %v15163_v31 = vld [vmem:[#allocation159_spill] sm:$0xff]  ;;  %v15172_v15 = vld [vmem:[#allocation152_spill] sm:$0xff] }
 0x873   : > { %v5122_v45 = vsel %vm15155_vm13, %v4965_v48, %v5121_v12  ;;  %vm15156_vm1 = vcmask 851712   ;;  %v5089_v60 = vsel %vm3724_vm0, %v5088_v21, %v5087_v52  ;;  %vm15157_vm10 = vcmask 1045509   ;;  %v15165_v48 = vld [vmem:[#allocation165_spill] sm:$0xff]  ;;  %v15168_v12 = vld [vmem:[#allocation158_spill] sm:$0xff] }
 0x874   : > { %v5114_v16 = vsel %vm15156_vm1, %v5113_v28, %v5112_v57  ;;  %v5123_v0 = vsel %vm3947_vm11, %v4996_v10, %v5122_v45  ;;  %vm15158_vm5 = vcmask 1046534   ;;  %vm15159_vm6 = vcmask 1047559   ;;  %v15169_v10 = vld [vmem:[#allocation134_spill] sm:$0xff]  ;;  %v15170_v52 = vld [vmem:[#allocation153_spill] sm:$0xff] }
 0x875   : > { %v4872_v23 = vpop.permute.xlu0 %4871  ;;  %v5124_v62 = vsel %vm14326_vm12, %v5027_v25, %v5123_v0  ;;  %v15174_v25 = vld [vmem:[#allocation143_spill] sm:$0xff]  ;;  %vm15206_vm13 = vcmask 261120  }
 0x876   : > { %v4866_v63 = vpop.permute.xlu1 %4865  ;;  %v5119_v37 = vperm.slane %v4872_v23, %v15068_v11  ;;  %v5125_v40 = vsel %vm15157_vm10, %v5058_v39, %v5124_v62  ;;  %v15173_v23 = vld [vmem:[#allocation162_spill] sm:$0xff]  ;;  %v15175_v39 = vld [vmem:[#allocation172_spill] sm:$0xff]  ;;  %vm15207_vm1 = vmmov %vm15206_vm13 }
 0x877   : > { %v5115_v6 = vperm.slane %v4866_v63, %v10884_v47  ;;  %v5126_v4 = vsel %vm15158_vm5, %v5089_v60, %v5125_v40  ;;  %v15177_v60 = vld [vmem:[#allocation155_spill] sm:$0xff]  ;;  %vm15210_vm10 = vmmov %vm15207_vm1 }
 0x878   : > { %vm15212_vm5 = vmmov %vm15207_vm1 }
 0x879   : > { %v5116_v50 = vsel %vm3716_vm14, %v5115_v6, %v5114_v16 }
 0x87a   : > { %v5118_v22 = vsel %vm3720_vm15, %v5117_v18, %v5116_v50  ;;  %v15176_v18 = vld [vmem:[#allocation147_spill] sm:$0xff]  ;;  %v15178_v50 = vld [vmem:[#allocation161_spill] sm:$0xff] }
 0x87b   : > { %v5120_v35 = vsel %vm3724_vm0, %v5119_v37, %v5118_v22  ;;  %v15179_v22 = vld [vmem:[#allocation166_spill] sm:$0xff] }
 0x87c   : > { %v5127_v33 = vsel %vm15159_vm6, %v5120_v35, %v5126_v4  ;;  %v15180_v35 = vld [vmem:[#allocation156_spill] sm:$0xff]  ;;  %vm15215_vm6 = vcmask 326912  }
 0x87d   : > { %5129 = vadd.xlane.f32.xlu1 %v5127_v33  ;;  %v15181_v33 = vld [vmem:[#allocation157_spill] sm:$0xff] }
 0x8f0   : > { %v5130_v3 = vpop.xlane.xlu1 %5129 }
 0x8f1   : > { %8018 = vrcp.f32 %v5130_v3 }
 0x8f7   : > { %v12492_v56 = vpop.eup %8018 }
 0x8f8   : > { %v5133_v54 = vperm.slane %v12492_v56, 0  ;;  %v12499_v2 = vperm.slane %v12492_v56, 1  ;;  %v12522_v37 = vperm.slane %v12492_v56, 2 }
 0x8fa   : > { %v5160_v55 = vmul.f32 %v15160_v27, %v5133_v54  ;;  %v5150_v42 = vmul.f32 %v15161_v59, %v5133_v54  ;;  %v5149_v7 = vmul.f32 %v15162_v61, %v5133_v54  ;;  %v5167_v32 = vmul.f32 %v15163_v31, %v12499_v2  ;;  %v15182_v27 = vld [vmem:[#allocation160_spill] sm:$0xff]  ;;  %v15183_v59 = vld [vmem:[#allocation171_spill] sm:$0xff] }
 0x8fb   : > { %v5152_v53 = vmul.f32 %v15164_v26, %v5133_v54  ;;  %v5151_v44 = vmul.f32 %v15165_v48, %v5133_v54  ;;  %v5170_v19 = vmul.f32 %v15166_v38, %v12499_v2  ;;  %v5154_v17 = vmul.f32 %v15167_v13, %v5133_v54  ;;  %v15188_v38 = vld [vmem:[#allocation167_spill] sm:$0xff]  ;;  %v15189_v13 = vld [vmem:[#allocation190_spill] sm:$0xff] }
 0x8fc   : > { %5439 = vperm.xlu1 %7493, %v5160_v55   ;;  %5409 = vperm.xlu0 %7494, %v5150_v42   ;;  %v5153_v8 = vmul.f32 %v15168_v12, %v5133_v54  ;;  %v5173_v30 = vmul.f32 %v15169_v10, %v12499_v2  ;;  %v5156_v57 = vmul.f32 %v15170_v52, %v5133_v54  ;;  %v12534_v61 = vperm.slane %v12492_v56, 3 }
 0x8fd   : > { %5406 = vperm.xlu2 %7492, %v5149_v7   ;;  %v5155_v21 = vmul.f32 %v15171_v1, %v5133_v54  ;;  %v5176_v28 = vmul.f32 %v15172_v15, %v12499_v2  ;;  %v5158_v63 = vmul.f32 %v15173_v23, %v5133_v54  ;;  %v5157_v45 = vmul.f32 %v15174_v25, %v5133_v54  ;;  %v15184_v7 = vld [vmem:[#allocation113_spill] sm:$0xff] }
 0x8fe   : > { %v5179_v6 = vmul.f32 %v15175_v39, %v12499_v2  ;;  %v5161_v16 = vmul.f32 %v15176_v18, %v5133_v54  ;;  %v5159_v0 = vmul.f32 %v15177_v60, %v5133_v54  ;;  %v5182_v62 = vmul.f32 %v15178_v50, %v12522_v37 }
 0x8ff   : > { %v5163_v40 = vmul.f32 %v15179_v22, %v5133_v54  ;;  %v5162_v4 = vmul.f32 %v15180_v35, %v5133_v54  ;;  %v5185_v3 = vmul.f32 %v15181_v33, %v12522_v37  ;;  %v5165_v55 = vmul.f32 %v15182_v27, %v12499_v2  ;;  %v15199_v22 = vld [vmem:[#allocation96_spill] sm:$0xff]  ;;  %v15200_v35 = vld [vmem:[#allocation182_spill] sm:$0xff] }
 0x900   : > { %v5164_v42 = vmul.f32 %v15183_v59, %v5133_v54  ;;  %v5198_v31 = vmul.f32 %v15184_v7, %v12534_v61  ;;  %v15187_v54 = vld [vmem:[#allocation94_spill] sm:$0xff]  ;;  %v12549_v12 = vperm.slane %v12492_v56, 4  ;;  %v15201_v33 = vld [vmem:[#allocation196_spill] sm:$0xff] }
 0x904   : > { %5460 = vperm.xlu1 %7493, %v5167_v32   ;;  %5415 = vperm.xlu0 %7494, %v5152_v53   ;;  %v15185_v32 = vld [vmem:[#allocation164_spill] sm:$0xff]  ;;  %v15186_v53 = vld [vmem:[#allocation173_spill] sm:$0xff] }
 0x905   : > { %5412 = vperm.xlu2 %7492, %v5151_v44   ;;  %v5168_v26 = vmul.f32 %v15185_v32, %v12499_v2  ;;  %v5166_v48 = vmul.f32 %v15186_v53, %v12499_v2  ;;  %v5199_v44 = vmul.f32 %v15187_v54, %v12534_v61  ;;  %v1825_v53 = vld [vmem:[%s15202_s18 + $0x8] sm:$0xff]  ;;  %v12594_v54 = vperm.slane %v12492_v56, 5 }
 0x90c   : > { %5469 = vperm.xlu1 %7493, %v5170_v19   ;;  %5421 = vperm.xlu0 %7494, %v5154_v17   ;;  %v5171_v19 = vmul.f32 %v15188_v38, %v12499_v2  ;;  %v5169_v17 = vmul.f32 %v15189_v13, %v12499_v2 }
 0x90d   : > { %5418 = vperm.xlu2 %7492, %v5153_v8   ;;  %v15190_v8 = vld [vmem:[#allocation144_spill] sm:$0xff] }
 0x90e   : > { %v5215_v10 = vmul.f32 %v15190_v8, %v12549_v12 }
 0x914   : > { %5478 = vperm.xlu1 %7493, %v5173_v30   ;;  %5427 = vperm.xlu0 %7494, %v5156_v57   ;;  %v15191_v30 = vld [vmem:[#allocation180_spill] sm:$0xff]  ;;  %v15192_v57 = vld [vmem:[#allocation195_spill] sm:$0xff] }
 0x915   : > { %5424 = vperm.xlu2 %7492, %v5155_v21   ;;  %v5174_v52 = vmul.f32 %v15191_v30, %v12499_v2  ;;  %v5172_v1 = vmul.f32 %v15192_v57, %v12499_v2  ;;  %v15193_v21 = vld [vmem:[#allocation186_spill] sm:$0xff] }
 0x916   : > { %v5200_v15 = vmul.f32 %v15193_v21, %v12534_v61 }
 0x91c   : > { %5487 = vperm.xlu1 %7493, %v5176_v28   ;;  %5433 = vperm.xlu0 %7494, %v5158_v63   ;;  %v15194_v28 = vld [vmem:[#allocation175_spill] sm:$0xff]  ;;  %v15195_v63 = vld [vmem:[#allocation198_spill] sm:$0xff] }
 0x91d   : > { %5430 = vperm.xlu2 %7492, %v5157_v45   ;;  %v5177_v23 = vmul.f32 %v15194_v28, %v12499_v2  ;;  %v5175_v25 = vmul.f32 %v15195_v63, %v12499_v2  ;;  %v12564_v45 = vperm.slane %v12492_v56, 7 }
 0x924   : > { %5496 = vperm.xlu1 %7493, %v5179_v6   ;;  %5442 = vperm.xlu0 %7494, %v5161_v16   ;;  %v15196_v6 = vld [vmem:[#allocation63_spill] sm:$0xff]  ;;  %v15197_v16 = vld [vmem:[#allocation176_spill] sm:$0xff] }
 0x925   : > { %5436 = vperm.xlu2 %7492, %v5159_v0   ;;  %v5262_v18 = vmul.f32 %v15196_v6, %v12564_v45  ;;  %v5180_v60 = vmul.f32 %v15197_v16, %v12499_v2  ;;  %v15198_v0 = vld [vmem:[#allocation170_spill] sm:$0xff]  ;;  %v15211_v6 = vld [vmem:[#allocation189_spill] sm:$0xff] }
 0x926   : > { %v5178_v50 = vmul.f32 %v15198_v0, %v12499_v2  ;;  %v1824_v2 = vld [vmem:[%s15202_s18] sm:$0xff] }
 0x927   : > { %v1828_v16 = vld [vmem:[%s15202_s18 + $0x20] sm:$0xff] }
 0x92c   : > { %5505 = vperm.xlu1 %7493, %v5182_v62   ;;  %5448 = vperm.xlu0 %7494, %v5163_v40   ;;  %v5201_v40 = vmul.f32 %v15199_v22, %v12534_v61 }
 0x92d   : > { %5445 = vperm.xlu2 %7492, %v5162_v4   ;;  %v5183_v4 = vmul.f32 %v15200_v35, %v12522_v37 }
 0x934   : > { %5514 = vperm.xlu1 %7493, %v5185_v3   ;;  %5454 = vperm.xlu0 %7494, %v5165_v55   ;;  %v5181_v3 = vmul.f32 %v15201_v33, %v12522_v37  ;;  %v15203_v55 = vld [vmem:[#allocation111_spill] sm:$0xff] }
 0x935   : > { %5451 = vperm.xlu2 %7492, %v5164_v42   ;;  %v5217_v59 = vmul.f32 %v15203_v55, %v12549_v12  ;;  %v15204_v42 = vld [vmem:[#allocation191_spill] sm:$0xff] }
 0x936   : > { %v5186_v7 = vmul.f32 %v15204_v42, %v12522_v37 }
 0x93c   : > { %5553 = vperm.xlu1 %7493, %v5198_v31   ;;  %5463 = vperm.xlu0 %7494, %v5168_v26   ;;  %v15205_v31 = vld [vmem:[#allocation179_spill] sm:$0xff] }
 0x93d   : > { %5457 = vperm.xlu2 %7492, %v5166_v48   ;;  %v5184_v32 = vmul.f32 %v15205_v31, %v12522_v37  ;;  %v1826_v26 = vld [vmem:[%s15202_s18 + $0x10] sm:$0xff] }
 0x944   : > { %5556 = vperm.xlu1 %7493, %v5199_v44   ;;  %5472 = vperm.xlu0 %7494, %v5171_v19  }
 0x945   : > { %5466 = vperm.xlu2 %7492, %v5169_v17  }
 0x94c   : > { %5604 = vperm.xlu1 %7493, %v5215_v10   ;;  %5481 = vperm.xlu0 %7494, %v5174_v52  }
 0x94d   : > { %5475 = vperm.xlu2 %7492, %v5172_v1  }
 0x954   : > { %5559 = vperm.xlu1 %7493, %v5200_v15   ;;  %5490 = vperm.xlu0 %7494, %v5177_v23   ;;  %v15208_v15 = vld [vmem:[#allocation104_spill] sm:$0xff]  ;;  %v15209_v23 = vld [vmem:[#allocation110_spill] sm:$0xff] }
 0x955   : > { %5484 = vperm.xlu2 %7492, %v5175_v25   ;;  %v5233_v28 = vmul.f32 %v15208_v15, %v12594_v54  ;;  %v5213_v63 = vmul.f32 %v15209_v23, %v12549_v12 }
 0x957   : > { %v5407_v39 = vpop.permute.xlu2 %5406 }
 0x958   : > { %v6174_v48 = vmul.f32 %v5407_v39, %v1824_v2  ;;  %v5789_v19 = vperm.slane %v5407_v39, %v10728_v58 }
 0x95a   : > { %v6302_v52 = vsel %vm15206_vm13, %v6174_v48, 0.0  ;;  %vm15216_vm13 = vmmov %vm15207_vm1 }
 0x95c   : > { %5745 = vperm.xlu1 %7493, %v5262_v18   ;;  %5499 = vperm.xlu0 %7494, %v5180_v60   ;;  %v5197_v18 = vmul.f32 %v15211_v6, %v12534_v61  ;;  %v1827_v60 = vld [vmem:[%s15202_s18 + $0x18] sm:$0xff] }
 0x95d   : > { %5493 = vperm.xlu2 %7492, %v5178_v50  }
 0x95f   : > { %v5413_v62 = vpop.permute.xlu2 %5412 }
 0x960   : > { %v6176_v13 = vmul.f32 %v5413_v62, %v1826_v26  ;;  %v5792_v30 = vperm.slane %v5413_v62, %v10738_v36 }
 0x962   : > { %v6305_v39 = vsel %vm15210_vm10, %v6176_v13, 0.0  ;;  %v12639_v13 = vperm.slane %v12492_v56, 6  ;;  %vm15219_vm10 = vmmov %vm15212_vm5  ;;  %v15221_v56 = vld [vmem:[#allocation121_spill] sm:$0xff] }
 0x964   : > { %5562 = vperm.xlu1 %7493, %v5201_v40   ;;  %5508 = vperm.xlu0 %7494, %v5183_v4  }
 0x965   : > { %5502 = vperm.xlu2 %7492, %v5181_v3  }
 0x967   : > { %v5419_v27 = vpop.permute.xlu2 %5418 }
 0x968   : > { %v6178_v22 = vmul.f32 %v5419_v27, %v1828_v16  ;;  %v5796_v33 = vperm.slane %v5419_v27, %v10759_v20  ;;  %v1830_v27 = vld [vmem:[%s15202_s18 + $0x30] sm:$0xff]  ;;  %v15222_v16 = vld [vmem:[#allocation128_spill] sm:$0xff] }
 0x96a   : > { %v6309_v26 = vsel %vm15216_vm13, %v6178_v22, 0.0  ;;  %vm15226_vm13 = vmmov %vm15212_vm5 }
 0x96c   : > { %5610 = vperm.xlu1 %7493, %v5217_v59   ;;  %5517 = vperm.xlu0 %7494, %v5186_v7   ;;  %v15213_v59 = vld [vmem:[#allocation89_spill] sm:$0xff] }
 0x96d   : > { %5511 = vperm.xlu2 %7492, %v5184_v32   ;;  %v5218_v42 = vmul.f32 %v15213_v59, %v12549_v12  ;;  %v15214_v7 = vld [vmem:[#allocation129_spill] sm:$0xff] }
 0x96e   : > { %v12596_v44 = vpop.permute.xlu1 %5439  ;;  %v5410_v38 = vpop.permute.xlu0 %5409  ;;  %v5229_v31 = vmul.f32 %v15214_v7, %v12594_v54 }
 0x96f   : > { %v5790_v17 = vperm.slane %v5410_v38, %v10735_v24  ;;  %v6175_v8 = vmul.f32 %v5410_v38, %v1825_v53  ;;  %v5425_v10 = vpop.permute.xlu2 %5424  ;;  %v15217_v53 = vld [vmem:[#allocation109_spill] sm:$0xff]  ;;  %v1829_v38 = vld [vmem:[%s15202_s18 + $0x28] sm:$0xff] }
 0x970   : > { %v5214_v48 = vmul.f32 %v15217_v53, %v12549_v12 }
 0x971   : > { %v5791_v57 = vsel %vm3668_vm2, %v5790_v17, %v5789_v19  ;;  %v6303_v1 = vsel %vm15207_vm1, %v6175_v8, 0.0  ;;  %vm15218_vm1 = vcmask 392512  }
 0x972   : > { %v6304_v21 = vadd.f32 %v6303_v1, %v6302_v52  ;;  %v5793_v25 = vsel %vm3672_vm3, %v5792_v30, %v5791_v57  ;;  %v6180_v30 = vmul.f32 %v5425_v10, %v1830_v27 }
 0x974   : > { %5658 = vperm.xlu1 %7493, %v5233_v28   ;;  %5598 = vperm.xlu0 %7494, %v5213_v63   ;;  %v6306_v0 = vadd.f32 %v6305_v39, %v6304_v21  ;;  %v5800_v21 = vperm.slane %v5425_v10, %v10781_v49  ;;  %v15220_v63 = vld [vmem:[#allocation45_spill] sm:$0xff]  ;;  %v5245_v39 = vmul.f32 %v15221_v56, %v12639_v13 }
 0x975   : > { %5550 = vperm.xlu2 %7492, %v5197_v18   ;;  %v6313_v18 = vsel %vm15212_vm5, %v6180_v30, 0.0  ;;  %v1832_v10 = vld [vmem:[%s15202_s18 + $0x40] sm:$0xff]  ;;  %v5810_v56 = vperm.slane %v12596_v44, %v10840_v29 }
 0x976   : > { %v12618_v50 = vpop.permute.xlu1 %5460  ;;  %v5416_v62 = vpop.permute.xlu0 %5415 }
 0x977   : > { %v5794_v40 = vperm.slane %v5416_v62, %v10753_v46  ;;  %v6177_v35 = vmul.f32 %v5416_v62, %v1827_v60  ;;  %v5431_v4 = vpop.permute.xlu2 %5430  ;;  %v5230_v60 = vmul.f32 %v15222_v16, %v12594_v54 }
 0x979   : > { %v5795_v3 = vsel %vm3676_vm4, %v5794_v40, %v5793_v25  ;;  %v6307_v2 = vsel %vm15212_vm5, %v6177_v35, 0.0  ;;  %v5234_v25 = vmul.f32 %v15220_v63, %v12594_v54  ;;  %v6182_v35 = vmul.f32 %v5431_v4, %v1832_v10  ;;  %v15231_v10 = vld [vmem:[#allocation30_spill] sm:$0xff] }
 0x97a   : > { %v6308_v55 = vadd.f32 %v6307_v2, %v6306_v0  ;;  %v5797_v32 = vsel %vm15215_vm6, %v5796_v33, %v5795_v3  ;;  %v1831_v0 = vld [vmem:[%s15202_s18 + $0x38] sm:$0xff]  ;;  %vm15223_vm6 = vmmov %vm15212_vm5 }
 0x97b   : > { %v6317_v27 = vsel %vm15226_vm13, %v6182_v35, 0.0  ;;  %v15233_v35 = vld [vmem:[#allocation57_spill] sm:$0xff]  ;;  %vm15234_vm13 = vcmask 786112  }
 0x97c   : > { %5613 = vperm.xlu1 %7493, %v5218_v42   ;;  %5646 = vperm.xlu0 %7494, %v5229_v31   ;;  %v6310_v19 = vadd.f32 %v6309_v26, %v6308_v55  ;;  %v5804_v55 = vperm.slane %v5431_v4, %v10796_v5  ;;  %v15224_v31 = vld [vmem:[#allocation112_spill] sm:$0xff]  ;;  %v15225_v26 = vld [vmem:[#allocation130_spill] sm:$0xff]  ;;  %v1834_v4 = vld [vmem:[%s15202_s18 + $0x50] sm:$0xff] }
 0x97d   : > { %5601 = vperm.xlu2 %7492, %v5214_v48   ;;  %v5231_v53 = vmul.f32 %v15225_v26, %v12594_v54 }
 0x97e   : > { %v12641_v17 = vpop.permute.xlu1 %5469  ;;  %v5422_v8 = vpop.permute.xlu0 %5421 }
 0x97f   : > { %v5798_v52 = vperm.slane %v5422_v8, %v10765_v51  ;;  %v6179_v57 = vmul.f32 %v5422_v8, %v1829_v38  ;;  %v5437_v1 = vpop.permute.xlu2 %5436  ;;  %v15227_v38 = vld [vmem:[#allocation44_spill] sm:$0xff]  ;;  %v1833_v8 = vld [vmem:[%s15202_s18 + $0x48] sm:$0xff] }
 0x981   : > { %v5799_v15 = vsel %vm15218_vm1, %v5798_v52, %v5797_v32  ;;  %v6311_v28 = vsel %vm15219_vm10, %v6179_v57, 0.0  ;;  %v5219_v32 = vmul.f32 %v15224_v31, %v12549_v12  ;;  %v1835_v52 = vld [vmem:[%s15202_s18 + $0x58] sm:$0xff]  ;;  %vm15228_vm1 = vcmask 654912   ;;  %vm15229_vm10 = vmmov %vm15212_vm5 }
 0x982   : > { %v6312_v23 = vadd.f32 %v6311_v28, %v6310_v19  ;;  %v5801_v6 = vsel %vm3688_vm7, %v5800_v21, %v5799_v15  ;;  %v5246_v19 = vmul.f32 %v15227_v38, %v12639_v13  ;;  %v6184_v15 = vmul.f32 %v5437_v1, %v1834_v4 }
 0x983   : > { %vm15230_vm5 = vcmask 720512  }
 0x984   : > { %5661 = vperm.xlu1 %7493, %v5234_v25   ;;  %5694 = vperm.xlu0 %7494, %v5245_v39   ;;  %v6314_v62 = vadd.f32 %v6313_v18, %v6312_v23  ;;  %v5808_v25 = vperm.slane %v5437_v1, %v10831_v14  ;;  %v6185_v39 = vmul.f32 %v12596_v44, %v1835_v52  ;;  %v6321_v1 = vsel %vm15223_vm6, %v6184_v15, 0.0 }
 0x985   : > { %5649 = vperm.xlu2 %7492, %v5230_v60  }
 0x986   : > { %v12661_v22 = vpop.permute.xlu1 %5478  ;;  %v5428_v40 = vpop.permute.xlu0 %5427 }
 0x987   : > { %v5802_v33 = vperm.slane %v5428_v40, %v10787_v9  ;;  %v6181_v3 = vmul.f32 %v5428_v40, %v1831_v0  ;;  %v5446_v2 = vpop.permute.xlu2 %5445  ;;  %v5235_v0 = vmul.f32 %v15231_v10, %v12594_v54 }
 0x988   : > { %v5814_v38 = vperm.slane %v5446_v2, %v10884_v47 }
 0x989   : > { %v5803_v59 = vsel %vm3692_vm8, %v5802_v33, %v5801_v6  ;;  %v6315_v42 = vsel %vm15223_vm6, %v6181_v3, 0.0  ;;  %v5261_v33 = vmul.f32 %v15233_v35, %v12564_v45  ;;  %v1837_v3 = vld [vmem:[%s15202_s18 + $0x68] sm:$0xff] }
 0x98a   : > { %v6316_v7 = vadd.f32 %v6315_v42, %v6314_v62  ;;  %v5805_v48 = vsel %vm3696_vm9, %v5804_v55, %v5803_v59  ;;  %v15232_v62 = vld [vmem:[#allocation20_spill] sm:$0xff]  ;;  %v1836_v59 = vld [vmem:[%s15202_s18 + $0x60] sm:$0xff]  ;;  %v6187_v26 = vmul.f32 %v5446_v2, %v1837_v3 }
 0x98b   : > { %v5216_v40 = vmul.f32 %v15232_v62, %v12549_v12  ;;  %v1839_v2 = vld [vmem:[%s15202_s18 + $0x78] sm:$0xff] }
 0x98c   : > { %5616 = vperm.xlu1 %7493, %v5219_v32   ;;  %5652 = vperm.xlu0 %7494, %v5231_v53   ;;  %v6318_v30 = vadd.f32 %v6317_v27, %v6316_v7 }
 0x98d   : > { %5697 = vperm.xlu2 %7492, %v5246_v19  }
 0x98e   : > { %v12684_v57 = vpop.permute.xlu1 %5487  ;;  %v5434_v21 = vpop.permute.xlu0 %5433 }
 0x98f   : > { %v5806_v28 = vperm.slane %v5434_v21, %v10819_v43  ;;  %v6183_v23 = vmul.f32 %v5434_v21, %v1833_v8  ;;  %v5452_v63 = vpop.permute.xlu2 %5451  ;;  %v15239_v21 = vld [vmem:[#allocation24_spill] sm:$0xff] }
 0x990   : > { %v5232_v15 = vmul.f32 %v15239_v21, %v12594_v54 }
 0x991   : > { %v5807_v6 = vsel %vm15228_vm1, %v5806_v28, %v5805_v48  ;;  %v6319_v18 = vsel %vm15229_vm10, %v6183_v23, 0.0  ;;  %vm15235_vm1 = vmmov %vm15223_vm6  ;;  %vm15236_vm10 = vcmask 851712  }
 0x992   : > { %v5809_v16 = vsel %vm15230_vm5, %v5808_v25, %v5807_v6  ;;  %v6320_v60 = vadd.f32 %v6319_v18, %v6318_v30  ;;  %v6323_v42 = vsel %vm15235_vm1, %v6185_v39, 0.0  ;;  %vm15237_vm5 = vmmov %vm15235_vm1  ;;  %v15238_v30 = vld [vmem:[#allocation118_spill] sm:$0xff]  ;;  %v1838_v39 = vld [vmem:[%s15202_s18 + $0x70] sm:$0xff] }
 0x993   : > { %v5811_v44 = vsel %vm15234_vm13, %v5810_v56, %v5809_v16  ;;  %v5220_v52 = vmul.f32 %v15238_v30, %v12549_v12  ;;  %vm15240_vm6 = vmmov %vm15235_vm1  ;;  %v15241_v25 = vld [vmem:[#allocation46_spill] sm:$0xff] }
 0x994   : > { %v6322_v55 = vadd.f32 %v6321_v1, %v6320_v60  ;;  %5664 = vperm.xlu1 %7493, %v5235_v0   ;;  %5607 = vperm.xlu0 %7494, %v5216_v40   ;;  %v6327_v23 = vsel %vm15240_vm6, %v6187_v26, 0.0  ;;  %v5247_v56 = vmul.f32 %v15241_v25, %v12639_v13  ;;  %v6189_v60 = vmul.f32 %v5452_v63, %v1839_v2  ;;  %vm15242_vm13 = vmmov %vm15235_vm1 }
 0x995   : > { %5742 = vperm.xlu2 %7492, %v5261_v33   ;;  %v5818_v40 = vperm.slane %v5452_v63, %v15068_v11  ;;  %v1841_v33 = vld [vmem:[%s15202_s18 + $0x88] sm:$0xff]  ;;  %vm15250_vm6 = vmmov %vm15235_vm1 }
 0x996   : > { %v12709_v7 = vpop.permute.xlu1 %5496  ;;  %v5443_v31 = vpop.permute.xlu0 %5442  ;;  %v6324_v32 = vadd.f32 %v6323_v42, %v6322_v55  ;;  %v15243_v55 = vld [vmem:[#allocation106_spill] sm:$0xff]  ;;  %v15244_v42 = vld [vmem:[#allocation123_spill] sm:$0xff]  ;;  %v6331_v63 = vsel %vm15235_vm1, %v6189_v60, 0.0 }
 0x997   : > { %v5812_v53 = vperm.slane %v5443_v31, %v10847_v34  ;;  %v6186_v48 = vmul.f32 %v5443_v31, %v1836_v59  ;;  %v5458_v27 = vpop.permute.xlu2 %5457  ;;  %v5236_v59 = vmul.f32 %v15243_v55, %v12594_v54  ;;  %v5248_v31 = vmul.f32 %v15244_v42, %v12639_v13  ;;  %v15249_v60 = vld [vmem:[#allocation67_spill] sm:$0xff] }
 0x999   : > { %v5813_v19 = vsel %vm15236_vm10, %v5812_v53, %v5811_v44  ;;  %v6325_v4 = vsel %vm15237_vm5, %v6186_v48, 0.0  ;;  %v1842_v53 = vld [vmem:[%s15202_s18 + $0x90] sm:$0xff]  ;;  %vm15246_vm10 = vmmov %vm15235_vm1 }
 0x99a   : > { %v6326_v8 = vadd.f32 %v6325_v4, %v6324_v32  ;;  %v5815_v28 = vsel %vm3716_vm14, %v5814_v38, %v5813_v19  ;;  %v15245_v32 = vld [vmem:[#allocation53_spill] sm:$0xff]  ;;  %v6191_v19 = vmul.f32 %v5458_v27, %v1841_v33  ;;  %v6192_v30 = vmul.f32 %v12618_v50, %v1842_v53  ;;  %vm15247_vm5 = vmmov %vm15235_vm1 }
 0x99b   : > { %v5263_v26 = vmul.f32 %v15245_v32, %v12564_v45  ;;  %v1840_v38 = vld [vmem:[%s15202_s18 + $0x80] sm:$0xff]  ;;  %v5829_v53 = vperm.slane %v12641_v17, %v10765_v51 }
 0x99c   : > { %5619 = vperm.xlu1 %7493, %v5220_v52   ;;  %5655 = vperm.xlu0 %7494, %v5232_v15   ;;  %v6328_v6 = vadd.f32 %v6327_v23, %v6326_v8  ;;  %v5821_v52 = vperm.slane %v5458_v27, %v10735_v24  ;;  %v5823_v23 = vperm.slane %v12618_v50, %v10738_v36  ;;  %v6340_v25 = vsel %vm15246_vm10, %v6191_v19, 0.0  ;;  %vm15256_vm10 = vmmov %vm15247_vm5 }
 0x99d   : > { %5700 = vperm.xlu2 %7492, %v5247_v56   ;;  %v5264_v27 = vmul.f32 %v15249_v60, %v12564_v45 }
 0x99e   : > { %v12729_v18 = vpop.permute.xlu1 %5505  ;;  %v5449_v16 = vpop.permute.xlu0 %5448 }
 0x99f   : > { %v5816_v10 = vperm.slane %v5449_v16, %v15064_v41  ;;  %v6188_v0 = vmul.f32 %v5449_v16, %v1838_v39  ;;  %v5467_v62 = vpop.permute.xlu2 %5466 }
 0x9a1   : > { %v5817_v1 = vsel %vm3720_vm15, %v5816_v10, %v5815_v28  ;;  %v6329_v35 = vsel %vm15242_vm13, %v6188_v0, 0.0  ;;  %v6342_v0 = vsel %vm15250_vm6, %v6192_v30, 0.0  ;;  %vm15252_vm13 = vmmov %vm15235_vm1  ;;  %vm15253_vm1 = vcmask 326912  }
 0x9a2   : > { %v12739_v44 = vsel %vm3724_vm0, %v5818_v40, %v5817_v1  ;;  %v6330_v3 = vadd.f32 %v6329_v35, %v6328_v6  ;;  %v15248_v6 = vld [vmem:[#allocation116_spill] sm:$0xff]  ;;  %v15251_v40 = vld [vmem:[#allocation122_spill] sm:$0xff]  ;;  %v1844_v1 = vld [vmem:[%s15202_s18 + $0xa0] sm:$0xff] }
 0x9a3   : > { %v5221_v16 = vmul.f32 %v15248_v6, %v12549_v12  ;;  %v5202_v50 = vmul.f32 %v15251_v40, %v12534_v61  ;;  %v1843_v35 = vld [vmem:[%s15202_s18 + $0x98] sm:$0xff]  ;;  %v6194_v42 = vmul.f32 %v5467_v62, %v1844_v1 }
 0x9a4   : > { %v12751_v48 = vadd.f32 %v6331_v63, %v6330_v3  ;;  %5667 = vperm.xlu1 %7493, %v5236_v59   ;;  %5703 = vperm.xlu0 %7494, %v5248_v31   ;;  %v1845_v3 = vld [vmem:[%s15202_s18 + $0xa8] sm:$0xff] }
 0x9a5   : > { %5748 = vperm.xlu2 %7492, %v5263_v26   ;;  %v5827_v26 = vperm.slane %v5467_v62, %v10759_v20  ;;  %v6346_v62 = vsel %vm15256_vm10, %v6194_v42, 0.0 }
 0x9a6   : > { %v12756_v4 = vpop.permute.xlu1 %5514  ;;  %v5455_v8 = vpop.permute.xlu0 %5454 }
 0x9a7   : > { %v5820_v21 = vperm.slane %v5455_v8, %v10728_v58  ;;  %v6190_v15 = vmul.f32 %v5455_v8, %v1840_v38  ;;  %v5476_v28 = vpop.permute.xlu2 %5475  ;;  %v6195_v38 = vmul.f32 %v12641_v17, %v1845_v3 }
 0x9a8   : > { %v5833_v3 = vperm.slane %v5476_v28, %v10787_v9 }
 0x9a9   : > { %v5822_v56 = vsel %vm3668_vm2, %v5821_v52, %v5820_v21  ;;  %v6339_v2 = vsel %vm15247_vm5, %v6190_v15, 0.0  ;;  %v15254_v21 = vld [vmem:[#allocation51_spill] sm:$0xff]  ;;  %vm15258_vm5 = vcmask 392512   ;;  %v6348_v60 = vsel %vm15250_vm6, %v6195_v38, 0.0 }
 0x9aa   : > { %v6341_v39 = vadd.f32 %v6340_v25, %v6339_v2  ;;  %v5824_v10 = vsel %vm3672_vm3, %v5823_v23, %v5822_v56  ;;  %v5237_v15 = vmul.f32 %v15254_v21, %v12594_v54  ;;  %v15255_v23 = vld [vmem:[#allocation50_spill] sm:$0xff]  ;;  %v15257_v56 = vld [vmem:[#allocation193_spill] sm:$0xff] }
 0x9ab   : > { %v5249_v25 = vmul.f32 %v15255_v23, %v12639_v13  ;;  %v5187_v2 = vmul.f32 %v15257_v56, %v12522_v37  ;;  %v1850_v23 = vld [vmem:[%s15202_s18 + $0xd0] sm:$0xff] }
 0x9ac   : > { %5622 = vperm.xlu1 %7493, %v5221_v16   ;;  %5751 = vperm.xlu0 %7494, %v5264_v27   ;;  %v6343_v33 = vadd.f32 %v6342_v0, %v6341_v39  ;;  %v1847_v39 = vld [vmem:[%s15202_s18 + $0xb8] sm:$0xff]  ;;  %v1846_v16 = vld [vmem:[%s15202_s18 + $0xb0] sm:$0xff]  ;;  %v1848_v27 = vld [vmem:[%s15202_s18 + $0xc0] sm:$0xff] }
 0x9ad   : > { %5565 = vperm.xlu2 %7492, %v5202_v50   ;;  %v6197_v50 = vmul.f32 %v5476_v28, %v1847_v39  ;;  %v6198_v42 = vmul.f32 %v12661_v22, %v1848_v27  ;;  %v15261_v28 = vld [vmem:[#allocation74_spill] sm:$0xff]  ;;  %v1851_v39 = vld [vmem:[%s15202_s18 + $0xd8] sm:$0xff] }
 0x9ae   : > { %v12783_v55 = vpop.permute.xlu1 %5553  ;;  %v5464_v59 = vpop.permute.xlu0 %5463  ;;  %v15265_v27 = vld [vmem:[#allocation52_spill] sm:$0xff] }
 0x9af   : > { %v5825_v31 = vperm.slane %v5464_v59, %v10753_v46  ;;  %v6193_v63 = vmul.f32 %v5464_v59, %v1843_v35  ;;  %v12786_v32 = vpop.permute.xlu2 %5484  ;;  %v5835_v59 = vperm.slane %v12661_v22, %v10796_v5  ;;  %v15263_v22 = vld [vmem:[#allocation192_spill] sm:$0xff] }
 0x9b0   : > { %v5203_v21 = vmul.f32 %v15263_v22, %v12534_v61 }
 0x9b1   : > { %v5826_v19 = vsel %vm3676_vm4, %v5825_v31, %v5824_v10  ;;  %v6344_v8 = vsel %vm15252_vm13, %v6193_v63, 0.0  ;;  %vm15259_vm13 = vmmov %vm15250_vm6 }
 0x9b2   : > { %v5828_v30 = vsel %vm15253_vm1, %v5827_v26, %v5826_v19  ;;  %v6345_v52 = vadd.f32 %v6344_v8, %v6343_v33  ;;  %v1857_v26 = vld [vmem:[%s15202_s18 + $0x108] sm:$0xff]  ;;  %v15260_v19 = vld [vmem:[#allocation28_spill] sm:$0xff]  ;;  %vm15262_vm1 = vmmov %vm15250_vm6  ;;  %vm15268_vm6 = vcmask 654912  }
 0x9b3   : > { %v5830_v17 = vsel %vm15258_vm5, %v5829_v53, %v5828_v30  ;;  %v5222_v8 = vmul.f32 %v15260_v19, %v12549_v12  ;;  %v5265_v30 = vmul.f32 %v15261_v28, %v12564_v45  ;;  %vm15264_vm10 = vmmov %vm15262_vm1 }
 0x9b4   : > { %v6347_v6 = vadd.f32 %v6346_v62, %v6345_v52  ;;  %5670 = vperm.xlu1 %7493, %v5237_v15   ;;  %5706 = vperm.xlu0 %7494, %v5249_v25   ;;  %v6352_v52 = vsel %vm15262_vm1, %v6197_v50, 0.0  ;;  %v1849_v62 = vld [vmem:[%s15202_s18 + $0xc8] sm:$0xff]  ;;  %v6354_v56 = vsel %vm15264_vm10, %v6198_v42, 0.0  ;;  %vm15267_vm5 = vmmov %vm15262_vm1 }
 0x9b5   : > { %5520 = vperm.xlu2 %7492, %v5187_v2   ;;  %v6207_v2 = vmul.f32 %v12729_v18, %v1857_v26  ;;  %vm15271_vm10 = vmmov %vm15267_vm5 }
 0x9b6   : > { %v12813_v10 = vpop.permute.xlu1 %5556  ;;  %v5473_v0 = vpop.permute.xlu0 %5472  ;;  %v6349_v40 = vadd.f32 %v6348_v60, %v6347_v6  ;;  %vm15272_vm12 = vmmov %vm15267_vm5 }
 0x9b7   : > { %v5831_v1 = vperm.slane %v5473_v0, %v10781_v49  ;;  %v6196_v35 = vmul.f32 %v5473_v0, %v1846_v16  ;;  %v12816_v33 = vpop.permute.xlu2 %5493  ;;  %v5238_v0 = vmul.f32 %v15265_v27, %v12594_v54  ;;  %v6377_v19 = vsel %vm15267_vm5, %v6207_v2, 0.0 }
 0x9b8   : > { %vm15274_vm5 = vcmask 786112  }
 0x9b9   : > { %v5832_v31 = vsel %vm3688_vm7, %v5831_v1, %v5830_v17  ;;  %v6350_v63 = vsel %vm15259_vm13, %v6196_v35, 0.0  ;;  %v1856_v17 = vld [vmem:[%s15202_s18 + $0x100] sm:$0xff]  ;;  %v5841_v1 = vperm.slane %v12684_v57, %v10840_v29  ;;  %v6200_v35 = vmul.f32 %v12786_v32, %v1850_v23  ;;  %vm15269_vm13 = vmmov %vm15262_vm1 }
 0x9ba   : > { %v5834_v53 = vsel %vm3692_vm8, %v5833_v3, %v5832_v31  ;;  %v6351_v38 = vadd.f32 %v6350_v63, %v6349_v40  ;;  %v15266_v40 = vld [vmem:[#allocation145_spill] sm:$0xff]  ;;  %v5852_v31 = vperm.slane %v12729_v18, %v10735_v24  ;;  %v5839_v63 = vperm.slane %v12786_v32, %v10831_v14 }
 0x9bb   : > { %v5836_v15 = vsel %vm3696_vm9, %v5835_v59, %v5834_v53  ;;  %v5250_v50 = vmul.f32 %v15266_v40, %v12639_v13  ;;  %vm15270_vm1 = vcmask 720512   ;;  %v6358_v32 = vsel %vm15272_vm12, %v6200_v35, 0.0 }
 0x9bc   : > { %v6353_v25 = vadd.f32 %v6352_v52, %v6351_v38  ;;  %5625 = vperm.xlu1 %7493, %v5222_v8   ;;  %5754 = vperm.xlu0 %7494, %v5265_v30   ;;  %v6201_v38 = vmul.f32 %v12684_v57, %v1851_v39  ;;  %v15273_v57 = vld [vmem:[#allocation169_spill] sm:$0xff]  ;;  %v5845_v35 = vperm.slane %v12816_v33, %v10884_v47  ;;  %vm15276_vm12 = vcmask 851712  }
 0x9bd   : > { %5568 = vperm.xlu2 %7492, %v5203_v21   ;;  %v5188_v23 = vmul.f32 %v15273_v57, %v12522_v37 }
 0x9be   : > { %v12850_v6 = vpop.permute.xlu1 %5604  ;;  %v5482_v16 = vpop.permute.xlu0 %5481  ;;  %v6355_v60 = vadd.f32 %v6354_v56, %v6353_v25  ;;  %v1852_v56 = vld [vmem:[%s15202_s18 + $0xe0] sm:$0xff] }
 0x9bf   : > { %v5837_v3 = vperm.slane %v5482_v16, %v10819_v43  ;;  %v6199_v59 = vmul.f32 %v5482_v16, %v1849_v62  ;;  %v5503_v42 = vpop.permute.xlu2 %5502 }
 0x9c0   : > { %v5851_v26 = vperm.slane %v5503_v42, %v10728_v58  ;;  %v6206_v53 = vmul.f32 %v5503_v42, %v1856_v17  ;;  %v1854_v17 = vld [vmem:[%s15202_s18 + $0xf0] sm:$0xff] }
 0x9c1   : > { %v5838_v8 = vsel %vm15268_vm6, %v5837_v3, %v5836_v15  ;;  %v6356_v28 = vsel %vm15269_vm13, %v6199_v59, 0.0  ;;  %v1853_v15 = vld [vmem:[%s15202_s18 + $0xe8] sm:$0xff]  ;;  %vm15275_vm6 = vmmov %vm15271_vm10  ;;  %v5847_v3 = vperm.slane %v12709_v7, %v15064_v41  ;;  %v6204_v59 = vmul.f32 %v12709_v7, %v1854_v17 }
 0x9c2   : > { %v5840_v30 = vsel %vm15270_vm1, %v5839_v63, %v5838_v8  ;;  %v6357_v52 = vadd.f32 %v6356_v28, %v6355_v60  ;;  %v12871_v22 = vsel %vm3668_vm2, %v5852_v31, %v5851_v26  ;;  %v6376_v18 = vsel %vm15271_vm10, %v6206_v53, 0.0  ;;  %vm15277_vm13 = vmmov %vm15275_vm6  ;;  %v15278_v53 = vld [vmem:[#allocation34_spill] sm:$0xff] }
 0x9c3   : > { %v12875_v21 = vadd.f32 %v6377_v19, %v6376_v18  ;;  %v5842_v25 = vsel %vm15274_vm5, %v5841_v1, %v5840_v30  ;;  %v6360_v2 = vsel %vm15275_vm6, %v6201_v38, 0.0  ;;  %v6203_v27 = vmul.f32 %v12816_v33, %v1853_v15  ;;  %v1873_v1 = vld [vmem:[%s15202_s18 + $0x188] sm:$0xff]  ;;  %v15279_v19 = vld [vmem:[#allocation59_spill] sm:$0xff]  ;;  %vm15280_vm1 = vmmov %vm15275_vm6 }
 0x9c4   : > { %v6359_v62 = vadd.f32 %v6358_v32, %v6357_v52  ;;  %5673 = vperm.xlu1 %7493, %v5238_v0   ;;  %5709 = vperm.xlu0 %7494, %v5250_v50   ;;  %v5223_v38 = vmul.f32 %v15278_v53, %v12549_v12  ;;  %v5266_v8 = vmul.f32 %v15279_v19, %v12564_v45  ;;  %v15281_v30 = vld [vmem:[#allocation95_spill] sm:$0xff]  ;;  %v1855_v32 = vld [vmem:[%s15202_s18 + $0xf8] sm:$0xff]  ;;  %vm15282_vm10 = vmmov %vm15280_vm1 }
 0x9c5   : > { %5523 = vperm.xlu2 %7492, %v5188_v23   ;;  %v6223_v33 = vmul.f32 %v12783_v55, %v1873_v1  ;;  %v6364_v28 = vsel %vm15280_vm1, %v6203_v27, 0.0  ;;  %v5204_v7 = vmul.f32 %v15281_v30, %v12534_v61  ;;  %v6366_v57 = vsel %vm15282_vm10, %v6204_v59, 0.0  ;;  %v1874_v23 = vld [vmem:[%s15202_s18 + $0x190] sm:$0xff]  ;;  %v1875_v15 = vld [vmem:[%s15202_s18 + $0x198] sm:$0xff]  ;;  %v15283_v17 = vld [vmem:[#allocation22_spill] sm:$0xff] }
 0x9c6   : > { %v5560_v39 = vpop.permute.xlu1 %5559  ;;  %v5491_v16 = vpop.permute.xlu0 %5490  ;;  %v6361_v60 = vadd.f32 %v6360_v2, %v6359_v62  ;;  %vm15285_vm5 = vmmov %vm15280_vm1  ;;  %v5885_v59 = vperm.slane %v12813_v10, %v10738_v36 }
 0x9c7   : > { %v5843_v40 = vperm.slane %v5491_v16, %v10847_v34  ;;  %v6202_v0 = vmul.f32 %v5491_v16, %v1852_v56  ;;  %v12892_v50 = vpop.permute.xlu2 %5511  ;;  %v5239_v16 = vmul.f32 %v15283_v17, %v12594_v54  ;;  %v6225_v53 = vmul.f32 %v5560_v39, %v1875_v15  ;;  %vm15286_vm6 = vmmov %vm15280_vm1 }
 0x9c8   : > { %vm15290_vm10 = vmmov %vm15280_vm1 }
 0x9c9   : > { %v5844_v42 = vsel %vm15276_vm12, %v5843_v40, %v5842_v25  ;;  %v6362_v31 = vsel %vm15277_vm13, %v6202_v0, 0.0  ;;  %v1872_v25 = vld [vmem:[%s15202_s18 + $0x180] sm:$0xff]  ;;  %v5883_v40 = vperm.slane %v12783_v55, %v10735_v24  ;;  %v6414_v0 = vsel %vm15285_vm5, %v6223_v33, 0.0  ;;  %vm15288_vm13 = vmmov %vm15280_vm1 }
 0x9ca   : > { %v5846_v63 = vsel %vm3716_vm14, %v5845_v35, %v5844_v42  ;;  %v6363_v26 = vadd.f32 %v6362_v31, %v6361_v60  ;;  %v15284_v60 = vld [vmem:[#allocation39_spill] sm:$0xff]  ;;  %v6224_v42 = vmul.f32 %v12813_v10, %v1874_v23  ;;  %vm15287_vm12 = vcmask 1041409  }
 0x9cb   : > { %v5848_v52 = vsel %vm3720_vm15, %v5847_v3, %v5846_v63  ;;  %v5251_v27 = vmul.f32 %v15284_v60, %v12639_v13  ;;  %v1858_v23 = vld [vmem:[%s15202_s18 + $0x110] sm:$0xff]  ;;  %vm15292_vm5 = vcmask 326912  }
 0x9cc   : > { %v6365_v18 = vadd.f32 %v6364_v28, %v6363_v26  ;;  %5628 = vperm.xlu1 %7493, %v5223_v38   ;;  %5757 = vperm.xlu0 %7494, %v5266_v8   ;;  %v5887_v26 = vperm.slane %v5560_v39, %v10753_v46 }
 0x9cd   : > { %5571 = vperm.xlu2 %7492, %v5204_v7   ;;  %v15289_v7 = vld [vmem:[#allocation177_spill] sm:$0xff] }
 0x9ce   : > { %v12927_v62 = vpop.permute.xlu1 %5745  ;;  %v5500_v56 = vpop.permute.xlu0 %5499  ;;  %v6367_v2 = vadd.f32 %v6366_v57, %v6365_v18  ;;  %v5189_v39 = vmul.f32 %v15289_v7, %v12522_v37 }
 0x9cf   : > { %v5849_v1 = vperm.slane %v5500_v56, %v15068_v11  ;;  %v6205_v35 = vmul.f32 %v5500_v56, %v1855_v32  ;;  %v5551_v3 = vpop.permute.xlu2 %5550  ;;  %v1859_v32 = vld [vmem:[%s15202_s18 + $0x118] sm:$0xff] }
 0x9d0   : > { %v5882_v31 = vperm.slane %v5551_v3, %v10728_v58  ;;  %v6222_v63 = vmul.f32 %v5551_v3, %v1872_v25  ;;  %v6418_v25 = vsel %vm15290_vm10, %v6225_v53, 0.0  ;;  %v15291_v3 = vld [vmem:[#allocation99_spill] sm:$0xff]  ;;  %vm15298_vm10 = vmmov %vm15280_vm1 }
 0x9d1   : > { %v5850_v38 = vsel %vm3724_vm0, %v5849_v1, %v5848_v52  ;;  %v6368_v55 = vsel %vm15286_vm6, %v6205_v35, 0.0  ;;  %v6416_v52 = vsel %vm15280_vm1, %v6224_v42, 0.0  ;;  %v6209_v1 = vmul.f32 %v12892_v50, %v1859_v32  ;;  %vm15293_vm6 = vmmov %vm15280_vm1 }
 0x9d2   : > { %v12946_v19 = vsel %vm15287_vm12, %v5850_v38, %v12739_v44  ;;  %v12948_v8 = vadd.f32 %v6368_v55, %v6367_v2  ;;  %v5884_v33 = vsel %vm3668_vm2, %v5883_v40, %v5882_v31  ;;  %v6413_v10 = vsel %vm15288_vm13, %v6222_v63, 0.0  ;;  %v1876_v44 = vld [vmem:[%s15202_s18 + $0x1a0] sm:$0xff]  ;;  %vm15294_vm12 = vmmov %vm15280_vm1  ;;  %v15295_v55 = vld [vmem:[#allocation91_spill] sm:$0xff] }
 0x9d3   : > { %v5886_v28 = vsel %vm3672_vm3, %v5885_v59, %v5884_v33  ;;  %v6415_v30 = vadd.f32 %v6414_v0, %v6413_v10  ;;  %v1860_v40 = vld [vmem:[%s15202_s18 + $0x120] sm:$0xff]  ;;  %v5856_v0 = vperm.slane %v12892_v50, %v10753_v46  ;;  %v5224_v59 = vmul.f32 %v15291_v3, %v12549_v12  ;;  %vm15297_vm13 = vmmov %vm15292_vm5  ;;  %v1890_v3 = vld [vmem:[%s15202_s18 + $0x210] sm:$0xff] }
 0x9d4   : > { %5676 = vperm.xlu1 %7493, %v5239_v16   ;;  %5712 = vperm.xlu0 %7494, %v5251_v27   ;;  %v5888_v18 = vsel %vm3676_vm4, %v5887_v26, %v5886_v28  ;;  %v5858_v42 = vperm.slane %v12756_v4, %v10759_v20  ;;  %v5267_v33 = vmul.f32 %v15295_v55, %v12564_v45 }
 0x9d5   : > { %v6417_v57 = vadd.f32 %v6416_v52, %v6415_v30  ;;  %5526 = vperm.xlu2 %7492, %v5189_v39   ;;  %v6210_v10 = vmul.f32 %v12756_v4, %v1860_v40  ;;  %v15296_v30 = vld [vmem:[#allocation105_spill] sm:$0xff]  ;;  %v1861_v52 = vld [vmem:[%s15202_s18 + $0x128] sm:$0xff] }
 0x9d6   : > { %v5563_v15 = vpop.permute.xlu1 %5562  ;;  %v5509_v56 = vpop.permute.xlu0 %5508  ;;  %v5205_v7 = vmul.f32 %v15296_v30, %v12534_v61  ;;  %v15302_v40 = vld [vmem:[#allocation146_spill] sm:$0xff] }
 0x9d7   : > { %v5889_v2 = vperm.slane %v5563_v15, %v10759_v20  ;;  %v6226_v17 = vmul.f32 %v5563_v15, %v1876_v44  ;;  %v6419_v16 = vadd.f32 %v6418_v25, %v6417_v57  ;;  %v5854_v60 = vperm.slane %v5509_v56, %v10738_v36  ;;  %v5602_v27 = vpop.permute.xlu2 %5601 }
 0x9d8   : > { %v6208_v35 = vmul.f32 %v5509_v56, %v1858_v23 }
 0x9d9   : > { %v12980_v31 = vsel %vm15292_vm5, %v5889_v2, %v5888_v18  ;;  %v6420_v63 = vsel %vm15293_vm6, %v6226_v17, 0.0  ;;  %v5855_v26 = vsel %vm3672_vm3, %v5854_v60, %v12871_v22  ;;  %v6381_v22 = vsel %vm15280_vm1, %v6209_v1, 0.0  ;;  %vm15300_vm6 = vmmov %vm15280_vm1  ;;  %v1889_v2 = vld [vmem:[%s15202_s18 + $0x208] sm:$0xff]  ;;  %v15303_v1 = vld [vmem:[#allocation200_spill] sm:$0xff] }
 0x9da   : > { %v12985_v53 = vadd.f32 %v6420_v63, %v6419_v16  ;;  %v5857_v38 = vsel %vm3676_vm4, %v5856_v0, %v5855_v26  ;;  %v6379_v50 = vsel %vm15294_vm12, %v6208_v35, 0.0  ;;  %vm15299_vm5 = vcmask 392512   ;;  %v15301_v16 = vld [vmem:[#allocation29_spill] sm:$0xff]  ;;  %vm15304_vm12 = vmmov %vm15280_vm1 }
 0x9db   : > { %v6380_v28 = vadd.f32 %v6379_v50, %v12875_v21  ;;  %v5859_v39 = vsel %vm15297_vm13, %v5858_v42, %v5857_v38  ;;  %v6383_v21 = vsel %vm15298_vm10, %v6210_v10, 0.0  ;;  %v5240_v60 = vmul.f32 %v15301_v16, %v12594_v54  ;;  %vm15305_vm13 = vmmov %vm15280_vm1 }
 0x9dc   : > { %5631 = vperm.xlu1 %7493, %v5224_v59   ;;  %5760 = vperm.xlu0 %7494, %v5267_v33   ;;  %v5252_v0 = vmul.f32 %v15302_v40, %v12639_v13  ;;  %v5190_v35 = vmul.f32 %v15303_v1, %v12522_v37  ;;  %v1888_v59 = vld [vmem:[%s15202_s18 + $0x200] sm:$0xff]  ;;  %v6239_v42 = vmul.f32 %v5602_v27, %v1889_v2  ;;  %vm15310_vm10 = vmmov %vm15280_vm1 }
 0x9dd   : > { %v6382_v44 = vadd.f32 %v6381_v22, %v6380_v28  ;;  %5574 = vperm.xlu2 %7492, %v5205_v7   ;;  %v6240_v38 = vmul.f32 %v12850_v6, %v1890_v3  ;;  %v5914_v50 = vperm.slane %v5602_v27, %v10735_v24  ;;  %v5916_v28 = vperm.slane %v12850_v6, %v10738_v36  ;;  %v1905_v22 = vld [vmem:[%s15202_s18 + $0x288] sm:$0xff]  ;;  %v15306_v27 = vld [vmem:[#allocation120_spill] sm:$0xff]  ;;  %v1904_v2 = vld [vmem:[%s15202_s18 + $0x280] sm:$0xff] }
 0x9de   : > { %v13000_v18 = vpop.permute.xlu1 %5610  ;;  %v5518_v4 = vpop.permute.xlu0 %5517  ;;  %v6451_v30 = vsel %vm15304_vm12, %v6239_v42, 0.0  ;;  %v1936_v40 = vld [vmem:[%s15202_s18 + $0x380] sm:$0xff]  ;;  %vm15314_vm12 = vmmov %vm15280_vm1 }
 0x9df   : > { %v5860_v32 = vperm.slane %v5518_v4, %v10765_v51  ;;  %v6211_v57 = vmul.f32 %v5518_v4, %v1861_v52  ;;  %v5650_v23 = vpop.permute.xlu2 %5649  ;;  %v6384_v25 = vadd.f32 %v6383_v21, %v6382_v44  ;;  %v5225_v44 = vmul.f32 %v15306_v27, %v12549_v12  ;;  %v15307_v4 = vld [vmem:[#allocation80_spill] sm:$0xff] }
 0x9e0   : > { %v5268_v21 = vmul.f32 %v15307_v4, %v12564_v45  ;;  %v6453_v6 = vsel %vm15280_vm1, %v6240_v38, 0.0  ;;  %v5945_v3 = vperm.slane %v5650_v23, %v10735_v24  ;;  %v6007_v38 = vperm.slane %v12927_v62, %v10735_v24 }
 0x9e1   : > { %v13005_v15 = vsel %vm15299_vm5, %v5860_v32, %v5859_v39  ;;  %v6385_v56 = vsel %vm15300_vm6, %v6211_v57, 0.0  ;;  %v1937_v57 = vld [vmem:[%s15202_s18 + $0x388] sm:$0xff]  ;;  %vm15311_vm5 = vmmov %vm15280_vm1 }
 0x9e2   : > { %v13011_v17 = vadd.f32 %v6385_v56, %v6384_v25  ;;  %v15308_v25 = vld [vmem:[#allocation163_spill] sm:$0xff]  ;;  %vm15313_vm6 = vmmov %vm15280_vm1 }
 0x9e3   : > { %v5206_v56 = vmul.f32 %v15308_v25, %v12534_v61  ;;  %v1920_v25 = vld [vmem:[%s15202_s18 + $0x300] sm:$0xff] }
 0x9e4   : > { %5679 = vperm.xlu1 %7493, %v5240_v60   ;;  %5715 = vperm.xlu0 %7494, %v5252_v0   ;;  %v6255_v60 = vmul.f32 %v5650_v23, %v1905_v22  ;;  %v6287_v0 = vmul.f32 %v12927_v62, %v1937_v57  ;;  %v15312_v23 = vld [vmem:[#allocation55_spill] sm:$0xff]  ;;  %v1921_v62 = vld [vmem:[%s15202_s18 + $0x308] sm:$0xff] }
 0x9e5   : > { %5529 = vperm.xlu2 %7492, %v5190_v35   ;;  %v5253_v22 = vmul.f32 %v15312_v23, %v12639_v13  ;;  %v15320_v23 = vld [vmem:[#allocation125_spill] sm:$0xff] }
 0x9e6   : > { %v13025_v63 = vpop.permute.xlu1 %5658  ;;  %v5599_v26 = vpop.permute.xlu0 %5598 }
 0x9e7   : > { %v5913_v55 = vperm.slane %v5599_v26, %v10728_v58  ;;  %v6238_v33 = vmul.f32 %v5599_v26, %v1888_v59  ;;  %v5698_v10 = vpop.permute.xlu2 %5697 }
 0x9e9   : > { %v5915_v7 = vsel %vm3668_vm2, %v5914_v50, %v5913_v55  ;;  %v6450_v39 = vsel %vm15305_vm13, %v6238_v33, 0.0  ;;  %v15309_v33 = vld [vmem:[#allocation35_spill] sm:$0xff]  ;;  %vm15316_vm13 = vmmov %vm15280_vm1 }
 0x9ea   : > { %v6452_v52 = vadd.f32 %v6451_v30, %v6450_v39  ;;  %v13043_v32 = vsel %vm3672_vm3, %v5916_v28, %v5915_v7  ;;  %v5241_v28 = vmul.f32 %v15309_v33, %v12594_v54  ;;  %v6488_v30 = vsel %vm15310_vm10, %v6255_v60, 0.0  ;;  %vm15319_vm10 = vmmov %vm15280_vm1 }
 0x9ec   : > { %5634 = vperm.xlu1 %7493, %v5225_v44   ;;  %5763 = vperm.xlu0 %7494, %v5268_v21   ;;  %v13054_v16 = vadd.f32 %v6453_v6, %v6452_v52  ;;  %v6562_v52 = vsel %vm15313_vm6, %v6287_v0, 0.0  ;;  %v15315_v6 = vld [vmem:[#allocation174_spill] sm:$0xff]  ;;  %v5976_v0 = vperm.slane %v5698_v10, %v10735_v24  ;;  %vm15330_vm6 = vcmask 326912  }
 0x9ed   : > { %5577 = vperm.xlu2 %7492, %v5206_v56   ;;  %v5191_v57 = vmul.f32 %v15315_v6, %v12522_v37  ;;  %v6271_v56 = vmul.f32 %v5698_v10, %v1921_v62  ;;  %v1906_v62 = vld [vmem:[%s15202_s18 + $0x290] sm:$0xff] }
 0x9ee   : > { %v13060_v1 = vpop.permute.xlu1 %5613  ;;  %v5647_v35 = vpop.permute.xlu0 %5646 }
 0x9ef   : > { %v5944_v59 = vperm.slane %v5647_v35, %v10728_v58  ;;  %v6254_v42 = vmul.f32 %v5647_v35, %v1904_v2  ;;  %v5743_v26 = vpop.permute.xlu2 %5742  ;;  %v1922_v2 = vld [vmem:[%s15202_s18 + $0x310] sm:$0xff] }
 0x9f0   : > { %v6006_v50 = vperm.slane %v5743_v26, %v10728_v58  ;;  %v6286_v55 = vmul.f32 %v5743_v26, %v1936_v40 }
 0x9f1   : > { %v5946_v7 = vsel %vm3668_vm2, %v5945_v3, %v5944_v59  ;;  %v6487_v39 = vsel %vm15311_vm5, %v6254_v42, 0.0  ;;  %vm15323_vm5 = vmmov %vm15280_vm1 }
 0x9f2   : > { %v6489_v27 = vadd.f32 %v6488_v30, %v6487_v39  ;;  %v6008_v44 = vsel %vm3668_vm2, %v6007_v38, %v6006_v50  ;;  %v6561_v4 = vsel %vm15314_vm12, %v6286_v55, 0.0  ;;  %v6525_v38 = vsel %vm15316_vm13, %v6271_v56, 0.0  ;;  %v15317_v30 = vld [vmem:[#allocation127_spill] sm:$0xff]  ;;  %vm15332_vm13 = vmmov %vm15280_vm1 }
 0x9f3   : > { %v6563_v21 = vadd.f32 %v6562_v52, %v6561_v4  ;;  %v5226_v24 = vmul.f32 %v15317_v30, %v12549_v12  ;;  %v1938_v4 = vld [vmem:[%s15202_s18 + $0x390] sm:$0xff]  ;;  %vm15331_vm12 = vcmask 392512  }
 0x9f4   : > { %5682 = vperm.xlu1 %7493, %v5241_v28   ;;  %5718 = vperm.xlu0 %7494, %v5253_v22   ;;  %v5207_v22 = vmul.f32 %v15320_v23, %v12534_v61  ;;  %v15326_v23 = vld [vmem:[#allocation97_spill] sm:$0xff] }
 0x9f5   : > { %5532 = vperm.xlu2 %7492, %v5191_v57  }
 0x9f6   : > { %v13088_v60 = vpop.permute.xlu1 %5661  ;;  %v5695_v40 = vpop.permute.xlu0 %5694 }
 0x9f7   : > { %v5975_v35 = vperm.slane %v5695_v40, %v10728_v58  ;;  %v6270_v3 = vmul.f32 %v5695_v40, %v1920_v25  ;;  %v5701_v59 = vpop.permute.xlu2 %5700  ;;  %v15318_v58 = vld [vmem:[#allocation65_spill] sm:$0xff] }
 0x9f8   : > { %v5978_v42 = vperm.slane %v5701_v59, %v10738_v36  ;;  %v6272_v26 = vmul.f32 %v5701_v59, %v1922_v2  ;;  %v5269_v10 = vmul.f32 %v15318_v58, %v12564_v45  ;;  %v15322_v59 = vld [vmem:[#allocation115_spill] sm:$0xff] }
 0x9f9   : > { %v5977_v50 = vsel %vm3668_vm2, %v5976_v0, %v5975_v35  ;;  %v6524_v55 = vsel %vm15280_vm1, %v6270_v3, 0.0  ;;  %vm15321_vm2 = vmmov %vm15280_vm1  ;;  %v1894_v58 = vld [vmem:[%s15202_s18 + $0x230] sm:$0xff] }
 0x9fa   : > { %v6526_v33 = vadd.f32 %v6525_v38, %v6524_v55  ;;  %v13097_v28 = vsel %vm3672_vm3, %v5978_v42, %v5977_v50  ;;  %v6527_v39 = vsel %vm15319_vm10, %v6272_v26, 0.0  ;;  %v5242_v42 = vmul.f32 %v15322_v59, %v12594_v54  ;;  %v15324_v55 = vld [vmem:[#allocation132_spill] sm:$0xff]  ;;  %vm15333_vm10 = vmmov %vm15331_vm12 }
 0x9fb   : > { %v5922_v59 = vperm.slane %v13060_v1, %v10765_v51 }
 0x9fc   : > { %v13106_v52 = vadd.f32 %v6527_v39, %v6526_v33  ;;  %5637 = vperm.xlu1 %7493, %v5226_v24   ;;  %5766 = vperm.xlu0 %7494, %v5269_v10   ;;  %v5254_v33 = vmul.f32 %v15324_v55, %v12639_v13  ;;  %v1892_v24 = vld [vmem:[%s15202_s18 + $0x220] sm:$0xff] }
 0x9fd   : > { %5580 = vperm.xlu2 %7492, %v5207_v22   ;;  %v5227_v22 = vmul.f32 %v15326_v23, %v12549_v12  ;;  %v15334_v23 = vld [vmem:[#allocation38_spill] sm:$0xff] }
 0x9fe   : > { %v5617_v6 = vpop.permute.xlu1 %5616  ;;  %v5653_v57 = vpop.permute.xlu0 %5652 }
 0x9ff   : > { %v5947_v25 = vperm.slane %v5653_v57, %v10738_v36  ;;  %v6256_v56 = vmul.f32 %v5653_v57, %v1906_v62  ;;  %v5749_v2 = vpop.permute.xlu2 %5748  ;;  %v15327_v62 = vld [vmem:[#allocation72_spill] sm:$0xff]  ;;  %v15328_v57 = vld [vmem:[#allocation102_spill] sm:$0xff] }
 0xa00   : > { %v6009_v40 = vperm.slane %v5749_v2, %v10738_v36  ;;  %v6288_v0 = vmul.f32 %v5749_v2, %v1938_v4  ;;  %v5270_v4 = vmul.f32 %v15327_v62, %v12564_v45  ;;  %v6242_v2 = vmul.f32 %v13000_v18, %v1892_v24  ;;  %v1908_v24 = vld [vmem:[%s15202_s18 + $0x2a0] sm:$0xff] }
 0xa01   : > { %v13117_v35 = vsel %vm3672_vm3, %v5947_v25, %v5946_v7  ;;  %v6490_v3 = vsel %vm15321_vm2, %v6256_v56, 0.0  ;;  %v15325_v7 = vld [vmem:[#allocation194_spill] sm:$0xff]  ;;  %v5208_v25 = vmul.f32 %v15328_v57, %v12534_v61  ;;  %v5920_v56 = vperm.slane %v13000_v18, %v10759_v20  ;;  %vm15336_vm2 = vmmov %vm15280_vm1 }
 0xa02   : > { %v13122_v26 = vadd.f32 %v6490_v3, %v6489_v27  ;;  %v13125_v38 = vsel %vm3672_vm3, %v6009_v40, %v6008_v44  ;;  %v6564_v50 = vsel %vm15323_vm5, %v6288_v0, 0.0  ;;  %v5192_v30 = vmul.f32 %v15325_v7, %v12522_v37  ;;  %v1891_v27 = vld [vmem:[%s15202_s18 + $0x218] sm:$0xff]  ;;  %v1893_v44 = vld [vmem:[%s15202_s18 + $0x228] sm:$0xff]  ;;  %vm15329_vm3 = vmmov %vm15280_vm1 }
 0xa03   : > { %v13130_v36 = vadd.f32 %v6564_v50, %v6563_v21  ;;  %v1877_v21 = vld [vmem:[%s15202_s18 + $0x1a8] sm:$0xff]  ;;  %v6244_v7 = vmul.f32 %v5617_v6, %v1894_v58  ;;  %vm15337_vm5 = vmmov %vm15280_vm1 }
 0xa04   : > { %5685 = vperm.xlu1 %7493, %v5242_v42   ;;  %5721 = vperm.xlu0 %7494, %v5254_v33   ;;  %v6243_v42 = vmul.f32 %v13060_v1, %v1893_v44  ;;  %v5924_v33 = vperm.slane %v5617_v6, %v10781_v49  ;;  %v6457_v6 = vsel %vm15280_vm1, %v6242_v2, 0.0 }
 0xa05   : > { %5535 = vperm.xlu2 %7492, %v5192_v30  }
 0xa06   : > { %v13149_v10 = vpop.permute.xlu1 %5664  ;;  %v5608_v39 = vpop.permute.xlu0 %5607 }
 0xa07   : > { %v5918_v40 = vperm.slane %v5608_v39, %v10753_v46  ;;  %v6241_v0 = vmul.f32 %v5608_v39, %v1891_v27  ;;  %v5566_v3 = vpop.permute.xlu2 %5565 }
 0xa08   : > { %v5891_v50 = vperm.slane %v5566_v3, %v10765_v51  ;;  %v6227_v55 = vmul.f32 %v5566_v3, %v1877_v21  ;;  %v1910_v3 = vld [vmem:[%s15202_s18 + $0x2b0] sm:$0xff] }
 0xa09   : > { %v5919_v30 = vsel %vm3676_vm4, %v5918_v40, %v13043_v32  ;;  %v6455_v18 = vsel %vm15329_vm3, %v6241_v0, 0.0  ;;  %v1909_v32 = vld [vmem:[%s15202_s18 + $0x2a8] sm:$0xff]  ;;  %v5951_v40 = vperm.slane %v13025_v63, %v10759_v20  ;;  %v6258_v0 = vmul.f32 %v13025_v63, %v1908_v24  ;;  %vm15338_vm3 = vmmov %vm15280_vm1 }
 0xa0a   : > { %v5921_v27 = vsel %vm15330_vm6, %v5920_v56, %v5919_v30  ;;  %v6456_v39 = vadd.f32 %v6455_v18, %v13054_v16  ;;  %v13176_v1 = vsel %vm15331_vm12, %v5891_v50, %v12980_v31  ;;  %v6422_v44 = vsel %vm15332_vm13, %v6227_v55, 0.0  ;;  %v1895_v31 = vld [vmem:[%s15202_s18 + $0x238] sm:$0xff]  ;;  %vm15339_vm6 = vmmov %vm15280_vm1 }
 0xa0b   : > { %v13184_v21 = vadd.f32 %v6422_v44, %v12985_v53  ;;  %v5923_v58 = vsel %vm15333_vm10, %v5922_v59, %v5921_v27  ;;  %v5243_v16 = vmul.f32 %v15334_v23, %v12594_v54  ;;  %v1907_v56 = vld [vmem:[%s15202_s18 + $0x298] sm:$0xff]  ;;  %v1862_v59 = vld [vmem:[%s15202_s18 + $0x130] sm:$0xff]  ;;  %v6259_v50 = vmul.f32 %v13088_v60, %v1909_v32  ;;  %vm15341_vm13 = vmmov %vm15280_vm1 }
 0xa0c   : > { %v6458_v62 = vadd.f32 %v6457_v6, %v6456_v39  ;;  %5640 = vperm.xlu1 %7493, %v5227_v22   ;;  %5769 = vperm.xlu0 %7494, %v5270_v4   ;;  %v5925_v57 = vsel %vm3688_vm7, %v5924_v33, %v5923_v58  ;;  %v15335_v53 = vld [vmem:[#allocation76_spill] sm:$0xff]  ;;  %v6459_v22 = vsel %vm15336_vm2, %v6243_v42, 0.0  ;;  %v5953_v4 = vperm.slane %v13088_v60, %v10765_v51  ;;  %vm15343_vm2 = vmmov %vm15280_vm1 }
 0xa0d   : > { %v5255_v2 = vmul.f32 %v15335_v53, %v12639_v13  ;;  %5583 = vperm.xlu2 %7492, %v5208_v25   ;;  %v6461_v55 = vsel %vm15337_vm5, %v6244_v7, 0.0  ;;  %v5955_v63 = vperm.slane %v13149_v10, %v10781_v49  ;;  %v6260_v44 = vmul.f32 %v13149_v10, %v1910_v3  ;;  %v15342_v3 = vld [vmem:[#allocation92_spill] sm:$0xff]  ;;  %vm15344_vm5 = vmmov %vm15280_vm1 }
 0xa0e   : > { %v5620_v42 = vpop.permute.xlu1 %5619  ;;  %v6460_v33 = vadd.f32 %v6459_v22, %v6458_v62  ;;  %v5656_v30 = vpop.permute.xlu0 %5655  ;;  %vm15340_vm12 = vcmask 326912  }
 0xa0f   : > { %v5926_v18 = vperm.slane %v5620_v42, %v10787_v9  ;;  %v6245_v24 = vmul.f32 %v5620_v42, %v1895_v31  ;;  %v5949_v27 = vperm.slane %v5656_v30, %v10753_v46  ;;  %v6257_v25 = vmul.f32 %v5656_v30, %v1907_v56  ;;  %v5521_v39 = vpop.permute.xlu2 %5520  ;;  %v15345_v30 = vld [vmem:[#allocation84_spill] sm:$0xff] }
 0xa10   : > { %v6462_v6 = vadd.f32 %v6461_v55, %v6460_v33  ;;  %v5862_v60 = vperm.slane %v5521_v39, %v10781_v49  ;;  %v6212_v32 = vmul.f32 %v5521_v39, %v1862_v59  ;;  %v5193_v59 = vmul.f32 %v15342_v3, %v12522_v37 }
 0xa11   : > { %v13219_v7 = vsel %vm3692_vm8, %v5926_v18, %v5925_v57  ;;  %v6463_v58 = vsel %vm15338_vm3, %v6245_v24, 0.0  ;;  %v5950_v23 = vsel %vm3676_vm4, %v5949_v27, %v13117_v35  ;;  %v6492_v62 = vsel %vm15339_vm6, %v6257_v25, 0.0  ;;  %vm15347_vm3 = vmmov %vm15280_vm1 }
 0xa12   : > { %v13225_v31 = vadd.f32 %v6463_v58, %v6462_v6  ;;  %v5952_v56 = vsel %vm15340_vm12, %v5951_v40, %v5950_v23  ;;  %v6493_v10 = vadd.f32 %v6492_v62, %v13122_v26  ;;  %v13231_v53 = vsel %vm3688_vm7, %v5862_v60, %v13005_v15  ;;  %v1911_v26 = vld [vmem:[%s15202_s18 + $0x2b8] sm:$0xff]  ;;  %vm15348_vm6 = vmmov %vm15280_vm1 }
 0xa13   : > { %v6494_v57 = vsel %vm15341_vm13, %v6258_v0, 0.0  ;;  %v6387_v22 = vsel %vm15280_vm1, %v6212_v32, 0.0  ;;  %v5954_v35 = vsel %vm15333_vm10, %v5953_v4, %v5952_v56  ;;  %v1923_v40 = vld [vmem:[%s15202_s18 + $0x318] sm:$0xff]  ;;  %v6496_v0 = vsel %vm15343_vm2, %v6259_v50, 0.0  ;;  %v1878_v4 = vld [vmem:[%s15202_s18 + $0x1b0] sm:$0xff]  ;;  %v15346_v32 = vld [vmem:[#allocation81_spill] sm:$0xff] }
 0xa14   : > { %v6495_v55 = vadd.f32 %v6494_v57, %v6493_v10  ;;  %v6388_v42 = vadd.f32 %v6387_v22, %v13011_v17  ;;  %5688 = vperm.xlu1 %7493, %v5243_v16   ;;  %5724 = vperm.xlu0 %7494, %v5255_v2   ;;  %v5956_v15 = vsel %vm3688_vm7, %v5955_v63, %v5954_v35  ;;  %v6498_v17 = vsel %vm15344_vm5, %v6260_v44, 0.0  ;;  %vm15349_vm12 = vmmov %vm15280_vm1  ;;  %v15350_v35 = vld [vmem:[#allocation188_spill] sm:$0xff] }
 0xa15   : > { %5538 = vperm.xlu2 %7492, %v5193_v59   ;;  %v5259_v18 = vmul.f32 %v15345_v30, %v12639_v13  ;;  %v5271_v44 = vmul.f32 %v15346_v32, %v12564_v45  ;;  %vm15353_vm13 = vmmov %vm15280_vm1  ;;  %vm15358_vm2 = vcmask 326912  }
 0xa16   : > { %v5668_v16 = vpop.permute.xlu1 %5667  ;;  %v6497_v2 = vadd.f32 %v6496_v0, %v6495_v55  ;;  %v5704_v33 = vpop.permute.xlu0 %5703  ;;  %v5209_v55 = vmul.f32 %v15350_v35, %v12534_v61  ;;  %vm15354_vm10 = vmmov %vm15280_vm1 }
 0xa17   : > { %v5957_v63 = vperm.slane %v5668_v16, %v10787_v9  ;;  %v6261_v24 = vmul.f32 %v5668_v16, %v1911_v26  ;;  %v5980_v27 = vperm.slane %v5704_v33, %v10753_v46  ;;  %v6273_v25 = vmul.f32 %v5704_v33, %v1923_v40  ;;  %v5569_v50 = vpop.permute.xlu2 %5568  ;;  %v15351_v33 = vld [vmem:[#allocation33_spill] sm:$0xff]  ;;  %vm15359_vm5 = vmmov %vm15280_vm1 }
 0xa18   : > { %v6499_v39 = vadd.f32 %v6498_v17, %v6497_v2  ;;  %v5893_v6 = vperm.slane %v5569_v50, %v10781_v49  ;;  %v6228_v60 = vmul.f32 %v5569_v50, %v1878_v4  ;;  %v5260_v30 = vmul.f32 %v15351_v33, %v12639_v13 }
 0xa19   : > { %v5958_v58 = vsel %vm3692_vm8, %v5957_v63, %v5956_v15  ;;  %v6500_v23 = vsel %vm15347_vm3, %v6261_v24, 0.0  ;;  %v5981_v62 = vsel %vm3676_vm4, %v5980_v27, %v13097_v28  ;;  %v6529_v56 = vsel %vm15348_vm6, %v6273_v25, 0.0  ;;  %v1896_v28 = vld [vmem:[%s15202_s18 + $0x240] sm:$0xff]  ;;  %vm15360_vm3 = vmmov %vm15280_vm1 }
 0xa1a   : > { %v6501_v10 = vadd.f32 %v6500_v23, %v6499_v39  ;;  %v6530_v57 = vadd.f32 %v6529_v56, %v13106_v52  ;;  %v5894_v22 = vsel %vm3688_vm7, %v5893_v6, %v13176_v1  ;;  %v6424_v3 = vsel %vm15349_vm12, %v6228_v60, 0.0  ;;  %v1939_v52 = vld [vmem:[%s15202_s18 + $0x398] sm:$0xff]  ;;  %vm15364_vm12 = vmmov %vm15280_vm1 }
 0xa1b   : > { %v6425_v59 = vadd.f32 %v6424_v3, %v13184_v21  ;;  %v1863_v1 = vld [vmem:[%s15202_s18 + $0x138] sm:$0xff]  ;;  %vm15363_vm6 = vcmask 654912  }
 0xa1c   : > { %5736 = vperm.xlu1 %7493, %v5259_v18   ;;  %5772 = vperm.xlu0 %7494, %v5271_v44   ;;  %v15352_v18 = vld [vmem:[#allocation54_spill] sm:$0xff]  ;;  %v15355_v44 = vld [vmem:[#allocation197_spill] sm:$0xff] }
 0xa1d   : > { %5586 = vperm.xlu2 %7492, %v5209_v55   ;;  %v5256_v63 = vmul.f32 %v15352_v18, %v12639_v13 }
 0xa1e   : > { %v5623_v26 = vpop.permute.xlu1 %5622  ;;  %v5752_v21 = vpop.permute.xlu0 %5751 }
 0xa1f   : > { %v5928_v15 = vperm.slane %v5623_v26, %v10796_v5  ;;  %v6246_v40 = vmul.f32 %v5623_v26, %v1896_v28  ;;  %v6011_v0 = vperm.slane %v5752_v21, %v10753_v46  ;;  %v6289_v4 = vmul.f32 %v5752_v21, %v1939_v52  ;;  %v5524_v17 = vpop.permute.xlu2 %5523 }
 0xa20   : > { %v5864_v16 = vperm.slane %v5524_v17, %v10787_v9  ;;  %v6213_v2 = vmul.f32 %v5524_v17, %v1863_v1  ;;  %v15356_v1 = vld [vmem:[#allocation49_spill] sm:$0xff] }
 0xa21   : > { %v5929_v24 = vsel %vm3696_vm9, %v5928_v15, %v13219_v7  ;;  %v6465_v27 = vsel %vm15353_vm13, %v6246_v40, 0.0  ;;  %v6012_v25 = vsel %vm3676_vm4, %v6011_v0, %v13125_v38  ;;  %v6566_v46 = vsel %vm15280_vm1, %v6289_v4, 0.0  ;;  %v1912_v38 = vld [vmem:[%s15202_s18 + $0x2c0] sm:$0xff]  ;;  %vm15357_vm4 = vmmov %vm15280_vm1 }
 0xa22   : > { %v6466_v50 = vadd.f32 %v6465_v27, %v13225_v31  ;;  %v6567_v39 = vadd.f32 %v6566_v46, %v13130_v36  ;;  %v5865_v6 = vsel %vm3692_vm8, %v5864_v16, %v13231_v53  ;;  %v6389_v60 = vsel %vm15354_vm10, %v6213_v2, 0.0  ;;  %v1924_v31 = vld [vmem:[%s15202_s18 + $0x320] sm:$0xff]  ;;  %v1879_v36 = vld [vmem:[%s15202_s18 + $0x1b8] sm:$0xff]  ;;  %vm15365_vm13 = vmmov %vm15358_vm2 }
 0xa23   : > { %v6390_v32 = vadd.f32 %v6389_v60, %v6388_v42  ;;  %v5194_v7 = vmul.f32 %v15355_v44, %v12522_v37  ;;  %v5272_v26 = vmul.f32 %v15356_v1, %v12564_v45  ;;  %vm15366_vm10 = vmmov %vm15280_vm1 }
 0xa24   : > { %5739 = vperm.xlu1 %7493, %v5260_v30   ;;  %5727 = vperm.xlu0 %7494, %v5256_v63   ;;  %v15361_v30 = vld [vmem:[#allocation103_spill] sm:$0xff] }
 0xa25   : > { %5541 = vperm.xlu2 %7492, %v5194_v7   ;;  %v5210_v18 = vmul.f32 %v15361_v30, %v12534_v61 }
 0xa26   : > { %v5671_v53 = vpop.permute.xlu1 %5670  ;;  %v5707_v42 = vpop.permute.xlu0 %5706 }
 0xa27   : > { %v5959_v23 = vperm.slane %v5671_v53, %v10796_v5  ;;  %v6262_v56 = vmul.f32 %v5671_v53, %v1912_v38  ;;  %v5982_v3 = vperm.slane %v5707_v42, %v10759_v20  ;;  %v6274_v35 = vmul.f32 %v5707_v42, %v1924_v31  ;;  %v5572_v55 = vpop.permute.xlu2 %5571  ;;  %v15362_v38 = vld [vmem:[#allocation27_spill] sm:$0xff] }
 0xa28   : > { %v5895_v28 = vperm.slane %v5572_v55, %v10787_v9  ;;  %v6229_v52 = vmul.f32 %v5572_v55, %v1879_v36  ;;  %v5257_v31 = vmul.f32 %v15362_v38, %v12639_v13 }
 0xa29   : > { %v5960_v21 = vsel %vm3696_vm9, %v5959_v23, %v5958_v58  ;;  %v6502_v15 = vsel %vm15357_vm4, %v6262_v56, 0.0  ;;  %v5983_v40 = vsel %vm15358_vm2, %v5982_v3, %v5981_v62  ;;  %v6531_v0 = vsel %vm15359_vm5, %v6274_v35, 0.0  ;;  %v1897_v58 = vld [vmem:[%s15202_s18 + $0x248] sm:$0xff]  ;;  %v1940_v62 = vld [vmem:[%s15202_s18 + $0x3a0] sm:$0xff]  ;;  %vm15369_vm4 = vmmov %vm15363_vm6 }
 0xa2a   : > { %v6503_v4 = vadd.f32 %v6502_v15, %v6501_v10  ;;  %v6532_v17 = vadd.f32 %v6531_v0, %v6530_v57  ;;  %v5896_v16 = vsel %vm3692_vm8, %v5895_v28, %v5894_v22  ;;  %v6426_v2 = vsel %vm15360_vm3, %v6229_v52, 0.0  ;;  %v1864_v10 = vld [vmem:[%s15202_s18 + $0x140] sm:$0xff]  ;;  %v15367_v28 = vld [vmem:[#allocation100_spill] sm:$0xff]  ;;  %vm15370_vm2 = vmmov %vm15280_vm1 }
 0xa2b   : > { %v6427_v33 = vadd.f32 %v6426_v2, %v6425_v59  ;;  %v5195_v52 = vmul.f32 %v15367_v28, %v12522_v37  ;;  %vm15371_vm5 = vcmask 392512   ;;  %vm15372_vm3 = vmmov %vm15280_vm1 }
 0xa2c   : > { %5775 = vperm.xlu0 %7494, %v5272_v26  }
 0xa2d   : > { %5589 = vperm.xlu2 %7492, %v5210_v18   ;;  %v15368_v18 = vld [vmem:[#allocation181_spill] sm:$0xff] }
 0xa2e   : > { %v5626_v57 = vpop.permute.xlu1 %5625  ;;  %v5755_v22 = vpop.permute.xlu0 %5754 }
 0xa2f   : > { %v5930_v59 = vperm.slane %v5626_v57, %v10819_v43  ;;  %v6247_v63 = vmul.f32 %v5626_v57, %v1897_v58  ;;  %v6013_v27 = vperm.slane %v5755_v22, %v10759_v20  ;;  %v6290_v46 = vmul.f32 %v5755_v22, %v1940_v62  ;;  %v5527_v60 = vpop.permute.xlu2 %5526 }
 0xa30   : > { %v5866_v44 = vperm.slane %v5527_v60, %v10796_v5  ;;  %v6214_v7 = vmul.f32 %v5527_v60, %v1864_v10  ;;  %v5273_v58 = vmul.f32 %v15368_v18, %v12564_v45 }
 0xa31   : > { %v5931_v36 = vsel %vm15363_vm6, %v5930_v59, %v5929_v24  ;;  %v6467_v53 = vsel %vm15364_vm12, %v6247_v63, 0.0  ;;  %v6014_v42 = vsel %vm15365_vm13, %v6013_v27, %v6012_v25  ;;  %v6568_v23 = vsel %vm15280_vm1, %v6290_v46, 0.0  ;;  %v1913_v24 = vld [vmem:[%s15202_s18 + $0x2c8] sm:$0xff]  ;;  %vm15373_vm6 = vmmov %vm15280_vm1 }
 0xa32   : > { %v6468_v56 = vadd.f32 %v6467_v53, %v6466_v50  ;;  %v6569_v3 = vadd.f32 %v6568_v23, %v6567_v39  ;;  %v5867_v20 = vsel %vm3696_vm9, %v5866_v44, %v5865_v6  ;;  %v6391_v35 = vsel %vm15366_vm10, %v6214_v7, 0.0  ;;  %v1925_v25 = vld [vmem:[%s15202_s18 + $0x328] sm:$0xff]  ;;  %v1880_v50 = vld [vmem:[%s15202_s18 + $0x1c0] sm:$0xff]  ;;  %v15374_v44 = vld [vmem:[#allocation19_spill] sm:$0xff] }
 0xa33   : > { %v6392_v55 = vadd.f32 %v6391_v35, %v6390_v32  ;;  %v5211_v7 = vmul.f32 %v15374_v44, %v12534_v61  ;;  %vm15376_vm12 = vcmask 720512   ;;  %vm15377_vm13 = vmmov %vm15280_vm1 }
 0xa34   : > { %5730 = vperm.xlu0 %7494, %v5257_v31   ;;  %vm15378_vm1 = vmmov %vm15371_vm5 }
 0xa35   : > { %5544 = vperm.xlu2 %7492, %v5195_v52   ;;  %v15375_v52 = vld [vmem:[#allocation58_spill] sm:$0xff]  ;;  %vm15379_vm10 = vmmov %vm15370_vm2 }
 0xa36   : > { %v5674_v39 = vpop.permute.xlu1 %5673  ;;  %v5710_v6 = vpop.permute.xlu0 %5709 }
 0xa37   : > { %v5961_v32 = vperm.slane %v5674_v39, %v10819_v43  ;;  %v6263_v1 = vmul.f32 %v5674_v39, %v1913_v24  ;;  %v5984_v26 = vperm.slane %v5710_v6, %v10765_v51  ;;  %v6275_v15 = vmul.f32 %v5710_v6, %v1925_v25  ;;  %v5575_v0 = vpop.permute.xlu2 %5574 }
 0xa38   : > { %v5897_v2 = vperm.slane %v5575_v0, %v10796_v5  ;;  %v6230_v30 = vmul.f32 %v5575_v0, %v1880_v50  ;;  %v5258_v24 = vmul.f32 %v15375_v52, %v12639_v13  ;;  %v15380_v0 = vld [vmem:[#allocation90_spill] sm:$0xff]  ;;  %v1914_v13 = vld [vmem:[%s15202_s18 + $0x2d0] sm:$0xff] }
 0xa39   : > { %v5962_v62 = vsel %vm15369_vm4, %v5961_v32, %v5960_v21  ;;  %v6504_v10 = vsel %vm15370_vm2, %v6263_v1, 0.0  ;;  %v5985_v57 = vsel %vm15371_vm5, %v5984_v26, %v5983_v40  ;;  %v6533_v22 = vsel %vm15372_vm3, %v6275_v15, 0.0  ;;  %v1898_v21 = vld [vmem:[%s15202_s18 + $0x250] sm:$0xff]  ;;  %v1941_v40 = vld [vmem:[%s15202_s18 + $0x3a8] sm:$0xff]  ;;  %vm15382_vm5 = vmmov %vm15376_vm12 }
 0xa3a   : > { %v6505_v59 = vadd.f32 %v6504_v10, %v6503_v4  ;;  %v6534_v63 = vadd.f32 %v6533_v22, %v6532_v17  ;;  %v5898_v27 = vsel %vm3696_vm9, %v5897_v2, %v5896_v16  ;;  %v6428_v46 = vsel %vm15373_vm6, %v6230_v30, 0.0  ;;  %v1865_v4 = vld [vmem:[%s15202_s18 + $0x148] sm:$0xff]  ;;  %v15381_v22 = vld [vmem:[#allocation185_spill] sm:$0xff]  ;;  %vm15383_vm3 = vmmov %vm15370_vm2 }
 0xa3b   : > { %v6429_v60 = vadd.f32 %v6428_v46, %v6427_v33  ;;  %v5196_v2 = vmul.f32 %v15380_v0, %v12522_v37  ;;  %v5274_v46 = vmul.f32 %v15381_v22, %v12564_v45  ;;  %vm15384_vm6 = vmmov %vm15370_vm2 }
 0xa3c   : > { %5778 = vperm.xlu0 %7494, %v5273_v58  }
 0xa3d   : > { %5592 = vperm.xlu2 %7492, %v5211_v7  }
 0xa3e   : > { %v5629_v17 = vpop.permute.xlu1 %5628  ;;  %v5758_v16 = vpop.permute.xlu0 %5757 }
 0xa3f   : > { %v5932_v33 = vperm.slane %v5629_v17, %v10831_v14  ;;  %v6248_v38 = vmul.f32 %v5629_v17, %v1898_v21  ;;  %v6015_v31 = vperm.slane %v5758_v16, %v10765_v51  ;;  %v6291_v53 = vmul.f32 %v5758_v16, %v1941_v40  ;;  %v5530_v23 = vpop.permute.xlu2 %5529 }
 0xa40   : > { %v5868_v35 = vperm.slane %v5530_v23, %v10819_v43  ;;  %v6215_v28 = vmul.f32 %v5530_v23, %v1865_v4 }
 0xa41   : > { %v5933_v25 = vsel %vm15376_vm12, %v5932_v33, %v5931_v36  ;;  %v6469_v50 = vsel %vm15377_vm13, %v6248_v38, 0.0  ;;  %v6016_v39 = vsel %vm15378_vm1, %v6015_v31, %v6014_v42  ;;  %v6570_v6 = vsel %vm15379_vm10, %v6291_v53, 0.0  ;;  %v1926_v36 = vld [vmem:[%s15202_s18 + $0x330] sm:$0xff]  ;;  %v1881_v42 = vld [vmem:[%s15202_s18 + $0x1c8] sm:$0xff]  ;;  %vm15385_vm12 = vmmov %vm15369_vm4 }
 0xa42   : > { %v13383_v32 = vadd.f32 %v6469_v50, %v6468_v56  ;;  %v6571_v1 = vadd.f32 %v6570_v6, %v6569_v3  ;;  %v5869_v51 = vsel %vm15369_vm4, %v5868_v35, %v5867_v20  ;;  %v6393_v26 = vsel %vm15370_vm2, %v6215_v28, 0.0  ;;  %vm15386_vm13 = vmmov %vm15370_vm2  ;;  %v15387_v31 = vld [vmem:[#allocation184_spill] sm:$0xff] }
 0xa43   : > { %v6394_v15 = vadd.f32 %v6393_v26, %v6392_v55  ;;  %v5212_v53 = vmul.f32 %v15387_v31, %v12534_v61  ;;  %vm15388_vm1 = vcmask 786112   ;;  %vm15389_vm10 = vmmov %vm15370_vm2 }
 0xa44   : > { %5733 = vperm.xlu0 %7494, %v5258_v24   ;;  %vm15390_vm4 = vmmov %vm15382_vm5 }
 0xa45   : > { %5547 = vperm.xlu2 %7492, %v5196_v2   ;;  %v15391_v2 = vld [vmem:[#allocation40_spill] sm:$0xff] }
 0xa46   : > { %v5677_v56 = vpop.permute.xlu1 %5676  ;;  %v5713_v3 = vpop.permute.xlu0 %5712 }
 0xa47   : > { %v5963_v20 = vperm.slane %v5677_v56, %v10831_v14  ;;  %v6264_v55 = vmul.f32 %v5677_v56, %v1914_v13  ;;  %v5986_v37 = vperm.slane %v5713_v3, %v10781_v49  ;;  %v6276_v30 = vmul.f32 %v5713_v3, %v1926_v36  ;;  %v5578_v18 = vpop.permute.xlu2 %5577  ;;  %v15392_v36 = vld [vmem:[#allocation36_spill] sm:$0xff] }
 0xa48   : > { %v5899_v58 = vperm.slane %v5578_v18, %v10819_v43  ;;  %v6231_v10 = vmul.f32 %v5578_v18, %v1881_v42  ;;  %v5244_v13 = vmul.f32 %v15391_v2, %v12594_v54  ;;  %v5228_v42 = vmul.f32 %v15392_v36, %v12549_v12 }
 0xa49   : > { %v5964_v44 = vsel %vm15382_vm5, %v5963_v20, %v5962_v62  ;;  %v6506_v7 = vsel %vm15383_vm3, %v6264_v55, 0.0  ;;  %v5987_v21 = vsel %vm3688_vm7, %v5986_v37, %v5985_v57  ;;  %v6535_v40 = vsel %vm15384_vm6, %v6276_v30, 0.0  ;;  %v1942_v62 = vld [vmem:[%s15202_s18 + $0x3b0] sm:$0xff]  ;;  %vm15394_vm5 = vmmov %vm15370_vm2 }
 0xa4a   : > { %v13407_v4 = vadd.f32 %v6506_v7, %v6505_v59  ;;  %v6536_v17 = vadd.f32 %v6535_v40, %v6534_v63  ;;  %v5900_v16 = vsel %vm15385_vm12, %v5899_v58, %v5898_v27  ;;  %v6430_v33 = vsel %vm15386_vm13, %v6231_v10, 0.0  ;;  %v1866_v57 = vld [vmem:[%s15202_s18 + $0x150] sm:$0xff]  ;;  %vm15395_vm3 = vmmov %vm15390_vm4 }
 0xa4b   : > { %v6431_v38 = vadd.f32 %v6430_v33, %v6429_v60  ;;  %v6333_v54 = vrot.slane %v12751_v48, 4  ;;  %vm15396_vm6 = vmmov %vm15370_vm2  ;;  %v15397_v40 = vld [vmem:[#allocation83_spill] sm:$0xff]  ;;  %vm15399_vm12 = vcmask 851712  }
 0xa4c   : > { %5781 = vperm.xlu0 %7494, %v5274_v46   ;;  %v5276_v33 = vmul.f32 %v15397_v40, %v12564_v45  ;;  %vm15400_vm13 = vmmov %vm15370_vm2 }
 0xa4d   : > { %5595 = vperm.xlu2 %7492, %v5212_v53   ;;  %v6334_v31 = vadd.f32 %v6333_v54, %v12751_v48 }
 0xa4e   : > { %v13419_v59 = vpop.permute.xlu1 %5631  ;;  %v5761_v63 = vpop.permute.xlu0 %5760 }
 0xa4f   : > { %v5934_v27 = vperm.slane %v13419_v59, %v10840_v29  ;;  %v6017_v60 = vperm.slane %v5761_v63, %v10781_v49  ;;  %v6292_v23 = vmul.f32 %v5761_v63, %v1942_v62  ;;  %v5533_v61 = vpop.permute.xlu2 %5532  ;;  %v15398_v62 = vld [vmem:[#allocation149_spill] sm:$0xff]  ;;  %v6335_v63 = vrot.slane %v6334_v31, 2 }
 0xa50   : > { %v5870_v35 = vperm.slane %v5533_v61, %v10831_v14  ;;  %v6216_v28 = vmul.f32 %v5533_v61, %v1866_v57 }
 0xa51   : > { %v5935_v52 = vsel %vm15388_vm1, %v5934_v27, %v5933_v25  ;;  %v6018_v24 = vsel %vm3688_vm7, %v6017_v60, %v6016_v39  ;;  %v6572_v50 = vsel %vm15389_vm10, %v6292_v23, 0.0  ;;  %v1927_v25 = vld [vmem:[%s15202_s18 + $0x338] sm:$0xff]  ;;  %v6370_v39 = vrot.slane %v12948_v8, 4  ;;  %vm15393_vm7 = vmmov %vm15388_vm1 }
 0xa52   : > { %v6573_v6 = vadd.f32 %v6572_v50, %v6571_v1  ;;  %v5871_v26 = vsel %vm15390_vm4, %v5870_v35, %v5869_v51  ;;  %v6395_v0 = vsel %vm15370_vm2, %v6216_v28, 0.0  ;;  %v1882_v1 = vld [vmem:[%s15202_s18 + $0x1d0] sm:$0xff]  ;;  %vm15401_vm10 = vmmov %vm15370_vm2  ;;  %v6336_v36 = vadd.f32 %v6335_v63, %v6334_v31 }
 0xa53   : > { %v6396_v49 = vadd.f32 %v6395_v0, %v6394_v15  ;;  %v6371_v30 = vadd.f32 %v6370_v39, %v12948_v8  ;;  %v5275_v8 = vmul.f32 %v15398_v62, %v12564_v45  ;;  %vm15403_vm4 = vmmov %vm15370_vm2 }
 0xa54   : > { %5691 = vperm.xlu0 %7494, %v5244_v13   ;;  %vm15404_vm2 = vmmov %vm15388_vm1 }
 0xa55   : > { %5643 = vperm.xlu2 %7492, %v5228_v42  }
 0xa56   : > { %v13441_v51 = vpop.permute.xlu1 %5679  ;;  %v5716_v56 = vpop.permute.xlu0 %5715 }
 0xa57   : > { %v5965_v12 = vperm.slane %v13441_v51, %v10840_v29  ;;  %v5988_v15 = vperm.slane %v5716_v56, %v10787_v9  ;;  %v6277_v3 = vmul.f32 %v5716_v56, %v1927_v25  ;;  %v5581_v20 = vpop.permute.xlu2 %5580 }
 0xa58   : > { %v5901_v55 = vperm.slane %v5581_v20, %v10831_v14  ;;  %v6232_v37 = vmul.f32 %v5581_v20, %v1882_v1 }
 0xa59   : > { %v5966_v18 = vsel %vm15393_vm7, %v5965_v12, %v5964_v44  ;;  %v5989_v58 = vsel %vm3692_vm8, %v5988_v15, %v5987_v21  ;;  %v6537_v10 = vsel %vm15394_vm5, %v6277_v3, 0.0  ;;  %v1943_v44 = vld [vmem:[%s15202_s18 + $0x3b8] sm:$0xff]  ;;  %v6372_v21 = vrot.slane %v6371_v30, 2  ;;  %vm15405_vm7 = vmmov %vm15403_vm4 }
 0xa5a   : > { %v6538_v22 = vadd.f32 %v6537_v10, %v6536_v17  ;;  %v5902_v46 = vsel %vm15395_vm3, %v5901_v55, %v5900_v16  ;;  %v6432_v7 = vsel %vm15396_vm6, %v6232_v37, 0.0  ;;  %v1867_v17 = vld [vmem:[%s15202_s18 + $0x158] sm:$0xff]  ;;  %vm15406_vm5 = vcmask 1041409   ;;  %vm15407_vm3 = vmmov %vm15403_vm4 }
 0xa5b   : > { %v6433_v53 = vadd.f32 %v6432_v7, %v6431_v38  ;;  %v6373_v61 = vadd.f32 %v6372_v21, %v6371_v30 }
 0xa5c   : > { %5787 = vperm.xlu0 %7494, %v5276_v33   ;;  %v1944_v33 = vld [vmem:[%s15202_s18 + $0x3c0] sm:$0xff] }
 0xa5d   : > { %5784 = vperm.xlu2 %7492, %v5275_v8   ;;  %v6374_v25 = vrot.slane %v6373_v61, 1 }
 0xa5e   : > { %v13465_v16 = vpop.permute.xlu1 %5634  ;;  %v5764_v57 = vpop.permute.xlu0 %5763 }
 0xa5f   : > { %v5936_v48 = vperm.slane %v13465_v16, %v10847_v34  ;;  %v6019_v45 = vperm.slane %v5764_v57, %v10787_v9  ;;  %v6293_v38 = vmul.f32 %v5764_v57, %v1943_v44  ;;  %v5536_v27 = vpop.permute.xlu2 %5535  ;;  %v1928_v9 = vld [vmem:[%s15202_s18 + $0x340] sm:$0xff]  ;;  %v6375_v15 = vadd.f32 %v6374_v25, %v6373_v61 }
 0xa60   : > { %v5872_v60 = vperm.slane %v5536_v27, %v10840_v29  ;;  %v6217_v23 = vmul.f32 %v5536_v27, %v1867_v17 }
 0xa61   : > { %v5937_v35 = vsel %vm15399_vm12, %v5936_v48, %v5935_v52  ;;  %v6020_v28 = vsel %vm3692_vm8, %v6019_v45, %v6018_v24  ;;  %v6574_v50 = vsel %vm15400_vm13, %v6293_v38, 0.0  ;;  %v1883_v52 = vld [vmem:[%s15202_s18 + $0x1d8] sm:$0xff]  ;;  %vm15402_vm8 = vmmov %vm15399_vm12  ;;  %v1929_v48 = vld [vmem:[%s15202_s18 + $0x348] sm:$0xff] }
 0xa62   : > { %v6575_v0 = vadd.f32 %v6574_v50, %v6573_v6  ;;  %v5873_v2 = vsel %vm15388_vm1, %v5872_v60, %v5871_v26  ;;  %v6397_v13 = vsel %vm15401_vm10, %v6217_v23, 0.0  ;;  %v6337_v6 = vrot.slane %v6336_v36, 1  ;;  %vm15408_vm6 = vmmov %vm15402_vm8 }
 0xa63   : > { %v13476_v42 = vadd.f32 %v6397_v13, %v6396_v49  ;;  %vm15410_vm12 = vmmov %vm15407_vm3  ;;  %v1945_v13 = vld [vmem:[%s15202_s18 + $0x3c8] sm:$0xff] }
 0xa64   : > { %v6338_v7 = vadd.f32 %v6337_v6, %v6336_v36  ;;  %vm15411_vm13 = vmmov %vm15408_vm6 }
 0xa65   : > { %vm15413_vm10 = vmmov %vm15407_vm3 }
 0xa66   : > { %v13484_v24 = vpop.permute.xlu1 %5682  ;;  %v5719_v39 = vpop.permute.xlu0 %5718  ;;  %v13501_v31 = vsel %vm15406_vm5, %v6375_v15, %v6338_v7  ;;  %vm15417_vm5 = vmmov %vm15407_vm3 }
 0xa67   : > { %v5967_v26 = vperm.slane %v13484_v24, %v10847_v34  ;;  %v5990_v1 = vperm.slane %v5719_v39, %v10796_v5  ;;  %v6278_v49 = vmul.f32 %v5719_v39, %v1928_v9  ;;  %v5584_v56 = vpop.permute.xlu2 %5583 }
 0xa68   : > { %v5903_v54 = vperm.slane %v5584_v56, %v10840_v29  ;;  %v6233_v12 = vmul.f32 %v5584_v56, %v1883_v52 }
 0xa69   : > { %v5968_v3 = vsel %vm15402_vm8, %v5967_v26, %v5966_v18  ;;  %v5991_v20 = vsel %vm3696_vm9, %v5990_v1, %v5989_v58  ;;  %v6539_v55 = vsel %vm15403_vm4, %v6278_v49, 0.0  ;;  %vm15414_vm8 = vcmask 720512  }
 0xa6a   : > { %v6540_v37 = vadd.f32 %v6539_v55, %v6538_v22  ;;  %v5904_v30 = vsel %vm15404_vm2, %v5903_v54, %v5902_v46  ;;  %v6434_v10 = vsel %vm15405_vm7, %v6233_v12, 0.0  ;;  %vm15415_vm4 = vmmov %vm15414_vm8 }
 0xa6b   : > { %v13495_v40 = vadd.f32 %v6434_v10, %v6433_v53  ;;  %vm15416_vm7 = vmmov %vm15407_vm3 }
 0xa6e   : > { %v13503_v18 = vpop.permute.xlu1 %5637  ;;  %v5767_v58 = vpop.permute.xlu0 %5766 }
 0xa6f   : > { %v5938_v22 = vperm.slane %v13503_v18, %v10884_v47  ;;  %v6021_v46 = vperm.slane %v5767_v58, %v10796_v5  ;;  %v6294_v62 = vmul.f32 %v5767_v58, %v1944_v33  ;;  %v5539_v8 = vpop.permute.xlu2 %5538 }
 0xa70   : > { %v5874_v53 = vperm.slane %v5539_v8, %v10847_v34 }
 0xa71   : > { %v5939_v44 = vsel %vm3716_vm14, %v5938_v22, %v5937_v35  ;;  %v6022_v21 = vsel %vm3696_vm9, %v6021_v46, %v6020_v28  ;;  %v6576_v17 = vsel %vm15407_vm3, %v6294_v62, 0.0  ;;  %vm15409_vm9 = vcmask 654912  }
 0xa72   : > { %v6577_v57 = vadd.f32 %v6576_v17, %v6575_v0  ;;  %v5875_v63 = vsel %vm15408_vm6, %v5874_v53, %v5873_v2  ;;  %vm15412_vm1 = vmmov %vm15409_vm9 }
 0xa73   : > { %vm15418_vm6 = vmmov %vm15404_vm2 }
 0xa76   : > { %v13516_v45 = vpop.permute.xlu1 %5685  ;;  %v5722_v5 = vpop.permute.xlu0 %5721 }
 0xa77   : > { %v5969_v38 = vperm.slane %v13516_v45, %v10884_v47  ;;  %v5992_v27 = vperm.slane %v5722_v5, %v10819_v43  ;;  %v6279_v60 = vmul.f32 %v5722_v5, %v1929_v48  ;;  %v5587_v23 = vpop.permute.xlu2 %5586 }
 0xa78   : > { %v5905_v61 = vperm.slane %v5587_v23, %v10847_v34 }
 0xa79   : > { %v5970_v35 = vsel %vm3716_vm14, %v5969_v38, %v5968_v3  ;;  %v5993_v28 = vsel %vm15409_vm9, %v5992_v27, %v5991_v20  ;;  %v6541_v50 = vsel %vm15410_vm12, %v6279_v60, 0.0  ;;  %vm15419_vm9 = vmmov %vm15407_vm3 }
 0xa7a   : > { %v13525_v0 = vadd.f32 %v6541_v50, %v6540_v37  ;;  %v5906_v2 = vsel %vm15411_vm13, %v5905_v61, %v5904_v30  ;;  %vm15420_vm12 = vmmov %vm15407_vm3  ;;  %vm15421_vm13 = vcmask 1042434  }
 0xa7e   : > { %v13531_v36 = vpop.permute.xlu1 %5640  ;;  %v5770_v9 = vpop.permute.xlu0 %5769 }
 0xa7f   : > { %v5940_v25 = vperm.slane %v13531_v36, %v15064_v41  ;;  %v6023_v52 = vperm.slane %v5770_v9, %v10819_v43  ;;  %v6295_v39 = vmul.f32 %v5770_v9, %v1945_v13  ;;  %v5542_v6 = vpop.permute.xlu2 %5541  ;;  %v1871_v13 = vld [vmem:[%s15202_s18 + $0x178] sm:$0xff] }
 0xa80   : > { %v5876_v26 = vperm.slane %v5542_v6, %v10884_v47 }
 0xa81   : > { %v13538_v1 = vsel %vm3720_vm15, %v5940_v25, %v5939_v44  ;;  %v6024_v49 = vsel %vm15412_vm1, %v6023_v52, %v6022_v21  ;;  %v6578_v56 = vsel %vm15413_vm10, %v6295_v39, 0.0  ;;  %v1868_v44 = vld [vmem:[%s15202_s18 + $0x160] sm:$0xff]  ;;  %v1869_v21 = vld [vmem:[%s15202_s18 + $0x168] sm:$0xff]  ;;  %vm15422_vm1 = vmmov %vm15407_vm3 }
 0xa82   : > { %v13542_v54 = vadd.f32 %v6578_v56, %v6577_v57  ;;  %v5877_v12 = vsel %vm3716_vm14, %v5876_v26, %v5875_v63  ;;  %v6218_v17 = vmul.f32 %v5539_v8, %v1868_v44  ;;  %v6219_v5 = vmul.f32 %v5542_v6, %v1869_v21  ;;  %v1886_v6 = vld [vmem:[%s15202_s18 + $0x1f0] sm:$0xff]  ;;  %vm15423_vm10 = vmmov %vm15422_vm1 }
 0xa84   : > { %v6399_v60 = vsel %vm15416_vm7, %v6218_v17, 0.0  ;;  %vm15427_vm7 = vmmov %vm15422_vm1 }
 0xa85   : > { %v6400_v50 = vadd.f32 %v6399_v60, %v13476_v42 }
 0xa86   : > { %v13545_v15 = vpop.permute.xlu1 %5688  ;;  %v13547_v3 = vpop.permute.xlu0 %5724 }
 0xa87   : > { %v5971_v43 = vperm.slane %v13545_v15, %v15064_v41  ;;  %v5994_v20 = vperm.slane %v13547_v3, %v10831_v14  ;;  %v5590_v55 = vpop.permute.xlu2 %5589 }
 0xa88   : > { %v5907_v37 = vperm.slane %v5590_v55, %v10884_v47 }
 0xa89   : > { %v13555_v30 = vsel %vm3720_vm15, %v5971_v43, %v5970_v35  ;;  %v5995_v10 = vsel %vm15414_vm8, %v5994_v20, %v5993_v28  ;;  %v1884_v35 = vld [vmem:[%s15202_s18 + $0x1e0] sm:$0xff]  ;;  %v6401_v28 = vsel %vm15417_vm5, %v6219_v5, 0.0  ;;  %vm15424_vm8 = vmmov %vm15422_vm1 }
 0xa8a   : > { %v5908_v7 = vsel %vm3716_vm14, %v5907_v37, %v5906_v2  ;;  %v1885_v2 = vld [vmem:[%s15202_s18 + $0x1e8] sm:$0xff]  ;;  %v6234_v9 = vmul.f32 %v5587_v23, %v1884_v35  ;;  %v6402_v39 = vadd.f32 %v6401_v28, %v6400_v50  ;;  %v1900_v37 = vld [vmem:[%s15202_s18 + $0x260] sm:$0xff]  ;;  %vm15428_vm5 = vmmov %vm15422_vm1 }
 0xa8b   : > { %v6235_v56 = vmul.f32 %v5590_v55, %v1885_v2  ;;  %v6250_v21 = vmul.f32 %v13465_v16, %v1900_v37  ;;  %v1932_v37 = vld [vmem:[%s15202_s18 + $0x360] sm:$0xff] }
 0xa8d   : > { %v6438_v44 = vsel %vm15422_vm1, %v6235_v56, 0.0 }
 0xa8e   : > { %v13559_v33 = vpop.permute.xlu0 %5772 }
 0xa8f   : > { %v6025_v58 = vperm.slane %v13559_v33, %v10831_v14  ;;  %v5545_v22 = vpop.permute.xlu2 %5544  ;;  %v1870_v14 = vld [vmem:[%s15202_s18 + $0x170] sm:$0xff] }
 0xa90   : > { %v5878_v46 = vperm.slane %v5545_v22, %v15064_v41  ;;  %v6220_v61 = vmul.f32 %v5545_v22, %v1870_v14 }
 0xa91   : > { %v6026_v62 = vsel %vm15415_vm4, %v6025_v58, %v6024_v49  ;;  %v1899_v49 = vld [vmem:[%s15202_s18 + $0x258] sm:$0xff]  ;;  %vm15425_vm4 = vmmov %vm15422_vm1 }
 0xa92   : > { %v5879_v53 = vsel %vm3720_vm15, %v5878_v46, %v5877_v12  ;;  %v6403_v25 = vsel %vm15407_vm3, %v6220_v61, 0.0  ;;  %v6249_v22 = vmul.f32 %v13419_v59, %v1899_v49  ;;  %v1902_v59 = vld [vmem:[%s15202_s18 + $0x270] sm:$0xff]  ;;  %v6473_v35 = vsel %vm15425_vm4, %v6250_v21, 0.0  ;;  %v5737_v49 = vpop.permute.xlu1 %5736  ;;  %vm15429_vm3 = vmmov %vm15422_vm1 }
 0xa93   : > { %v6404_v43 = vadd.f32 %v6403_v25, %v6402_v39  ;;  %v6252_v28 = vmul.f32 %v13531_v36, %v1902_v59  ;;  %vm6604_vm4 = vcmask 130048  }
 0xa96   : > { %v13572_v57 = vpop.permute.xlu0 %5727 }
 0xa97   : > { %v5996_v63 = vperm.slane %v13572_v57, %v10840_v29  ;;  %v5593_v48 = vpop.permute.xlu2 %5592 }
 0xa98   : > { %v5909_v38 = vperm.slane %v5593_v48, %v15064_v41 }
 0xa99   : > { %v5997_v27 = vsel %vm15404_vm2, %v5996_v63, %v5995_v10  ;;  %v6436_v10 = vsel %vm15419_vm9, %v6234_v9, 0.0  ;;  %vm15426_vm2 = vcmask 851712  }
 0xa9a   : > { %v5910_v8 = vsel %vm3720_vm15, %v5909_v38, %v5908_v7  ;;  %v6236_v7 = vmul.f32 %v5593_v48, %v1886_v6  ;;  %v6437_v17 = vadd.f32 %v6436_v10, %v13495_v40  ;;  %v6471_v48 = vsel %vm15424_vm8, %v6249_v22, 0.0  ;;  %vm15431_vm9 = vmmov %vm15426_vm2 }
 0xa9b   : > { %vm15436_vm8 = vmmov %vm15429_vm3 }
 0xa9c   : > { %v6439_v38 = vadd.f32 %v6438_v44, %v6437_v17 }
 0xa9e   : > { %v13595_v52 = vpop.permute.xlu0 %5775 }
 0xa9f   : > { %v6027_v42 = vperm.slane %v13595_v52, %v10840_v29  ;;  %v5548_v26 = vpop.permute.xlu2 %5547 }
 0xaa0   : > { %v5880_v23 = vperm.slane %v5548_v26, %v15068_v11  ;;  %v6221_v12 = vmul.f32 %v5548_v26, %v1871_v13  ;;  %v6472_v13 = vadd.f32 %v6471_v48, %v13383_v32  ;;  %v1931_v32 = vld [vmem:[%s15202_s18 + $0x358] sm:$0xff] }
 0xaa1   : > { %v6028_v20 = vsel %vm15418_vm6, %v6027_v42, %v6026_v62  ;;  %v1901_v62 = vld [vmem:[%s15202_s18 + $0x268] sm:$0xff]  ;;  %vm15430_vm6 = vmmov %vm15422_vm1 }
 0xaa2   : > { %v5881_v29 = vsel %vm3724_vm0, %v5880_v23, %v5879_v53  ;;  %v6405_v58 = vsel %vm15420_vm12, %v6221_v12, 0.0  ;;  %v1887_v53 = vld [vmem:[%s15202_s18 + $0x1f8] sm:$0xff]  ;;  %v6251_v5 = vmul.f32 %v13503_v18, %v1901_v62  ;;  %v1930_v18 = vld [vmem:[%s15202_s18 + $0x350] sm:$0xff]  ;;  %v6474_v26 = vadd.f32 %v6473_v35, %v6472_v13  ;;  %vm15432_vm12 = vmmov %vm15422_vm1 }
 0xaa3   : > { %v6038_v55 = vsel %vm15421_vm13, %v5881_v29, %v12946_v19  ;;  %v6406_v46 = vadd.f32 %v6405_v58, %v6404_v43  ;;  %v6440_v19 = vsel %vm15423_vm10, %v6236_v7, 0.0  ;;  %v6280_v56 = vmul.f32 %v13547_v3, %v1930_v18  ;;  %vm15433_vm13 = vmmov %vm15422_vm1 }
 0xaa4   : > { %v6441_v50 = vadd.f32 %v6440_v19, %v6439_v38  ;;  %v6475_v6 = vsel %vm15428_vm5, %v6251_v5, 0.0  ;;  %v6281_v7 = vmul.f32 %v13572_v57, %v1931_v32  ;;  %vm15434_vm1 = vcmask 1044484   ;;  %v6603_v38 = vld [vmem:[%s14019_s10 + $0x8] sm:$0xff]  ;;  %vm15435_vm10 = vmmov %vm15429_vm3 }
 0xaa5   : > { %v6407_v14 = vrot.slane %v6406_v46, 4  ;;  %v6476_v12 = vadd.f32 %v6475_v6, %v6474_v26  ;;  %v6543_v62 = vsel %vm15430_vm6, %v6280_v56, 0.0  ;;  %6622 = vmatpush.msra.mxu1 %v6603_v38  ;;  %v6002_v6 = vperm.slane %v5737_v49, %v15064_v41  ;;  %v1916_v26 = vld [vmem:[%s15202_s18 + $0x2e0] sm:$0xff]  ;;  %v1917_v32 = vld [vmem:[%s15202_s18 + $0x2e8] sm:$0xff] }
 0xaa6   : > { %v5731_v63 = vpop.permute.xlu0 %5730  ;;  %v6545_v19 = vsel %vm15433_vm13, %v6281_v7, 0.0  ;;  %v6544_v48 = vadd.f32 %v6543_v62, %v13525_v0  ;;  %v1935_v0 = vld [vmem:[%s15202_s18 + $0x378] sm:$0xff]  ;;  %v6671_v7 = vld [vmem:[%s14021_s12 + $0x8] sm:$0xff] }
 0xaa7   : > { %v5998_v16 = vperm.slane %v5731_v63, %v10847_v34  ;;  %v5596_v40 = vpop.permute.xlu2 %5595  ;;  %v6408_v9 = vadd.f32 %v6407_v14, %v6406_v46  ;;  %v6282_v44 = vmul.f32 %v5731_v63, %v1932_v37  ;;  %v6602_v37 = vld [vmem:[%s14019_s10] sm:$0xff] }
 0xaa8   : > { %v5911_v60 = vperm.slane %v5596_v40, %v15068_v11  ;;  %v6237_v61 = vmul.f32 %v5596_v40, %v1887_v53  ;;  %v6546_v35 = vadd.f32 %v6545_v19, %v6544_v48  ;;  %6623 = vmatpush.msra.mxu1 %v6602_v37  ;;  %v6267_v48 = vmul.f32 %v13516_v45, %v1917_v32  ;;  %v6600_v45 = vld [vmem:[%s14018_s9 + $0x10] sm:$0xff]  ;;  %v6598_v32 = vld [vmem:[%s14018_s9] sm:$0xff] }
 0xaa9   : > { %v13636_v2 = vsel %vm15426_vm2, %v5998_v16, %v5997_v27  ;;  %v6477_v27 = vsel %vm15429_vm3, %v6252_v28, 0.0  ;;  %v6409_v43 = vrot.slane %v6408_v9, 2  ;;  %v6672_v16 = vld [vmem:[%s14021_s12 + $0x10] sm:$0xff]  ;;  %v6547_v40 = vsel %vm15435_vm10, %v6282_v44, 0.0  ;;  %vm15437_vm2 = vmmov %vm15429_vm3  ;;  %v7398_v37 = vld [vmem:[%s14018_s9 + $0x40] sm:$0xff] }
 0xaaa   : > { %v5912_v25 = vsel %vm3724_vm0, %v5911_v60, %v5910_v8  ;;  %v6442_v39 = vsel %vm15427_vm7, %v6237_v61, 0.0  ;;  %v1903_v8 = vld [vmem:[%s15202_s18 + $0x278] sm:$0xff]  ;;  %v6478_v22 = vadd.f32 %v6477_v27, %v6476_v12  ;;  %v13694_v61 = vpop.permute.xlu1 %5739  ;;  %vm15438_vm7 = vmmov %vm15437_vm2  ;;  %vm15440_vm3 = vcmask 1042434  }
 0xaab   : > { %v6039_v42 = vsel %vm3947_vm11, %v5912_v25, %v6038_v55  ;;  %v6443_v36 = vadd.f32 %v6442_v39, %v6441_v50  ;;  %v6410_v53 = vadd.f32 %v6409_v43, %v6408_v9  ;;  %v1915_v39 = vld [vmem:[%s15202_s18 + $0x2d8] sm:$0xff]  ;;  %v6285_v27 = vmul.f32 %v13694_v61, %v1935_v0  ;;  %vm15439_vm5 = vmmov %vm15437_vm2 }
 0xaac   : > { %vm15441_vm6 = vmmov %vm15437_vm2 }
 0xaad   : > { %v6444_v23 = vrot.slane %v6443_v36, 4  ;;  %v6411_v28 = vrot.slane %v6410_v53, 1  ;;  %vm15447_vm13 = vmmov %vm15437_vm2 }
 0xaae   : > { %v13657_v10 = vpop.permute.xlu0 %5778 }
 0xaaf   : > { %v6445_v29 = vadd.f32 %v6444_v23, %v6443_v36  ;;  %v6029_v58 = vperm.slane %v13657_v10, %v10847_v34  ;;  %v5644_v3 = vpop.permute.xlu2 %5643  ;;  %v1934_v34 = vld [vmem:[%s15202_s18 + $0x370] sm:$0xff]  ;;  %v6412_v12 = vadd.f32 %v6411_v28, %v6410_v53  ;;  %v6601_v53 = vld [vmem:[%s14018_s9 + $0x18] sm:$0xff] }
 0xab0   : > { %v5942_v55 = vperm.slane %v5644_v3, %v15068_v11  ;;  %v6253_v46 = vmul.f32 %v5644_v3, %v1903_v8  ;;  %v6284_v13 = vmul.f32 %v5737_v49, %v1934_v34  ;;  %v1946_v3 = vld [vmem:[%s15202_s18 + $0x3d0] sm:$0xff]  ;;  %6657 = vmatpush.msra.mxu2 %v6601_v53 }
 0xab1   : > { %v6446_v21 = vrot.slane %v6445_v29, 2  ;;  %v13665_v17 = vsel %vm15431_vm9, %v6029_v58, %v6028_v20  ;;  %v1933_v20 = vld [vmem:[%s15202_s18 + $0x368] sm:$0xff]  ;;  %vm15442_vm9 = vmmov %vm15437_vm2 }
 0xab2   : > { %v5943_v57 = vsel %vm3724_vm0, %v5942_v55, %v13538_v1  ;;  %v6479_v59 = vsel %vm15432_vm12, %v6253_v46, 0.0  ;;  %v6673_v1 = vld [vmem:[%s14021_s12 + $0x18] sm:$0xff]  ;;  %v6551_v58 = vsel %vm15437_vm2, %v6284_v13, 0.0  ;;  %v6670_v55 = vld [vmem:[%s14021_s12] sm:$0xff]  ;;  %v7400_v13 = vld [vmem:[%s14018_s9 + $0x50] sm:$0xff]  ;;  %6658 = vmatpush.msra.mxu2 %v6600_v45 }
 0xab3   : > { %v13675_v14 = vsel %vm15434_vm1, %v5943_v57, %v6039_v42  ;;  %v6480_v63 = vadd.f32 %v6479_v59, %v6478_v22  ;;  %v6447_v5 = vadd.f32 %v6446_v21, %v6445_v29  ;;  %6690 = vmatpush.msra.mxu3 %v6673_v1  ;;  %v6548_v42 = vadd.f32 %v6547_v40, %v6546_v35  ;;  %v13721_v29 = vld [vmem:[%s8329_s23] sm:$0xff]  ;;  %v7387_v46 = vld [vmem:[%s14019_s10 + $0x18] sm:$0xff]  ;;  %v7403_v21 = vld [vmem:[%s14019_s10 + $0x28] sm:$0xff]  ;;  %s7011_s23 = sshll.u32 %s626_s29, 4  ;;  %s7012_s23 = int_to_ptr.vmem [resolvable:$true] %s7011_s23 }
 0xab4   : > { %7378 = vmatmul.msk.f32.vlgmr.msra.gmra.mxu1 %vm6604_vm4, %v13721_v29  ;;  %v6266_v57 = vmul.f32 %v13484_v24, %v1916_v26  ;;  %v1918_v59 = vld [vmem:[%s15202_s18 + $0x2f0] sm:$0xff]  ;;  %v6296_v24 = vmul.f32 %v13559_v33, %v1946_v3  ;;  %v1947_v1 = vld [vmem:[%s15202_s18 + $0x3d8] sm:$0xff]  ;;  %v7402_v40 = vld [vmem:[%s14019_s10 + $0x20] sm:$0xff]  ;;  %v6637_v33 = vsel %vm15440_vm3, %v6412_v12, %v13501_v31  ;;  %vm15454_vm3 = vcmask 1046534  }
 0xab5   : > { %v6481_v60 = vrot.slane %v6480_v63, 4  ;;  %6691 = vmatpush.msra.mxu3 %v6672_v16  ;;  %v6448_v36 = vrot.slane %v6447_v5, 1  ;;  %6740 = vmatpush.msrb.mxu1 %v7387_v46  ;;  %v13763_v16 = vld [vmem:[#allocation2] sm:$0xff]  ;;  %vm15443_vm12 = vmmov %vm15434_vm1  ;;  %v1949_v26 = vld [vmem:[%s15202_s18 + $0x3e8] sm:$0xff] }
 0xab6   : > { %v5734_v50 = vpop.permute.xlu0 %5733  ;;  %v1948_v31 = vld [vmem:[%s15202_s18 + $0x3e0] sm:$0xff]  ;;  %v7393_v46 = vld [vmem:[%s14021_s12 + $0x30] sm:$0xff]  ;;  %vm15448_vm1 = vmmov %vm15437_vm2 }
 0xab7   : > { %v6482_v18 = vadd.f32 %v6481_v60, %v6480_v63  ;;  %v6000_v9 = vperm.slane %v5734_v50, %v10884_v47  ;;  %v6283_v25 = vmul.f32 %v5734_v50, %v1933_v20  ;;  %6692 = vmatpush.msra.mxu3 %v6671_v7  ;;  %v6449_v62 = vadd.f32 %v6448_v36, %v6447_v5  ;;  %v13749_v19 = vpop.permute.xlu2 %5784  ;;  %v7385_v63 = vld [vmem:[%s14018_s9 + $0x38] sm:$0xff]  ;;  %v7384_v50 = vld [vmem:[%s14018_s9 + $0x30] sm:$0xff]  ;;  %vm15449_vm10 = vmmov %vm15448_vm1 }
 0xab8   : > { %v7401_v20 = vld [vmem:[%s14018_s9 + $0x58] sm:$0xff]  ;;  %v6553_v5 = vsel %vm15438_vm7, %v6285_v27, 0.0  ;;  %6758 = vmatpush.msrb.mxu0 %v7385_v63  ;;  %vm15452_vm7 = vmmov %vm15448_vm1 }
 0xab9   : > { %v6483_v56 = vrot.slane %v6482_v18, 2  ;;  %v6001_v23 = vsel %vm3716_vm14, %v6000_v9, %v13636_v2  ;;  %v6549_v8 = vsel %vm15436_vm8, %v6283_v25, 0.0  ;;  %v6265_v2 = vmul.f32 %v13441_v51, %v1915_v39  ;;  %v7386_v51 = vld [vmem:[%s14019_s10 + $0x10] sm:$0xff]  ;;  %6693 = vmatpush.msra.mxu3 %v6670_v55  ;;  %vm15450_vm8 = vmmov %vm15448_vm1 }
 0xaba   : > { %v13712_v49 = vsel %vm3720_vm15, %v6002_v6, %v6001_v23  ;;  %v6550_v43 = vadd.f32 %v6549_v8, %v6548_v42  ;;  %7380 = vmatmul.msk.f32.vlgmr.msra.gmra.mxu3 %vm15439_vm5, %v13763_v16  ;;  %6741 = vmatpush.msrb.mxu1 %v7386_v51  ;;  %v6033_v9 = vperm.slane %v13749_v19, %v15064_v41  ;;  %v6510_v39 = vsel %vm15442_vm9, %v6266_v57, 0.0  ;;  %v7383_v41 = vld [vmem:[%s14018_s9 + $0x28] sm:$0xff]  ;;  %v7382_v8 = vld [vmem:[%s14018_s9 + $0x20] sm:$0xff]  ;;  %vm15456_vm9 = vmmov %vm15448_vm1 }
 0xabb   : > { %v6484_v22 = vadd.f32 %v6483_v56, %v6482_v18  ;;  %v6508_v60 = vsel %vm15441_vm6, %v6265_v2, 0.0  ;;  %6844 = vmatpush.msrb.mxu3 %v7403_v21  ;;  %v6268_v18 = vmul.f32 %v13545_v15, %v1918_v59  ;;  %v6638_v25 = vsel %vm3947_vm11, %v6449_v62, %v6637_v33  ;;  %6759 = vmatpush.msrb.mxu0 %v7384_v50  ;;  %vm15444_vm11 = vmmov %vm15437_vm2 }
 0xabc   : > { %v6552_v44 = vadd.f32 %v6551_v58, %v6550_v43  ;;  %6862 = vmatpush.msra.mxu1 %v7401_v20  ;;  %v6297_v6 = vmul.f32 %v13595_v52, %v1947_v1  ;;  %v6509_v36 = vadd.f32 %v6508_v60, %v13407_v4  ;;  %v6512_v27 = vsel %vm15444_vm11, %v6267_v48, 0.0  ;;  %v1919_v43 = vld [vmem:[%s15202_s18 + $0x2f8] sm:$0xff]  ;;  %v7409_v48 = vld [vmem:[%s14021_s12 + $0x50] sm:$0xff]  ;;  %v7391_v1 = vld [vmem:[%s14021_s12 + $0x20] sm:$0xff] }
 0xabd   : > { %v6485_v34 = vrot.slane %v6484_v22, 1  ;;  %6845 = vmatpush.msrb.mxu3 %v7402_v40  ;;  %v6298_v56 = vmul.f32 %v13657_v10, %v1948_v31  ;;  %7388 = vmatmul.msk.f32.vlgmr.msrb.gmra.mxu1 %vm6604_vm4, %v13721_v29  ;;  %v7394_v10 = vld [vmem:[%s14021_s12 + $0x38] sm:$0xff]  ;;  %v7408_v40 = vld [vmem:[%s14021_s12 + $0x48] sm:$0xff]  ;;  %vm15453_vm5 = vcmask 1045509   ;;  %vm15455_vm6 = vcmask 1047559   ;;  %vm15458_vm11 = vmmov %vm15448_vm1 }
 0xabe   : > { %v5782_v38 = vpop.permute.xlu0 %5781  ;;  %v6554_v35 = vadd.f32 %v6553_v5, %v6552_v44  ;;  %6863 = vmatpush.msra.mxu1 %v7400_v13  ;;  %v6511_v12 = vadd.f32 %v6510_v39, %v6509_v36  ;;  %6760 = vmatpush.msrb.mxu0 %v7383_v41  ;;  %v6582_v2 = vsel %vm15447_vm13, %v6297_v6, 0.0  ;;  %v7410_v20 = vld [vmem:[%s14021_s12 + $0x58] sm:$0xff]  ;;  %vm15461_vm13 = vmmov %vm15453_vm5 }
 0xabf   : > { %v6486_v0 = vadd.f32 %v6485_v34, %v6484_v22  ;;  %v6031_v28 = vperm.slane %v5782_v38, %v10884_v47  ;;  %v6599_v47 = vld [vmem:[%s14018_s9 + $0x8] sm:$0xff]  ;;  %v6299_v58 = vmul.f32 %v5782_v38, %v1949_v26  ;;  %v6584_v62 = vsel %vm15448_vm1, %v6298_v56, 0.0  ;;  %v1951_v60 = vld [vmem:[%s15202_s18 + $0x3f8] sm:$0xff] }
 0xac0   : > { %v6555_v23 = vrot.slane %v6554_v35, 4  ;;  %6659 = vmatpush.msra.mxu2 %v6599_v47  ;;  %v6513_v3 = vadd.f32 %v6512_v27, %v6511_v12  ;;  %6761 = vmatpush.msrb.mxu0 %v7382_v8 }
 0xac1   : > { %v6032_v15 = vsel %vm3716_vm14, %v6031_v28, %v13665_v17  ;;  %v13801_v42 = vsel %vm15443_vm12, %v6486_v0, %v6638_v25  ;;  %v7399_v17 = vld [vmem:[%s14018_s9 + $0x48] sm:$0xff]  ;;  %vm15445_vm14 = vmmov %vm15437_vm2  ;;  %v6586_v59 = vsel %vm15449_vm10, %v6299_v58, 0.0  ;;  %v7407_v0 = vld [vmem:[%s14021_s12 + $0x40] sm:$0xff] }
 0xac2   : > { %v13808_v52 = vsel %vm3720_vm15, %v6033_v9, %v6032_v15  ;;  %v6580_v4 = vsel %vm15445_vm14, %v6296_v24, 0.0  ;;  %vm15446_vm15 = vmmov %vm15437_vm2  ;;  %6864 = vmatpush.msra.mxu1 %v7399_v17  ;;  %6660 = vmatpush.msra.mxu2 %v6598_v32  ;;  %v6556_v44 = vadd.f32 %v6555_v23, %v6554_v35  ;;  %v7498_v58 = vld [vmem:[%s14022_s13] ss:$0 sm:$0xff] }
 0xac3   : > { %v6514_v7 = vsel %vm15446_vm15, %v6268_v18, 0.0  ;;  %v6581_v22 = vadd.f32 %v6580_v4, %v13542_v54  ;;  %7404 = vmatmul.msk.f32.vlgmr.msrb.gmra.mxu3 %vm6604_vm4, %v13721_v29  ;;  %v1950_v54 = vld [vmem:[%s15202_s18 + $0x3f0] sm:$0xff]  ;;  %v7392_v29 = vld [vmem:[%s14021_s12 + $0x28] sm:$0xff]  ;;  %6898 = vmatpush.msra.mxu0 %v7410_v20  ;;  %vm15451_vm2 = vmmov %vm15448_vm1 }
 0xac4   : > { %6865 = vmatpush.msra.mxu1 %v7398_v37  ;;  %6794 = vmatpush.msrb.mxu2 %v7394_v10  ;;  %v6515_v53 = vadd.f32 %v6514_v7, %v6513_v3  ;;  %v6557_v38 = vrot.slane %v6556_v44, 2  ;;  %vm15457_vm12 = vmmov %vm15448_vm1  ;;  %v6917_v20 = vld [vmem:[%s14023_s14 + $0x10] sm:$0xff] }
 0xac5   : > { %v6583_v57 = vadd.f32 %v6582_v2, %v6581_v22  ;;  %6899 = vmatpush.msra.mxu0 %v7409_v48  ;;  %vm15459_vm14 = vmmov %vm15448_vm1 }
 0xac6   : > { %v5692_v55 = vpop.permute.xlu0 %5691  ;;  %6795 = vmatpush.msrb.mxu2 %v7393_v46  ;;  %v6558_v18 = vadd.f32 %v6557_v38, %v6556_v44  ;;  %vm15460_vm15 = vmmov %vm15448_vm1  ;;  %v7499_v44 = vld [vmem:[%s14020_s11 + $0x1] ss:$0 sm:$0xff] }
 0xac7   : > { %v5973_v51 = vperm.slane %v5692_v55, %v15068_v11  ;;  %v6269_v21 = vmul.f32 %v5692_v55, %v1919_v43  ;;  %v6585_v24 = vadd.f32 %v6584_v62, %v6583_v57  ;;  %6900 = vmatpush.msra.mxu0 %v7408_v40  ;;  %vm15462_vm1 = vmmov %vm15454_vm3 }
 0xac8   : > { %6796 = vmatpush.msrb.mxu2 %v7392_v29  ;;  %v6559_v15 = vrot.slane %v6558_v18, 1  ;;  %vm15463_vm10 = vmmov %vm15455_vm6 }
 0xac9   : > { %v5974_v34 = vsel %vm3724_vm0, %v5973_v51, %v13555_v30  ;;  %v6516_v63 = vsel %vm15450_vm8, %v6269_v21, 0.0  ;;  %v6300_v30 = vmul.f32 %v13749_v19, %v1950_v54  ;;  %v6587_v45 = vadd.f32 %v6586_v59, %v6585_v24  ;;  %6901 = vmatpush.msra.mxu0 %v7407_v0  ;;  %v7502_v21 = vld [vmem:[%s14022_s13 + $0x1] ss:$0 sm:$0xff] }
 0xaca   : > { %v6517_v5 = vadd.f32 %v6516_v63, %v6515_v53  ;;  %6797 = vmatpush.msrb.mxu2 %v7391_v1  ;;  %v6560_v32 = vadd.f32 %v6559_v15, %v6558_v18  ;;  %v6041_v37 = vsel %vm15461_vm13, %v5974_v34, %v13675_v14  ;;  %v6918_v63 = vld [vmem:[%s14023_s14 + $0x18] sm:$0xff]  ;;  %v6915_v1 = vld [vmem:[%s14023_s14] sm:$0xff] }
 0xacb   : > { %v6588_v28 = vsel %vm15451_vm2, %v6300_v30, 0.0  ;;  %v6950_v30 = vld [vmem:[%s14025_s16 + $0x8] sm:$0xff] }
 0xacc   : > { %v6518_v33 = vrot.slane %v6517_v5, 4  ;;  %v6589_v9 = vadd.f32 %v6588_v28, %v6587_v45  ;;  %6972 = vmatpush.msra.mxu3 %v6950_v30 }
 0xace   : > { %v6519_v35 = vadd.f32 %v6518_v33, %v6517_v5  ;;  %v5788_v19 = vpop.permute.xlu0 %5787  ;;  %v6916_v5 = vld [vmem:[%s14023_s14 + $0x8] sm:$0xff] }
 0xacf   : > { %v6035_v50 = vperm.slane %v5788_v19, %v15068_v11  ;;  %v6301_v13 = vmul.f32 %v5788_v19, %v1951_v60  ;;  %v7503_v19 = vld [vmem:[%s14022_s13 + $0x2] ss:$0 sm:$0xff] }
 0xad0   : > { %v6520_v31 = vrot.slane %v6519_v35, 2 }
 0xad1   : > { %v6036_v47 = vsel %vm3724_vm0, %v6035_v50, %v13808_v52  ;;  %v6590_v25 = vsel %vm15452_vm7, %v6301_v13, 0.0 }
 0xad2   : > { %v6521_v39 = vadd.f32 %v6520_v31, %v6519_v35  ;;  %v6591_v6 = vadd.f32 %v6590_v25, %v6589_v9 }
 0xad4   : > { %v6522_v41 = vrot.slane %v6521_v39, 1  ;;  %v6592_v36 = vrot.slane %v6591_v6, 4 }
 0xad6   : > { %v6593_v26 = vadd.f32 %v6592_v36, %v6591_v6  ;;  %v6523_v17 = vadd.f32 %v6522_v41, %v6521_v39 }
 0xad8   : > { %v6594_v27 = vrot.slane %v6593_v26, 2  ;;  %v6640_v4 = vsel %vm15453_vm5, %v6523_v17, %v13801_v42  ;;  %v6004_v42 = vperm.slane %v13694_v61, %v15068_v11  ;;  %v7501_v11 = vld [vmem:[%s14020_s11] ss:$0 sm:$0xff] }
 0xad9   : > { %v6641_v56 = vsel %vm15454_vm3, %v6560_v32, %v6640_v4 }
 0xada   : > { %v6595_v23 = vadd.f32 %v6594_v27, %v6593_v26  ;;  %v6005_v43 = vsel %vm3724_vm0, %v6004_v42, %v13712_v49 }
 0xadb   : > { %v6042_v10 = vsel %vm15462_vm1, %v6005_v43, %v6041_v37 }
 0xadc   : > { %v6596_v8 = vrot.slane %v6595_v23, 1  ;;  %v6043_v2 = vsel %vm15463_vm10, %v6036_v47, %v6042_v10  ;;  %v7500_v47 = vld [vmem:[%s14020_s11 + $0x2] ss:$0 sm:$0xff] }
 0xadd   : > { %6045 = vst [vmem:[%s626_s29] sm:$0xff] %v6043_v2 }
 0xade   : > { %v6597_v52 = vadd.f32 %v6596_v8, %v6595_v23 }
 0xae0   : > { %v6642_v12 = vsel %vm15455_vm6, %v6597_v52, %v6641_v56 }
 0xae1   : > { %7379 = vmatmul.msk.f32.vlgmr.msra.gmra.mxu2 %vm15456_vm9, %v6642_v12  ;;  %7389 = vmatmul.msk.f32.vlgmr.msrb.gmra.mxu0 %vm15457_vm12, %v6642_v12  ;;  %vm15464_vm12 = vmmov %vm15458_vm11 }
 0xae2   : > { %7405 = vmatmul.msk.f32.vlgmr.msra.gmra.mxu1 %vm15458_vm11, %v6642_v12  ;;  %6938 = vmatpush.msra.mxu2 %v6918_v63 }
 0xae4   : > { %6939 = vmatpush.msra.mxu2 %v6917_v20 }
 0xae6   : > { %6940 = vmatpush.msra.mxu2 %v6916_v5 }
 0xae8   : > { %6941 = vmatpush.msra.mxu2 %v6915_v1 }
 0xae9   : > { %7396 = vmatmul.msk.f32.vlgmr.msrb.gmra.mxu2 %vm15459_vm14, %v13763_v16  ;;  %7412 = vmatmul.msk.f32.vlgmr.msra.gmra.mxu0 %vm15460_vm15, %v13763_v16  ;;  %vm15465_vm14 = vmmov %vm15458_vm11 }
 0xb31   : > { %v6625_v7 = vpop.f32.mrf.mxu1 }
 0xb3a   : > { %v6743_v46 = vpop.f32.mrf.mxu1 }
 0xb3d   : > { %v6695_v61 = vpop.f32.mrf.mxu3 }
 0xb3e   : > { %v6696_v3 = vadd.f32 %v7498_v58, %v6695_v61  ;;  %v6949_v58 = vld [vmem:[%s14025_s16] sm:$0xff] }
 0xb3f   : > { %6973 = vmatpush.msra.mxu3 %v6949_v58 }
 0xb46   : > { %v6847_v60 = vpop.f32.mrf.mxu3 }
 0xb5e   : > { %v6763_v14 = vpop.f32.mrf.mxu0 }
 0xb5f   : > { %v6764_v62 = vadd.f32 %v6763_v14, %v6743_v46  ;;  %v6867_v0 = vpop.f32.mrf.mxu1 }
 0xb60   : > { %v6868_v9 = vadd.f32 %v6867_v0, %v6847_v60 }
 0xb61   : > { %v6771_v54 = vadd.f32 %v7499_v44, %v6764_v62 }
 0xb62   : > { %v6875_v26 = vadd.f32 %v7500_v47, %v6868_v9 }
 0xb64   : > { %v6662_v49 = vpop.f32.mrf.mxu2 }
 0xb65   : > { %v6663_v22 = vadd.f32 %v6662_v49, %v6625_v7 }
 0xb66   : > { %v6903_v50 = vpop.f32.mrf.mxu0 }
 0xb67   : > { %v6669_v55 = vadd.f32 %v7501_v11, %v6663_v22  ;;  %v6904_v6 = vadd.f32 %v7503_v19, %v6903_v50  ;;  %v7504_v11 = vld [vmem:[%s14024_s15] ss:$0 sm:$0xff] }
 0xb69   : > { %v6698_v51 = vadd.f32 %v6696_v3, %v6669_v55 }
 0xb6b   : > { %v7381_v53 = vmul.f32 -1.442695, %v6698_v51 }
 0xb6c   : > { %v6799_v57 = vpop.f32.mrf.mxu2 }
 0xb6d   : > { %8020 = vpow2.f32 %v7381_v53  ;;  %v6800_v29 = vadd.f32 %v7502_v21, %v6799_v57 }
 0xb6f   : > { %v6802_v59 = vadd.f32 %v6800_v29, %v6771_v54 }
 0xb71   : > { %v7397_v34 = vmul.f32 -1.442695, %v6802_v59 }
 0xb73   : > { %v8021_v48 = vpop.eup %8020  ;;  %8022 = vpow2.f32 %v7397_v34 }
 0xb74   : > { %v6702_v24 = vadd.f32 1.0, %v8021_v48 }
 0xb76   : > { %8024 = vrcp.f32 %v6702_v24  ;;  %v6714_v28 = vand.u32 2147483648, %v6702_v24  ;;  %v6712_v18 = vand.u32 2147483647, %v6702_v24  ;;  %vm6708_vm8 = vweird.f32 %v6702_v24 }
 0xb78   : > { %v6715_v15 = vor.u32 1.1754944e-38, %v6714_v28  ;;  %vm6713_vm7 = vcmp.eq.f32.partialorder %v6712_v18, 8.507059e+37 }
 0xb79   : > { %v8023_v38 = vpop.eup %8022 }
 0xb7a   : > { %v6806_v40 = vadd.f32 1.0, %v8023_v38 }
 0xb7c   : > { %v8025_v45 = vpop.eup %8024  ;;  %8026 = vrcp.f32 %v6806_v40  ;;  %v6818_v27 = vand.u32 2147483648, %v6806_v40  ;;  %v6816_v56 = vand.u32 2147483647, %v6806_v40  ;;  %vm6812_vm3 = vweird.f32 %v6806_v40 }
 0xb7d   : > { %v6704_v33 = vmul.f32 %v8025_v45, %v6702_v24  ;;  %vm6709_vm0 = vweird.f32 %v8025_v45 }
 0xb7e   : > { %vm6710_vm2 = vmor %vm6708_vm8, %vm6709_vm0  ;;  %v6819_v52 = vor.u32 1.1754944e-38, %v6818_v27  ;;  %vm6817_vm9 = vcmp.eq.f32.partialorder %v6816_v56, 8.507059e+37 }
 0xb7f   : > { %v6705_v35 = vsub.f32 1.0, %v6704_v33 }
 0xb81   : > { %v6706_v13 = vmul.f32 %v8025_v45, %v6705_v35 }
 0xb82   : > { %v8027_v31 = vpop.eup %8026 }
 0xb83   : > { %v6808_v25 = vmul.f32 %v8027_v31, %v6806_v40  ;;  %v6707_v39 = vadd.f32 %v8025_v45, %v6706_v13  ;;  %vm6813_vm5 = vweird.f32 %v8027_v31 }
 0xb84   : > { %vm6814_vm6 = vmor %vm6812_vm3, %vm6813_vm5 }
 0xb85   : > { %v6809_v41 = vsub.f32 1.0, %v6808_v25  ;;  %v6711_v36 = vsel %vm6710_vm2, %v8025_v45, %v6707_v39 }
 0xb86   : > { %v6716_v17 = vsel %vm6713_vm7, %v6715_v15, %v6711_v36 }
 0xb87   : > { %v6810_v32 = vmul.f32 %v8027_v31, %v6809_v41  ;;  %v6906_v4 = vmul.f32 %v6904_v6, %v6716_v17 }
 0xb89   : > { %v6811_v23 = vadd.f32 %v8027_v31, %v6810_v32  ;;  %v6907_v8 = vadd.f32 %v6906_v4, %v6875_v26 }
 0xb8b   : > { %v6815_v12 = vsel %vm6814_vm6, %v8027_v31, %v6811_v23  ;;  %8028 = vtanh.f32 %v6907_v8 }
 0xb8c   : > { %v6820_v42 = vsel %vm6817_vm9, %v6819_v52, %v6815_v12 }
 0xb8d   : > { %v6909_v43 = vsub.f32 1.0, %v6820_v42  ;;  %v6911_v7 = vmul.f32 %v13763_v16, %v6820_v42 }
 0xb91   : > { %v8029_v37 = vpop.eup %8028 }
 0xb92   : > { %v6910_v10 = vmul.f32 %v8029_v37, %v6909_v43 }
 0xb94   : > { %v6912_v2 = vadd.f32 %v6911_v7, %v6910_v10 }
 0xb96   : > { %6913 = vst.msk [vmem:[#allocation2] sm:$0xff] %vm15464_vm12, %v6912_v2  ;;  %7413 = vmatmul.msk.f32.vlgmr.msra.gmra.mxu2 %vm15458_vm11, %v6912_v2 }
 0xb97   : > { %6914 = vst.msk [vmem:[#allocation8] sm:$0xff] %vm15465_vm14, %v6912_v2 }
 0xc19   : > { %v6943_v61 = vpop.f32.mrf.mxu2 }
 0xc1a   : > { %v6944_v49 = vadd.f32 %v7504_v11, %v6943_v61 }
 0xc1c   : > { %vm6946_vm15 = vcmp.gt.f32.partialorder %v6944_v49, 0.0  ;;  %v6947_v16 = vmul.f32 0.01, %v6944_v49 }
 0xc1e   : > { %v6948_v3 = vsel %vm6946_vm15, %v6944_v49, %v6947_v16 }
 0xc1f   : > { %7414 = vmatmul.msk.f32.vlgmr.msra.gmra.mxu3 %vm6604_vm4, %v6948_v3 }
 0xc20   : > { %8059 = shalt.err (!%p8056_p7)
}
 0xc21   : > { %7424 = dma.vmem_to_hbm [thread:$0]  (%p8309_p5), %s7012_s23, 128, %s7014_s27, %s6985_s21  }
 0xc22   : > { %s15466_s30 = sld [smem:[#allocation13_spill]]  ;;  %s7025_s3 = sshll.u32 %s14029_s20, 4  ;;  %s7026_s3 = int_to_ptr.hbm [resolvable:$true] %s7025_s3 }
 0xc23   : > { %s8161_s18 = smov [#allocation8]   ;;  %s15467_s25 = sld [smem:[#allocation221_spill]] }
 0xc24   : > { %s7023_s26 = sshll.u32 %s8161_s18, 4  ;;  %s15468_s8 = sld [smem:[#allocation220_spill]]  ;;  %s7024_s26 = int_to_ptr.vmem [resolvable:$true] %s7023_s26 }
 0xc25   : > { %7426 = dma.vmem_to_hbm [thread:$0]  (%p438_p2), %s7024_s26, 128, %s7026_s3, [#allocation7]  }
 0xc26   : > { %s15469_s23 = scalar_lea.vmem [#allocation4], %s8323_s0 }
 0xc27   : > { %s6997_s27 = sshll.u32 %s15469_s23, 4  ;;  %s15470_s29 = smov %s15469_s23  ;;  %s6998_s27 = int_to_ptr.vmem [resolvable:$true] %s6997_s27 }
 0xc28   : > { %s15471_s1 = sand.u32 1, %s15466_s30  }
 0xc29   : > { %s6995_s28 = scalar_lea.hbm %s15467_s25, %s7417_s22  ;;  %s6980_s18 = scalar_lea.sflag [#allocation5], %s15471_s1 }
 0xc2a   : > { %v7505_v22 = vld [vmem:[%s15468_s8] ss:$0 sm:$0xff]  ;;  %s6999_s21 = sshll.u32 %s6995_s28, 4  ;;  %s8108_s22 = scalar_lea.hbm %s15467_s25, 32  ;;  %s7000_s21 = int_to_ptr.hbm [resolvable:$true] %s6999_s21 }
 0xc2b   : > { %s8102_s3 = sshra.s32 %s7000_s21, 4  ;;  %s8103_s3 = int_to_ptr.hbm [resolvable:$true] %s8102_s3 }
 0xc2c   : > { %s8104_s26 = scalar_lea.hbm %s8103_s3, 8  ;;  %p8109_p11 = scmp.lt.s32.totalorder %s8103_s3, %s15467_s25 }
 0xc2d   : > { %p8105_p8 = scmp.ne.s32.totalorder %s8103_s3, %s8104_s26  ;;  %p8110_p12 = scmp.lt.s32.totalorder %s8108_s22, %s8104_s26 }
 0xc2f   : > { %p8106_p9 = pnand %p8105_p8, %p8309_p5  ;;  %p8111_p13 = por %p8110_p12, %p8109_p11 }
 0xc31   : > { %p8107_p10 = pneg %p8106_p9 }
 0xc33   : > { %p8112_p0 = pnand %p8111_p13, %p8107_p10 }
 0xca2   : > { %v6975_v14 = vpop.f32.mrf.mxu3 }
 0xca3   : > { %v6976_v55 = vadd.f32 %v7505_v22, %v6975_v14 }
 0xca5   : > { %6978 = vst [vmem:[%s15470_s29] sm:$0xff] %v6976_v55 }
 0xca6   : > { %8115 = shalt.err (!%p8112_p0)
}
 0xca7   : > { %7423 = dma.vmem_to_hbm [thread:$0]  (%p8309_p5), %s6998_s27, 128, %s7000_s21, %s6980_s18  }
 0xca8   : > { %8133 = dma.done.wait (%p438_p2), [#allocation7], 128  }
 0xca9   : > { %8135 = vsyncadd (%p438_p2), [#allocation7], 4294967168 }
 0xcaa PF: > { %s15472_s0 = sld [smem:[#allocation15_spill]] }
 0xcab   : > { %s15473_s30 = sld [smem:[#allocation12_spill]] }
 0xcb0   : > { %p7440_p1 = scmp.ge.s32.totalorder %s15472_s0, 2 }
 0xcb1   : > { %s7042_s24 = sand.u32 1, %s15473_s30  }
 0xcb2   : > { %p7432_p3 = pnand %p7440_p1, %p8313_p6  ;;  %s7043_s23 = scalar_lea.sflag [#allocation5], %s7042_s24 }
 0xcb4   : > { %p7433_p4 = pneg %p7432_p3 }
 0xcb6   : > { %8137 = dma.done.wait (%p7433_p4), %s7043_s23, 128  }
 0xcb7   : > { %8139 = vsyncadd (%p7433_p4), %s7043_s23, 4294967168  ;;  %s15475_s4 = sadd.s32 4294967294, %s15472_s0  }
 0xcb8   : > { %s7052_s27 = sand.u32 1, %s15475_s4  }
 0xcb9   : > { %s7053_s21 = scalar_lea.sflag [#allocation7], %s7052_s27 }
 0xcba   : > { %8141 = dma.done.wait (%p7433_p4), %s7053_s21, 128  }
 0xcbb   : > { %8143 = vsyncadd (%p7433_p4), %s7053_s21, 4294967168  ;;  %s15476_s24 = sld [smem:[#allocation16_spill]] }
 0xcbc   : > { %s15477_s1 = sld [smem:[#allocation13_spill]] }
 0xcbd   : > { %s15478_s22 = sld [smem:[#allocation14_spill]] }
 0xcbe   : > { %s15479_s23 = sld [smem:[#allocation17_spill]] }
 0xcc1   : > { %p34_p2 = scmp.ge.s32.totalorder %s15476_s24, 6  }
 0xcc3   :  { %36 = sbr.rel (!%p34_p2) target bundleno = 17 (0x11), region = 180 }
 0xcc8   :  { %7059 = vsyncpa [#allocation5], 1 }
 0xcc9   :  { %7061 = vsyncpa [#allocation5 + $0x1], 1 }
 0xcca   :  { %7062 = vsyncpa [#allocation7], 1 }
 0xccb   :  { %7064 = vsyncpa [#allocation7 + $0x1], 1 }

</bundles_post_ra>
